<compile_context>
chip_gen: v5e
topology: v5e:2x2
jax: 0.10.0
libtpu: 0.0.40
codegen_flags: <defaults>
</compile_context>

<pallas_src>
import math
from functools import partial

import jax
import jax.numpy as jnp
from jax.experimental import pallas as pl
from jax.experimental.pallas import tpu as pltpu


# ---------------------------------------------------------------------------
# In-kernel helpers
# ---------------------------------------------------------------------------
def _gelu(x):
    # TODO(synk): F.gelu default is the exact erf form; using the tanh approximation
    # (max abs err ~3e-4) since erf lowering is not guaranteed in Mosaic.
    c0 = math.sqrt(2.0 / math.pi)
    return 0.5 * x * (1.0 + jnp.tanh(c0 * (x + 0.044715 * x * x * x)))


# ---------------------------------------------------------------------------
# Fused MCRM kernel: sal-conv+sigmoid, per-patch cross-attention, LN, FFN, LN.
# Tokens are patch-packed: (tokens, 4*C) with patch p on lanes [p*C, (p+1)*C).
# Attention score lanes use the interleaved layout  lane = key_slot * G + group,
# group = patch*num_heads + head, G = 4*num_heads.
# ---------------------------------------------------------------------------
def mcrm_fused_kernel(loc_ref, glb_ref, wsal_ref, wq_ref, kT_ref, vden_ref, wo_ref,
                      w3_ref, b3_ref, w4_ref, mavg_ref, cb_ref, sbias_ref,
                      src_ref, amap_ref, *, group_stride, tpu_native):
    f32 = jnp.float32
    cdt = jnp.bfloat16 if tpu_native else jnp.float32
    c4 = src_ref.shape[1]
    width = sbias_ref.shape[1]

    def bdot(a, b):
        # activations cast to the compute dtype; weights are pre-cast in the wrapper;
        # f32 accumulation on the MXU.
        return jnp.dot(a.astype(cdt), b, preferred_element_type=f32)

    # fused tiny-constant slab: bsal, bq, bo, b4, g1, be1, g2, be2
    cb = cb_ref[...]
    bsal, bq, bo, b4 = cb[0:1], cb[1:2], cb[2:3], cb[3:4]
    g1, be1, g2, be2 = cb[4:5], cb[5:6], cb[6:7], cb[7:8]

    # --- token attention map: sigmoid(1x1 sal conv), broadcast over each patch block
    amap = jax.nn.sigmoid(bdot(glb_ref[...], wsal_ref[...]) + bsal)          # (TL, 4C)
    amap_ref[...] = amap.astype(amap_ref.dtype)

    x = loc_ref[...] * amap                                                  # (TL, 4C)

    # --- packed (block-diagonal) query projection; K/V are baked into kT/vden consts
    q = bdot(x, wq_ref[...]) + bq                                            # (TL, 4C)
    s = bdot(q, kT_ref[...]) + sbias_ref[...]                                # (TL, W)

    # --- segmented softmax max over each group's key slots.  With the interleaved
    #     layout, 128-aligned half folds + cyclic rolls by multiples of G give the
    #     exact per-group max broadcast to every lane.
    m = s
    w = width
    while w > 128:
        w //= 2
        m = jnp.maximum(m[:, :w], m[:, w:])
    shift = group_stride
    while shift < 128:
        rolled = pltpu.roll(m, shift, axis=1) if tpu_native else jnp.roll(m, shift, axis=1)
        m = jnp.maximum(m, rolled)
        shift *= 2
    m_full = jnp.concatenate([m] * (width // 128), axis=1)                   # (TL, W)

    e = jnp.exp(s - m_full)                                                  # (TL, W)
    # context and per-group softmax denominator from a single matmul:
    # vden = [V_expanded | valid-key ones], both block-structured per group.
    cd = bdot(e, vden_ref[...])                                              # (TL, 2*4C)
    denom = cd[:, c4:]
    inv = pl.reciprocal(denom, approx=True) if tpu_native else 1.0 / denom
    ctx = cd[:, :c4] * inv                                                   # (TL, 4C)

    attn = bdot(ctx, wo_ref[...]) + bo                                       # (TL, 4C)

    mavg = mavg_ref[...]

    def block_ln(y, gamma, beta, eps=1e-5):
        # per-patch LayerNorm over each 32-lane block; mu and E[y^2] via independent
        # block-averaging matmuls (no serialization through the MXU result path).
        mu = jnp.dot(y, mavg, preferred_element_type=f32)
        ms = jnp.dot(y * y, mavg, preferred_element_type=f32)
        var = jnp.maximum(ms - mu * mu, 0.0)
        return (y - mu) * jax.lax.rsqrt(var + eps) * gamma + beta

    # residual + norm1 (dropouts are identity in eval mode)
    src = block_ln(x + attn, g1, be1)
    # FFN: linear3 -> gelu -> linear4, residual, norm2
    h1 = _gelu(bdot(src, w3_ref[...]) + b3_ref[...])
    h2 = bdot(h1, w4_ref[...]) + b4
    src = block_ln(src + h2, g2, be2)
    src_ref[...] = src.astype(src_ref.dtype)


def run_mcrm_fused(loc_packed, glb_packed, consts, *, group_stride, tpu_native, tl=128):
    L, c4 = loc_packed.shape
    n_t = L // tl
    width = consts["sbias"].shape[1]

    tok = lambda: pl.BlockSpec((tl, c4), lambda t: (t, 0))
    const = lambda shape: pl.BlockSpec(shape, lambda t: (0, 0))

    kernel = partial(mcrm_fused_kernel, group_stride=group_stride, tpu_native=tpu_native)

    return pl.pallas_call(
        kernel,
        out_shape=(jax.ShapeDtypeStruct((L, c4), jnp.float32),    # refined src tokens
                   jax.ShapeDtypeStruct((L, c4), jnp.bfloat16)),  # attention map tokens
        grid=(n_t,),
        in_specs=[
            tok(), tok(),
            const((c4, c4)),            # wsal
            const((c4, c4)),            # wq
            const((c4, width)),         # kT_exp (scale + k bias baked in)
            const((width, 2 * c4)),     # vden_exp = [V | ones]
            const((c4, c4)),            # wo
            const((c4, 2 * c4)),        # w3
            const((1, 2 * c4)),         # b3
            const((2 * c4, c4)),        # w4
            const((c4, c4)),            # block-averaging matrix (f32)
            const((8, c4)),             # fused bias / LN-affine slab (f32)
            const((1, width)),          # key-padding score bias (f32)
        ],
        out_specs=(tok(), tok()),
        compiler_params=pltpu.CompilerParams(
            dimension_semantics=("parallel",),
            vmem_limit_bytes=32 * 1024 * 1024),
    )(loc_packed, glb_packed,
      consts["wsal"], consts["wq"], consts["kT"], consts["vden"], consts["wo"],
      consts["w3"], consts["b3"], consts["w4"], consts["mavg"],
      consts["cb"], consts["sbias"])


# ---------------------------------------------------------------------------
# Parameter packing helpers
# ---------------------------------------------------------------------------
def _block_diag(blocks):
    """blocks: (n, A, B) -> (n*A, n*B) block diagonal."""
    n, a, b = blocks.shape
    out = jnp.zeros((n * a, n * b), blocks.dtype)
    for i in range(n):
        out = out.at[i * a:(i + 1) * a, i * b:(i + 1) * b].set(blocks[i])
    return out


def _pack_static_params(p, c, cdt):
    n = 4
    c4 = n * c
    f32 = jnp.float32
    rep = lambda w: jnp.broadcast_to(w[None], (n,) + w.shape)
    tile_row = lambda r: jnp.tile(r, (1, n))
    wsal_block = p["w_sal"].reshape(c, 1) * jnp.ones((1, c), f32)
    cb = jnp.concatenate([
        jnp.tile(p["b_sal"].reshape(1, 1), (1, c4)),   # bsal
        p["bq"].reshape(1, c4),                        # bq
        p["bo"].reshape(1, c4),                        # bo
        tile_row(p["b4"]),                             # b4
        tile_row(p["g1"]), tile_row(p["be1"]),         # norm1 gamma/beta
        tile_row(p["g2"]), tile_row(p["be2"]),         # norm2 gamma/beta
    ], axis=0).astype(f32)                             # (8, 4C)
    return {
        "wsal": _block_diag(rep(wsal_block)).astype(cdt),
        "wq": _block_diag(p["wq_t"]).astype(cdt),
        "wo": _block_diag(p["wo_t"]).astype(cdt),
        "w3": _block_diag(rep(p["w3_t"])).astype(cdt),
        "w4": _block_diag(rep(p["w4_t"])).astype(cdt),
        "b3": tile_row(p["b3"]).astype(f32),
        "mavg": _block_diag(rep(jnp.full((c, c), 1.0 / c, f32))),
        "cb": cb,
    }


def _build_attention_constants(pools, p, c, num_heads, cdt):
    """K/V projections hoisted out of the kernel and expanded along the lane axis.

    Score lane layout: lane = key_slot * G + group, group = patch*num_heads + head.
    kT_exp[(g*hd+d), (k*G+g)] = scale * K[patch, k, head*hd+d]   (zero elsewhere)
    vden_exp rows = score lanes; first 4C columns hold V, last 4C hold the valid-key
    ones mask (so the softmax denominator falls out of the same matmul).
    """
    f32 = jnp.float32
    n_patch = 4
    S = pools.shape[-1]
    hd = c // num_heads
    G = n_patch * num_heads
    c4 = n_patch * c
    scale = 1.0 / math.sqrt(hd)

    width = 128
    while width < S * G:
        width *= 2
    Sslot = width // G

    pools_t = pools.transpose(0, 2, 1)                                        # (4, S, C)
    K = jnp.einsum('psc,pcd->psd', pools_t, p["wk_t"]) + p["bk"]              # (4, S, C)
    V = jnp.einsum('psc,pcd->psd', pools_t, p["wv_t"]) + p["bv"]              # (4, S, C)

    A = (scale * K).transpose(0, 2, 1).reshape(G, hd, S)                      # (G, hd, S)
    B = V.transpose(0, 2, 1).reshape(G, hd, S)                                # (G, hd, S)
    Apad = jnp.pad(A, ((0, 0), (0, 0), (0, Sslot - S)))                       # (G, hd, Ss)
    Bpad = jnp.pad(B, ((0, 0), (0, 0), (0, Sslot - S)))
    eye = jnp.eye(G, dtype=f32)

    kT_exp = (Apad[:, :, :, None] * eye[:, None, None, :]).reshape(G * hd, Sslot * G)

    v4 = eye[None, :, :, None] * Bpad.transpose(2, 0, 1)[:, None, :, :]       # (Ss,G,G,hd)
    v_part = v4.reshape(Sslot * G, G * hd)
    valid = (jnp.arange(Sslot) < S).astype(f32)                               # (Ss,)
    ones4 = valid[:, None, None, None] * eye[None, :, :, None] * jnp.ones((1, 1, 1, hd), f32)
    ones_part = ones4.reshape(Sslot * G, G * hd)
    vden = jnp.concatenate([v_part, ones_part], axis=1)                       # (W, 2*4C)

    sbias = jnp.repeat(jnp.where(valid > 0, 0.0, -1e30).astype(f32), G)[None, :]  # (1, W)

    return {"kT": kT_exp.astype(cdt), "vden": vden.astype(cdt), "sbias": sbias}


# ---------------------------------------------------------------------------
# Full MCRM forward (JAX index glue around the fused Pallas kernel)
# ---------------------------------------------------------------------------
def mcrm_forward(x, params, pool_ratios=(4, 8, 16), num_heads=4):
    b, c, h, w = x.shape
    assert b == 5, "MCRM expects 4 local patches + 1 global view along the batch dim"
    assert c % num_heads == 0
    loc, glb = x[:4], x[4:5]
    h2, w2 = h // 2, w // 2
    L, c4 = h * w, 4 * c
    assert c4 % 128 == 0, "patch-packed lane width must be a multiple of 128"
    G = 4 * num_heads
    assert 128 % G == 0 and (G & (G - 1)) == 0

    tpu_native = jax.default_backend() == "tpu"
    cdt = jnp.bfloat16 if tpu_native else jnp.float32

    # --- pack the 4 local patches along the lane axis: (L, 4C) ---
    loc_packed = loc.transpose(2, 3, 0, 1).reshape(L, c4)

    # --- per-patch nearest-upsampled global tokens (for the in-kernel sal conv) ---
    glb_up = jnp.repeat(jnp.repeat(glb[0], 2, axis=1), 2, axis=2)             # (C, 2H, 2W)
    glb_patches = glb_up.reshape(c, 2, h, 2, w).transpose(1, 3, 0, 2, 4).reshape(4, c, h, w)
    glb_packed = glb_patches.transpose(2, 3, 0, 1).reshape(L, c4)

    # --- patched global + multi-scale adaptive avg pools (exact block means) ---
    pg = glb[0].reshape(c, 2, h2, 2, w2).transpose(1, 3, 0, 2, 4).reshape(4, c, h2, w2)
    pool_list = []
    for r in pool_ratios:
        th, tw = int(round(h / r)), int(round(w / r))
        assert h2 % th == 0 and w2 % tw == 0, "adaptive pool assumed uniform at these shapes"
        kh, kw = h2 // th, w2 // tw
        pooled = pg.reshape(4, c, th, kh, tw, kw).mean(axis=(3, 5))           # (4, C, th, tw)
        pool_list.append(pooled.reshape(4, c, th * tw))
    pools = jnp.concatenate(pool_list, axis=2)                                # (4, C, S)

    consts = _pack_static_params(params, c, cdt)
    consts.update(_build_attention_constants(pools, params, c, num_heads, cdt))

    # --- pad token axis to the 128-token block (keeps n_t >= 2 at the shipped shape) ---
    tl = 128
    Lpad = ((L + tl - 1) // tl) * tl
    if Lpad != L:
        loc_packed = jnp.pad(loc_packed, ((0, Lpad - L), (0, 0)))
        glb_packed = jnp.pad(glb_packed, ((0, Lpad - L), (0, 0)))

    src_packed, amap_packed = run_mcrm_fused(
        loc_packed, glb_packed, consts,
        group_stride=G, tpu_native=tpu_native, tl=tl)
    src_packed = src_packed[:L]
    amap_packed = amap_packed[:L].astype(jnp.float32)

    # --- unpack refined tokens: (L, 4C) -> (4, C, H, W) ---
    src = src_packed.reshape(h, w, 4, c).transpose(2, 3, 0, 1)

    # --- glb = glb + nearest-downsample(patches2image(src)) ---
    src_img = src.reshape(2, 2, c, h, w).transpose(2, 0, 3, 1, 4).reshape(c, 2 * h, 2 * w)
    glb_new = glb + src_img[:, ::2, ::2][None]
    out = jnp.concatenate([src, glb_new], axis=0)                             # (5, C, H, W)

    # --- token attention map at global resolution (1, 1, 2H, 2W) ---
    amap_pp = amap_packed.reshape(h, w, 4, c)[:, :, :, 0].transpose(2, 0, 1)  # (4, H, W)
    amap_big = amap_pp.reshape(2, 2, h, w).transpose(0, 2, 1, 3).reshape(2 * h, 2 * w)
    return out, amap_big[None, None]


# ---------------------------------------------------------------------------
# Deterministic parameter init (shapes follow the PyTorch __init__)
# ---------------------------------------------------------------------------
def init_params(key, c):
    ks = jax.random.split(key, 10)

    def nrm(k, shape, s=0.05):
        return s * jax.random.normal(k, shape, jnp.float32)

    in_w = nrm(ks[0], (4, 3 * c, c))      # 4x MultiheadAttention in_proj_weight
    in_b = nrm(ks[1], (4, 3 * c))         # 4x in_proj_bias
    out_w = nrm(ks[2], (4, c, c))         # 4x out_proj.weight
    out_b = nrm(ks[3], (4, c))            # 4x out_proj.bias
    w3 = nrm(ks[4], (2 * c, c)); b3 = nrm(ks[5], (2 * c,))      # linear3
    w4 = nrm(ks[6], (c, 2 * c)); b4 = nrm(ks[7], (c,))          # linear4
    w_sal = nrm(ks[8], (1, c, 1, 1)); b_sal = nrm(ks[9], (1,))  # sal_conv (1x1)

    return {
        # weights pre-transposed to (in, out) so kernels compute x @ W
        "wq_t": jnp.transpose(in_w[:, :c, :], (0, 2, 1)),
        "wk_t": jnp.transpose(in_w[:, c:2 * c, :], (0, 2, 1)),
        "wv_t": jnp.transpose(in_w[:, 2 * c:, :], (0, 2, 1)),
        "bq": in_b[:, None, :c],
        "bk": in_b[:, None, c:2 * c],
        "bv": in_b[:, None, 2 * c:],
        "wo_t": jnp.transpose(out_w, (0, 2, 1)),
        "bo": out_b[:, None, :],
        "w3_t": w3.T, "b3": b3[None, :],
        "w4_t": w4.T, "b4": b4[None, :],
        "g1": jnp.ones((1, c), jnp.float32), "be1": jnp.zeros((1, c), jnp.float32),
        "g2": jnp.ones((1, c), jnp.float32), "be2": jnp.zeros((1, c), jnp.float32),
        "w_sal": w_sal.reshape(1, c),     # 1x1 conv as a (1, C) row vector
        "b_sal": b_sal.reshape(1, 1),
    }


if __name__ == "__main__":
    D_MODEL, NUM_HEADS, H, W = 32, 4, 16, 16
    key = jax.random.PRNGKey(0)
    kx, kp = jax.random.split(key)
    # x is (4 local patches + 1 global) stacked along the batch dim, NCHW.
    x = jax.random.normal(kx, (5, D_MODEL, H, W), jnp.float32)
    params = init_params(kp, D_MODEL)

    fwd = jax.jit(partial(mcrm_forward, num_heads=NUM_HEADS))
    out, amap = fwd(x, params)
    jax.block_until_ready((out, amap))

    assert out.shape == (5, D_MODEL, H, W)
    assert amap.shape == (1, 1, 2 * H, 2 * W)
    assert bool(jnp.all(jnp.isfinite(out))) and bool(jnp.all(jnp.isfinite(amap)))
    print("KERNEL_OK")
</pallas_src>

<mosaic_0001>
module attributes {stable_mosaic.version = 11 : i64} {
  func.func @mcrm_fused_kernel(%arg0: i32, %arg1: memref<128x128xf32, #tpu.memory_space<vmem>>, %arg2: memref<128x128xf32, #tpu.memory_space<vmem>>, %arg3: memref<128x128xf32, #tpu.memory_space<vmem>>, %arg4: memref<128x128xf32, #tpu.memory_space<vmem>>, %arg5: memref<128x512xf32, #tpu.memory_space<vmem>>, %arg6: memref<512x256xf32, #tpu.memory_space<vmem>>, %arg7: memref<128x128xf32, #tpu.memory_space<vmem>>, %arg8: memref<128x256xf32, #tpu.memory_space<vmem>>, %arg9: memref<1x256xf32, #tpu.memory_space<vmem>>, %arg10: memref<256x128xf32, #tpu.memory_space<vmem>>, %arg11: memref<128x128xf32, #tpu.memory_space<vmem>>, %arg12: memref<8x128xf32, #tpu.memory_space<vmem>>, %arg13: memref<1x512xf32, #tpu.memory_space<vmem>>, %arg14: memref<128x128xf32, #tpu.memory_space<vmem>>, %arg15: memref<128x128xbf16, #tpu.memory_space<vmem>>) attributes {dimension_semantics = [#tpu.dimension_semantics<parallel>], iteration_bounds = array<i64: 2>, scalar_prefetch = 0 : i64, scratch_operands = 0 : i64, tpu.core_type = #tpu.core_type<tc>, window_params = [{transform_indices = @transform_0, window_bounds = array<i64: 128, 128>}, {transform_indices = @transform_1, window_bounds = array<i64: 128, 128>}, {pipeline_mode = #tpu.pipeline_mode<synchronous>, transform_indices = @transform_2, window_bounds = array<i64: 128, 128>}, {pipeline_mode = #tpu.pipeline_mode<synchronous>, transform_indices = @transform_3, window_bounds = array<i64: 128, 128>}, {pipeline_mode = #tpu.pipeline_mode<synchronous>, transform_indices = @transform_4, window_bounds = array<i64: 128, 512>}, {pipeline_mode = #tpu.pipeline_mode<synchronous>, transform_indices = @transform_5, window_bounds = array<i64: 512, 256>}, {pipeline_mode = #tpu.pipeline_mode<synchronous>, transform_indices = @transform_6, window_bounds = array<i64: 128, 128>}, {pipeline_mode = #tpu.pipeline_mode<synchronous>, transform_indices = @transform_7, window_bounds = array<i64: 128, 256>}, {pipeline_mode = #tpu.pipeline_mode<synchronous>, transform_indices = @transform_8, window_bounds = array<i64: 1, 256>}, {pipeline_mode = #tpu.pipeline_mode<synchronous>, transform_indices = @transform_9, window_bounds = array<i64: 256, 128>}, {pipeline_mode = #tpu.pipeline_mode<synchronous>, transform_indices = @transform_10, window_bounds = array<i64: 128, 128>}, {pipeline_mode = #tpu.pipeline_mode<synchronous>, transform_indices = @transform_11, window_bounds = array<i64: 8, 128>}, {pipeline_mode = #tpu.pipeline_mode<synchronous>, transform_indices = @transform_12, window_bounds = array<i64: 1, 512>}, {transform_indices = @transform_13, window_bounds = array<i64: 128, 128>}, {transform_indices = @transform_14, window_bounds = array<i64: 128, 128>}]} {
    %c0 = arith.constant 0 : index
    %c0_0 = arith.constant 0 : index
    %0 = vector.load %arg12[%c0, %c0_0] : memref<8x128xf32, #tpu.memory_space<vmem>>, vector<8x128xf32>
    %1 = vector.extract_strided_slice %0 {offsets = [0, 0], sizes = [1, 128], strides = [1, 1]} : vector<8x128xf32> to vector<1x128xf32>
    %2 = vector.extract_strided_slice %0 {offsets = [1, 0], sizes = [1, 128], strides = [1, 1]} : vector<8x128xf32> to vector<1x128xf32>
    %3 = vector.extract_strided_slice %0 {offsets = [2, 0], sizes = [1, 128], strides = [1, 1]} : vector<8x128xf32> to vector<1x128xf32>
    %4 = vector.extract_strided_slice %0 {offsets = [3, 0], sizes = [1, 128], strides = [1, 1]} : vector<8x128xf32> to vector<1x128xf32>
    %5 = vector.extract_strided_slice %0 {offsets = [4, 0], sizes = [1, 128], strides = [1, 1]} : vector<8x128xf32> to vector<1x128xf32>
    %6 = vector.extract_strided_slice %0 {offsets = [5, 0], sizes = [1, 128], strides = [1, 1]} : vector<8x128xf32> to vector<1x128xf32>
    %7 = vector.extract_strided_slice %0 {offsets = [6, 0], sizes = [1, 128], strides = [1, 1]} : vector<8x128xf32> to vector<1x128xf32>
    %8 = vector.extract_strided_slice %0 {offsets = [7, 0], sizes = [1, 128], strides = [1, 1]} : vector<8x128xf32> to vector<1x128xf32>
    %c0_1 = arith.constant 0 : index
    %c0_2 = arith.constant 0 : index
    %9 = vector.load %arg2[%c0_1, %c0_2] : memref<128x128xf32, #tpu.memory_space<vmem>>, vector<128x128xf32>
    %c0_3 = arith.constant 0 : index
    %c0_4 = arith.constant 0 : index
    %10 = vector.load %arg3[%c0_3, %c0_4] : memref<128x128xf32, #tpu.memory_space<vmem>>, vector<128x128xf32>
    %cst = arith.constant dense<0.000000e+00> : vector<128x128xf32>
    %11 = tpu.matmul %9, %10, %cst {dimension_numbers = #tpu.dot_dimension_numbers<[1], [0], [0], [1], [0, 0, 1, 1], [], []>} : vector<128x128xf32>, vector<128x128xf32>, vector<128x128xf32> -> vector<128x128xf32>
    %12 = vector.broadcast %1 : vector<1x128xf32> to vector<128x128xf32>
    %13 = arith.addf %11, %12 : vector<128x128xf32>
    %14 = arith.negf %13 : vector<128x128xf32>
    %15 = math.exp %14 : vector<128x128xf32>
    %cst_5 = arith.constant 1.000000e+00 : f32
    %16 = vector.broadcast %cst_5 : f32 to vector<128x128xf32>
    %17 = arith.addf %16, %15 : vector<128x128xf32>
    %18 = arith.divf %16, %17 : vector<128x128xf32>
    %19 = arith.truncf %18 : vector<128x128xf32> to vector<128x128xbf16>
    %c0_6 = arith.constant 0 : index
    %c0_7 = arith.constant 0 : index
    %20 = vector.load %arg15[%c0_6, %c0_7] : memref<128x128xbf16, #tpu.memory_space<vmem>>, vector<128x128xbf16>
    tpu.vector_store %arg15[%c0_6, %c0_7], %19 {strides = array<i32>} : memref<128x128xbf16, #tpu.memory_space<vmem>>, vector<128x128xbf16>,
    %c0_8 = arith.constant 0 : index
    %c0_9 = arith.constant 0 : index
    %21 = vector.load %arg1[%c0_8, %c0_9] : memref<128x128xf32, #tpu.memory_space<vmem>>, vector<128x128xf32>
    %22 = arith.mulf %21, %18 : vector<128x128xf32>
    %c0_10 = arith.constant 0 : index
    %c0_11 = arith.constant 0 : index
    %23 = vector.load %arg4[%c0_10, %c0_11] : memref<128x128xf32, #tpu.memory_space<vmem>>, vector<128x128xf32>
    %cst_12 = arith.constant dense<0.000000e+00> : vector<128x128xf32>
    %24 = tpu.matmul %22, %23, %cst_12 {dimension_numbers = #tpu.dot_dimension_numbers<[1], [0], [0], [1], [0, 0, 1, 1], [], []>} : vector<128x128xf32>, vector<128x128xf32>, vector<128x128xf32> -> vector<128x128xf32>
    %25 = vector.broadcast %2 : vector<1x128xf32> to vector<128x128xf32>
    %26 = arith.addf %24, %25 : vector<128x128xf32>
    %c0_13 = arith.constant 0 : index
    %c0_14 = arith.constant 0 : index
    %27 = vector.load %arg5[%c0_13, %c0_14] : memref<128x512xf32, #tpu.memory_space<vmem>>, vector<128x512xf32>
    %cst_15 = arith.constant dense<0.000000e+00> : vector<128x512xf32>
    %28 = tpu.matmul %26, %27, %cst_15 {dimension_numbers = #tpu.dot_dimension_numbers<[1], [0], [0], [1], [0, 0, 1, 1], [], []>} : vector<128x128xf32>, vector<128x512xf32>, vector<128x512xf32> -> vector<128x512xf32>
    %c0_16 = arith.constant 0 : index
    %c0_17 = arith.constant 0 : index
    %29 = vector.load %arg13[%c0_16, %c0_17] : memref<1x512xf32, #tpu.memory_space<vmem>>, vector<1x512xf32>
    %30 = vector.broadcast %29 : vector<1x512xf32> to vector<128x512xf32>
    %31 = arith.addf %28, %30 : vector<128x512xf32>
    %32 = vector.extract_strided_slice %31 {offsets = [0, 0], sizes = [128, 256], strides = [1, 1]} : vector<128x512xf32> to vector<128x256xf32>
    %33 = vector.extract_strided_slice %31 {offsets = [0, 256], sizes = [128, 256], strides = [1, 1]} : vector<128x512xf32> to vector<128x256xf32>
    %34 = arith.maximumf %32, %33 : vector<128x256xf32>
    %35 = vector.extract_strided_slice %34 {offsets = [0, 0], sizes = [128, 128], strides = [1, 1]} : vector<128x256xf32> to vector<128x128xf32>
    %36 = vector.extract_strided_slice %34 {offsets = [0, 128], sizes = [128, 128], strides = [1, 1]} : vector<128x256xf32> to vector<128x128xf32>
    %37 = arith.maximumf %35, %36 : vector<128x128xf32>
    %38 = vector.extract_strided_slice %37 {offsets = [0, 112], sizes = [128, 16], strides = [1, 1]} : vector<128x128xf32> to vector<128x16xf32>
    %39 = vector.extract_strided_slice %37 {offsets = [0, 0], sizes = [128, 112], strides = [1, 1]} : vector<128x128xf32> to vector<128x112xf32>
    %40 = tpu.concatenate %38, %39 in 1 : vector<128x16xf32>, vector<128x112xf32> -> vector<128x128xf32>
    %41 = arith.maximumf %37, %40 : vector<128x128xf32>
    %42 = vector.extract_strided_slice %41 {offsets = [0, 96], sizes = [128, 32], strides = [1, 1]} : vector<128x128xf32> to vector<128x32xf32>
    %43 = vector.extract_strided_slice %41 {offsets = [0, 0], sizes = [128, 96], strides = [1, 1]} : vector<128x128xf32> to vector<128x96xf32>
    %44 = tpu.concatenate %42, %43 in 1 : vector<128x32xf32>, vector<128x96xf32> -> vector<128x128xf32>
    %45 = arith.maximumf %41, %44 : vector<128x128xf32>
    %46 = vector.extract_strided_slice %45 {offsets = [0, 64], sizes = [128, 64], strides = [1, 1]} : vector<128x128xf32> to vector<128x64xf32>
    %47 = vector.extract_strided_slice %45 {offsets = [0, 0], sizes = [128, 64], strides = [1, 1]} : vector<128x128xf32> to vector<128x64xf32>
    %48 = tpu.concatenate %46, %47 in 1 : vector<128x64xf32>, vector<128x64xf32> -> vector<128x128xf32>
    %49 = arith.maximumf %45, %48 : vector<128x128xf32>
    %50 = tpu.concatenate %49, %49, %49, %49 in 1 : vector<128x128xf32>, vector<128x128xf32>, vector<128x128xf32>, vector<128x128xf32> -> vector<128x512xf32>
    %51 = arith.subf %31, %50 : vector<128x512xf32>
    %52 = math.exp %51 : vector<128x512xf32>
    %c0_18 = arith.constant 0 : index
    %c0_19 = arith.constant 0 : index
    %53 = vector.load %arg6[%c0_18, %c0_19] : memref<512x256xf32, #tpu.memory_space<vmem>>, vector<512x256xf32>
    %cst_20 = arith.constant dense<0.000000e+00> : vector<128x256xf32>
    %54 = tpu.matmul %52, %53, %cst_20 {dimension_numbers = #tpu.dot_dimension_numbers<[1], [0], [0], [1], [0, 0, 1, 1], [], []>} : vector<128x512xf32>, vector<512x256xf32>, vector<128x256xf32> -> vector<128x256xf32>
    %55 = vector.extract_strided_slice %54 {offsets = [0, 128], sizes = [128, 128], strides = [1, 1]} : vector<128x256xf32> to vector<128x128xf32>
    %cst_21 = arith.constant 1.000000e+00 : f32
    %56 = vector.broadcast %cst_21 : f32 to vector<128x128xf32>
    %57 = arith.divf %56, %55 : vector<128x128xf32>
    %58 = vector.extract_strided_slice %54 {offsets = [0, 0], sizes = [128, 128], strides = [1, 1]} : vector<128x256xf32> to vector<128x128xf32>
    %59 = arith.mulf %58, %57 : vector<128x128xf32>
    %c0_22 = arith.constant 0 : index
    %c0_23 = arith.constant 0 : index
    %60 = vector.load %arg7[%c0_22, %c0_23] : memref<128x128xf32, #tpu.memory_space<vmem>>, vector<128x128xf32>
    %cst_24 = arith.constant dense<0.000000e+00> : vector<128x128xf32>
    %61 = tpu.matmul %59, %60, %cst_24 {dimension_numbers = #tpu.dot_dimension_numbers<[1], [0], [0], [1], [0, 0, 1, 1], [], []>} : vector<128x128xf32>, vector<128x128xf32>, vector<128x128xf32> -> vector<128x128xf32>
    %62 = vector.broadcast %3 : vector<1x128xf32> to vector<128x128xf32>
    %63 = arith.addf %61, %62 : vector<128x128xf32>
    %c0_25 = arith.constant 0 : index
    %c0_26 = arith.constant 0 : index
    %64 = vector.load %arg11[%c0_25, %c0_26] : memref<128x128xf32, #tpu.memory_space<vmem>>, vector<128x128xf32>
    %65 = arith.addf %22, %63 : vector<128x128xf32>
    %cst_27 = arith.constant dense<0.000000e+00> : vector<128x128xf32>
    %66 = tpu.matmul %65, %64, %cst_27 {dimension_numbers = #tpu.dot_dimension_numbers<[1], [0], [0], [1], [0, 0, 1, 1], [], []>} : vector<128x128xf32>, vector<128x128xf32>, vector<128x128xf32> -> vector<128x128xf32>
    %67 = arith.mulf %65, %65 : vector<128x128xf32>
    %cst_28 = arith.constant dense<0.000000e+00> : vector<128x128xf32>
    %68 = tpu.matmul %67, %64, %cst_28 {dimension_numbers = #tpu.dot_dimension_numbers<[1], [0], [0], [1], [0, 0, 1, 1], [], []>} : vector<128x128xf32>, vector<128x128xf32>, vector<128x128xf32> -> vector<128x128xf32>
    %69 = arith.mulf %66, %66 : vector<128x128xf32>
    %70 = arith.subf %68, %69 : vector<128x128xf32>
    %cst_29 = arith.constant 0.000000e+00 : f32
    %71 = vector.broadcast %cst_29 : f32 to vector<128x128xf32>
    %72 = arith.maximumf %70, %71 : vector<128x128xf32>
    %73 = arith.subf %65, %66 : vector<128x128xf32>
    %cst_30 = arith.constant 9.99999974E-6 : f32
    %74 = vector.broadcast %cst_30 : f32 to vector<128x128xf32>
    %75 = arith.addf %72, %74 : vector<128x128xf32>
    %76 = math.rsqrt %75 : vector<128x128xf32>
    %77 = arith.mulf %73, %76 : vector<128x128xf32>
    %78 = vector.broadcast %5 : vector<1x128xf32> to vector<128x128xf32>
    %79 = arith.mulf %77, %78 : vector<128x128xf32>
    %80 = vector.broadcast %6 : vector<1x128xf32> to vector<128x128xf32>
    %81 = arith.addf %79, %80 : vector<128x128xf32>
    %c0_31 = arith.constant 0 : index
    %c0_32 = arith.constant 0 : index
    %82 = vector.load %arg8[%c0_31, %c0_32] : memref<128x256xf32, #tpu.memory_space<vmem>>, vector<128x256xf32>
    %cst_33 = arith.constant dense<0.000000e+00> : vector<128x256xf32>
    %83 = tpu.matmul %81, %82, %cst_33 {dimension_numbers = #tpu.dot_dimension_numbers<[1], [0], [0], [1], [0, 0, 1, 1], [], []>} : vector<128x128xf32>, vector<128x256xf32>, vector<128x256xf32> -> vector<128x256xf32>
    %c0_34 = arith.constant 0 : index
    %c0_35 = arith.constant 0 : index
    %84 = vector.load %arg9[%c0_34, %c0_35] : memref<1x256xf32, #tpu.memory_space<vmem>>, vector<1x256xf32>
    %85 = vector.broadcast %84 : vector<1x256xf32> to vector<128x256xf32>
    %86 = arith.addf %83, %85 : vector<128x256xf32>
    %cst_36 = arith.constant 5.000000e-01 : f32
    %87 = vector.broadcast %cst_36 : f32 to vector<128x256xf32>
    %88 = arith.mulf %87, %86 : vector<128x256xf32>
    %cst_37 = arith.constant 4.471500e-02 : f32
    %89 = vector.broadcast %cst_37 : f32 to vector<128x256xf32>
    %90 = arith.mulf %89, %86 : vector<128x256xf32>
    %91 = arith.mulf %90, %86 : vector<128x256xf32>
    %92 = arith.mulf %91, %86 : vector<128x256xf32>
    %93 = arith.addf %86, %92 : vector<128x256xf32>
    %cst_38 = arith.constant 0.797884583 : f32
    %94 = vector.broadcast %cst_38 : f32 to vector<128x256xf32>
    %95 = arith.mulf %94, %93 : vector<128x256xf32>
    %96 = math.tanh %95 : vector<128x256xf32>
    %cst_39 = arith.constant 1.000000e+00 : f32
    %97 = vector.broadcast %cst_39 : f32 to vector<128x256xf32>
    %98 = arith.addf %97, %96 : vector<128x256xf32>
    %99 = arith.mulf %88, %98 : vector<128x256xf32>
    %c0_40 = arith.constant 0 : index
    %c0_41 = arith.constant 0 : index
    %100 = vector.load %arg10[%c0_40, %c0_41] : memref<256x128xf32, #tpu.memory_space<vmem>>, vector<256x128xf32>
    %cst_42 = arith.constant dense<0.000000e+00> : vector<128x128xf32>
    %101 = tpu.matmul %99, %100, %cst_42 {dimension_numbers = #tpu.dot_dimension_numbers<[1], [0], [0], [1], [0, 0, 1, 1], [], []>} : vector<128x256xf32>, vector<256x128xf32>, vector<128x128xf32> -> vector<128x128xf32>
    %102 = vector.broadcast %4 : vector<1x128xf32> to vector<128x128xf32>
    %103 = arith.addf %101, %102 : vector<128x128xf32>
    %104 = arith.addf %81, %103 : vector<128x128xf32>
    %cst_43 = arith.constant dense<0.000000e+00> : vector<128x128xf32>
    %105 = tpu.matmul %104, %64, %cst_43 {dimension_numbers = #tpu.dot_dimension_numbers<[1], [0], [0], [1], [0, 0, 1, 1], [], []>} : vector<128x128xf32>, vector<128x128xf32>, vector<128x128xf32> -> vector<128x128xf32>
    %106 = arith.mulf %104, %104 : vector<128x128xf32>
    %cst_44 = arith.constant dense<0.000000e+00> : vector<128x128xf32>
    %107 = tpu.matmul %106, %64, %cst_44 {dimension_numbers = #tpu.dot_dimension_numbers<[1], [0], [0], [1], [0, 0, 1, 1], [], []>} : vector<128x128xf32>, vector<128x128xf32>, vector<128x128xf32> -> vector<128x128xf32>
    %108 = arith.mulf %105, %105 : vector<128x128xf32>
    %109 = arith.subf %107, %108 : vector<128x128xf32>
    %cst_45 = arith.constant 0.000000e+00 : f32
    %110 = vector.broadcast %cst_45 : f32 to vector<128x128xf32>
    %111 = arith.maximumf %109, %110 : vector<128x128xf32>
    %112 = arith.subf %104, %105 : vector<128x128xf32>
    %cst_46 = arith.constant 9.99999974E-6 : f32
    %113 = vector.broadcast %cst_46 : f32 to vector<128x128xf32>
    %114 = arith.addf %111, %113 : vector<128x128xf32>
    %115 = math.rsqrt %114 : vector<128x128xf32>
    %116 = arith.mulf %112, %115 : vector<128x128xf32>
    %117 = vector.broadcast %7 : vector<1x128xf32> to vector<128x128xf32>
    %118 = arith.mulf %116, %117 : vector<128x128xf32>
    %119 = vector.broadcast %8 : vector<1x128xf32> to vector<128x128xf32>
    %120 = arith.addf %118, %119 : vector<128x128xf32>
    %c0_47 = arith.constant 0 : index
    %c0_48 = arith.constant 0 : index
    %121 = vector.load %arg14[%c0_47, %c0_48] : memref<128x128xf32, #tpu.memory_space<vmem>>, vector<128x128xf32>
    tpu.vector_store %arg14[%c0_47, %c0_48], %120 {strides = array<i32>} : memref<128x128xf32, #tpu.memory_space<vmem>>, vector<128x128xf32>,
    return
  }
  func.func @transform_0(%arg0: i32) -> (i32, i32) {
    %c0_i32 = arith.constant 0 : i32
    %c0_i32_0 = arith.constant 0 : i32
    return %arg0, %c0_i32 : i32, i32
  }
  func.func @transform_1(%arg0: i32) -> (i32, i32) {
    %c0_i32 = arith.constant 0 : i32
    %c0_i32_0 = arith.constant 0 : i32
    return %arg0, %c0_i32 : i32, i32
  }
  func.func @transform_2(%arg0: i32) -> (i32, i32) {
    %c0_i32 = arith.constant 0 : i32
    %c0_i32_0 = arith.constant 0 : i32
    %c0_i32_1 = arith.constant 0 : i32
    return %c0_i32, %c0_i32_0 : i32, i32
  }
  func.func @transform_3(%arg0: i32) -> (i32, i32) {
    %c0_i32 = arith.constant 0 : i32
    %c0_i32_0 = arith.constant 0 : i32
    %c0_i32_1 = arith.constant 0 : i32
    return %c0_i32, %c0_i32_0 : i32, i32
  }
  func.func @transform_4(%arg0: i32) -> (i32, i32) {
    %c0_i32 = arith.constant 0 : i32
    %c0_i32_0 = arith.constant 0 : i32
    %c0_i32_1 = arith.constant 0 : i32
    return %c0_i32, %c0_i32_0 : i32, i32
  }
  func.func @transform_5(%arg0: i32) -> (i32, i32) {
    %c0_i32 = arith.constant 0 : i32
    %c0_i32_0 = arith.constant 0 : i32
    %c0_i32_1 = arith.constant 0 : i32
    return %c0_i32, %c0_i32_0 : i32, i32
  }
  func.func @transform_6(%arg0: i32) -> (i32, i32) {
    %c0_i32 = arith.constant 0 : i32
    %c0_i32_0 = arith.constant 0 : i32
    %c0_i32_1 = arith.constant 0 : i32
    return %c0_i32, %c0_i32_0 : i32, i32
  }
  func.func @transform_7(%arg0: i32) -> (i32, i32) {
    %c0_i32 = arith.constant 0 : i32
    %c0_i32_0 = arith.constant 0 : i32
    %c0_i32_1 = arith.constant 0 : i32
    return %c0_i32, %c0_i32_0 : i32, i32
  }
  func.func @transform_8(%arg0: i32) -> (i32, i32) {
    %c0_i32 = arith.constant 0 : i32
    %c0_i32_0 = arith.constant 0 : i32
    %c0_i32_1 = arith.constant 0 : i32
    return %c0_i32, %c0_i32_0 : i32, i32
  }
  func.func @transform_9(%arg0: i32) -> (i32, i32) {
    %c0_i32 = arith.constant 0 : i32
    %c0_i32_0 = arith.constant 0 : i32
    %c0_i32_1 = arith.constant 0 : i32
    return %c0_i32, %c0_i32_0 : i32, i32
  }
  func.func @transform_10(%arg0: i32) -> (i32, i32) {
    %c0_i32 = arith.constant 0 : i32
    %c0_i32_0 = arith.constant 0 : i32
    %c0_i32_1 = arith.constant 0 : i32
    return %c0_i32, %c0_i32_0 : i32, i32
  }
  func.func @transform_11(%arg0: i32) -> (i32, i32) {
    %c0_i32 = arith.constant 0 : i32
    %c0_i32_0 = arith.constant 0 : i32
    %c0_i32_1 = arith.constant 0 : i32
    return %c0_i32, %c0_i32_0 : i32, i32
  }
  func.func @transform_12(%arg0: i32) -> (i32, i32) {
    %c0_i32 = arith.constant 0 : i32
    %c0_i32_0 = arith.constant 0 : i32
    %c0_i32_1 = arith.constant 0 : i32
    return %c0_i32, %c0_i32_0 : i32, i32
  }
  func.func @transform_13(%arg0: i32) -> (i32, i32) {
    %c0_i32 = arith.constant 0 : i32
    %c0_i32_0 = arith.constant 0 : i32
    return %arg0, %c0_i32 : i32, i32
  }
  func.func @transform_14(%arg0: i32) -> (i32, i32) {
    %c0_i32 = arith.constant 0 : i32
    %c0_i32_0 = arith.constant 0 : i32
    return %arg0, %c0_i32 : i32, i32
  }
}

</mosaic_0001>

<bundles_post_ra>
// kernel: mul.57
= control target key start
LH: loop header
LB: loop body
LE: loop exit
PB: predicated region body
PF: predicated region fallthrough
CT: control target
= control target key end

     0   :  { %s4106_s0 = inlined_call_operand.vmem [shape: f32[32,16,16], index: 0, kind: input, shape index: {}]   ;;  %s4107_s1 = inlined_call_operand.vmem [shape: f32[32,16,16,8], index: 1, kind: output, shape index: {}]  }
   0x1   :  { %v1741_v0 = vld [vmem:[%s4106_s0] sm:$0xff]  ;;  %v2325_v16 = vld [vmem:[%s4106_s0 + $0x8] sm:$0xff]  ;;  %v2917_v32 = vld [vmem:[%s4106_s0 + $0x10] sm:$0xff] }
   0x2   :  { %v1746_v1 = vld [vmem:[%s4106_s0 + $0x20] sm:$0xff]  ;;  %5 = vst [vmem:[%s4107_s1] sm:$0xff] %v1741_v0  ;;  %v2334_v17 = vld [vmem:[%s4106_s0 + $0x28] sm:$0xff]  ;;  %v2926_v33 = vld [vmem:[%s4106_s0 + $0x30] sm:$0xff] }
   0x3   :  { %v1751_v2 = vld [vmem:[%s4106_s0 + $0x40] sm:$0xff]  ;;  %1155 = vst [vmem:[%s4107_s1 + $0x100] sm:$0xff] %v1746_v1  ;;  %v2343_v18 = vld [vmem:[%s4106_s0 + $0x48] sm:$0xff]  ;;  %v2935_v34 = vld [vmem:[%s4106_s0 + $0x50] sm:$0xff] }
   0x4   :  { %v1760_v3 = vld [vmem:[%s4106_s0 + $0x60] sm:$0xff]  ;;  %1157 = vst [vmem:[%s4107_s1 + $0x200] sm:$0xff] %v1751_v2  ;;  %v2352_v19 = vld [vmem:[%s4106_s0 + $0x68] sm:$0xff]  ;;  %v2944_v35 = vld [vmem:[%s4106_s0 + $0x70] sm:$0xff] }
   0x5   :  { %v1769_v4 = vld [vmem:[%s4106_s0 + $0x80] sm:$0xff]  ;;  %1159 = vst [vmem:[%s4107_s1 + $0x300] sm:$0xff] %v1760_v3  ;;  %v2361_v20 = vld [vmem:[%s4106_s0 + $0x88] sm:$0xff]  ;;  %v2953_v36 = vld [vmem:[%s4106_s0 + $0x90] sm:$0xff] }
   0x6   :  { %v1778_v5 = vld [vmem:[%s4106_s0 + $0xa0] sm:$0xff]  ;;  %1161 = vst [vmem:[%s4107_s1 + $0x400] sm:$0xff] %v1769_v4  ;;  %v2370_v21 = vld [vmem:[%s4106_s0 + $0xa8] sm:$0xff]  ;;  %v2962_v37 = vld [vmem:[%s4106_s0 + $0xb0] sm:$0xff] }
   0x7   :  { %v1787_v6 = vld [vmem:[%s4106_s0 + $0xc0] sm:$0xff]  ;;  %1163 = vst [vmem:[%s4107_s1 + $0x500] sm:$0xff] %v1778_v5  ;;  %v2379_v22 = vld [vmem:[%s4106_s0 + $0xc8] sm:$0xff]  ;;  %v2971_v38 = vld [vmem:[%s4106_s0 + $0xd0] sm:$0xff] }
   0x8   :  { %v1796_v7 = vld [vmem:[%s4106_s0 + $0xe0] sm:$0xff]  ;;  %1165 = vst [vmem:[%s4107_s1 + $0x600] sm:$0xff] %v1787_v6  ;;  %v2388_v23 = vld [vmem:[%s4106_s0 + $0xe8] sm:$0xff]  ;;  %v2980_v39 = vld [vmem:[%s4106_s0 + $0xf0] sm:$0xff] }
   0x9   :  { %v1805_v8 = vld [vmem:[%s4106_s0 + $0x100] sm:$0xff]  ;;  %1167 = vst [vmem:[%s4107_s1 + $0x700] sm:$0xff] %v1796_v7  ;;  %v2397_v24 = vld [vmem:[%s4106_s0 + $0x108] sm:$0xff]  ;;  %v2989_v40 = vld [vmem:[%s4106_s0 + $0x110] sm:$0xff] }
   0xa   :  { %v1814_v9 = vld [vmem:[%s4106_s0 + $0x120] sm:$0xff]  ;;  %1169 = vst [vmem:[%s4107_s1 + $0x800] sm:$0xff] %v1805_v8  ;;  %v2406_v25 = vld [vmem:[%s4106_s0 + $0x128] sm:$0xff]  ;;  %v2998_v41 = vld [vmem:[%s4106_s0 + $0x130] sm:$0xff] }
   0xb   :  { %v1823_v10 = vld [vmem:[%s4106_s0 + $0x140] sm:$0xff]  ;;  %1171 = vst [vmem:[%s4107_s1 + $0x900] sm:$0xff] %v1814_v9  ;;  %v2415_v26 = vld [vmem:[%s4106_s0 + $0x148] sm:$0xff]  ;;  %v3007_v42 = vld [vmem:[%s4106_s0 + $0x150] sm:$0xff] }
   0xc   :  { %v1832_v11 = vld [vmem:[%s4106_s0 + $0x160] sm:$0xff]  ;;  %1173 = vst [vmem:[%s4107_s1 + $0xa00] sm:$0xff] %v1823_v10  ;;  %v2424_v27 = vld [vmem:[%s4106_s0 + $0x168] sm:$0xff]  ;;  %v3016_v43 = vld [vmem:[%s4106_s0 + $0x170] sm:$0xff] }
   0xd   :  { %v1841_v12 = vld [vmem:[%s4106_s0 + $0x180] sm:$0xff]  ;;  %1175 = vst [vmem:[%s4107_s1 + $0xb00] sm:$0xff] %v1832_v11  ;;  %v2433_v28 = vld [vmem:[%s4106_s0 + $0x188] sm:$0xff]  ;;  %v3025_v44 = vld [vmem:[%s4106_s0 + $0x190] sm:$0xff] }
   0xe   :  { %v1850_v13 = vld [vmem:[%s4106_s0 + $0x1a0] sm:$0xff]  ;;  %1177 = vst [vmem:[%s4107_s1 + $0xc00] sm:$0xff] %v1841_v12  ;;  %v2442_v29 = vld [vmem:[%s4106_s0 + $0x1a8] sm:$0xff]  ;;  %v3034_v45 = vld [vmem:[%s4106_s0 + $0x1b0] sm:$0xff] }
   0xf   :  { %v1859_v14 = vld [vmem:[%s4106_s0 + $0x1c0] sm:$0xff]  ;;  %1179 = vst [vmem:[%s4107_s1 + $0xd00] sm:$0xff] %v1850_v13  ;;  %v2451_v30 = vld [vmem:[%s4106_s0 + $0x1c8] sm:$0xff]  ;;  %v3043_v46 = vld [vmem:[%s4106_s0 + $0x1d0] sm:$0xff] }
  0x10   :  { %v1868_v15 = vld [vmem:[%s4106_s0 + $0x1e0] sm:$0xff]  ;;  %1181 = vst [vmem:[%s4107_s1 + $0xe00] sm:$0xff] %v1859_v14  ;;  %v2460_v31 = vld [vmem:[%s4106_s0 + $0x1e8] sm:$0xff]  ;;  %v3052_v47 = vld [vmem:[%s4106_s0 + $0x1f0] sm:$0xff] }
  0x11   :  { %1183 = vst [vmem:[%s4107_s1 + $0xf00] sm:$0xff] %v1868_v15  ;;  %v3509_v48 = vld [vmem:[%s4106_s0 + $0x18] sm:$0xff] }
  0x12   :  { %1184 = vst [vmem:[%s4107_s1 + $0x20] sm:$0xff] %v1741_v0  ;;  %v3518_v49 = vld [vmem:[%s4106_s0 + $0x38] sm:$0xff] }
  0x13   :  { %1185 = vst [vmem:[%s4107_s1 + $0x120] sm:$0xff] %v1746_v1  ;;  %v3527_v50 = vld [vmem:[%s4106_s0 + $0x58] sm:$0xff] }
  0x14   :  { %1186 = vst [vmem:[%s4107_s1 + $0x220] sm:$0xff] %v1751_v2  ;;  %v3536_v51 = vld [vmem:[%s4106_s0 + $0x78] sm:$0xff] }
  0x15   :  { %1187 = vst [vmem:[%s4107_s1 + $0x320] sm:$0xff] %v1760_v3  ;;  %v3545_v52 = vld [vmem:[%s4106_s0 + $0x98] sm:$0xff] }
  0x16   :  { %1188 = vst [vmem:[%s4107_s1 + $0x420] sm:$0xff] %v1769_v4  ;;  %v3554_v53 = vld [vmem:[%s4106_s0 + $0xb8] sm:$0xff] }
  0x17   :  { %1189 = vst [vmem:[%s4107_s1 + $0x520] sm:$0xff] %v1778_v5  ;;  %v3563_v54 = vld [vmem:[%s4106_s0 + $0xd8] sm:$0xff] }
  0x18   :  { %1190 = vst [vmem:[%s4107_s1 + $0x620] sm:$0xff] %v1787_v6  ;;  %v3572_v55 = vld [vmem:[%s4106_s0 + $0xf8] sm:$0xff] }
  0x19   :  { %1191 = vst [vmem:[%s4107_s1 + $0x720] sm:$0xff] %v1796_v7  ;;  %v3581_v56 = vld [vmem:[%s4106_s0 + $0x118] sm:$0xff] }
  0x1a   :  { %1192 = vst [vmem:[%s4107_s1 + $0x820] sm:$0xff] %v1805_v8  ;;  %v3590_v57 = vld [vmem:[%s4106_s0 + $0x138] sm:$0xff] }
  0x1b   :  { %1193 = vst [vmem:[%s4107_s1 + $0x920] sm:$0xff] %v1814_v9  ;;  %v3599_v58 = vld [vmem:[%s4106_s0 + $0x158] sm:$0xff] }
  0x1c   :  { %1194 = vst [vmem:[%s4107_s1 + $0xa20] sm:$0xff] %v1823_v10  ;;  %v3608_v59 = vld [vmem:[%s4106_s0 + $0x178] sm:$0xff] }
  0x1d   :  { %1195 = vst [vmem:[%s4107_s1 + $0xb20] sm:$0xff] %v1832_v11  ;;  %v3617_v60 = vld [vmem:[%s4106_s0 + $0x198] sm:$0xff] }
  0x1e   :  { %1196 = vst [vmem:[%s4107_s1 + $0xc20] sm:$0xff] %v1841_v12  ;;  %v3626_v61 = vld [vmem:[%s4106_s0 + $0x1b8] sm:$0xff] }
  0x1f   :  { %1197 = vst [vmem:[%s4107_s1 + $0xd20] sm:$0xff] %v1850_v13  ;;  %v3635_v62 = vld [vmem:[%s4106_s0 + $0x1d8] sm:$0xff] }
  0x20   :  { %1198 = vst [vmem:[%s4107_s1 + $0xe20] sm:$0xff] %v1859_v14  ;;  %v3644_v63 = vld [vmem:[%s4106_s0 + $0x1f8] sm:$0xff] }
  0x21   :  { %1199 = vst [vmem:[%s4107_s1 + $0xf20] sm:$0xff] %v1868_v15 }
  0x22   :  { %1200 = vst [vmem:[%s4107_s1 + $0x40] sm:$0xff] %v1741_v0 }
  0x23   :  { %1201 = vst [vmem:[%s4107_s1 + $0x140] sm:$0xff] %v1746_v1 }
  0x24   :  { %1202 = vst [vmem:[%s4107_s1 + $0x240] sm:$0xff] %v1751_v2 }
  0x25   :  { %1203 = vst [vmem:[%s4107_s1 + $0x340] sm:$0xff] %v1760_v3 }
  0x26   :  { %1204 = vst [vmem:[%s4107_s1 + $0x440] sm:$0xff] %v1769_v4 }
  0x27   :  { %1205 = vst [vmem:[%s4107_s1 + $0x540] sm:$0xff] %v1778_v5 }
  0x28   :  { %1206 = vst [vmem:[%s4107_s1 + $0x640] sm:$0xff] %v1787_v6 }
  0x29   :  { %1207 = vst [vmem:[%s4107_s1 + $0x740] sm:$0xff] %v1796_v7 }
  0x2a   :  { %1208 = vst [vmem:[%s4107_s1 + $0x840] sm:$0xff] %v1805_v8 }
  0x2b   :  { %1209 = vst [vmem:[%s4107_s1 + $0x940] sm:$0xff] %v1814_v9 }
  0x2c   :  { %1210 = vst [vmem:[%s4107_s1 + $0xa40] sm:$0xff] %v1823_v10 }
  0x2d   :  { %1211 = vst [vmem:[%s4107_s1 + $0xb40] sm:$0xff] %v1832_v11 }
  0x2e   :  { %1212 = vst [vmem:[%s4107_s1 + $0xc40] sm:$0xff] %v1841_v12 }
  0x2f   :  { %1213 = vst [vmem:[%s4107_s1 + $0xd40] sm:$0xff] %v1850_v13 }
  0x30   :  { %1214 = vst [vmem:[%s4107_s1 + $0xe40] sm:$0xff] %v1859_v14 }
  0x31   :  { %1215 = vst [vmem:[%s4107_s1 + $0xf40] sm:$0xff] %v1868_v15 }
  0x32   :  { %1216 = vst [vmem:[%s4107_s1 + $0x60] sm:$0xff] %v1741_v0 }
  0x33   :  { %1217 = vst [vmem:[%s4107_s1 + $0x160] sm:$0xff] %v1746_v1 }
  0x34   :  { %1218 = vst [vmem:[%s4107_s1 + $0x260] sm:$0xff] %v1751_v2 }
  0x35   :  { %1219 = vst [vmem:[%s4107_s1 + $0x360] sm:$0xff] %v1760_v3 }
  0x36   :  { %1220 = vst [vmem:[%s4107_s1 + $0x460] sm:$0xff] %v1769_v4 }
  0x37   :  { %1221 = vst [vmem:[%s4107_s1 + $0x560] sm:$0xff] %v1778_v5 }
  0x38   :  { %1222 = vst [vmem:[%s4107_s1 + $0x660] sm:$0xff] %v1787_v6 }
  0x39   :  { %1223 = vst [vmem:[%s4107_s1 + $0x760] sm:$0xff] %v1796_v7 }
  0x3a   :  { %1224 = vst [vmem:[%s4107_s1 + $0x860] sm:$0xff] %v1805_v8 }
  0x3b   :  { %1225 = vst [vmem:[%s4107_s1 + $0x960] sm:$0xff] %v1814_v9 }
  0x3c   :  { %1226 = vst [vmem:[%s4107_s1 + $0xa60] sm:$0xff] %v1823_v10 }
  0x3d   :  { %1227 = vst [vmem:[%s4107_s1 + $0xb60] sm:$0xff] %v1832_v11 }
  0x3e   :  { %1228 = vst [vmem:[%s4107_s1 + $0xc60] sm:$0xff] %v1841_v12 }
  0x3f   :  { %1229 = vst [vmem:[%s4107_s1 + $0xd60] sm:$0xff] %v1850_v13 }
  0x40   :  { %1230 = vst [vmem:[%s4107_s1 + $0xe60] sm:$0xff] %v1859_v14 }
  0x41   :  { %1231 = vst [vmem:[%s4107_s1 + $0xf60] sm:$0xff] %v1868_v15 }
  0x42   :  { %1232 = vst [vmem:[%s4107_s1 + $0x80] sm:$0xff] %v1741_v0 }
  0x43   :  { %1233 = vst [vmem:[%s4107_s1 + $0x180] sm:$0xff] %v1746_v1 }
  0x44   :  { %1234 = vst [vmem:[%s4107_s1 + $0x280] sm:$0xff] %v1751_v2 }
  0x45   :  { %1235 = vst [vmem:[%s4107_s1 + $0x380] sm:$0xff] %v1760_v3 }
  0x46   :  { %1236 = vst [vmem:[%s4107_s1 + $0x480] sm:$0xff] %v1769_v4 }
  0x47   :  { %1237 = vst [vmem:[%s4107_s1 + $0x580] sm:$0xff] %v1778_v5 }
  0x48   :  { %1238 = vst [vmem:[%s4107_s1 + $0x680] sm:$0xff] %v1787_v6 }
  0x49   :  { %1239 = vst [vmem:[%s4107_s1 + $0x780] sm:$0xff] %v1796_v7 }
  0x4a   :  { %1240 = vst [vmem:[%s4107_s1 + $0x880] sm:$0xff] %v1805_v8 }
  0x4b   :  { %1241 = vst [vmem:[%s4107_s1 + $0x980] sm:$0xff] %v1814_v9 }
  0x4c   :  { %1242 = vst [vmem:[%s4107_s1 + $0xa80] sm:$0xff] %v1823_v10 }
  0x4d   :  { %1243 = vst [vmem:[%s4107_s1 + $0xb80] sm:$0xff] %v1832_v11 }
  0x4e   :  { %1244 = vst [vmem:[%s4107_s1 + $0xc80] sm:$0xff] %v1841_v12 }
  0x4f   :  { %1245 = vst [vmem:[%s4107_s1 + $0xd80] sm:$0xff] %v1850_v13 }
  0x50   :  { %1246 = vst [vmem:[%s4107_s1 + $0xe80] sm:$0xff] %v1859_v14 }
  0x51   :  { %1247 = vst [vmem:[%s4107_s1 + $0xf80] sm:$0xff] %v1868_v15 }
  0x52   :  { %1248 = vst [vmem:[%s4107_s1 + $0xa0] sm:$0xff] %v1741_v0 }
  0x53   :  { %1249 = vst [vmem:[%s4107_s1 + $0x1a0] sm:$0xff] %v1746_v1 }
  0x54   :  { %1250 = vst [vmem:[%s4107_s1 + $0x2a0] sm:$0xff] %v1751_v2 }
  0x55   :  { %1251 = vst [vmem:[%s4107_s1 + $0x3a0] sm:$0xff] %v1760_v3 }
  0x56   :  { %1252 = vst [vmem:[%s4107_s1 + $0x4a0] sm:$0xff] %v1769_v4 }
  0x57   :  { %1253 = vst [vmem:[%s4107_s1 + $0x5a0] sm:$0xff] %v1778_v5 }
  0x58   :  { %1254 = vst [vmem:[%s4107_s1 + $0x6a0] sm:$0xff] %v1787_v6 }
  0x59   :  { %1255 = vst [vmem:[%s4107_s1 + $0x7a0] sm:$0xff] %v1796_v7 }
  0x5a   :  { %1256 = vst [vmem:[%s4107_s1 + $0x8a0] sm:$0xff] %v1805_v8 }
  0x5b   :  { %1257 = vst [vmem:[%s4107_s1 + $0x9a0] sm:$0xff] %v1814_v9 }
  0x5c   :  { %1258 = vst [vmem:[%s4107_s1 + $0xaa0] sm:$0xff] %v1823_v10 }
  0x5d   :  { %1259 = vst [vmem:[%s4107_s1 + $0xba0] sm:$0xff] %v1832_v11 }
  0x5e   :  { %1260 = vst [vmem:[%s4107_s1 + $0xca0] sm:$0xff] %v1841_v12 }
  0x5f   :  { %1261 = vst [vmem:[%s4107_s1 + $0xda0] sm:$0xff] %v1850_v13 }
  0x60   :  { %1262 = vst [vmem:[%s4107_s1 + $0xea0] sm:$0xff] %v1859_v14 }
  0x61   :  { %1263 = vst [vmem:[%s4107_s1 + $0xfa0] sm:$0xff] %v1868_v15 }
  0x62   :  { %1264 = vst [vmem:[%s4107_s1 + $0xc0] sm:$0xff] %v1741_v0 }
  0x63   :  { %1265 = vst [vmem:[%s4107_s1 + $0x1c0] sm:$0xff] %v1746_v1 }
  0x64   :  { %1266 = vst [vmem:[%s4107_s1 + $0x2c0] sm:$0xff] %v1751_v2 }
  0x65   :  { %1267 = vst [vmem:[%s4107_s1 + $0x3c0] sm:$0xff] %v1760_v3 }
  0x66   :  { %1268 = vst [vmem:[%s4107_s1 + $0x4c0] sm:$0xff] %v1769_v4 }
  0x67   :  { %1269 = vst [vmem:[%s4107_s1 + $0x5c0] sm:$0xff] %v1778_v5 }
  0x68   :  { %1270 = vst [vmem:[%s4107_s1 + $0x6c0] sm:$0xff] %v1787_v6 }
  0x69   :  { %1271 = vst [vmem:[%s4107_s1 + $0x7c0] sm:$0xff] %v1796_v7 }
  0x6a   :  { %1272 = vst [vmem:[%s4107_s1 + $0x8c0] sm:$0xff] %v1805_v8 }
  0x6b   :  { %1273 = vst [vmem:[%s4107_s1 + $0x9c0] sm:$0xff] %v1814_v9 }
  0x6c   :  { %1274 = vst [vmem:[%s4107_s1 + $0xac0] sm:$0xff] %v1823_v10 }
  0x6d   :  { %1275 = vst [vmem:[%s4107_s1 + $0xbc0] sm:$0xff] %v1832_v11 }
  0x6e   :  { %1276 = vst [vmem:[%s4107_s1 + $0xcc0] sm:$0xff] %v1841_v12 }
  0x6f   :  { %1277 = vst [vmem:[%s4107_s1 + $0xdc0] sm:$0xff] %v1850_v13 }
  0x70   :  { %1278 = vst [vmem:[%s4107_s1 + $0xec0] sm:$0xff] %v1859_v14 }
  0x71   :  { %1279 = vst [vmem:[%s4107_s1 + $0xfc0] sm:$0xff] %v1868_v15 }
  0x72   :  { %1280 = vst [vmem:[%s4107_s1 + $0xe0] sm:$0xff] %v1741_v0 }
  0x73   :  { %1281 = vst [vmem:[%s4107_s1 + $0x1e0] sm:$0xff] %v1746_v1 }
  0x74   :  { %1282 = vst [vmem:[%s4107_s1 + $0x2e0] sm:$0xff] %v1751_v2 }
  0x75   :  { %1283 = vst [vmem:[%s4107_s1 + $0x3e0] sm:$0xff] %v1760_v3 }
  0x76   :  { %1284 = vst [vmem:[%s4107_s1 + $0x4e0] sm:$0xff] %v1769_v4 }
  0x77   :  { %1285 = vst [vmem:[%s4107_s1 + $0x5e0] sm:$0xff] %v1778_v5 }
  0x78   :  { %1286 = vst [vmem:[%s4107_s1 + $0x6e0] sm:$0xff] %v1787_v6 }
  0x79   :  { %1287 = vst [vmem:[%s4107_s1 + $0x7e0] sm:$0xff] %v1796_v7 }
  0x7a   :  { %1288 = vst [vmem:[%s4107_s1 + $0x8e0] sm:$0xff] %v1805_v8 }
  0x7b   :  { %1289 = vst [vmem:[%s4107_s1 + $0x9e0] sm:$0xff] %v1814_v9 }
  0x7c   :  { %1290 = vst [vmem:[%s4107_s1 + $0xae0] sm:$0xff] %v1823_v10 }
  0x7d   :  { %1291 = vst [vmem:[%s4107_s1 + $0xbe0] sm:$0xff] %v1832_v11 }
  0x7e   :  { %1292 = vst [vmem:[%s4107_s1 + $0xce0] sm:$0xff] %v1841_v12 }
  0x7f   :  { %1293 = vst [vmem:[%s4107_s1 + $0xde0] sm:$0xff] %v1850_v13 }
  0x80   :  { %1294 = vst [vmem:[%s4107_s1 + $0xee0] sm:$0xff] %v1859_v14 }
  0x81   :  { %1295 = vst [vmem:[%s4107_s1 + $0xfe0] sm:$0xff] %v1868_v15 }
  0x82   :  { %1297 = vst [vmem:[%s4107_s1 + $0x8] sm:$0xff] %v2325_v16 }
  0x83   :  { %1299 = vst [vmem:[%s4107_s1 + $0x108] sm:$0xff] %v2334_v17 }
  0x84   :  { %1301 = vst [vmem:[%s4107_s1 + $0x208] sm:$0xff] %v2343_v18 }
  0x85   :  { %1303 = vst [vmem:[%s4107_s1 + $0x308] sm:$0xff] %v2352_v19 }
  0x86   :  { %1305 = vst [vmem:[%s4107_s1 + $0x408] sm:$0xff] %v2361_v20 }
  0x87   :  { %1307 = vst [vmem:[%s4107_s1 + $0x508] sm:$0xff] %v2370_v21 }
  0x88   :  { %1309 = vst [vmem:[%s4107_s1 + $0x608] sm:$0xff] %v2379_v22 }
  0x89   :  { %1311 = vst [vmem:[%s4107_s1 + $0x708] sm:$0xff] %v2388_v23 }
  0x8a   :  { %1313 = vst [vmem:[%s4107_s1 + $0x808] sm:$0xff] %v2397_v24 }
  0x8b   :  { %1315 = vst [vmem:[%s4107_s1 + $0x908] sm:$0xff] %v2406_v25 }
  0x8c   :  { %1317 = vst [vmem:[%s4107_s1 + $0xa08] sm:$0xff] %v2415_v26 }
  0x8d   :  { %1319 = vst [vmem:[%s4107_s1 + $0xb08] sm:$0xff] %v2424_v27 }
  0x8e   :  { %1321 = vst [vmem:[%s4107_s1 + $0xc08] sm:$0xff] %v2433_v28 }
  0x8f   :  { %1323 = vst [vmem:[%s4107_s1 + $0xd08] sm:$0xff] %v2442_v29 }
  0x90   :  { %1325 = vst [vmem:[%s4107_s1 + $0xe08] sm:$0xff] %v2451_v30 }
  0x91   :  { %1327 = vst [vmem:[%s4107_s1 + $0xf08] sm:$0xff] %v2460_v31 }
  0x92   :  { %1328 = vst [vmem:[%s4107_s1 + $0x28] sm:$0xff] %v2325_v16 }
  0x93   :  { %1329 = vst [vmem:[%s4107_s1 + $0x128] sm:$0xff] %v2334_v17 }
  0x94   :  { %1330 = vst [vmem:[%s4107_s1 + $0x228] sm:$0xff] %v2343_v18 }
  0x95   :  { %1331 = vst [vmem:[%s4107_s1 + $0x328] sm:$0xff] %v2352_v19 }
  0x96   :  { %1332 = vst [vmem:[%s4107_s1 + $0x428] sm:$0xff] %v2361_v20 }
  0x97   :  { %1333 = vst [vmem:[%s4107_s1 + $0x528] sm:$0xff] %v2370_v21 }
  0x98   :  { %1334 = vst [vmem:[%s4107_s1 + $0x628] sm:$0xff] %v2379_v22 }
  0x99   :  { %1335 = vst [vmem:[%s4107_s1 + $0x728] sm:$0xff] %v2388_v23 }
  0x9a   :  { %1336 = vst [vmem:[%s4107_s1 + $0x828] sm:$0xff] %v2397_v24 }
  0x9b   :  { %1337 = vst [vmem:[%s4107_s1 + $0x928] sm:$0xff] %v2406_v25 }
  0x9c   :  { %1338 = vst [vmem:[%s4107_s1 + $0xa28] sm:$0xff] %v2415_v26 }
  0x9d   :  { %1339 = vst [vmem:[%s4107_s1 + $0xb28] sm:$0xff] %v2424_v27 }
  0x9e   :  { %1340 = vst [vmem:[%s4107_s1 + $0xc28] sm:$0xff] %v2433_v28 }
  0x9f   :  { %1341 = vst [vmem:[%s4107_s1 + $0xd28] sm:$0xff] %v2442_v29 }
  0xa0   :  { %1342 = vst [vmem:[%s4107_s1 + $0xe28] sm:$0xff] %v2451_v30 }
  0xa1   :  { %1343 = vst [vmem:[%s4107_s1 + $0xf28] sm:$0xff] %v2460_v31 }
  0xa2   :  { %1344 = vst [vmem:[%s4107_s1 + $0x48] sm:$0xff] %v2325_v16 }
  0xa3   :  { %1345 = vst [vmem:[%s4107_s1 + $0x148] sm:$0xff] %v2334_v17 }
  0xa4   :  { %1346 = vst [vmem:[%s4107_s1 + $0x248] sm:$0xff] %v2343_v18 }
  0xa5   :  { %1347 = vst [vmem:[%s4107_s1 + $0x348] sm:$0xff] %v2352_v19 }
  0xa6   :  { %1348 = vst [vmem:[%s4107_s1 + $0x448] sm:$0xff] %v2361_v20 }
  0xa7   :  { %1349 = vst [vmem:[%s4107_s1 + $0x548] sm:$0xff] %v2370_v21 }
  0xa8   :  { %1350 = vst [vmem:[%s4107_s1 + $0x648] sm:$0xff] %v2379_v22 }
  0xa9   :  { %1351 = vst [vmem:[%s4107_s1 + $0x748] sm:$0xff] %v2388_v23 }
  0xaa   :  { %1352 = vst [vmem:[%s4107_s1 + $0x848] sm:$0xff] %v2397_v24 }
  0xab   :  { %1353 = vst [vmem:[%s4107_s1 + $0x948] sm:$0xff] %v2406_v25 }
  0xac   :  { %1354 = vst [vmem:[%s4107_s1 + $0xa48] sm:$0xff] %v2415_v26 }
  0xad   :  { %1355 = vst [vmem:[%s4107_s1 + $0xb48] sm:$0xff] %v2424_v27 }
  0xae   :  { %1356 = vst [vmem:[%s4107_s1 + $0xc48] sm:$0xff] %v2433_v28 }
  0xaf   :  { %1357 = vst [vmem:[%s4107_s1 + $0xd48] sm:$0xff] %v2442_v29 }
  0xb0   :  { %1358 = vst [vmem:[%s4107_s1 + $0xe48] sm:$0xff] %v2451_v30 }
  0xb1   :  { %1359 = vst [vmem:[%s4107_s1 + $0xf48] sm:$0xff] %v2460_v31 }
  0xb2   :  { %1360 = vst [vmem:[%s4107_s1 + $0x68] sm:$0xff] %v2325_v16 }
  0xb3   :  { %1361 = vst [vmem:[%s4107_s1 + $0x168] sm:$0xff] %v2334_v17 }
  0xb4   :  { %1362 = vst [vmem:[%s4107_s1 + $0x268] sm:$0xff] %v2343_v18 }
  0xb5   :  { %1363 = vst [vmem:[%s4107_s1 + $0x368] sm:$0xff] %v2352_v19 }
  0xb6   :  { %1364 = vst [vmem:[%s4107_s1 + $0x468] sm:$0xff] %v2361_v20 }
  0xb7   :  { %1365 = vst [vmem:[%s4107_s1 + $0x568] sm:$0xff] %v2370_v21 }
  0xb8   :  { %1366 = vst [vmem:[%s4107_s1 + $0x668] sm:$0xff] %v2379_v22 }
  0xb9   :  { %1367 = vst [vmem:[%s4107_s1 + $0x768] sm:$0xff] %v2388_v23 }
  0xba   :  { %1368 = vst [vmem:[%s4107_s1 + $0x868] sm:$0xff] %v2397_v24 }
  0xbb   :  { %1369 = vst [vmem:[%s4107_s1 + $0x968] sm:$0xff] %v2406_v25 }
  0xbc   :  { %1370 = vst [vmem:[%s4107_s1 + $0xa68] sm:$0xff] %v2415_v26 }
  0xbd   :  { %1371 = vst [vmem:[%s4107_s1 + $0xb68] sm:$0xff] %v2424_v27 }
  0xbe   :  { %1372 = vst [vmem:[%s4107_s1 + $0xc68] sm:$0xff] %v2433_v28 }
  0xbf   :  { %1373 = vst [vmem:[%s4107_s1 + $0xd68] sm:$0xff] %v2442_v29 }
  0xc0   :  { %1374 = vst [vmem:[%s4107_s1 + $0xe68] sm:$0xff] %v2451_v30 }
  0xc1   :  { %1375 = vst [vmem:[%s4107_s1 + $0xf68] sm:$0xff] %v2460_v31 }
  0xc2   :  { %1376 = vst [vmem:[%s4107_s1 + $0x88] sm:$0xff] %v2325_v16 }
  0xc3   :  { %1377 = vst [vmem:[%s4107_s1 + $0x188] sm:$0xff] %v2334_v17 }
  0xc4   :  { %1378 = vst [vmem:[%s4107_s1 + $0x288] sm:$0xff] %v2343_v18 }
  0xc5   :  { %1379 = vst [vmem:[%s4107_s1 + $0x388] sm:$0xff] %v2352_v19 }
  0xc6   :  { %1380 = vst [vmem:[%s4107_s1 + $0x488] sm:$0xff] %v2361_v20 }
  0xc7   :  { %1381 = vst [vmem:[%s4107_s1 + $0x588] sm:$0xff] %v2370_v21 }
  0xc8   :  { %1382 = vst [vmem:[%s4107_s1 + $0x688] sm:$0xff] %v2379_v22 }
  0xc9   :  { %1383 = vst [vmem:[%s4107_s1 + $0x788] sm:$0xff] %v2388_v23 }
  0xca   :  { %1384 = vst [vmem:[%s4107_s1 + $0x888] sm:$0xff] %v2397_v24 }
  0xcb   :  { %1385 = vst [vmem:[%s4107_s1 + $0x988] sm:$0xff] %v2406_v25 }
  0xcc   :  { %1386 = vst [vmem:[%s4107_s1 + $0xa88] sm:$0xff] %v2415_v26 }
  0xcd   :  { %1387 = vst [vmem:[%s4107_s1 + $0xb88] sm:$0xff] %v2424_v27 }
  0xce   :  { %1388 = vst [vmem:[%s4107_s1 + $0xc88] sm:$0xff] %v2433_v28 }
  0xcf   :  { %1389 = vst [vmem:[%s4107_s1 + $0xd88] sm:$0xff] %v2442_v29 }
  0xd0   :  { %1390 = vst [vmem:[%s4107_s1 + $0xe88] sm:$0xff] %v2451_v30 }
  0xd1   :  { %1391 = vst [vmem:[%s4107_s1 + $0xf88] sm:$0xff] %v2460_v31 }
  0xd2   :  { %1392 = vst [vmem:[%s4107_s1 + $0xa8] sm:$0xff] %v2325_v16 }
  0xd3   :  { %1393 = vst [vmem:[%s4107_s1 + $0x1a8] sm:$0xff] %v2334_v17 }
  0xd4   :  { %1394 = vst [vmem:[%s4107_s1 + $0x2a8] sm:$0xff] %v2343_v18 }
  0xd5   :  { %1395 = vst [vmem:[%s4107_s1 + $0x3a8] sm:$0xff] %v2352_v19 }
  0xd6   :  { %1396 = vst [vmem:[%s4107_s1 + $0x4a8] sm:$0xff] %v2361_v20 }
  0xd7   :  { %1397 = vst [vmem:[%s4107_s1 + $0x5a8] sm:$0xff] %v2370_v21 }
  0xd8   :  { %1398 = vst [vmem:[%s4107_s1 + $0x6a8] sm:$0xff] %v2379_v22 }
  0xd9   :  { %1399 = vst [vmem:[%s4107_s1 + $0x7a8] sm:$0xff] %v2388_v23 }
  0xda   :  { %1400 = vst [vmem:[%s4107_s1 + $0x8a8] sm:$0xff] %v2397_v24 }
  0xdb   :  { %1401 = vst [vmem:[%s4107_s1 + $0x9a8] sm:$0xff] %v2406_v25 }
  0xdc   :  { %1402 = vst [vmem:[%s4107_s1 + $0xaa8] sm:$0xff] %v2415_v26 }
  0xdd   :  { %1403 = vst [vmem:[%s4107_s1 + $0xba8] sm:$0xff] %v2424_v27 }
  0xde   :  { %1404 = vst [vmem:[%s4107_s1 + $0xca8] sm:$0xff] %v2433_v28 }
  0xdf   :  { %1405 = vst [vmem:[%s4107_s1 + $0xda8] sm:$0xff] %v2442_v29 }
  0xe0   :  { %1406 = vst [vmem:[%s4107_s1 + $0xea8] sm:$0xff] %v2451_v30 }
  0xe1   :  { %1407 = vst [vmem:[%s4107_s1 + $0xfa8] sm:$0xff] %v2460_v31 }
  0xe2   :  { %1408 = vst [vmem:[%s4107_s1 + $0xc8] sm:$0xff] %v2325_v16 }
  0xe3   :  { %1409 = vst [vmem:[%s4107_s1 + $0x1c8] sm:$0xff] %v2334_v17 }
  0xe4   :  { %1410 = vst [vmem:[%s4107_s1 + $0x2c8] sm:$0xff] %v2343_v18 }
  0xe5   :  { %1411 = vst [vmem:[%s4107_s1 + $0x3c8] sm:$0xff] %v2352_v19 }
  0xe6   :  { %1412 = vst [vmem:[%s4107_s1 + $0x4c8] sm:$0xff] %v2361_v20 }
  0xe7   :  { %1413 = vst [vmem:[%s4107_s1 + $0x5c8] sm:$0xff] %v2370_v21 }
  0xe8   :  { %1414 = vst [vmem:[%s4107_s1 + $0x6c8] sm:$0xff] %v2379_v22 }
  0xe9   :  { %1415 = vst [vmem:[%s4107_s1 + $0x7c8] sm:$0xff] %v2388_v23 }
  0xea   :  { %1416 = vst [vmem:[%s4107_s1 + $0x8c8] sm:$0xff] %v2397_v24 }
  0xeb   :  { %1417 = vst [vmem:[%s4107_s1 + $0x9c8] sm:$0xff] %v2406_v25 }
  0xec   :  { %1418 = vst [vmem:[%s4107_s1 + $0xac8] sm:$0xff] %v2415_v26 }
  0xed   :  { %1419 = vst [vmem:[%s4107_s1 + $0xbc8] sm:$0xff] %v2424_v27 }
  0xee   :  { %1420 = vst [vmem:[%s4107_s1 + $0xcc8] sm:$0xff] %v2433_v28 }
  0xef   :  { %1421 = vst [vmem:[%s4107_s1 + $0xdc8] sm:$0xff] %v2442_v29 }
  0xf0   :  { %1422 = vst [vmem:[%s4107_s1 + $0xec8] sm:$0xff] %v2451_v30 }
  0xf1   :  { %1423 = vst [vmem:[%s4107_s1 + $0xfc8] sm:$0xff] %v2460_v31 }
  0xf2   :  { %1424 = vst [vmem:[%s4107_s1 + $0xe8] sm:$0xff] %v2325_v16 }
  0xf3   :  { %1425 = vst [vmem:[%s4107_s1 + $0x1e8] sm:$0xff] %v2334_v17 }
  0xf4   :  { %1426 = vst [vmem:[%s4107_s1 + $0x2e8] sm:$0xff] %v2343_v18 }
  0xf5   :  { %1427 = vst [vmem:[%s4107_s1 + $0x3e8] sm:$0xff] %v2352_v19 }
  0xf6   :  { %1428 = vst [vmem:[%s4107_s1 + $0x4e8] sm:$0xff] %v2361_v20 }
  0xf7   :  { %1429 = vst [vmem:[%s4107_s1 + $0x5e8] sm:$0xff] %v2370_v21 }
  0xf8   :  { %1430 = vst [vmem:[%s4107_s1 + $0x6e8] sm:$0xff] %v2379_v22 }
  0xf9   :  { %1431 = vst [vmem:[%s4107_s1 + $0x7e8] sm:$0xff] %v2388_v23 }
  0xfa   :  { %1432 = vst [vmem:[%s4107_s1 + $0x8e8] sm:$0xff] %v2397_v24 }
  0xfb   :  { %1433 = vst [vmem:[%s4107_s1 + $0x9e8] sm:$0xff] %v2406_v25 }
  0xfc   :  { %1434 = vst [vmem:[%s4107_s1 + $0xae8] sm:$0xff] %v2415_v26 }
  0xfd   :  { %1435 = vst [vmem:[%s4107_s1 + $0xbe8] sm:$0xff] %v2424_v27 }
  0xfe   :  { %1436 = vst [vmem:[%s4107_s1 + $0xce8] sm:$0xff] %v2433_v28 }
  0xff   :  { %1437 = vst [vmem:[%s4107_s1 + $0xde8] sm:$0xff] %v2442_v29 }
 0x100   :  { %1438 = vst [vmem:[%s4107_s1 + $0xee8] sm:$0xff] %v2451_v30 }
 0x101   :  { %1439 = vst [vmem:[%s4107_s1 + $0xfe8] sm:$0xff] %v2460_v31 }
 0x102   :  { %1441 = vst [vmem:[%s4107_s1 + $0x10] sm:$0xff] %v2917_v32 }
 0x103   :  { %1443 = vst [vmem:[%s4107_s1 + $0x110] sm:$0xff] %v2926_v33 }
 0x104   :  { %1445 = vst [vmem:[%s4107_s1 + $0x210] sm:$0xff] %v2935_v34 }
 0x105   :  { %1447 = vst [vmem:[%s4107_s1 + $0x310] sm:$0xff] %v2944_v35 }
 0x106   :  { %1449 = vst [vmem:[%s4107_s1 + $0x410] sm:$0xff] %v2953_v36 }
 0x107   :  { %1451 = vst [vmem:[%s4107_s1 + $0x510] sm:$0xff] %v2962_v37 }
 0x108   :  { %1453 = vst [vmem:[%s4107_s1 + $0x610] sm:$0xff] %v2971_v38 }
 0x109   :  { %1455 = vst [vmem:[%s4107_s1 + $0x710] sm:$0xff] %v2980_v39 }
 0x10a   :  { %1457 = vst [vmem:[%s4107_s1 + $0x810] sm:$0xff] %v2989_v40 }
 0x10b   :  { %1459 = vst [vmem:[%s4107_s1 + $0x910] sm:$0xff] %v2998_v41 }
 0x10c   :  { %1461 = vst [vmem:[%s4107_s1 + $0xa10] sm:$0xff] %v3007_v42 }
 0x10d   :  { %1463 = vst [vmem:[%s4107_s1 + $0xb10] sm:$0xff] %v3016_v43 }
 0x10e   :  { %1465 = vst [vmem:[%s4107_s1 + $0xc10] sm:$0xff] %v3025_v44 }
 0x10f   :  { %1467 = vst [vmem:[%s4107_s1 + $0xd10] sm:$0xff] %v3034_v45 }
 0x110   :  { %1469 = vst [vmem:[%s4107_s1 + $0xe10] sm:$0xff] %v3043_v46 }
 0x111   :  { %1471 = vst [vmem:[%s4107_s1 + $0xf10] sm:$0xff] %v3052_v47 }
 0x112   :  { %1472 = vst [vmem:[%s4107_s1 + $0x30] sm:$0xff] %v2917_v32 }
 0x113   :  { %1473 = vst [vmem:[%s4107_s1 + $0x130] sm:$0xff] %v2926_v33 }
 0x114   :  { %1474 = vst [vmem:[%s4107_s1 + $0x230] sm:$0xff] %v2935_v34 }
 0x115   :  { %1475 = vst [vmem:[%s4107_s1 + $0x330] sm:$0xff] %v2944_v35 }
 0x116   :  { %1476 = vst [vmem:[%s4107_s1 + $0x430] sm:$0xff] %v2953_v36 }
 0x117   :  { %1477 = vst [vmem:[%s4107_s1 + $0x530] sm:$0xff] %v2962_v37 }
 0x118   :  { %1478 = vst [vmem:[%s4107_s1 + $0x630] sm:$0xff] %v2971_v38 }
 0x119   :  { %1479 = vst [vmem:[%s4107_s1 + $0x730] sm:$0xff] %v2980_v39 }
 0x11a   :  { %1480 = vst [vmem:[%s4107_s1 + $0x830] sm:$0xff] %v2989_v40 }
 0x11b   :  { %1481 = vst [vmem:[%s4107_s1 + $0x930] sm:$0xff] %v2998_v41 }
 0x11c   :  { %1482 = vst [vmem:[%s4107_s1 + $0xa30] sm:$0xff] %v3007_v42 }
 0x11d   :  { %1483 = vst [vmem:[%s4107_s1 + $0xb30] sm:$0xff] %v3016_v43 }
 0x11e   :  { %1484 = vst [vmem:[%s4107_s1 + $0xc30] sm:$0xff] %v3025_v44 }
 0x11f   :  { %1485 = vst [vmem:[%s4107_s1 + $0xd30] sm:$0xff] %v3034_v45 }
 0x120   :  { %1486 = vst [vmem:[%s4107_s1 + $0xe30] sm:$0xff] %v3043_v46 }
 0x121   :  { %1487 = vst [vmem:[%s4107_s1 + $0xf30] sm:$0xff] %v3052_v47 }
 0x122   :  { %1488 = vst [vmem:[%s4107_s1 + $0x50] sm:$0xff] %v2917_v32 }
 0x123   :  { %1489 = vst [vmem:[%s4107_s1 + $0x150] sm:$0xff] %v2926_v33 }
 0x124   :  { %1490 = vst [vmem:[%s4107_s1 + $0x250] sm:$0xff] %v2935_v34 }
 0x125   :  { %1491 = vst [vmem:[%s4107_s1 + $0x350] sm:$0xff] %v2944_v35 }
 0x126   :  { %1492 = vst [vmem:[%s4107_s1 + $0x450] sm:$0xff] %v2953_v36 }
 0x127   :  { %1493 = vst [vmem:[%s4107_s1 + $0x550] sm:$0xff] %v2962_v37 }
 0x128   :  { %1494 = vst [vmem:[%s4107_s1 + $0x650] sm:$0xff] %v2971_v38 }
 0x129   :  { %1495 = vst [vmem:[%s4107_s1 + $0x750] sm:$0xff] %v2980_v39 }
 0x12a   :  { %1496 = vst [vmem:[%s4107_s1 + $0x850] sm:$0xff] %v2989_v40 }
 0x12b   :  { %1497 = vst [vmem:[%s4107_s1 + $0x950] sm:$0xff] %v2998_v41 }
 0x12c   :  { %1498 = vst [vmem:[%s4107_s1 + $0xa50] sm:$0xff] %v3007_v42 }
 0x12d   :  { %1499 = vst [vmem:[%s4107_s1 + $0xb50] sm:$0xff] %v3016_v43 }
 0x12e   :  { %1500 = vst [vmem:[%s4107_s1 + $0xc50] sm:$0xff] %v3025_v44 }
 0x12f   :  { %1501 = vst [vmem:[%s4107_s1 + $0xd50] sm:$0xff] %v3034_v45 }
 0x130   :  { %1502 = vst [vmem:[%s4107_s1 + $0xe50] sm:$0xff] %v3043_v46 }
 0x131   :  { %1503 = vst [vmem:[%s4107_s1 + $0xf50] sm:$0xff] %v3052_v47 }
 0x132   :  { %1504 = vst [vmem:[%s4107_s1 + $0x70] sm:$0xff] %v2917_v32 }
 0x133   :  { %1505 = vst [vmem:[%s4107_s1 + $0x170] sm:$0xff] %v2926_v33 }
 0x134   :  { %1506 = vst [vmem:[%s4107_s1 + $0x270] sm:$0xff] %v2935_v34 }
 0x135   :  { %1507 = vst [vmem:[%s4107_s1 + $0x370] sm:$0xff] %v2944_v35 }
 0x136   :  { %1508 = vst [vmem:[%s4107_s1 + $0x470] sm:$0xff] %v2953_v36 }
 0x137   :  { %1509 = vst [vmem:[%s4107_s1 + $0x570] sm:$0xff] %v2962_v37 }
 0x138   :  { %1510 = vst [vmem:[%s4107_s1 + $0x670] sm:$0xff] %v2971_v38 }
 0x139   :  { %1511 = vst [vmem:[%s4107_s1 + $0x770] sm:$0xff] %v2980_v39 }
 0x13a   :  { %1512 = vst [vmem:[%s4107_s1 + $0x870] sm:$0xff] %v2989_v40 }
 0x13b   :  { %1513 = vst [vmem:[%s4107_s1 + $0x970] sm:$0xff] %v2998_v41 }
 0x13c   :  { %1514 = vst [vmem:[%s4107_s1 + $0xa70] sm:$0xff] %v3007_v42 }
 0x13d   :  { %1515 = vst [vmem:[%s4107_s1 + $0xb70] sm:$0xff] %v3016_v43 }
 0x13e   :  { %1516 = vst [vmem:[%s4107_s1 + $0xc70] sm:$0xff] %v3025_v44 }
 0x13f   :  { %1517 = vst [vmem:[%s4107_s1 + $0xd70] sm:$0xff] %v3034_v45 }
 0x140   :  { %1518 = vst [vmem:[%s4107_s1 + $0xe70] sm:$0xff] %v3043_v46 }
 0x141   :  { %1519 = vst [vmem:[%s4107_s1 + $0xf70] sm:$0xff] %v3052_v47 }
 0x142   :  { %1520 = vst [vmem:[%s4107_s1 + $0x90] sm:$0xff] %v2917_v32 }
 0x143   :  { %1521 = vst [vmem:[%s4107_s1 + $0x190] sm:$0xff] %v2926_v33 }
 0x144   :  { %1522 = vst [vmem:[%s4107_s1 + $0x290] sm:$0xff] %v2935_v34 }
 0x145   :  { %1523 = vst [vmem:[%s4107_s1 + $0x390] sm:$0xff] %v2944_v35 }
 0x146   :  { %1524 = vst [vmem:[%s4107_s1 + $0x490] sm:$0xff] %v2953_v36 }
 0x147   :  { %1525 = vst [vmem:[%s4107_s1 + $0x590] sm:$0xff] %v2962_v37 }
 0x148   :  { %1526 = vst [vmem:[%s4107_s1 + $0x690] sm:$0xff] %v2971_v38 }
 0x149   :  { %1527 = vst [vmem:[%s4107_s1 + $0x790] sm:$0xff] %v2980_v39 }
 0x14a   :  { %1528 = vst [vmem:[%s4107_s1 + $0x890] sm:$0xff] %v2989_v40 }
 0x14b   :  { %1529 = vst [vmem:[%s4107_s1 + $0x990] sm:$0xff] %v2998_v41 }
 0x14c   :  { %1530 = vst [vmem:[%s4107_s1 + $0xa90] sm:$0xff] %v3007_v42 }
 0x14d   :  { %1531 = vst [vmem:[%s4107_s1 + $0xb90] sm:$0xff] %v3016_v43 }
 0x14e   :  { %1532 = vst [vmem:[%s4107_s1 + $0xc90] sm:$0xff] %v3025_v44 }
 0x14f   :  { %1533 = vst [vmem:[%s4107_s1 + $0xd90] sm:$0xff] %v3034_v45 }
 0x150   :  { %1534 = vst [vmem:[%s4107_s1 + $0xe90] sm:$0xff] %v3043_v46 }
 0x151   :  { %1535 = vst [vmem:[%s4107_s1 + $0xf90] sm:$0xff] %v3052_v47 }
 0x152   :  { %1536 = vst [vmem:[%s4107_s1 + $0xb0] sm:$0xff] %v2917_v32 }
 0x153   :  { %1537 = vst [vmem:[%s4107_s1 + $0x1b0] sm:$0xff] %v2926_v33 }
 0x154   :  { %1538 = vst [vmem:[%s4107_s1 + $0x2b0] sm:$0xff] %v2935_v34 }
 0x155   :  { %1539 = vst [vmem:[%s4107_s1 + $0x3b0] sm:$0xff] %v2944_v35 }
 0x156   :  { %1540 = vst [vmem:[%s4107_s1 + $0x4b0] sm:$0xff] %v2953_v36 }
 0x157   :  { %1541 = vst [vmem:[%s4107_s1 + $0x5b0] sm:$0xff] %v2962_v37 }
 0x158   :  { %1542 = vst [vmem:[%s4107_s1 + $0x6b0] sm:$0xff] %v2971_v38 }
 0x159   :  { %1543 = vst [vmem:[%s4107_s1 + $0x7b0] sm:$0xff] %v2980_v39 }
 0x15a   :  { %1544 = vst [vmem:[%s4107_s1 + $0x8b0] sm:$0xff] %v2989_v40 }
 0x15b   :  { %1545 = vst [vmem:[%s4107_s1 + $0x9b0] sm:$0xff] %v2998_v41 }
 0x15c   :  { %1546 = vst [vmem:[%s4107_s1 + $0xab0] sm:$0xff] %v3007_v42 }
 0x15d   :  { %1547 = vst [vmem:[%s4107_s1 + $0xbb0] sm:$0xff] %v3016_v43 }
 0x15e   :  { %1548 = vst [vmem:[%s4107_s1 + $0xcb0] sm:$0xff] %v3025_v44 }
 0x15f   :  { %1549 = vst [vmem:[%s4107_s1 + $0xdb0] sm:$0xff] %v3034_v45 }
 0x160   :  { %1550 = vst [vmem:[%s4107_s1 + $0xeb0] sm:$0xff] %v3043_v46 }
 0x161   :  { %1551 = vst [vmem:[%s4107_s1 + $0xfb0] sm:$0xff] %v3052_v47 }
 0x162   :  { %1552 = vst [vmem:[%s4107_s1 + $0xd0] sm:$0xff] %v2917_v32 }
 0x163   :  { %1553 = vst [vmem:[%s4107_s1 + $0x1d0] sm:$0xff] %v2926_v33 }
 0x164   :  { %1554 = vst [vmem:[%s4107_s1 + $0x2d0] sm:$0xff] %v2935_v34 }
 0x165   :  { %1555 = vst [vmem:[%s4107_s1 + $0x3d0] sm:$0xff] %v2944_v35 }
 0x166   :  { %1556 = vst [vmem:[%s4107_s1 + $0x4d0] sm:$0xff] %v2953_v36 }
 0x167   :  { %1557 = vst [vmem:[%s4107_s1 + $0x5d0] sm:$0xff] %v2962_v37 }
 0x168   :  { %1558 = vst [vmem:[%s4107_s1 + $0x6d0] sm:$0xff] %v2971_v38 }
 0x169   :  { %1559 = vst [vmem:[%s4107_s1 + $0x7d0] sm:$0xff] %v2980_v39 }
 0x16a   :  { %1560 = vst [vmem:[%s4107_s1 + $0x8d0] sm:$0xff] %v2989_v40 }
 0x16b   :  { %1561 = vst [vmem:[%s4107_s1 + $0x9d0] sm:$0xff] %v2998_v41 }
 0x16c   :  { %1562 = vst [vmem:[%s4107_s1 + $0xad0] sm:$0xff] %v3007_v42 }
 0x16d   :  { %1563 = vst [vmem:[%s4107_s1 + $0xbd0] sm:$0xff] %v3016_v43 }
 0x16e   :  { %1564 = vst [vmem:[%s4107_s1 + $0xcd0] sm:$0xff] %v3025_v44 }
 0x16f   :  { %1565 = vst [vmem:[%s4107_s1 + $0xdd0] sm:$0xff] %v3034_v45 }
 0x170   :  { %1566 = vst [vmem:[%s4107_s1 + $0xed0] sm:$0xff] %v3043_v46 }
 0x171   :  { %1567 = vst [vmem:[%s4107_s1 + $0xfd0] sm:$0xff] %v3052_v47 }
 0x172   :  { %1568 = vst [vmem:[%s4107_s1 + $0xf0] sm:$0xff] %v2917_v32 }
 0x173   :  { %1569 = vst [vmem:[%s4107_s1 + $0x1f0] sm:$0xff] %v2926_v33 }
 0x174   :  { %1570 = vst [vmem:[%s4107_s1 + $0x2f0] sm:$0xff] %v2935_v34 }
 0x175   :  { %1571 = vst [vmem:[%s4107_s1 + $0x3f0] sm:$0xff] %v2944_v35 }
 0x176   :  { %1572 = vst [vmem:[%s4107_s1 + $0x4f0] sm:$0xff] %v2953_v36 }
 0x177   :  { %1573 = vst [vmem:[%s4107_s1 + $0x5f0] sm:$0xff] %v2962_v37 }
 0x178   :  { %1574 = vst [vmem:[%s4107_s1 + $0x6f0] sm:$0xff] %v2971_v38 }
 0x179   :  { %1575 = vst [vmem:[%s4107_s1 + $0x7f0] sm:$0xff] %v2980_v39 }
 0x17a   :  { %1576 = vst [vmem:[%s4107_s1 + $0x8f0] sm:$0xff] %v2989_v40 }
 0x17b   :  { %1577 = vst [vmem:[%s4107_s1 + $0x9f0] sm:$0xff] %v2998_v41 }
 0x17c   :  { %1578 = vst [vmem:[%s4107_s1 + $0xaf0] sm:$0xff] %v3007_v42 }
 0x17d   :  { %1579 = vst [vmem:[%s4107_s1 + $0xbf0] sm:$0xff] %v3016_v43 }
 0x17e   :  { %1580 = vst [vmem:[%s4107_s1 + $0xcf0] sm:$0xff] %v3025_v44 }
 0x17f   :  { %1581 = vst [vmem:[%s4107_s1 + $0xdf0] sm:$0xff] %v3034_v45 }
 0x180   :  { %1582 = vst [vmem:[%s4107_s1 + $0xef0] sm:$0xff] %v3043_v46 }
 0x181   :  { %1583 = vst [vmem:[%s4107_s1 + $0xff0] sm:$0xff] %v3052_v47 }
 0x182   :  { %1585 = vst [vmem:[%s4107_s1 + $0x18] sm:$0xff] %v3509_v48 }
 0x183   :  { %1587 = vst [vmem:[%s4107_s1 + $0x118] sm:$0xff] %v3518_v49 }
 0x184   :  { %1589 = vst [vmem:[%s4107_s1 + $0x218] sm:$0xff] %v3527_v50 }
 0x185   :  { %1591 = vst [vmem:[%s4107_s1 + $0x318] sm:$0xff] %v3536_v51 }
 0x186   :  { %1593 = vst [vmem:[%s4107_s1 + $0x418] sm:$0xff] %v3545_v52 }
 0x187   :  { %1595 = vst [vmem:[%s4107_s1 + $0x518] sm:$0xff] %v3554_v53 }
 0x188   :  { %1597 = vst [vmem:[%s4107_s1 + $0x618] sm:$0xff] %v3563_v54 }
 0x189   :  { %1599 = vst [vmem:[%s4107_s1 + $0x718] sm:$0xff] %v3572_v55 }
 0x18a   :  { %1601 = vst [vmem:[%s4107_s1 + $0x818] sm:$0xff] %v3581_v56 }
 0x18b   :  { %1603 = vst [vmem:[%s4107_s1 + $0x918] sm:$0xff] %v3590_v57 }
 0x18c   :  { %1605 = vst [vmem:[%s4107_s1 + $0xa18] sm:$0xff] %v3599_v58 }
 0x18d   :  { %1607 = vst [vmem:[%s4107_s1 + $0xb18] sm:$0xff] %v3608_v59 }
 0x18e   :  { %1609 = vst [vmem:[%s4107_s1 + $0xc18] sm:$0xff] %v3617_v60 }
 0x18f   :  { %1611 = vst [vmem:[%s4107_s1 + $0xd18] sm:$0xff] %v3626_v61 }
 0x190   :  { %1613 = vst [vmem:[%s4107_s1 + $0xe18] sm:$0xff] %v3635_v62 }
 0x191   :  { %1615 = vst [vmem:[%s4107_s1 + $0xf18] sm:$0xff] %v3644_v63 }
 0x192   :  { %1616 = vst [vmem:[%s4107_s1 + $0x38] sm:$0xff] %v3509_v48 }
 0x193   :  { %1617 = vst [vmem:[%s4107_s1 + $0x138] sm:$0xff] %v3518_v49 }
 0x194   :  { %1618 = vst [vmem:[%s4107_s1 + $0x238] sm:$0xff] %v3527_v50 }
 0x195   :  { %1619 = vst [vmem:[%s4107_s1 + $0x338] sm:$0xff] %v3536_v51 }
 0x196   :  { %1620 = vst [vmem:[%s4107_s1 + $0x438] sm:$0xff] %v3545_v52 }
 0x197   :  { %1621 = vst [vmem:[%s4107_s1 + $0x538] sm:$0xff] %v3554_v53 }
 0x198   :  { %1622 = vst [vmem:[%s4107_s1 + $0x638] sm:$0xff] %v3563_v54 }
 0x199   :  { %1623 = vst [vmem:[%s4107_s1 + $0x738] sm:$0xff] %v3572_v55 }
 0x19a   :  { %1624 = vst [vmem:[%s4107_s1 + $0x838] sm:$0xff] %v3581_v56 }
 0x19b   :  { %1625 = vst [vmem:[%s4107_s1 + $0x938] sm:$0xff] %v3590_v57 }
 0x19c   :  { %1626 = vst [vmem:[%s4107_s1 + $0xa38] sm:$0xff] %v3599_v58 }
 0x19d   :  { %1627 = vst [vmem:[%s4107_s1 + $0xb38] sm:$0xff] %v3608_v59 }
 0x19e   :  { %1628 = vst [vmem:[%s4107_s1 + $0xc38] sm:$0xff] %v3617_v60 }
 0x19f   :  { %1629 = vst [vmem:[%s4107_s1 + $0xd38] sm:$0xff] %v3626_v61 }
 0x1a0   :  { %1630 = vst [vmem:[%s4107_s1 + $0xe38] sm:$0xff] %v3635_v62 }
 0x1a1   :  { %1631 = vst [vmem:[%s4107_s1 + $0xf38] sm:$0xff] %v3644_v63 }
 0x1a2   :  { %1632 = vst [vmem:[%s4107_s1 + $0x58] sm:$0xff] %v3509_v48 }
 0x1a3   :  { %1633 = vst [vmem:[%s4107_s1 + $0x158] sm:$0xff] %v3518_v49 }
 0x1a4   :  { %1634 = vst [vmem:[%s4107_s1 + $0x258] sm:$0xff] %v3527_v50 }
 0x1a5   :  { %1635 = vst [vmem:[%s4107_s1 + $0x358] sm:$0xff] %v3536_v51 }
 0x1a6   :  { %1636 = vst [vmem:[%s4107_s1 + $0x458] sm:$0xff] %v3545_v52 }
 0x1a7   :  { %1637 = vst [vmem:[%s4107_s1 + $0x558] sm:$0xff] %v3554_v53 }
 0x1a8   :  { %1638 = vst [vmem:[%s4107_s1 + $0x658] sm:$0xff] %v3563_v54 }
 0x1a9   :  { %1639 = vst [vmem:[%s4107_s1 + $0x758] sm:$0xff] %v3572_v55 }
 0x1aa   :  { %1640 = vst [vmem:[%s4107_s1 + $0x858] sm:$0xff] %v3581_v56 }
 0x1ab   :  { %1641 = vst [vmem:[%s4107_s1 + $0x958] sm:$0xff] %v3590_v57 }
 0x1ac   :  { %1642 = vst [vmem:[%s4107_s1 + $0xa58] sm:$0xff] %v3599_v58 }
 0x1ad   :  { %1643 = vst [vmem:[%s4107_s1 + $0xb58] sm:$0xff] %v3608_v59 }
 0x1ae   :  { %1644 = vst [vmem:[%s4107_s1 + $0xc58] sm:$0xff] %v3617_v60 }
 0x1af   :  { %1645 = vst [vmem:[%s4107_s1 + $0xd58] sm:$0xff] %v3626_v61 }
 0x1b0   :  { %1646 = vst [vmem:[%s4107_s1 + $0xe58] sm:$0xff] %v3635_v62 }
 0x1b1   :  { %1647 = vst [vmem:[%s4107_s1 + $0xf58] sm:$0xff] %v3644_v63 }
 0x1b2   :  { %1648 = vst [vmem:[%s4107_s1 + $0x78] sm:$0xff] %v3509_v48 }
 0x1b3   :  { %1649 = vst [vmem:[%s4107_s1 + $0x178] sm:$0xff] %v3518_v49 }
 0x1b4   :  { %1650 = vst [vmem:[%s4107_s1 + $0x278] sm:$0xff] %v3527_v50 }
 0x1b5   :  { %1651 = vst [vmem:[%s4107_s1 + $0x378] sm:$0xff] %v3536_v51 }
 0x1b6   :  { %1652 = vst [vmem:[%s4107_s1 + $0x478] sm:$0xff] %v3545_v52 }
 0x1b7   :  { %1653 = vst [vmem:[%s4107_s1 + $0x578] sm:$0xff] %v3554_v53 }
 0x1b8   :  { %1654 = vst [vmem:[%s4107_s1 + $0x678] sm:$0xff] %v3563_v54 }
 0x1b9   :  { %1655 = vst [vmem:[%s4107_s1 + $0x778] sm:$0xff] %v3572_v55 }
 0x1ba   :  { %1656 = vst [vmem:[%s4107_s1 + $0x878] sm:$0xff] %v3581_v56 }
 0x1bb   :  { %1657 = vst [vmem:[%s4107_s1 + $0x978] sm:$0xff] %v3590_v57 }
 0x1bc   :  { %1658 = vst [vmem:[%s4107_s1 + $0xa78] sm:$0xff] %v3599_v58 }
 0x1bd   :  { %1659 = vst [vmem:[%s4107_s1 + $0xb78] sm:$0xff] %v3608_v59 }
 0x1be   :  { %1660 = vst [vmem:[%s4107_s1 + $0xc78] sm:$0xff] %v3617_v60 }
 0x1bf   :  { %1661 = vst [vmem:[%s4107_s1 + $0xd78] sm:$0xff] %v3626_v61 }
 0x1c0   :  { %1662 = vst [vmem:[%s4107_s1 + $0xe78] sm:$0xff] %v3635_v62 }
 0x1c1   :  { %1663 = vst [vmem:[%s4107_s1 + $0xf78] sm:$0xff] %v3644_v63 }
 0x1c2   :  { %1664 = vst [vmem:[%s4107_s1 + $0x98] sm:$0xff] %v3509_v48 }
 0x1c3   :  { %1665 = vst [vmem:[%s4107_s1 + $0x198] sm:$0xff] %v3518_v49 }
 0x1c4   :  { %1666 = vst [vmem:[%s4107_s1 + $0x298] sm:$0xff] %v3527_v50 }
 0x1c5   :  { %1667 = vst [vmem:[%s4107_s1 + $0x398] sm:$0xff] %v3536_v51 }
 0x1c6   :  { %1668 = vst [vmem:[%s4107_s1 + $0x498] sm:$0xff] %v3545_v52 }
 0x1c7   :  { %1669 = vst [vmem:[%s4107_s1 + $0x598] sm:$0xff] %v3554_v53 }
 0x1c8   :  { %1670 = vst [vmem:[%s4107_s1 + $0x698] sm:$0xff] %v3563_v54 }
 0x1c9   :  { %1671 = vst [vmem:[%s4107_s1 + $0x798] sm:$0xff] %v3572_v55 }
 0x1ca   :  { %1672 = vst [vmem:[%s4107_s1 + $0x898] sm:$0xff] %v3581_v56 }
 0x1cb   :  { %1673 = vst [vmem:[%s4107_s1 + $0x998] sm:$0xff] %v3590_v57 }
 0x1cc   :  { %1674 = vst [vmem:[%s4107_s1 + $0xa98] sm:$0xff] %v3599_v58 }
 0x1cd   :  { %1675 = vst [vmem:[%s4107_s1 + $0xb98] sm:$0xff] %v3608_v59 }
 0x1ce   :  { %1676 = vst [vmem:[%s4107_s1 + $0xc98] sm:$0xff] %v3617_v60 }
 0x1cf   :  { %1677 = vst [vmem:[%s4107_s1 + $0xd98] sm:$0xff] %v3626_v61 }
 0x1d0   :  { %1678 = vst [vmem:[%s4107_s1 + $0xe98] sm:$0xff] %v3635_v62 }
 0x1d1   :  { %1679 = vst [vmem:[%s4107_s1 + $0xf98] sm:$0xff] %v3644_v63 }
 0x1d2   :  { %1680 = vst [vmem:[%s4107_s1 + $0xb8] sm:$0xff] %v3509_v48 }
 0x1d3   :  { %1681 = vst [vmem:[%s4107_s1 + $0x1b8] sm:$0xff] %v3518_v49 }
 0x1d4   :  { %1682 = vst [vmem:[%s4107_s1 + $0x2b8] sm:$0xff] %v3527_v50 }
 0x1d5   :  { %1683 = vst [vmem:[%s4107_s1 + $0x3b8] sm:$0xff] %v3536_v51 }
 0x1d6   :  { %1684 = vst [vmem:[%s4107_s1 + $0x4b8] sm:$0xff] %v3545_v52 }
 0x1d7   :  { %1685 = vst [vmem:[%s4107_s1 + $0x5b8] sm:$0xff] %v3554_v53 }
 0x1d8   :  { %1686 = vst [vmem:[%s4107_s1 + $0x6b8] sm:$0xff] %v3563_v54 }
 0x1d9   :  { %1687 = vst [vmem:[%s4107_s1 + $0x7b8] sm:$0xff] %v3572_v55 }
 0x1da   :  { %1688 = vst [vmem:[%s4107_s1 + $0x8b8] sm:$0xff] %v3581_v56 }
 0x1db   :  { %1689 = vst [vmem:[%s4107_s1 + $0x9b8] sm:$0xff] %v3590_v57 }
 0x1dc   :  { %1690 = vst [vmem:[%s4107_s1 + $0xab8] sm:$0xff] %v3599_v58 }
 0x1dd   :  { %1691 = vst [vmem:[%s4107_s1 + $0xbb8] sm:$0xff] %v3608_v59 }
 0x1de   :  { %1692 = vst [vmem:[%s4107_s1 + $0xcb8] sm:$0xff] %v3617_v60 }
 0x1df   :  { %1693 = vst [vmem:[%s4107_s1 + $0xdb8] sm:$0xff] %v3626_v61 }
 0x1e0   :  { %1694 = vst [vmem:[%s4107_s1 + $0xeb8] sm:$0xff] %v3635_v62 }
 0x1e1   :  { %1695 = vst [vmem:[%s4107_s1 + $0xfb8] sm:$0xff] %v3644_v63 }
 0x1e2   :  { %1696 = vst [vmem:[%s4107_s1 + $0xd8] sm:$0xff] %v3509_v48 }
 0x1e3   :  { %1697 = vst [vmem:[%s4107_s1 + $0x1d8] sm:$0xff] %v3518_v49 }
 0x1e4   :  { %1698 = vst [vmem:[%s4107_s1 + $0x2d8] sm:$0xff] %v3527_v50 }
 0x1e5   :  { %1699 = vst [vmem:[%s4107_s1 + $0x3d8] sm:$0xff] %v3536_v51 }
 0x1e6   :  { %1700 = vst [vmem:[%s4107_s1 + $0x4d8] sm:$0xff] %v3545_v52 }
 0x1e7   :  { %1701 = vst [vmem:[%s4107_s1 + $0x5d8] sm:$0xff] %v3554_v53 }
 0x1e8   :  { %1702 = vst [vmem:[%s4107_s1 + $0x6d8] sm:$0xff] %v3563_v54 }
 0x1e9   :  { %1703 = vst [vmem:[%s4107_s1 + $0x7d8] sm:$0xff] %v3572_v55 }
 0x1ea   :  { %1704 = vst [vmem:[%s4107_s1 + $0x8d8] sm:$0xff] %v3581_v56 }
 0x1eb   :  { %1705 = vst [vmem:[%s4107_s1 + $0x9d8] sm:$0xff] %v3590_v57 }
 0x1ec   :  { %1706 = vst [vmem:[%s4107_s1 + $0xad8] sm:$0xff] %v3599_v58 }
 0x1ed   :  { %1707 = vst [vmem:[%s4107_s1 + $0xbd8] sm:$0xff] %v3608_v59 }
 0x1ee   :  { %1708 = vst [vmem:[%s4107_s1 + $0xcd8] sm:$0xff] %v3617_v60 }
 0x1ef   :  { %1709 = vst [vmem:[%s4107_s1 + $0xdd8] sm:$0xff] %v3626_v61 }
 0x1f0   :  { %1710 = vst [vmem:[%s4107_s1 + $0xed8] sm:$0xff] %v3635_v62 }
 0x1f1   :  { %1711 = vst [vmem:[%s4107_s1 + $0xfd8] sm:$0xff] %v3644_v63 }
 0x1f2   :  { %1712 = vst [vmem:[%s4107_s1 + $0xf8] sm:$0xff] %v3509_v48 }
 0x1f3   :  { %1713 = vst [vmem:[%s4107_s1 + $0x1f8] sm:$0xff] %v3518_v49 }
 0x1f4   :  { %1714 = vst [vmem:[%s4107_s1 + $0x2f8] sm:$0xff] %v3527_v50 }
 0x1f5   :  { %1715 = vst [vmem:[%s4107_s1 + $0x3f8] sm:$0xff] %v3536_v51 }
 0x1f6   :  { %1716 = vst [vmem:[%s4107_s1 + $0x4f8] sm:$0xff] %v3545_v52 }
 0x1f7   :  { %1717 = vst [vmem:[%s4107_s1 + $0x5f8] sm:$0xff] %v3554_v53 }
 0x1f8   :  { %1718 = vst [vmem:[%s4107_s1 + $0x6f8] sm:$0xff] %v3563_v54 }
 0x1f9   :  { %1719 = vst [vmem:[%s4107_s1 + $0x7f8] sm:$0xff] %v3572_v55 }
 0x1fa   :  { %1720 = vst [vmem:[%s4107_s1 + $0x8f8] sm:$0xff] %v3581_v56 }
 0x1fb   :  { %1721 = vst [vmem:[%s4107_s1 + $0x9f8] sm:$0xff] %v3590_v57 }
 0x1fc   :  { %1722 = vst [vmem:[%s4107_s1 + $0xaf8] sm:$0xff] %v3599_v58 }
 0x1fd   :  { %1723 = vst [vmem:[%s4107_s1 + $0xbf8] sm:$0xff] %v3608_v59 }
 0x1fe   :  { %1724 = vst [vmem:[%s4107_s1 + $0xcf8] sm:$0xff] %v3617_v60 }
 0x1ff   :  { %1725 = vst [vmem:[%s4107_s1 + $0xdf8] sm:$0xff] %v3626_v61 }
 0x200   :  { %1726 = vst [vmem:[%s4107_s1 + $0xef8] sm:$0xff] %v3635_v62 }
 0x201   :  { %1727 = vst [vmem:[%s4107_s1 + $0xff8] sm:$0xff] %v3644_v63 }

// kernel: mcrm_forward.1
= control target key start
LH: loop header
LB: loop body
LE: loop exit
PB: predicated region body
PF: predicated region fallthrough
CT: control target
= control target key end

     0   :  { %s5097_s29 = smov 0   ;;  %s8384_s0 = inlined_call_operand.vmem [shape: f32[256,128], index: 0, kind: input, shape index: {}]   ;;  %s8385_s1 = inlined_call_operand.vmem [shape: f32[256,128], index: 1, kind: input, shape index: {}]   ;;  %s8386_s2 = inlined_call_operand.vmem [shape: f32[128,128], index: 2, kind: input, shape index: {}]   ;;  %s8387_s3 = inlined_call_operand.vmem [shape: f32[128,128], index: 3, kind: input, shape index: {}]   ;;  %s8388_s4 = inlined_call_operand.vmem [shape: f32[128,512], index: 4, kind: input, shape index: {}]   ;;  %s8389_s5 = inlined_call_operand.vmem [shape: f32[512,256], index: 5, kind: input, shape index: {}]   ;;  %s8390_s6 = inlined_call_operand.vmem [shape: f32[128,128], index: 6, kind: input, shape index: {}]   ;;  %s8391_s7 = inlined_call_operand.vmem [shape: f32[128,256], index: 7, kind: input, shape index: {}]   ;;  %s8392_s8 = inlined_call_operand.vmem [shape: f32[1,256], index: 8, kind: input, shape index: {}]   ;;  %s8393_s9 = inlined_call_operand.vmem [shape: f32[256,128], index: 9, kind: input, shape index: {}]   ;;  %s8394_s10 = inlined_call_operand.vmem [shape: f32[128,128], index: 10, kind: input, shape index: {}]   ;;  %s8395_s11 = inlined_call_operand.vmem [shape: f32[8,128], index: 11, kind: input, shape index: {}]   ;;  %s8396_s12 = inlined_call_operand.vmem [shape: f32[1,512], index: 12, kind: input, shape index: {}]   ;;  %s8397_s13 = inlined_call_operand.vmem [shape: f32[256,128], index: 13, kind: output, shape index: {0}]   ;;  %s8398_s14 = inlined_call_operand.vmem [shape: bf16[256,128], index: 14, kind: output, shape index: {1}]  }
   0x1 LB: > { %s4513_s30 = sadd.s32 4294967295, %s5017_s29   ;;  %p4517_p0 = scmp.ge.s32.totalorder %s5017_s29, 1  ;;  %s5017_s29 = sphi %s5097_s29, %s25_s29  }
   0x2   : > { %p427_p1 = scmp.lt.s32.totalorder %s5017_s29, 3 }
   0x4   : > { %p428_p2 = pnand %p4517_p0, %p427_p1 }
   0x6   : > { %431 = sbr.rel (%p428_p2) target bundleno = 2151 (0x867), region = 72 }
   0xb   : > { %v539_v0 = vld [vmem:[%s8386_s2 + $0x78] sm:$0xff]  ;;  %v538_v1 = vld [vmem:[%s8386_s2 + $0x70] sm:$0xff]  ;;  %v537_v2 = vld [vmem:[%s8386_s2 + $0x68] sm:$0xff]  ;;  %s4518_s17 = sshll.u32 %s4513_s30, 4  ;;  %s5019_s18 = smov 16  }
   0xc   : > { %541 = vmatpush.msra.mxu0 %v539_v0  ;;  %4591 = vmatpush.msra.mxu3 %v539_v0  ;;  %v536_v3 = vld [vmem:[%s8386_s2 + $0x60] sm:$0xff]  ;;  %v535_v4 = vld [vmem:[%s8386_s2 + $0x58] sm:$0xff]  ;;  %v534_v5 = vld [vmem:[%s8386_s2 + $0x50] sm:$0xff]  ;;  %p484_p3 = scmp.lt.s32.totalorder %s4518_s17, 31  ;;  %s5020_s19 = smov 32  }
   0xd   : > { %v533_v6 = vld [vmem:[%s8386_s2 + $0x48] sm:$0xff]  ;;  %v532_v7 = vld [vmem:[%s8386_s2 + $0x40] sm:$0xff]  ;;  %v531_v8 = vld [vmem:[%s8386_s2 + $0x38] sm:$0xff]  ;;  %s5021_s20 = smov 64  }
   0xe   : > { %542 = vmatpush.msra.mxu0 %v538_v1  ;;  %4592 = vmatpush.msra.mxu3 %v538_v1  ;;  %v530_v9 = vld [vmem:[%s8386_s2 + $0x30] sm:$0xff]  ;;  %v529_v10 = vld [vmem:[%s8386_s2 + $0x28] sm:$0xff]  ;;  %s8652_s17 = smov (!%p484_p3, %s4518_s17), 31  ;;  %v528_v11 = vld [vmem:[%s8386_s2 + $0x20] sm:$0xff] }
   0xf   : > { %v527_v12 = vld [vmem:[%s8386_s2 + $0x18] sm:$0xff]  ;;  %s5147_s27 = sshll.u32 %s8652_s17, 3  ;;  %v526_v13 = vld [vmem:[%s8386_s2 + $0x10] sm:$0xff]  ;;  %v525_v14 = vld [vmem:[%s8386_s2 + $0x8] sm:$0xff]  ;;  %s4525_s22 = sshll.u32 %s8652_s17, 2 }
  0x10   : > { %543 = vmatpush.msra.mxu0 %v537_v2  ;;  %4593 = vmatpush.msra.mxu3 %v537_v2  ;;  %s5159_s21 = scalar_lea.vmem %s8385_s1, %s5147_s27  ;;  %v524_v15 = vld [vmem:[%s8386_s2] sm:$0xff]  ;;  %v989_v32 = vld [vmem:[%s8387_s3 + $0x78] sm:$0xff]  ;;  %v988_v33 = vld [vmem:[%s8387_s3 + $0x70] sm:$0xff]  ;;  %s5327_s30 = scalar_lea.vmem %s8398_s14, %s4525_s22 }
  0x11   : > { %v508_v16 = vld [vmem:[%s5159_s21] sm:$0xff]  ;;  %v509_v18 = vld [vmem:[%s5159_s21 + $0x8] sm:$0xff]  ;;  %v510_v20 = vld [vmem:[%s5159_s21 + $0x10] sm:$0xff]  ;;  %4607 = vmatpush.msra.mxu1 %v989_v32 }
  0x12   : > { %544 = vmatpush.msra.mxu0 %v536_v3  ;;  %4594 = vmatpush.msra.mxu3 %v536_v3  ;;  %v512_v17 = vld [vmem:[%s5159_s21 + $0x20] sm:$0xff]  ;;  %v513_v19 = vld [vmem:[%s5159_s21 + $0x28] sm:$0xff]  ;;  %v514_v21 = vld [vmem:[%s5159_s21 + $0x30] sm:$0xff] }
  0x13   : > { %v511_v22 = vld [vmem:[%s5159_s21 + $0x18] sm:$0xff]  ;;  %v516_v24 = vld [vmem:[%s5159_s21 + $0x40] sm:$0xff]  ;;  %v517_v25 = vld [vmem:[%s5159_s21 + $0x48] sm:$0xff]  ;;  %4608 = vmatpush.msra.mxu1 %v988_v33 }
  0x14   : > { %545 = vmatpush.msra.mxu0 %v535_v4  ;;  %4595 = vmatpush.msra.mxu3 %v535_v4  ;;  %v515_v23 = vld [vmem:[%s5159_s21 + $0x38] sm:$0xff]  ;;  %v518_v26 = vld [vmem:[%s5159_s21 + $0x50] sm:$0xff]  ;;  %v520_v28 = vld [vmem:[%s5159_s21 + $0x60] sm:$0xff] }
  0x15   : > { %v519_v27 = vld [vmem:[%s5159_s21 + $0x58] sm:$0xff]  ;;  %v521_v29 = vld [vmem:[%s5159_s21 + $0x68] sm:$0xff]  ;;  %v522_v30 = vld [vmem:[%s5159_s21 + $0x70] sm:$0xff] }
  0x16   : > { %546 = vmatpush.msra.mxu0 %v534_v5  ;;  %4596 = vmatpush.msra.mxu3 %v534_v5  ;;  %v523_v31 = vld [vmem:[%s5159_s21 + $0x78] sm:$0xff]  ;;  %v987_v34 = vld [vmem:[%s8387_s3 + $0x68] sm:$0xff]  ;;  %v986_v35 = vld [vmem:[%s8387_s3 + $0x60] sm:$0xff]  ;;  %s5250_s21 = scalar_lea.vmem %s8384_s0, %s5147_s27 }
  0x17   : > { %4609 = vmatpush.msra.mxu1 %v987_v34  ;;  %v985_v36 = vld [vmem:[%s8387_s3 + $0x58] sm:$0xff]  ;;  %v984_v37 = vld [vmem:[%s8387_s3 + $0x50] sm:$0xff]  ;;  %v983_v38 = vld [vmem:[%s8387_s3 + $0x48] sm:$0xff] }
  0x18   : > { %547 = vmatpush.msra.mxu0 %v533_v6  ;;  %4597 = vmatpush.msra.mxu3 %v533_v6  ;;  %v982_v39 = vld [vmem:[%s8387_s3 + $0x40] sm:$0xff]  ;;  %v981_v40 = vld [vmem:[%s8387_s3 + $0x38] sm:$0xff]  ;;  %v980_v41 = vld [vmem:[%s8387_s3 + $0x30] sm:$0xff] }
  0x19   : > { %4610 = vmatpush.msra.mxu1 %v986_v35  ;;  %v979_v42 = vld [vmem:[%s8387_s3 + $0x28] sm:$0xff]  ;;  %v978_v43 = vld [vmem:[%s8387_s3 + $0x20] sm:$0xff]  ;;  %v977_v44 = vld [vmem:[%s8387_s3 + $0x18] sm:$0xff] }
  0x1a   : > { %548 = vmatpush.msra.mxu0 %v532_v7  ;;  %4598 = vmatpush.msra.mxu3 %v532_v7  ;;  %v507_v45 = vld [vmem:[%s8395_s11] sm:$0xff]  ;;  %v976_v46 = vld [vmem:[%s8387_s3 + $0x10] sm:$0xff]  ;;  %v975_v48 = vld [vmem:[%s8387_s3 + $0x8] sm:$0xff] }
  0x1b   : > { %4611 = vmatpush.msra.mxu1 %v985_v36  ;;  %v5225_v47 = vperm.slane %v507_v45, 0  ;;  %v974_v49 = vld [vmem:[%s8387_s3] sm:$0xff] }
  0x1c   : > { %549 = vmatpush.msra.mxu0 %v531_v8  ;;  %4599 = vmatpush.msra.mxu3 %v531_v8 }
  0x1d   : > { %4612 = vmatpush.msra.mxu1 %v984_v37 }
  0x1e   : > { %550 = vmatpush.msra.mxu0 %v530_v9  ;;  %4600 = vmatpush.msra.mxu3 %v530_v9 }
  0x1f   : > { %4613 = vmatpush.msra.mxu1 %v983_v38 }
  0x20   : > { %551 = vmatpush.msra.mxu0 %v529_v10  ;;  %4601 = vmatpush.msra.mxu3 %v529_v10 }
  0x21   : > { %4614 = vmatpush.msra.mxu1 %v982_v39 }
  0x22   : > { %552 = vmatpush.msra.mxu0 %v528_v11  ;;  %4602 = vmatpush.msra.mxu3 %v528_v11 }
  0x23   : > { %4615 = vmatpush.msra.mxu1 %v981_v40 }
  0x24   : > { %553 = vmatpush.msra.mxu0 %v527_v12  ;;  %4603 = vmatpush.msra.mxu3 %v527_v12 }
  0x25   : > { %4616 = vmatpush.msra.mxu1 %v980_v41 }
  0x26   : > { %554 = vmatpush.msra.mxu0 %v526_v13  ;;  %4604 = vmatpush.msra.mxu3 %v526_v13 }
  0x27   : > { %4617 = vmatpush.msra.mxu1 %v979_v42 }
  0x28   : > { %555 = vmatpush.msra.mxu0 %v525_v14  ;;  %4605 = vmatpush.msra.mxu3 %v525_v14 }
  0x29   : > { %4618 = vmatpush.msra.mxu1 %v978_v43 }
  0x2a   : > { %556 = vmatpush.msra.mxu0 %v524_v15  ;;  %4606 = vmatpush.msra.mxu3 %v524_v15 }
  0x2b   : > { %557 = vmatmul.f32.vlgmr.msra.gmra.mxu0 %v508_v16  ;;  %569 = vmatmul.f32.vlgmr.msra.gmra.mxu3 %v512_v17 }
  0x2c   : > { %991 = vmatpush.msrb.mxu0 %v989_v32  ;;  %4619 = vmatpush.msra.mxu1 %v977_v44 }
  0x2e   : > { %992 = vmatpush.msrb.mxu0 %v988_v33  ;;  %4620 = vmatpush.msra.mxu1 %v976_v46 }
  0x30   : > { %993 = vmatpush.msrb.mxu0 %v987_v34  ;;  %4621 = vmatpush.msra.mxu1 %v975_v48 }
  0x32   : > { %994 = vmatpush.msrb.mxu0 %v986_v35  ;;  %4622 = vmatpush.msra.mxu1 %v974_v49 }
  0x33   : > { %560 = vmatmul.f32.gmra.mxu0 %v509_v18  ;;  %572 = vmatmul.f32.gmra.mxu3 %v513_v19 }
  0x34   : > { %995 = vmatpush.msrb.mxu0 %v985_v36 }
  0x36   : > { %996 = vmatpush.msrb.mxu0 %v984_v37 }
  0x38   : > { %997 = vmatpush.msrb.mxu0 %v983_v38 }
  0x3a   : > { %998 = vmatpush.msrb.mxu0 %v982_v39 }
  0x3b   : > { %563 = vmatmul.f32.gmra.mxu0 %v510_v20  ;;  %575 = vmatmul.f32.gmra.mxu3 %v514_v21 }
  0x3c   : > { %999 = vmatpush.msrb.mxu0 %v981_v40 }
  0x3e   : > { %1000 = vmatpush.msrb.mxu0 %v980_v41 }
  0x40   : > { %1001 = vmatpush.msrb.mxu0 %v979_v42 }
  0x42   : > { %1002 = vmatpush.msrb.mxu0 %v978_v43 }
  0x43   : > { %566 = vmatmul.f32.gmra.mxu0 %v511_v22  ;;  %578 = vmatmul.f32.gmra.mxu3 %v515_v23 }
  0x44   : > { %1003 = vmatpush.msrb.mxu0 %v977_v44 }
  0x46   : > { %1004 = vmatpush.msrb.mxu0 %v976_v46 }
  0x48   : > { %1005 = vmatpush.msrb.mxu0 %v975_v48 }
  0x4a   : > { %1006 = vmatpush.msrb.mxu0 %v974_v49 }
  0x4b   : > { %581 = vmatmul.f32.gmra.mxu3 %v516_v24 }
  0x53   : > { %584 = vmatmul.f32.gmra.mxu3 %v517_v25 }
  0x5b   : > { %587 = vmatmul.f32.gmra.mxu3 %v518_v26 }
  0x63   : > { %590 = vmatmul.f32.gmra.mxu3 %v519_v27 }
  0x6b   : > { %593 = vmatmul.f32.gmra.mxu3 %v520_v28 }
  0x73   : > { %596 = vmatmul.f32.gmra.mxu3 %v521_v29  ;;  %v942_v29 = vld [vmem:[%s5250_s21] sm:$0xff] }
  0x7b   : > { %599 = vmatmul.f32.gmra.mxu3 %v522_v30 }
  0x83   : > { %602 = vmatmul.f32.gmra.mxu3 %v523_v31 }
  0xa8   : > { %v558_v50 = vpop.f32.mrf.mxu0 }
  0xa9   : > { %v559_v51 = vadd.f32 %v558_v50, %v5225_v47 }
  0xab   : > { %v4526_v52 = vmul.f32 -1.442695, %v559_v51 }
  0xad   : > { %4650 = vpow2.f32 %v4526_v52 }
  0xae   : > { %v570_v53 = vpop.f32.mrf.mxu3 }
  0xaf   : > { %v571_v54 = vadd.f32 %v570_v53, %v5225_v47 }
  0xb0   : > { %v561_v55 = vpop.f32.mrf.mxu0 }
  0xb1   : > { %v562_v56 = vadd.f32 %v561_v55, %v5225_v47  ;;  %v4530_v57 = vmul.f32 -1.442695, %v571_v54 }
  0xb3   : > { %v4651_v58 = vpop.eup %4650  ;;  %v4527_v59 = vmul.f32 -1.442695, %v562_v56  ;;  %4652 = vpow2.f32 %v4530_v57 }
  0xb4   : > { %v654_v60 = vadd.f32 1.0, %v4651_v58 }
  0xb5   : > { %4654 = vpow2.f32 %v4527_v59 }
  0xb6   : > { %4656 = vrcp.f32 %v654_v60  ;;  %v573_v61 = vpop.f32.mrf.mxu3  ;;  %v679_v9 = vand.u32 2147483647, %v654_v60  ;;  %v681_v12 = vand.u32 2147483648, %v654_v60  ;;  %vm675_vm1 = vweird.f32 %v654_v60 }
  0xb7   : > { %v574_v62 = vadd.f32 %v573_v61, %v5225_v47 }
  0xb8   : > { %v564_v63 = vpop.f32.mrf.mxu0  ;;  %vm5254_vm2 = vcmp.eq.f32.partialorder %v679_v9, 8.507059e+37  ;;  %v682_v26 = vor.u32 1.1754944e-38, %v681_v12 }
  0xb9   : > { %v4653_v0 = vpop.eup %4652  ;;  %v565_v1 = vadd.f32 %v564_v63, %v5225_v47  ;;  %v4531_v2 = vmul.f32 -1.442695, %v574_v62 }
  0xba   : > { %v5238_v3 = vadd.f32 1.0, %v4653_v0 }
  0xbb   : > { %v4655_v4 = vpop.eup %4654  ;;  %v4528_v5 = vmul.f32 -1.442695, %v565_v1  ;;  %4658 = vpow2.f32 %v4531_v2 }
  0xbc   : > { %v4657_v6 = vpop.eup %4656  ;;  %v5240_v7 = vadd.f32 1.0, %v4655_v4  ;;  %4660 = vrcp.f32 %v5238_v3  ;;  %v739_v37 = vand.u32 2147483647, %v5238_v3  ;;  %v741_v41 = vand.u32 2147483648, %v5238_v3 }
  0xbd   : > { %4662 = vpow2.f32 %v4528_v5  ;;  %v671_v8 = vmul.f32 %v4657_v6, %v654_v60  ;;  %vm676_vm0 = vweird.f32 %v4657_v6  ;;  %vm735_vm6 = vweird.f32 %v5238_v3  ;;  %v943_v60 = vld [vmem:[%s5250_s21 + $0x8] sm:$0xff] }
  0xbe   : > { %4664 = vrcp.f32 %v5240_v7  ;;  %v576_v10 = vpop.f32.mrf.mxu3  ;;  %v694_v22 = vand.u32 2147483647, %v5240_v7  ;;  %vm677_vm3 = vmor %vm675_vm1, %vm676_vm0  ;;  %v696_v30 = vand.u32 2147483648, %v5240_v7  ;;  %vm690_vm4 = vweird.f32 %v5240_v7 }
  0xbf   : > { %v672_v11 = vsub.f32 1.0, %v671_v8  ;;  %v577_v13 = vadd.f32 %v576_v10, %v5225_v47  ;;  %vm5292_vm9 = vcmp.eq.f32.partialorder %v739_v37, 8.507059e+37  ;;  %v742_v56 = vor.u32 1.1754944e-38, %v741_v41 }
  0xc0   : > { %v567_v14 = vpop.f32.mrf.mxu0  ;;  %vm5273_vm5 = vcmp.eq.f32.partialorder %v694_v22, 8.507059e+37  ;;  %v697_v42 = vor.u32 1.1754944e-38, %v696_v30 }
  0xc1   : > { %v4659_v15 = vpop.eup %4658  ;;  %v568_v16 = vadd.f32 %v567_v14, %v5225_v47  ;;  %v673_v17 = vmul.f32 %v4657_v6, %v672_v11  ;;  %v4532_v18 = vmul.f32 -1.442695, %v577_v13  ;;  %v946_v11 = vld [vmem:[%s5250_s21 + $0x20] sm:$0xff] }
  0xc2   : > { %v5252_v19 = vpop.eup %4660  ;;  %v5258_v21 = vadd.f32 1.0, %v4659_v15 }
  0xc3   : > { %v4663_v23 = vpop.eup %4662  ;;  %v4529_v24 = vmul.f32 -1.442695, %v568_v16  ;;  %v674_v25 = vadd.f32 %v4657_v6, %v673_v17  ;;  %4666 = vpow2.f32 %v4532_v18  ;;  %v731_v31 = vmul.f32 %v5252_v19, %v5238_v3 }
  0xc4   : > { %v4665_v27 = vpop.eup %4664  ;;  %v5261_v28 = vadd.f32 1.0, %v4663_v23  ;;  %4668 = vrcp.f32 %v5258_v21  ;;  %vm736_vm7 = vweird.f32 %v5252_v19  ;;  %v754_v62 = vand.u32 2147483647, %v5258_v21 }
  0xc5   : > { %4670 = vpow2.f32 %v4529_v24  ;;  %v678_v32 = vsel %vm677_vm3, %v4657_v6, %v674_v25  ;;  %v686_v33 = vmul.f32 %v4665_v27, %v5240_v7  ;;  %v732_v43 = vsub.f32 1.0, %v731_v31  ;;  %vm5318_vm13 = vmor %vm735_vm6, %vm736_vm7 }
  0xc6   : > { %4672 = vrcp.f32 %v5261_v28  ;;  %v683_v34 = vsel %vm5254_vm2, %v682_v26, %v678_v32  ;;  %v579_v36 = vpop.f32.mrf.mxu3  ;;  %vm691_vm8 = vweird.f32 %v4665_v27  ;;  %v709_v46 = vand.u32 2147483647, %v5261_v28  ;;  %v944_v32 = vld [vmem:[%s5250_s21 + $0x10] sm:$0xff] }
  0xc7   : > { %v5278_v38 = vmul.f32 %v942_v29, %v683_v34  ;;  %v687_v39 = vsub.f32 1.0, %v686_v33  ;;  %v580_v40 = vadd.f32 %v579_v36, %v5225_v47  ;;  %v711_v51 = vand.u32 2147483648, %v5261_v28  ;;  %vm692_vm11 = vmor %vm690_vm4, %vm691_vm8  ;;  %v947_v36 = vld [vmem:[%s5250_s21 + $0x28] sm:$0xff] }
  0xc8   : > { %v733_v52 = vmul.f32 %v5252_v19, %v732_v43  ;;  %vm705_vm10 = vweird.f32 %v5261_v28  ;;  %vm5310_vm12 = vcmp.eq.f32.partialorder %v709_v46, 8.507059e+37  ;;  %v756_v5 = vand.u32 2147483648, %v5258_v21 }
  0xc9   : > { %8461 = vst [vmem:[#allocation2_spill] sm:$0xff] %v5278_v38  ;;  %v4667_v44 = vpop.eup %4666  ;;  %1007 = vmatmul.f32.vlgmr.msrb.gmra.mxu0 %v5278_v38  ;;  %v688_v45 = vmul.f32 %v4665_v27, %v687_v39  ;;  %v4533_v48 = vmul.f32 -1.442695, %v580_v40  ;;  %vm750_vm14 = vweird.f32 %v5258_v21  ;;  %v712_v10 = vor.u32 1.1754944e-38, %v711_v51 }
  0xca   : > { %v5286_v49 = vpop.eup %4668  ;;  %v5288_v50 = vadd.f32 1.0, %v4667_v44  ;;  %v734_v61 = vadd.f32 %v5252_v19, %v733_v52  ;;  %vm5341_vm0 = vcmp.eq.f32.partialorder %v754_v62, 8.507059e+37  ;;  %v757_v20 = vor.u32 1.1754944e-38, %v756_v5  ;;  %v948_v5 = vld [vmem:[%s5250_s21 + $0x30] sm:$0xff] }
  0xcb   : > { %v4671_v54 = vpop.eup %4670  ;;  %v689_v55 = vadd.f32 %v4665_v27, %v688_v45  ;;  %4674 = vpow2.f32 %v4533_v48  ;;  %v746_v57 = vmul.f32 %v5286_v49, %v5258_v21  ;;  %vm751_vm15 = vweird.f32 %v5286_v49 }
  0xcc   : > { %v4673_v58 = vpop.eup %4672  ;;  %v5300_v59 = vadd.f32 1.0, %v4671_v54  ;;  %4676 = vrcp.f32 %v5288_v50  ;;  %v738_v13 = vsel %vm5318_vm13, %v5252_v19, %v734_v61  ;;  %vm5353_vm2 = vmor %vm750_vm14, %vm751_vm15  ;;  %vm765_vm4 = vweird.f32 %v5288_v50 }
  0xcd   : > { %v693_v63 = vsel %vm692_vm11, %v4665_v27, %v689_v55  ;;  %v701_v0 = vmul.f32 %v4673_v58, %v5261_v28  ;;  %v747_v4 = vsub.f32 1.0, %v746_v57  ;;  %vm706_vm1 = vweird.f32 %v4673_v58  ;;  %v1101_v57 = vld [vmem:[%s8388_s4 + $0x168] sm:$0xff] }
  0xce   : > { %4678 = vrcp.f32 %v5300_v59  ;;  %v698_v6 = vsel %vm5273_vm5, %v697_v42, %v693_v63  ;;  %v582_v7 = vpop.f32.mrf.mxu3  ;;  %v743_v18 = vsel %vm5292_vm9, %v742_v56, %v738_v13  ;;  %v724_v29 = vand.u32 2147483647, %v5300_v59  ;;  %vm707_vm3 = vmor %vm705_vm10, %vm706_vm1  ;;  %v945_v63 = vld [vmem:[%s5250_s21 + $0x18] sm:$0xff] }
  0xcf   : > { %v4547_v3 = vpack.c.bf16 %v698_v6, %v683_v34  ;;  %v5333_v8 = vmul.f32 %v943_v60, %v698_v6  ;;  %v702_v9 = vsub.f32 1.0, %v701_v0  ;;  %v583_v12 = vadd.f32 %v582_v7, %v5225_v47  ;;  %v1117_v34 = vld [vmem:[%s8388_s4 + $0x1e8] sm:$0xff]  ;;  %v1115_v13 = vld [vmem:[%s8388_s4 + $0x1d8] sm:$0xff] }
  0xd0   : > { %v748_v14 = vmul.f32 %v5286_v49, %v747_v4  ;;  %v5361_v25 = vmul.f32 %v946_v11, %v743_v18  ;;  %v726_v21 = vand.u32 2147483648, %v5300_v59  ;;  %v771_v37 = vand.u32 2147483648, %v5288_v50  ;;  %1195 = vmatpush.msrb.mxu3 %v1117_v34  ;;  %v1119_v11 = vld [vmem:[%s8388_s4 + $0x1f8] sm:$0xff] }
  0xd1   : > { %8468 = vst [vmem:[#allocation3_spill] sm:$0xff] %v5333_v8  ;;  %v4675_v16 = vpop.eup %4674  ;;  %1010 = vmatmul.f32.gmra.mxu0 %v5333_v8  ;;  %v703_v17 = vmul.f32 %v4673_v58, %v702_v9  ;;  %v4534_v24 = vmul.f32 -1.442695, %v583_v12  ;;  %v769_v43 = vand.u32 2147483647, %v5288_v50  ;;  %vm720_vm6 = vweird.f32 %v5300_v59  ;;  %v1109_v12 = vld [vmem:[%s8388_s4 + $0x1a8] sm:$0xff]  ;;  %1325 = vmatpush.msrb.mxu1 %v1119_v11 }
  0xd2   : > { %4548 = vst [vmem:[%s5327_s30] sm:$0xff] %v4547_v3   ;;  %v5357_v22 = vpop.eup %4676  ;;  %v5359_v23 = vadd.f32 1.0, %v4675_v16  ;;  %v749_v26 = vadd.f32 %v5286_v49, %v748_v14  ;;  %1019 = vmatmul.f32.vlgmr.msra.gmra.mxu1 %v5361_v25  ;;  %v772_v55 = vor.u32 1.1754944e-38, %v771_v37  ;;  %vm5411_vm9 = vcmp.eq.f32.partialorder %v724_v29, 8.507059e+37 }
  0xd3   : > { %8473 = vst [vmem:[#allocation4_spill] sm:$0xff] %v5361_v25  ;;  %v704_v27 = vadd.f32 %v4673_v58, %v703_v17  ;;  %v761_v30 = vmul.f32 %v5357_v22, %v5288_v50  ;;  %vm766_vm5 = vweird.f32 %v5357_v22  ;;  %vm5416_vm10 = vcmp.eq.f32.partialorder %v769_v43, 8.507059e+37  ;;  %1326 = vmatpush.msrb.mxu1 %v1115_v13  ;;  %v951_v13 = vld [vmem:[%s5250_s21 + $0x48] sm:$0xff] }
  0xd4   : > { %v5368_v31 = vpop.eup %4678  ;;  %4680 = vrcp.f32 %v5359_v23  ;;  %v753_v33 = vsel %vm5353_vm2, %v5286_v49, %v749_v26  ;;  %vm5407_vm8 = vmor %vm765_vm4, %vm766_vm5  ;;  %vm780_vm11 = vweird.f32 %v5359_v23  ;;  %v784_v6 = vand.u32 2147483647, %v5359_v23 }
  0xd5   : > { %v708_v35 = vsel %vm707_vm3, %v4673_v58, %v704_v27  ;;  %v716_v28 = vmul.f32 %v5368_v31, %v5300_v59  ;;  %4682 = vpow2.f32 %v4534_v24  ;;  %v758_v41 = vsel %vm5341_vm0, %v757_v20, %v753_v33  ;;  %v1113_v59 = vld [vmem:[%s8388_s4 + $0x1c8] sm:$0xff]  ;;  %v1111_v33 = vld [vmem:[%s8388_s4 + $0x1b8] sm:$0xff] }
  0xd6   : > { %v713_v39 = vsel %vm5310_vm12, %v712_v10, %v708_v35  ;;  %v585_v40 = vpop.f32.mrf.mxu3  ;;  %v762_v42 = vsub.f32 1.0, %v761_v30  ;;  %v4557_v48 = vpack.c.bf16 %v758_v41, %v743_v18  ;;  %v5396_v49 = vmul.f32 %v947_v36, %v758_v41  ;;  %1196 = vmatpush.msrb.mxu3 %v1113_v59  ;;  %v949_v35 = vld [vmem:[%s5250_s21 + $0x38] sm:$0xff]  ;;  %1327 = vmatpush.msrb.mxu1 %v1111_v33 }
  0xd7   : > { %v5392_v44 = vmul.f32 %v944_v32, %v713_v39  ;;  %v717_v45 = vsub.f32 1.0, %v716_v28  ;;  %v586_v46 = vadd.f32 %v585_v40, %v5225_v47  ;;  %vm721_vm7 = vweird.f32 %v5368_v31  ;;  %v1105_v32 = vld [vmem:[%s8388_s4 + $0x188] sm:$0xff] }
  0xd8   : > { %8475 = vst [vmem:[#allocation6_spill] sm:$0xff] %v5396_v49  ;;  %v763_v51 = vmul.f32 %v5357_v22, %v762_v42  ;;  %v727_v58 = vor.u32 1.1754944e-38, %v726_v21  ;;  %vm5428_vm12 = vmor %vm720_vm6, %vm721_vm7  ;;  %v786_v7 = vand.u32 2147483648, %v5359_v23  ;;  %1197 = vmatpush.msrb.mxu3 %v1109_v12  ;;  %vm785_vm15 = vcmp.eq.f32.partialorder %v784_v6, 8.507059e+37 }
  0xd9   : > { %8474 = vst [vmem:[#allocation5_spill] sm:$0xff] %v5392_v44  ;;  %1013 = vmatmul.f32.gmra.mxu0 %v5392_v44  ;;  %v718_v52 = vmul.f32 %v5368_v31, %v717_v45  ;;  %v4535_v53 = vmul.f32 -1.442695, %v586_v46 }
  0xda   : > { %4585 = vst [vmem:[%s5327_s30 + $0x10] sm:$0xff] %v4557_v48   ;;  %v4681_v56 = vpop.eup %4680  ;;  %v764_v60 = vadd.f32 %v5357_v22, %v763_v51  ;;  %1022 = vmatmul.f32.gmra.mxu1 %v5396_v49  ;;  %v787_v24 = vor.u32 1.1754944e-38, %v786_v7  ;;  %1198 = vmatpush.msrb.mxu3 %v1105_v32  ;;  %v1095_v32 = vld [vmem:[%s8388_s4 + $0x138] sm:$0xff] }
  0xdb   : > { %v4683_v62 = vpop.eup %4682  ;;  %v719_v50 = vadd.f32 %v5368_v31, %v718_v52  ;;  %4684 = vpow2.f32 %v4535_v53  ;;  %v776_v0 = vmul.f32 %v4681_v56, %v5359_v23  ;;  %vm781_vm13 = vweird.f32 %v4681_v56 }
  0xdc   : > { %v5432_v2 = vadd.f32 1.0, %v4683_v62  ;;  %v768_v4 = vsel %vm5407_vm8, %v5357_v22, %v764_v60  ;;  %vm5469_vm14 = vmor %vm780_vm11, %vm781_vm13  ;;  %v950_v60 = vld [vmem:[%s5250_s21 + $0x40] sm:$0xff]  ;;  %1199 = vmatpush.msrb.mxu3 %v1101_v57  ;;  %v1093_v22 = vld [vmem:[%s8388_s4 + $0x128] sm:$0xff] }
  0xdd   : > { %v723_v3 = vsel %vm5428_vm12, %v5368_v31, %v719_v50  ;;  %v773_v9 = vsel %vm5416_vm10, %v772_v55, %v768_v4  ;;  %v777_v10 = vsub.f32 1.0, %v776_v0  ;;  %v1107_v50 = vld [vmem:[%s8388_s4 + $0x198] sm:$0xff] }
  0xde   : > { %v728_v14 = vsel %vm5411_vm9, %v727_v58, %v723_v3  ;;  %4686 = vrcp.f32 %v5432_v2  ;;  %v588_v15 = vpop.f32.mrf.mxu3  ;;  %v5464_v20 = vmul.f32 %v948_v5, %v773_v9  ;;  %vm795_vm0 = vweird.f32 %v5432_v2  ;;  %1328 = vmatpush.msrb.mxu1 %v1107_v50  ;;  %v1091_v57 = vld [vmem:[%s8388_s4 + $0x118] sm:$0xff] }
  0xdf   : > { %v4552_v16 = vpack.c.bf16 %v728_v14, %v713_v39  ;;  %v5461_v17 = vmul.f32 %v945_v63, %v728_v14  ;;  %v589_v18 = vadd.f32 %v588_v15, %v5225_v47  ;;  %v778_v19 = vmul.f32 %v4681_v56, %v777_v10  ;;  %v1097_v14 = vld [vmem:[%s8388_s4 + $0x148] sm:$0xff] }
  0xe0   : > { %8485 = vst [vmem:[#allocation8_spill] sm:$0xff] %v5464_v20  ;;  %v801_v37 = vand.u32 2147483648, %v5432_v2  ;;  %v799_v41 = vand.u32 2147483647, %v5432_v2  ;;  %1200 = vmatpush.msrb.mxu3 %v1097_v14 }
  0xe1   : > { %8484 = vst [vmem:[#allocation7_spill] sm:$0xff] %v5461_v17  ;;  %v4685_v26 = vpop.eup %4684  ;;  %1016 = vmatmul.f32.gmra.mxu0 %v5461_v17  ;;  %v4536_v27 = vmul.f32 -1.442695, %v589_v18  ;;  %v779_v29 = vadd.f32 %v4681_v56, %v778_v19  ;;  %v1103_v19 = vld [vmem:[%s8388_s4 + $0x178] sm:$0xff] }
  0xe2   : > { %4584 = vst [vmem:[%s5327_s30 + $0x8] sm:$0xff] %v4552_v16   ;;  %v663_v21 = vadd.f32 1.0, %v4685_v26  ;;  %1025 = vmatmul.f32.gmra.mxu1 %v5464_v20  ;;  %v802_v53 = vor.u32 1.1754944e-38, %v801_v37  ;;  %vm800_vm3 = vcmp.eq.f32.partialorder %v799_v41, 8.507059e+37  ;;  %1201 = vmatpush.msrb.mxu3 %v1093_v22  ;;  %v1083_v22 = vld [vmem:[%s8388_s4 + $0xd8] sm:$0xff] }
  0xe3   : > { %4688 = vpow2.f32 %v4536_v27  ;;  %v783_v30 = vsel %vm5469_vm14, %v4681_v56, %v779_v29  ;;  %1329 = vmatpush.msrb.mxu1 %v1103_v19  ;;  %v1116_v29 = vld [vmem:[%s8388_s4 + $0x1e0] sm:$0xff]  ;;  %v1087_v19 = vld [vmem:[%s8388_s4 + $0xf8] sm:$0xff] }
  0xe4   : > { %v4687_v23 = vpop.eup %4686  ;;  %4690 = vrcp.f32 %v663_v21  ;;  %v788_v31 = vsel %vm785_vm15, %v787_v24, %v783_v30  ;;  %vm810_vm4 = vweird.f32 %v663_v21  ;;  %v816_v56 = vand.u32 2147483648, %v663_v21  ;;  %v1099_v24 = vld [vmem:[%s8388_s4 + $0x158] sm:$0xff]  ;;  %1130 = vmatpush.msra.mxu0 %v1116_v29  ;;  %4623 = vmatpush.msra.mxu2 %v1116_v29  ;;  %v1077_v29 = vld [vmem:[%s8388_s4 + $0xa8] sm:$0xff] }
  0xe5   : > { %v4562_v34 = vpack.c.bf16 %v788_v31, %v773_v9  ;;  %v791_v28 = vmul.f32 %v4687_v23, %v5432_v2  ;;  %vm796_vm1 = vweird.f32 %v4687_v23  ;;  %v5491_v42 = vmul.f32 %v949_v35, %v788_v31  ;;  %v1089_v31 = vld [vmem:[%s8388_s4 + $0x108] sm:$0xff]  ;;  %1330 = vmatpush.msrb.mxu1 %v1099_v24  ;;  %v1108_v35 = vld [vmem:[%s8388_s4 + $0x1a0] sm:$0xff] }
  0xe6   : > { %v591_v36 = vpop.f32.mrf.mxu3  ;;  %vm5495_vm2 = vmor %vm795_vm0, %vm796_vm1  ;;  %v814_v62 = vand.u32 2147483647, %v663_v21  ;;  %v817_v5 = vor.u32 1.1754944e-38, %v816_v56  ;;  %1202 = vmatpush.msrb.mxu3 %v1089_v31  ;;  %v1085_v56 = vld [vmem:[%s8388_s4 + $0xe8] sm:$0xff] }
  0xe7   : > { %v592_v39 = vadd.f32 %v591_v36, %v5225_v47  ;;  %4586 = vst [vmem:[%s5327_s30 + $0x18] sm:$0xff] %v4562_v34   ;;  %v792_v40 = vsub.f32 1.0, %v791_v28  ;;  %1331 = vmatpush.msrb.mxu1 %v1095_v32  ;;  %v1073_v31 = vld [vmem:[%s8388_s4 + $0x88] sm:$0xff]  ;;  %v1076_v34 = vld [vmem:[%s8388_s4 + $0xa0] sm:$0xff] }
  0xe8   : > { %8488 = vst [vmem:[#allocation9_spill] sm:$0xff] %v5491_v42  ;;  %vm815_vm7 = vcmp.eq.f32.partialorder %v814_v62, 8.507059e+37  ;;  %1203 = vmatpush.msrb.mxu3 %v1085_v56 }
  0xe9   : > { %v4689_v43 = vpop.eup %4688  ;;  %v4537_v45 = vmul.f32 -1.442695, %v592_v39  ;;  %v793_v46 = vmul.f32 %v4687_v23, %v792_v40  ;;  %1332 = vmatpush.msrb.mxu1 %v1091_v57 }
  0xea   : > { %v4691_v48 = vpop.eup %4690  ;;  %v5493_v51 = vadd.f32 1.0, %v4689_v43  ;;  %1028 = vmatmul.f32.gmra.mxu1 %v5491_v42  ;;  %v1104_v43 = vld [vmem:[%s8388_s4 + $0x180] sm:$0xff] }
  0xeb   : > { %4692 = vpow2.f32 %v4537_v45  ;;  %v794_v54 = vadd.f32 %v4687_v23, %v793_v46  ;;  %v806_v55 = vmul.f32 %v4691_v48, %v663_v21  ;;  %vm811_vm5 = vweird.f32 %v4691_v48  ;;  %v1112_v21 = vld [vmem:[%s8388_s4 + $0x1c0] sm:$0xff]  ;;  %1333 = vmatpush.msrb.mxu1 %v1087_v19 }
  0xec   : > { %4694 = vrcp.f32 %v5493_v51  ;;  %vm812_vm6 = vmor %vm810_vm4, %vm811_vm5  ;;  %vm825_vm8 = vweird.f32 %v5493_v51  ;;  %v831_v18 = vand.u32 2147483648, %v5493_v51  ;;  %v829_v27 = vand.u32 2147483647, %v5493_v51  ;;  %1131 = vmatpush.msra.mxu0 %v1112_v21  ;;  %4624 = vmatpush.msra.mxu2 %v1112_v21 }
  0xed   : > { %v798_v58 = vsel %vm5495_vm2, %v4687_v23, %v794_v54  ;;  %v807_v61 = vsub.f32 1.0, %v806_v55  ;;  %1334 = vmatpush.msrb.mxu1 %v1083_v22 }
  0xee   : > { %v594_v63 = vpop.f32.mrf.mxu3  ;;  %v803_v0 = vsel %vm800_vm3, %v802_v53, %v798_v58  ;;  %v832_v39 = vor.u32 1.1754944e-38, %v831_v18  ;;  %vm830_vm11 = vcmp.eq.f32.partialorder %v829_v27, 8.507059e+37  ;;  %1132 = vmatpush.msra.mxu0 %v1108_v35  ;;  %4625 = vmatpush.msra.mxu2 %v1108_v35  ;;  %v952_v53 = vld [vmem:[%s5250_s21 + $0x50] sm:$0xff]  ;;  %v1080_v27 = vld [vmem:[%s8388_s4 + $0xc0] sm:$0xff] }
  0xef   : > { %v595_v1 = vadd.f32 %v594_v63, %v5225_v47  ;;  %v808_v2 = vmul.f32 %v4691_v48, %v807_v61  ;;  %v5511_v4 = vmul.f32 %v950_v60, %v803_v0  ;;  %v1096_v60 = vld [vmem:[%s8388_s4 + $0x140] sm:$0xff] }
  0xf0   : > { %1133 = vmatpush.msra.mxu0 %v1104_v43  ;;  %4626 = vmatpush.msra.mxu2 %v1104_v43  ;;  %v1072_v43 = vld [vmem:[%s8388_s4 + $0x80] sm:$0xff] }
  0xf1   : > { %8491 = vst [vmem:[#allocation10_spill] sm:$0xff] %v5511_v4  ;;  %v4693_v6 = vpop.eup %4692  ;;  %v4538_v7 = vmul.f32 -1.442695, %v595_v1  ;;  %v809_v59 = vadd.f32 %v4691_v48, %v808_v2  ;;  %v1092_v1 = vld [vmem:[%s8388_s4 + $0x120] sm:$0xff] }
  0xf2   : > { %v4695_v3 = vpop.eup %4694  ;;  %v5514_v9 = vadd.f32 1.0, %v4693_v6  ;;  %1031 = vmatmul.f32.gmra.mxu1 %v5511_v4 }
  0xf3   : > { %4696 = vpow2.f32 %v4538_v7  ;;  %v813_v10 = vsel %vm812_vm6, %v4691_v48, %v809_v59  ;;  %v821_v11 = vmul.f32 %v4695_v3, %v5493_v51  ;;  %vm826_vm9 = vweird.f32 %v4695_v3  ;;  %v1100_v51 = vld [vmem:[%s8388_s4 + $0x160] sm:$0xff] }
  0xf4   : > { %4698 = vrcp.f32 %v5514_v9  ;;  %v818_v12 = vsel %vm815_vm7, %v817_v5, %v813_v10  ;;  %vm5554_vm10 = vmor %vm825_vm8, %vm826_vm9  ;;  %vm840_vm12 = vweird.f32 %v5514_v9  ;;  %v846_v48 = vand.u32 2147483648, %v5514_v9  ;;  %1134 = vmatpush.msra.mxu0 %v1100_v51  ;;  %4627 = vmatpush.msra.mxu2 %v1100_v51 }
  0xf5   : > { %v4567_v15 = vpack.c.bf16 %v818_v12, %v803_v0  ;;  %v822_v16 = vsub.f32 1.0, %v821_v11  ;;  %v5549_v33 = vmul.f32 %v951_v13, %v818_v12  ;;  %v844_v55 = vand.u32 2147483647, %v5514_v9  ;;  %v1084_v12 = vld [vmem:[%s8388_s4 + $0xe0] sm:$0xff]  ;;  %v1081_v13 = vld [vmem:[%s8388_s4 + $0xc8] sm:$0xff] }
  0xf6   : > { %v597_v26 = vpop.f32.mrf.mxu3  ;;  %v847_v0 = vor.u32 1.1754944e-38, %v846_v48  ;;  %1135 = vmatpush.msra.mxu0 %v1096_v60  ;;  %4628 = vmatpush.msra.mxu2 %v1096_v60  ;;  %v1065_v60 = vld [vmem:[%s8388_s4 + $0x48] sm:$0xff] }
  0xf7   : > { %v598_v30 = vadd.f32 %v597_v26, %v5225_v47  ;;  %4587 = vst [vmem:[%s5327_s30 + $0x20] sm:$0xff] %v4567_v15   ;;  %v823_v23 = vmul.f32 %v4695_v3, %v822_v16  ;;  %vm845_vm15 = vcmp.eq.f32.partialorder %v844_v55, 8.507059e+37  ;;  %v953_v15 = vld [vmem:[%s5250_s21 + $0x58] sm:$0xff]  ;;  %1204 = vmatpush.msrb.mxu3 %v1081_v13  ;;  %v954_v55 = vld [vmem:[%s5250_s21 + $0x60] sm:$0xff]  ;;  %v955_v13 = vld [vmem:[%s5250_s21 + $0x68] sm:$0xff] }
  0xf8   : > { %8492 = vst [vmem:[#allocation11_spill] sm:$0xff] %v5549_v33  ;;  %1136 = vmatpush.msra.mxu0 %v1092_v1  ;;  %4629 = vmatpush.msra.mxu2 %v1092_v1  ;;  %v1078_v1 = vld [vmem:[%s8388_s4 + $0xb0] sm:$0xff] }
  0xf9   : > { %v4697_v28 = vpop.eup %4696  ;;  %v4539_v36 = vmul.f32 -1.442695, %v598_v30  ;;  %v824_v37 = vadd.f32 %v4695_v3, %v823_v23  ;;  %1205 = vmatpush.msrb.mxu3 %v1077_v29  ;;  %v1079_v23 = vld [vmem:[%s8388_s4 + $0xb8] sm:$0xff] }
  0xfa   : > { %v4699_v40 = vpop.eup %4698  ;;  %v5561_v41 = vadd.f32 1.0, %v4697_v28  ;;  %1034 = vmatmul.f32.gmra.mxu1 %v5549_v33 }
  0xfb   : > { %4700 = vpow2.f32 %v4539_v36  ;;  %v828_v45 = vsel %vm5554_vm10, %v4695_v3, %v824_v37  ;;  %v836_v46 = vmul.f32 %v4699_v40, %v5514_v9  ;;  %vm841_vm13 = vweird.f32 %v4699_v40  ;;  %v1088_v3 = vld [vmem:[%s8388_s4 + $0x100] sm:$0xff]  ;;  %1206 = vmatpush.msrb.mxu3 %v1073_v31  ;;  %1335 = vmatpush.msrb.mxu1 %v1079_v23  ;;  %v956_v23 = vld [vmem:[%s5250_s21 + $0x70] sm:$0xff] }
  0xfc   : > { %4702 = vrcp.f32 %v5561_v41  ;;  %v833_v52 = vsel %vm830_vm11, %v832_v39, %v828_v45  ;;  %vm5592_vm14 = vmor %vm840_vm12, %vm841_vm13  ;;  %vm855_vm0 = vweird.f32 %v5561_v41  ;;  %v861_v18 = vand.u32 2147483648, %v5561_v41  ;;  %1137 = vmatpush.msra.mxu0 %v1088_v3  ;;  %4630 = vmatpush.msra.mxu2 %v1088_v3  ;;  %v1075_v45 = vld [vmem:[%s8388_s4 + $0x98] sm:$0xff] }
  0xfd   : > { %v837_v54 = vsub.f32 1.0, %v836_v46  ;;  %v5588_v50 = vmul.f32 %v952_v53, %v833_v52  ;;  %v859_v26 = vand.u32 2147483647, %v5561_v41  ;;  %v1069_v53 = vld [vmem:[%s8388_s4 + $0x68] sm:$0xff]  ;;  %1336 = vmatpush.msrb.mxu1 %v1075_v45  ;;  %v1063_v45 = vld [vmem:[%s8388_s4 + $0x38] sm:$0xff] }
  0xfe   : > { %v600_v58 = vpop.f32.mrf.mxu3  ;;  %1138 = vmatpush.msra.mxu0 %v1084_v12  ;;  %v862_v37 = vor.u32 1.1754944e-38, %v861_v18  ;;  %4631 = vmatpush.msra.mxu2 %v1084_v12 }
  0xff   : > { %v601_v61 = vadd.f32 %v600_v58, %v5225_v47  ;;  %v838_v62 = vmul.f32 %v4699_v40, %v837_v54  ;;  %8495 = vst [vmem:[#allocation12_spill] sm:$0xff] %v5588_v50  ;;  %vm5660_vm3 = vcmp.eq.f32.partialorder %v859_v26, 8.507059e+37  ;;  %v1071_v58 = vld [vmem:[%s8388_s4 + $0x78] sm:$0xff]  ;;  %1207 = vmatpush.msrb.mxu3 %v1069_v53  ;;  %v1118_v53 = vld [vmem:[%s8388_s4 + $0x1f0] sm:$0xff] }
 0x100   : > { %1139 = vmatpush.msra.mxu0 %v1080_v27  ;;  %4632 = vmatpush.msra.mxu2 %v1080_v27 }
 0x101   : > { %v4701_v2 = vpop.eup %4700  ;;  %v4540_v5 = vmul.f32 -1.442695, %v601_v61  ;;  %v839_v6 = vadd.f32 %v4699_v40, %v838_v62  ;;  %v1064_v61 = vld [vmem:[%s8388_s4 + $0x40] sm:$0xff]  ;;  %v1067_v62 = vld [vmem:[%s8388_s4 + $0x58] sm:$0xff]  ;;  %1337 = vmatpush.msrb.mxu1 %v1071_v58  ;;  %1208 = vmatpush.msrb.mxu3 %v1065_v60  ;;  %v1098_v58 = vld [vmem:[%s8388_s4 + $0x150] sm:$0xff] }
 0x102   : > { %v5599_v7 = vpop.eup %4702  ;;  %v5601_v59 = vadd.f32 1.0, %v4701_v2  ;;  %1037 = vmatmul.f32.gmra.mxu1 %v5588_v50  ;;  %1140 = vmatpush.msra.mxu0 %v1076_v34  ;;  %v1094_v60 = vld [vmem:[%s8388_s4 + $0x130] sm:$0xff] }
 0x103   : > { %4704 = vpow2.f32 %v4540_v5  ;;  %v843_v9 = vsel %vm5592_vm14, %v4699_v40, %v839_v6  ;;  %v851_v10 = vmul.f32 %v5599_v7, %v5561_v41  ;;  %vm856_vm1 = vweird.f32 %v5599_v7  ;;  %4633 = vmatpush.msra.mxu2 %v1076_v34  ;;  %v1060_v5 = vld [vmem:[%s8388_s4 + $0x20] sm:$0xff]  ;;  %1338 = vmatpush.msrb.mxu1 %v1067_v62  ;;  %v957_v41 = vld [vmem:[%s5250_s21 + $0x78] sm:$0xff]  ;;  %v1086_v62 = vld [vmem:[%s8388_s4 + $0xf0] sm:$0xff] }
 0x104   : > { %4706 = vrcp.f32 %v5601_v59  ;;  %v848_v11 = vsel %vm845_vm15, %v847_v0, %v843_v9  ;;  %vm5650_vm2 = vmor %vm855_vm0, %vm856_vm1  ;;  %vm870_vm4 = vweird.f32 %v5601_v59  ;;  %v876_v51 = vand.u32 2147483648, %v5601_v59  ;;  %1141 = vmatpush.msra.mxu0 %v1072_v43 }
 0x105   : > { %v4572_v14 = vpack.c.bf16 %v848_v11, %v833_v52  ;;  %v852_v16 = vsub.f32 1.0, %v851_v10  ;;  %v5644_v32 = vmul.f32 %v953_v15, %v848_v11  ;;  %v1068_v52 = vld [vmem:[%s8388_s4 + $0x60] sm:$0xff]  ;;  %v874_v57 = vand.u32 2147483647, %v5601_v59  ;;  %4634 = vmatpush.msra.mxu2 %v1072_v43  ;;  %v1061_v43 = vld [vmem:[%s8388_s4 + $0x28] sm:$0xff]  ;;  %1339 = vmatpush.msrb.mxu1 %v1063_v45 }
 0x106   : > { %v603_v24 = vpop.f32.mrf.mxu3  ;;  %1142 = vmatpush.msra.mxu0 %v1068_v52  ;;  %v877_v2 = vor.u32 1.1754944e-38, %v876_v51  ;;  %1209 = vmatpush.msrb.mxu3 %v1061_v43  ;;  %v1059_v51 = vld [vmem:[%s8388_s4 + $0x18] sm:$0xff] }
 0x107   : > { %v604_v21 = vadd.f32 %v603_v24, %v5225_v47  ;;  %4588 = vst [vmem:[%s5327_s30 + $0x28] sm:$0xff] %v4572_v14   ;;  %v853_v30 = vmul.f32 %v5599_v7, %v852_v16  ;;  %vm875_vm7 = vcmp.eq.f32.partialorder %v874_v57, 8.507059e+37  ;;  %4635 = vmatpush.msra.mxu2 %v1068_v52  ;;  %1340 = vmatpush.msrb.mxu1 %v1059_v51  ;;  %v1102_v57 = vld [vmem:[%s8388_s4 + $0x170] sm:$0xff] }
 0x108   : > { %8498 = vst [vmem:[#allocation13_spill] sm:$0xff] %v5644_v32  ;;  %1143 = vmatpush.msra.mxu0 %v1064_v61 }
 0x109   : > { %v4705_v35 = vpop.eup %4704  ;;  %v4541_v28 = vmul.f32 -1.442695, %v604_v21  ;;  %v854_v36 = vadd.f32 %v5599_v7, %v853_v30  ;;  %4636 = vmatpush.msra.mxu2 %v1064_v61  ;;  %v1090_v61 = vld [vmem:[%s8388_s4 + $0x110] sm:$0xff] }
 0x10a   : > { %v4707_v39 = vpop.eup %4706  ;;  %v5658_v40 = vadd.f32 1.0, %v4705_v35  ;;  %1040 = vmatmul.f32.gmra.mxu1 %v5644_v32  ;;  %1144 = vmatpush.msra.mxu0 %v1060_v5 }
 0x10b   : > { %4708 = vpow2.f32 %v4541_v28  ;;  %v858_v46 = vsel %vm5650_vm2, %v5599_v7, %v854_v36  ;;  %v866_v48 = vmul.f32 %v4707_v39, %v5601_v59  ;;  %vm871_vm5 = vweird.f32 %v4707_v39  ;;  %4637 = vmatpush.msra.mxu2 %v1060_v5  ;;  %v1070_v5 = vld [vmem:[%s8388_s4 + $0x70] sm:$0xff] }
 0x10c   : > { %4710 = vrcp.f32 %v5658_v40  ;;  %v863_v54 = vsel %vm5660_vm3, %v862_v37, %v858_v46  ;;  %vm5704_vm6 = vmor %vm870_vm4, %vm871_vm5  ;;  %vm885_vm8 = vweird.f32 %v5658_v40  ;;  %v891_v15 = vand.u32 2147483648, %v5658_v40  ;;  %v1056_v46 = vld [vmem:[%s8388_s4] sm:$0xff] }
 0x10d   : > { %v867_v56 = vsub.f32 1.0, %v866_v48  ;;  %v5700_v0 = vmul.f32 %v954_v55, %v863_v54  ;;  %v889_v16 = vand.u32 2147483647, %v5658_v40  ;;  %v1057_v48 = vld [vmem:[%s8388_s4 + $0x8] sm:$0xff]  ;;  %1145 = vmatpush.msra.mxu0 %v1056_v46  ;;  %4638 = vmatpush.msra.mxu2 %v1056_v46  ;;  %v1110_v55 = vld [vmem:[%s8388_s4 + $0x1b0] sm:$0xff] }
 0x10e   : > { %v892_v24 = vor.u32 1.1754944e-38, %v891_v15  ;;  %1210 = vmatpush.msrb.mxu3 %v1057_v48 }
 0x10f   : > { %v868_v63 = vmul.f32 %v4707_v39, %v867_v56  ;;  %8503 = vst [vmem:[#allocation14_spill] sm:$0xff] %v5700_v0  ;;  %vm890_vm11 = vcmp.eq.f32.partialorder %v889_v16, 8.507059e+37  ;;  %1260 = vmatpush.msrb.mxu0 %v1118_v53  ;;  %v1106_v56 = vld [vmem:[%s8388_s4 + $0x190] sm:$0xff] }
 0x111   : > { %v4709_v6 = vpop.eup %4708  ;;  %v869_v7 = vadd.f32 %v4707_v39, %v868_v63  ;;  %v1082_v63 = vld [vmem:[%s8388_s4 + $0xd0] sm:$0xff] }
 0x112   : > { %v4711_v3 = vpop.eup %4710  ;;  %v669_v9 = vadd.f32 1.0, %v4709_v6  ;;  %1043 = vmatmul.f32.gmra.mxu1 %v5700_v0  ;;  %v1066_v6 = vld [vmem:[%s8388_s4 + $0x50] sm:$0xff] }
 0x113   : > { %v873_v59 = vsel %vm5704_vm6, %v4707_v39, %v869_v7  ;;  %v881_v10 = vmul.f32 %v4711_v3, %v5658_v40  ;;  %vm886_vm9 = vweird.f32 %v4711_v3  ;;  %v5002_v7 = vld [vmem:[%s8395_s11] sm:$0xff] }
 0x114   : > { %4712 = vrcp.f32 %v669_v9  ;;  %v878_v11 = vsel %vm875_vm7, %v877_v2, %v873_v59  ;;  %vm887_vm10 = vmor %vm885_vm8, %vm886_vm9  ;;  %vm900_vm12 = vweird.f32 %v669_v9  ;;  %v906_v21 = vand.u32 2147483648, %v669_v9  ;;  %v1074_v2 = vld [vmem:[%s8388_s4 + $0x90] sm:$0xff] }
 0x115   : > { %v4577_v12 = vpack.c.bf16 %v878_v11, %v863_v54  ;;  %v882_v14 = vsub.f32 1.0, %v881_v10  ;;  %v5720_v19 = vmul.f32 %v955_v13, %v878_v11  ;;  %v904_v47 = vand.u32 2147483647, %v669_v9  ;;  %v1114_v54 = vld [vmem:[%s8388_s4 + $0x1d0] sm:$0xff] }
 0x116   : > { %v907_v28 = vor.u32 1.1754944e-38, %v906_v21  ;;  %1261 = vmatpush.msrb.mxu0 %v1114_v54  ;;  %v1058_v59 = vld [vmem:[%s8388_s4 + $0x10] sm:$0xff] }
 0x117   : > { %4589 = vst [vmem:[%s5327_s30 + $0x30] sm:$0xff] %v4577_v12   ;;  %v883_v18 = vmul.f32 %v4711_v3, %v882_v14  ;;  %vm905_vm15 = vcmp.eq.f32.partialorder %v904_v47, 8.507059e+37 }
 0x118   : > { %8506 = vst [vmem:[#allocation15_spill] sm:$0xff] %v5720_v19  ;;  %1262 = vmatpush.msrb.mxu0 %v1110_v55 }
 0x119   : > { %v884_v22 = vadd.f32 %v4711_v3, %v883_v18 }
 0x11a   : > { %v4713_v26 = vpop.eup %4712  ;;  %1046 = vmatmul.f32.gmra.mxu1 %v5720_v19  ;;  %1263 = vmatpush.msrb.mxu0 %v1106_v56 }
 0x11b   : > { %v888_v27 = vsel %vm887_vm10, %v4711_v3, %v884_v22  ;;  %v896_v29 = vmul.f32 %v4713_v26, %v669_v9  ;;  %vm901_vm13 = vweird.f32 %v4713_v26  ;;  %v5792_v3 = vperm.slane %v5002_v7, 1  ;;  %v1062_v9 = vld [vmem:[%s8388_s4 + $0x30] sm:$0xff] }
 0x11c   : > { %v893_v30 = vsel %vm890_vm11, %v892_v24, %v888_v27  ;;  %vm902_vm14 = vmor %vm900_vm12, %vm901_vm13  ;;  %1264 = vmatpush.msrb.mxu0 %v1102_v57 }
 0x11d   : > { %v897_v31 = vsub.f32 1.0, %v896_v29  ;;  %v5724_v35 = vmul.f32 %v956_v23, %v893_v30 }
 0x11e   : > { %1265 = vmatpush.msrb.mxu0 %v1098_v58 }
 0x11f   : > { %v898_v34 = vmul.f32 %v4713_v26, %v897_v31  ;;  %8507 = vst [vmem:[#allocation16_spill] sm:$0xff] %v5724_v35 }
 0x120   : > { %1266 = vmatpush.msrb.mxu0 %v1094_v60 }
 0x121   : > { %v899_v36 = vadd.f32 %v4713_v26, %v898_v34 }
 0x122   : > { %1049 = vmatmul.f32.gmra.mxu1 %v5724_v35  ;;  %1267 = vmatpush.msrb.mxu0 %v1090_v61 }
 0x123   : > { %v903_v37 = vsel %vm902_vm14, %v4713_v26, %v899_v36 }
 0x124   : > { %v908_v39 = vsel %vm905_vm15, %v907_v28, %v903_v37  ;;  %1268 = vmatpush.msrb.mxu0 %v1086_v62  ;;  %v1120_v62 = vld [vmem:[%s8396_s12] sm:$0xf] }
 0x125   : > { %v4582_v40 = vpack.c.bf16 %v908_v39, %v893_v30  ;;  %v5744_v52 = vmul.f32 %v957_v41, %v908_v39  ;;  %v5825_v7 = vperm.slane %v1120_v62, 2 }
 0x126   : > { %1269 = vmatpush.msrb.mxu0 %v1082_v63  ;;  %v5819_v63 = vperm.slane %v1120_v62, 1 }
 0x127   : > { %4590 = vst [vmem:[%s5327_s30 + $0x38] sm:$0xff] %v4582_v40  }
 0x128   : > { %8508 = vst [vmem:[#allocation17_spill] sm:$0xff] %v5744_v52  ;;  %1270 = vmatpush.msrb.mxu0 %v1078_v1 }
 0x12a   : > { %1052 = vmatmul.f32.gmra.mxu1 %v5744_v52  ;;  %1271 = vmatpush.msrb.mxu0 %v1074_v2 }
 0x12c   : > { %1272 = vmatpush.msrb.mxu0 %v1070_v5  ;;  %v5821_v5 = vperm.slane %v1120_v62, 0 }
 0x12e   : > { %1273 = vmatpush.msrb.mxu0 %v1066_v6  ;;  %v5823_v6 = vperm.slane %v1120_v62, 3 }
 0x130   : > { %1274 = vmatpush.msrb.mxu0 %v1062_v9 }
 0x132   : > { %1275 = vmatpush.msrb.mxu0 %v1058_v59 }
 0x146   : > { %v1008_v10 = vpop.f32.mrf.mxu0 }
 0x147   : > { %v1009_v11 = vadd.f32 %v1008_v10, %v5792_v3 }
 0x149   : > { %1146 = vmatmul.f32.vlgmr.msra.gmra.mxu0 %v1009_v11  ;;  %1211 = vmatmul.f32.vlgmr.msrb.gmra.mxu3 %v1009_v11 }
 0x14a   : > { %1341 = vmatmul.f32.vlgmr.msrb.gmra.mxu1 %v1009_v11 }
 0x14e   : > { %v1011_v12 = vpop.f32.mrf.mxu0 }
 0x14f   : > { %v1012_v13 = vadd.f32 %v1011_v12, %v5792_v3  ;;  %v1020_v14 = vpop.f32.mrf.mxu1 }
 0x150   : > { %v1021_v15 = vadd.f32 %v1020_v14, %v5792_v3 }
 0x151   : > { %1149 = vmatmul.f32.gmra.mxu0 %v1012_v13  ;;  %1214 = vmatmul.f32.gmra.mxu3 %v1012_v13 }
 0x152   : > { %1344 = vmatmul.f32.gmra.mxu1 %v1012_v13  ;;  %1158 = vmatmul.f32.vlgmr.msra.gmra.mxu2 %v1021_v15 }
 0x156   : > { %v1014_v16 = vpop.f32.mrf.mxu0 }
 0x157   : > { %v1015_v18 = vadd.f32 %v1014_v16, %v5792_v3  ;;  %v1023_v22 = vpop.f32.mrf.mxu1 }
 0x158   : > { %v1024_v24 = vadd.f32 %v1023_v22, %v5792_v3 }
 0x159   : > { %1152 = vmatmul.f32.gmra.mxu0 %v1015_v18  ;;  %1217 = vmatmul.f32.gmra.mxu3 %v1015_v18 }
 0x15a   : > { %1347 = vmatmul.f32.gmra.mxu1 %v1015_v18  ;;  %1161 = vmatmul.f32.gmra.mxu2 %v1024_v24 }
 0x15e   : > { %v1017_v26 = vpop.f32.mrf.mxu0 }
 0x15f   : > { %v1018_v27 = vadd.f32 %v1017_v26, %v5792_v3  ;;  %v1026_v29 = vpop.f32.mrf.mxu1 }
 0x160   : > { %v1027_v21 = vadd.f32 %v1026_v29, %v5792_v3 }
 0x161   : > { %1155 = vmatmul.f32.gmra.mxu0 %v1018_v27  ;;  %1220 = vmatmul.f32.gmra.mxu3 %v1018_v27 }
 0x162   : > { %1350 = vmatmul.f32.gmra.mxu1 %v1018_v27  ;;  %1164 = vmatmul.f32.gmra.mxu2 %v1027_v21 }
 0x167   : > { %v1029_v30 = vpop.f32.mrf.mxu1 }
 0x168   : > { %v1030_v23 = vadd.f32 %v1029_v30, %v5792_v3 }
 0x169   : > { %1276 = vmatmul.f32.vlgmr.msrb.gmra.mxu0 %v1009_v11  ;;  %1223 = vmatmul.f32.gmra.mxu3 %v1021_v15 }
 0x16a   : > { %1353 = vmatmul.f32.gmra.mxu1 %v1021_v15  ;;  %1167 = vmatmul.f32.gmra.mxu2 %v1030_v23 }
 0x16f   : > { %v1032_v31 = vpop.f32.mrf.mxu1 }
 0x170   : > { %v1033_v47 = vadd.f32 %v1032_v31, %v5792_v3 }
 0x171   : > { %1279 = vmatmul.f32.gmra.mxu0 %v1012_v13  ;;  %1226 = vmatmul.f32.gmra.mxu3 %v1024_v24 }
 0x172   : > { %1356 = vmatmul.f32.gmra.mxu1 %v1024_v24  ;;  %1170 = vmatmul.f32.gmra.mxu2 %v1033_v47 }
 0x177   : > { %v1035_v34 = vpop.f32.mrf.mxu1 }
 0x178   : > { %v1036_v28 = vadd.f32 %v1035_v34, %v5792_v3 }
 0x179   : > { %1282 = vmatmul.f32.gmra.mxu0 %v1015_v18  ;;  %1229 = vmatmul.f32.gmra.mxu3 %v1027_v21 }
 0x17a   : > { %1359 = vmatmul.f32.gmra.mxu1 %v1027_v21  ;;  %1173 = vmatmul.f32.gmra.mxu2 %v1036_v28 }
 0x17f   : > { %v1038_v36 = vpop.f32.mrf.mxu1 }
 0x180   : > { %v1039_v37 = vadd.f32 %v1038_v36, %v5792_v3 }
 0x181   : > { %1285 = vmatmul.f32.gmra.mxu0 %v1018_v27  ;;  %1232 = vmatmul.f32.gmra.mxu3 %v1030_v23 }
 0x182   : > { %1362 = vmatmul.f32.gmra.mxu1 %v1030_v23  ;;  %1176 = vmatmul.f32.gmra.mxu2 %v1039_v37 }
 0x187   : > { %v1041_v39 = vpop.f32.mrf.mxu1 }
 0x188   : > { %v1042_v40 = vadd.f32 %v1041_v39, %v5792_v3 }
 0x189   : > { %1288 = vmatmul.f32.gmra.mxu0 %v1021_v15  ;;  %1235 = vmatmul.f32.gmra.mxu3 %v1033_v47 }
 0x18a   : > { %1365 = vmatmul.f32.gmra.mxu1 %v1033_v47  ;;  %1179 = vmatmul.f32.gmra.mxu2 %v1042_v40 }
 0x18f   : > { %v1044_v41 = vpop.f32.mrf.mxu1 }
 0x190   : > { %v1045_v43 = vadd.f32 %v1044_v41, %v5792_v3 }
 0x191   : > { %1291 = vmatmul.f32.gmra.mxu0 %v1024_v24  ;;  %1238 = vmatmul.f32.gmra.mxu3 %v1036_v28 }
 0x192   : > { %1368 = vmatmul.f32.gmra.mxu1 %v1036_v28  ;;  %1182 = vmatmul.f32.gmra.mxu2 %v1045_v43 }
 0x197   : > { %v1047_v45 = vpop.f32.mrf.mxu1 }
 0x198   : > { %v1048_v46 = vadd.f32 %v1047_v45, %v5792_v3 }
 0x199   : > { %1294 = vmatmul.f32.gmra.mxu0 %v1027_v21  ;;  %1241 = vmatmul.f32.gmra.mxu3 %v1039_v37 }
 0x19a   : > { %1371 = vmatmul.f32.gmra.mxu1 %v1039_v37  ;;  %1185 = vmatmul.f32.gmra.mxu2 %v1048_v46 }
 0x19f   : > { %v1050_v48 = vpop.f32.mrf.mxu1 }
 0x1a0   : > { %v1051_v51 = vadd.f32 %v1050_v48, %v5792_v3 }
 0x1a1   : > { %1297 = vmatmul.f32.gmra.mxu0 %v1030_v23  ;;  %1244 = vmatmul.f32.gmra.mxu3 %v1042_v40 }
 0x1a2   : > { %1374 = vmatmul.f32.gmra.mxu1 %v1042_v40  ;;  %1188 = vmatmul.f32.gmra.mxu2 %v1051_v51 }
 0x1a7   : > { %v1053_v53 = vpop.f32.mrf.mxu1 }
 0x1a8   : > { %v1054_v54 = vadd.f32 %v1053_v53, %v5792_v3 }
 0x1a9   : > { %1300 = vmatmul.f32.gmra.mxu0 %v1033_v47  ;;  %1247 = vmatmul.f32.gmra.mxu3 %v1045_v43 }
 0x1aa   : > { %1377 = vmatmul.f32.gmra.mxu1 %v1045_v43  ;;  %1191 = vmatmul.f32.gmra.mxu2 %v1054_v54 }
 0x1b1   : > { %1303 = vmatmul.f32.gmra.mxu0 %v1036_v28  ;;  %1250 = vmatmul.f32.gmra.mxu3 %v1048_v46 }
 0x1b2   : > { %1380 = vmatmul.f32.gmra.mxu1 %v1048_v46 }
 0x1b9   : > { %1306 = vmatmul.f32.gmra.mxu0 %v1039_v37  ;;  %1253 = vmatmul.f32.gmra.mxu3 %v1051_v51 }
 0x1ba   : > { %1383 = vmatmul.f32.gmra.mxu1 %v1051_v51 }
 0x1c1   : > { %1309 = vmatmul.f32.gmra.mxu0 %v1042_v40  ;;  %1256 = vmatmul.f32.gmra.mxu3 %v1054_v54 }
 0x1c2   : > { %1386 = vmatmul.f32.gmra.mxu1 %v1054_v54 }
 0x1c6   : > { %v1147_v55 = vpop.f32.mrf.mxu0 }
 0x1c7   : > { %v1342_v58 = vpop.f32.mrf.mxu1  ;;  %v5831_v59 = vadd.f32 %v1147_v55, %v5821_v5 }
 0x1c8   : > { %v5834_v10 = vadd.f32 %v1342_v58, %v5823_v6 }
 0x1c9   : > { %1312 = vmatmul.f32.gmra.mxu0 %v1045_v43 }
 0x1cc   : > { %v1212_v60 = vpop.f32.mrf.mxu3 }
 0x1cd   : > { %v5828_v3 = vadd.f32 %v1212_v60, %v5819_v63 }
 0x1ce   : > { %v1150_v56 = vpop.f32.mrf.mxu0 }
 0x1cf   : > { %v1345_v1 = vpop.f32.mrf.mxu1  ;;  %v1391_v13 = vmax.f32 %v5828_v3, %v5834_v10  ;;  %v5851_v24 = vadd.f32 %v1150_v56, %v5821_v5 }
 0x1d0   : > { %v5854_v26 = vadd.f32 %v1345_v1, %v5823_v6 }
 0x1d1   : > { %1315 = vmatmul.f32.gmra.mxu0 %v1048_v46 }
 0x1d4   : > { %v1215_v2 = vpop.f32.mrf.mxu3 }
 0x1d5   : > { %v5846_v18 = vadd.f32 %v1215_v2, %v5819_v63  ;;  %v1159_v55 = vpop.f32.mrf.mxu2 }
 0x1d6   : > { %v1153_v57 = vpop.f32.mrf.mxu0  ;;  %v5914_v1 = vadd.f32 %v1159_v55, %v5821_v5 }
 0x1d7   : > { %v1348_v14 = vpop.f32.mrf.mxu1  ;;  %v1393_v29 = vmax.f32 %v5846_v18, %v5854_v26  ;;  %v5871_v28 = vadd.f32 %v1153_v57, %v5821_v5 }
 0x1d8   : > { %v5874_v36 = vadd.f32 %v1348_v14, %v5823_v6 }
 0x1d9   : > { %1318 = vmatmul.f32.gmra.mxu0 %v1051_v51 }
 0x1dc   : > { %v1218_v16 = vpop.f32.mrf.mxu3 }
 0x1dd   : > { %v5866_v23 = vadd.f32 %v1218_v16, %v5819_v63  ;;  %v1162_v16 = vpop.f32.mrf.mxu2 }
 0x1de   : > { %v1156_v61 = vpop.f32.mrf.mxu0 }
 0x1df   : > { %v1351_v31 = vpop.f32.mrf.mxu1  ;;  %v1395_v40 = vmax.f32 %v5866_v23, %v5874_v36  ;;  %v5891_v51 = vadd.f32 %v1156_v61, %v5821_v5 }
 0x1e0   : > { %v5894_v53 = vadd.f32 %v1351_v31, %v5823_v6 }
 0x1e1   : > { %1321 = vmatmul.f32.gmra.mxu0 %v1054_v54 }
 0x1e4   : > { %v1221_v47 = vpop.f32.mrf.mxu3 }
 0x1e5   : > { %v5886_v43 = vadd.f32 %v1221_v47, %v5819_v63  ;;  %v5934_v47 = vadd.f32 %v1162_v16, %v5821_v5  ;;  %v1165_v55 = vpop.f32.mrf.mxu2 }
 0x1e6   : > { %v1277_v9 = vpop.f32.mrf.mxu0 }
 0x1e7   : > { %v5837_v11 = vadd.f32 %v1277_v9, %v5825_v7  ;;  %v1354_v45 = vpop.f32.mrf.mxu1  ;;  %v1397_v56 = vmax.f32 %v5886_v43, %v5894_v53 }
 0x1e8   : > { %v5909_v61 = vadd.f32 %v1354_v45, %v5823_v6 }
 0x1e9   : > { %v1390_v12 = vmax.f32 %v5831_v59, %v5837_v11 }
 0x1eb   : > { %v5843_v15 = vmax.f32 %v1390_v12, %v1391_v13 }
 0x1ec   : > { %v1224_v46 = vpop.f32.mrf.mxu3 }
 0x1ed   : > { %1454 = vrot.lane.b32.xlu0 %v5843_v15, %s5019_s18  ;;  %v5906_v60 = vadd.f32 %v1224_v46, %v5819_v63 }
 0x1ee   : > { %v1280_v22 = vpop.f32.mrf.mxu0 }
 0x1ef   : > { %v5857_v27 = vadd.f32 %v1280_v22, %v5825_v7  ;;  %v1357_v12 = vpop.f32.mrf.mxu1  ;;  %v1399_v14 = vmax.f32 %v5906_v60, %v5909_v61 }
 0x1f1   : > { %v1392_v21 = vmax.f32 %v5851_v24, %v5857_v27 }
 0x1f3   : > { %v5863_v30 = vmax.f32 %v1392_v21, %v1393_v29  ;;  %v5929_v21 = vadd.f32 %v1357_v12, %v5823_v6 }
 0x1f4   : > { %v1227_v9 = vpop.f32.mrf.mxu3 }
 0x1f5   : > { %1456 = vrot.lane.b32.xlu0 %v5863_v30, %s5019_s18  ;;  %v5926_v29 = vadd.f32 %v1227_v9, %v5819_v63  ;;  %v5954_v9 = vadd.f32 %v1165_v55, %v5821_v5 }
 0x1f6   : > { %v1283_v34 = vpop.f32.mrf.mxu0 }
 0x1f7   : > { %v5877_v37 = vadd.f32 %v1283_v34, %v5825_v7  ;;  %v1360_v46 = vpop.f32.mrf.mxu1 }
 0x1f9   : > { %v1394_v39 = vmax.f32 %v5871_v28, %v5877_v37 }
 0x1fb   : > { %v5883_v41 = vmax.f32 %v1394_v39, %v1395_v40  ;;  %v1401_v39 = vmax.f32 %v5926_v29, %v5929_v21 }
 0x1fc   : > { %v1230_v45 = vpop.f32.mrf.mxu3 }
 0x1fd   : > { %1458 = vrot.lane.b32.xlu1 %v5883_v41, %s5019_s18 }
 0x1fe   : > { %v1286_v48 = vpop.f32.mrf.mxu0 }
 0x1ff   : > { %v5897_v54 = vadd.f32 %v1286_v48, %v5825_v7 }
 0x201   : > { %v1396_v57 = vmax.f32 %v5891_v51, %v5897_v54 }
 0x203   : > { %v5903_v58 = vmax.f32 %v1396_v57, %v1397_v56  ;;  %v5946_v56 = vadd.f32 %v1230_v45, %v5819_v63  ;;  %v5949_v57 = vadd.f32 %v1360_v46, %v5823_v6 }
 0x204   : > { %v1233_v45 = vpop.f32.mrf.mxu3 }
 0x205   : > { %1460 = vrot.lane.b32.xlu1 %v5903_v58, %s5019_s18 }
 0x206   : > { %v1289_v62 = vpop.f32.mrf.mxu0 }
 0x207   : > { %v5917_v2 = vadd.f32 %v1289_v62, %v5825_v7 }
 0x209   : > { %v1398_v13 = vmax.f32 %v5914_v1, %v5917_v2 }
 0x20b   : > { %v5923_v22 = vmax.f32 %v1398_v13, %v1399_v14  ;;  %v1403_v13 = vmax.f32 %v5946_v56, %v5949_v57 }
 0x20d   : > { %1462 = vrot.lane.b32.xlu2 %v5923_v22, %s5019_s18 }
 0x20e   : > { %v1292_v31 = vpop.f32.mrf.mxu0 }
 0x20f   : > { %v5937_v34 = vadd.f32 %v1292_v31, %v5825_v7 }
 0x211   : > { %v1400_v40 = vmax.f32 %v5934_v47, %v5937_v34 }
 0x213   : > { %v5943_v48 = vmax.f32 %v1400_v40, %v1401_v39  ;;  %v1363_v39 = vpop.f32.mrf.mxu1  ;;  %v1168_v40 = vpop.f32.mrf.mxu2 }
 0x214   : > { %v5977_v32 = vadd.f32 %v1363_v39, %v5823_v6  ;;  %v5980_v50 = vadd.f32 %v1168_v40, %v5821_v5 }
 0x215   : > { %1464 = vrot.lane.b32.xlu2 %v5943_v48, %s5019_s18 }
 0x216   : > { %v1295_v62 = vpop.f32.mrf.mxu0  ;;  %8509 = vst [vmem:[#allocation18_spill] sm:$0xff] %v5980_v50 }
 0x217   : > { %v5957_v12 = vadd.f32 %v1295_v62, %v5825_v7  ;;  %v1236_v62 = vpop.f32.mrf.mxu3 }
 0x218   : > { %v5997_v20 = vadd.f32 %v1236_v62, %v5819_v63 }
 0x219   : > { %v1402_v14 = vmax.f32 %v5954_v9, %v5957_v12 }
 0x21a   : > { %8511 = vst [vmem:[#allocation20_spill] sm:$0xff] %v5997_v20 }
 0x21b   : > { %v5963_v16 = vmax.f32 %v1402_v14, %v1403_v13  ;;  %v1366_v55 = vpop.f32.mrf.mxu1  ;;  %v1171_v52 = vpop.f32.mrf.mxu2  ;;  %v5974_v14 = vadd.f32 %v1233_v45, %v5819_v63 }
 0x21c   : > { %v6000_v49 = vadd.f32 %v1366_v55, %v5823_v6  ;;  %v6003_v25 = vadd.f32 %v1171_v52, %v5821_v5 }
 0x21d   : > { %1466 = vrot.lane.b32.xlu1 %v5963_v16, %s5019_s18 }
 0x21e   : > { %v1298_v31 = vpop.f32.mrf.mxu0  ;;  %8512 = vst [vmem:[#allocation21_spill] sm:$0xff] %v6000_v49  ;;  %v1407_v55 = vmax.f32 %v5997_v20, %v6000_v49 }
 0x21f   : > { %v5968_v19 = vadd.f32 %v1298_v31, %v5825_v7  ;;  %v1239_v31 = vpop.f32.mrf.mxu3  ;;  %8513 = vst [vmem:[#allocation22_spill] sm:$0xff] %v6003_v25 }
 0x220   : > { %v6022_v8 = vadd.f32 %v1239_v31, %v5819_v63 }
 0x222   : > { %8515 = vst [vmem:[#allocation24_spill] sm:$0xff] %v6022_v8 }
 0x223   : > { %v1369_v33 = vpop.f32.mrf.mxu1  ;;  %v1174_v4 = vpop.f32.mrf.mxu2 }
 0x224   : > { %v6025_v38 = vadd.f32 %v1369_v33, %v5823_v6 }
 0x226   : > { %v1301_v46 = vpop.f32.mrf.mxu0  ;;  %8516 = vst [vmem:[#allocation25_spill] sm:$0xff] %v6025_v38  ;;  %v1409_v31 = vmax.f32 %v6022_v8, %v6025_v38 }
 0x227   : > { %v5989_v39 = vadd.f32 %v1301_v46, %v5825_v7  ;;  %v1242_v62 = vpop.f32.mrf.mxu3 }
 0x229   : > { %8510 = vst [vmem:[#allocation19_spill] sm:$0xff] %v5989_v39 }
 0x22e   : > { %v1304_v13 = vpop.f32.mrf.mxu0 }
 0x22f   : > { %v6014_v52 = vadd.f32 %v1304_v13, %v5825_v7 }
 0x231   : > { %8514 = vst [vmem:[#allocation23_spill] sm:$0xff] %v6014_v52 }
 0x236   : > { %v1307_v46 = vpop.f32.mrf.mxu0 }
 0x25f   : > { %v1455_v35 = vpop.permute.xlu0 %1454 }
 0x260   : > { %v5971_v0 = vmax.f32 %v5843_v15, %v1455_v35  ;;  %v1404_v35 = vmax.f32 %v5980_v50, %v5968_v19  ;;  %v1405_v15 = vmax.f32 %v5974_v14, %v5977_v32 }
 0x262   : > { %1534 = vrot.lane.b32.xlu0 %v5971_v0, %s5020_s19  ;;  %v5994_v42 = vmax.f32 %v1404_v35, %v1405_v15  ;;  %v1372_v35 = vpop.f32.mrf.mxu1  ;;  %v1177_v15 = vpop.f32.mrf.mxu2 }
 0x263   : > { %v6053_v38 = vadd.f32 %v1372_v35, %v5823_v6 }
 0x265   : > { %8519 = vst [vmem:[#allocation28_spill] sm:$0xff] %v6053_v38 }
 0x267   : > { %v1457_v45 = vpop.permute.xlu0 %1456  ;;  %v1463_v13 = vpop.permute.xlu2 %1462 }
 0x268   : > { %v5992_v40 = vmax.f32 %v5863_v30, %v1457_v45  ;;  %v1406_v30 = vmax.f32 %v6003_v25, %v5989_v39  ;;  %v6028_v25 = vadd.f32 %v1174_v4, %v5821_v5  ;;  %v6039_v4 = vadd.f32 %v1307_v46, %v5825_v7 }
 0x269   : > { %v6047_v50 = vmax.f32 %v5923_v22, %v1463_v13 }
 0x26a   : > { %1468 = vrot.lane.b32.xlu0 %v5994_v42, %s5019_s18  ;;  %1536 = vrot.lane.b32.xlu2 %v5992_v40, %s5020_s19  ;;  %v6019_v44 = vmax.f32 %v1406_v30, %v1407_v55  ;;  %8517 = vst [vmem:[#allocation26_spill] sm:$0xff] %v6028_v25  ;;  %v1310_v30 = vpop.f32.mrf.mxu0  ;;  %v1375_v55 = vpop.f32.mrf.mxu1 }
 0x26b   : > { %v1180_v33 = vpop.f32.mrf.mxu2  ;;  %8518 = vst [vmem:[#allocation27_spill] sm:$0xff] %v6039_v4  ;;  %v6069_v35 = vadd.f32 %v1310_v30, %v5825_v7 }
 0x26d   : > { %8521 = vst [vmem:[#allocation30_spill] sm:$0xff] %v6069_v35 }
 0x26f   : > { %v1459_v45 = vpop.permute.xlu1 %1458 }
 0x270   : > { %v6017_v17 = vmax.f32 %v5883_v41, %v1459_v45  ;;  %v1408_v41 = vmax.f32 %v6028_v25, %v6014_v52  ;;  %v1245_v45 = vpop.f32.mrf.mxu3  ;;  %v6050_v25 = vadd.f32 %v1242_v62, %v5819_v63  ;;  %v6056_v52 = vadd.f32 %v1177_v15, %v5821_v5 }
 0x271   : > { %v6077_v8 = vadd.f32 %v1245_v45, %v5819_v63 }
 0x272   : > { %1538 = vrot.lane.b32.xlu1 %v6017_v17, %s5020_s19  ;;  %1470 = vrot.lane.b32.xlu2 %v6019_v44, %s5019_s18  ;;  %v6044_v20 = vmax.f32 %v1408_v41, %v1409_v31  ;;  %8520 = vst [vmem:[#allocation29_spill] sm:$0xff] %v6056_v52  ;;  %v1411_v22 = vmax.f32 %v6050_v25, %v6053_v38  ;;  %v1313_v46 = vpop.f32.mrf.mxu0  ;;  %v1378_v31 = vpop.f32.mrf.mxu1 }
 0x273   : > { %v1183_v15 = vpop.f32.mrf.mxu2  ;;  %8522 = vst [vmem:[#allocation31_spill] sm:$0xff] %v6077_v8  ;;  %v6083_v38 = vadd.f32 %v1180_v33, %v5821_v5  ;;  %v6094_v45 = vadd.f32 %v1313_v46, %v5825_v7 }
 0x275   : > { %8524 = vst [vmem:[#allocation33_spill] sm:$0xff] %v6083_v38 }
 0x276   : > { %8525 = vst [vmem:[#allocation34_spill] sm:$0xff] %v6094_v45 }
 0x277   : > { %v1461_v49 = vpop.permute.xlu1 %1460 }
 0x278   : > { %v6042_v39 = vmax.f32 %v5903_v58, %v1461_v49  ;;  %v1410_v49 = vmax.f32 %v6056_v52, %v6039_v4  ;;  %v1465_v58 = vpop.permute.xlu2 %1464  ;;  %v1248_v41 = vpop.f32.mrf.mxu3  ;;  %v6080_v52 = vadd.f32 %v1375_v55, %v5823_v6 }
 0x279   : > { %v6072_v62 = vmax.f32 %v5943_v48, %v1465_v58  ;;  %v1412_v48 = vmax.f32 %v6083_v38, %v6069_v35  ;;  %v6099_v33 = vadd.f32 %v1248_v41, %v5819_v63  ;;  %v6102_v58 = vadd.f32 %v1378_v31, %v5823_v6 }
 0x27a   : > { %1472 = vrot.lane.b32.xlu1 %v6044_v20, %s5019_s18  ;;  %1540 = vrot.lane.b32.xlu0 %v6042_v39, %s5020_s19  ;;  %v6074_v13 = vmax.f32 %v1410_v49, %v1411_v22  ;;  %8523 = vst [vmem:[#allocation32_spill] sm:$0xff] %v6080_v52  ;;  %v1413_v30 = vmax.f32 %v6077_v8, %v6080_v52  ;;  %v1316_v49 = vpop.f32.mrf.mxu0  ;;  %v1381_v52 = vpop.f32.mrf.mxu1 }
 0x27b   : > { %1542 = vrot.lane.b32.xlu2 %v6047_v50, %s5020_s19  ;;  %8526 = vst [vmem:[#allocation35_spill] sm:$0xff] %v6099_v33  ;;  %v6105_v22 = vadd.f32 %v1183_v15, %v5821_v5  ;;  %v1186_v4 = vpop.f32.mrf.mxu2  ;;  %v6125_v8 = vadd.f32 %v1381_v52, %v5823_v6 }
 0x27c   : > { %v6096_v55 = vmax.f32 %v1412_v48, %v1413_v30  ;;  %8527 = vst [vmem:[#allocation36_spill] sm:$0xff] %v6102_v58  ;;  %v1415_v48 = vmax.f32 %v6099_v33, %v6102_v58  ;;  %v6114_v30 = vadd.f32 %v1316_v49, %v5825_v7 }
 0x27d   : > { %8528 = vst [vmem:[#allocation37_spill] sm:$0xff] %v6105_v22  ;;  %v1414_v46 = vmax.f32 %v6105_v22, %v6094_v45  ;;  %v6128_v22 = vadd.f32 %v1186_v4, %v5821_v5 }
 0x27e   : > { %8529 = vst [vmem:[#allocation38_spill] sm:$0xff] %v6114_v30 }
 0x27f   : > { %v6119_v15 = vmax.f32 %v1414_v46, %v1415_v48  ;;  %8531 = vst [vmem:[#allocation40_spill] sm:$0xff] %v6125_v8 }
 0x280   : > { %v1251_v38 = vpop.f32.mrf.mxu3  ;;  %8532 = vst [vmem:[#allocation41_spill] sm:$0xff] %v6128_v22 }
 0x281   : > { %v6122_v35 = vadd.f32 %v1251_v38, %v5819_v63 }
 0x282   : > { %1544 = vrot.lane.b32.xlu1 %v6072_v62, %s5020_s19  ;;  %1474 = vrot.lane.b32.xlu0 %v6074_v13, %s5019_s18  ;;  %v1319_v49 = vpop.f32.mrf.mxu0  ;;  %v1384_v38 = vpop.f32.mrf.mxu1 }
 0x283   : > { %8530 = vst [vmem:[#allocation39_spill] sm:$0xff] %v6122_v35  ;;  %v1189_v46 = vpop.f32.mrf.mxu2  ;;  %v1417_v52 = vmax.f32 %v6122_v35, %v6125_v8  ;;  %v6147_v45 = vadd.f32 %v1384_v38, %v5823_v6 }
 0x284   : > { %v6150_v33 = vadd.f32 %v1189_v46, %v5821_v5 }
 0x285   : > { %8534 = vst [vmem:[#allocation43_spill] sm:$0xff] %v6147_v45 }
 0x288   : > { %v1254_v48 = vpop.f32.mrf.mxu3 }
 0x289   : > { %v6144_v58 = vadd.f32 %v1254_v48, %v5819_v63 }
 0x28a   : > { %1476 = vrot.lane.b32.xlu0 %v6096_v55, %s5019_s18  ;;  %v1322_v8 = vpop.f32.mrf.mxu0  ;;  %v1387_v48 = vpop.f32.mrf.mxu1 }
 0x28b   : > { %v6167_v35 = vadd.f32 %v1387_v48, %v5823_v6 }
 0x28d   : > { %8537 = vst [vmem:[#allocation46_spill] sm:$0xff] %v6167_v35 }
 0x28f   : > { %v1467_v41 = vpop.permute.xlu1 %1466 }
 0x290   : > { %v6117_v31 = vmax.f32 %v5963_v16, %v1467_v41  ;;  %v1416_v16 = vmax.f32 %v6128_v22, %v6114_v30  ;;  %v6139_v41 = vadd.f32 %v1319_v49, %v5825_v7  ;;  %v1419_v49 = vmax.f32 %v6144_v58, %v6147_v45 }
 0x291   : > { %v6159_v30 = vadd.f32 %v1322_v8, %v5825_v7 }
 0x292   : > { %1546 = vrot.lane.b32.xlu1 %v6117_v31, %s5020_s19  ;;  %1478 = vrot.lane.b32.xlu0 %v6119_v15, %s5019_s18  ;;  %8533 = vst [vmem:[#allocation42_spill] sm:$0xff] %v6139_v41  ;;  %v6141_v4 = vmax.f32 %v1416_v16, %v1417_v52  ;;  %v1418_v22 = vmax.f32 %v6150_v33, %v6139_v41  ;;  %v1192_v16 = vpop.f32.mrf.mxu2  ;;  %v1257_v52 = vpop.f32.mrf.mxu3 }
 0x293   : > { %8535 = vst [vmem:[#allocation44_spill] sm:$0xff] %v6159_v30  ;;  %v6164_v46 = vadd.f32 %v1257_v52, %v5819_v63  ;;  %v6170_v41 = vadd.f32 %v1192_v16, %v5821_v5 }
 0x294   : > { %v6161_v38 = vmax.f32 %v1418_v22, %v1419_v49 }
 0x295   : > { %8536 = vst [vmem:[#allocation45_spill] sm:$0xff] %v6164_v46  ;;  %v1420_v45 = vmax.f32 %v6170_v41, %v6159_v30  ;;  %v1421_v8 = vmax.f32 %v6164_v46, %v6167_v35 }
 0x297   : > { %v6178_v7 = vmax.f32 %v1420_v45, %v1421_v8 }
 0x29a   : > { %1480 = vrot.lane.b32.xlu0 %v6141_v4, %s5019_s18 }
 0x2a2   : > { %1482 = vrot.lane.b32.xlu0 %v6161_v38, %s5019_s18 }
 0x2aa   : > { %1484 = vrot.lane.b32.xlu0 %v6178_v7, %s5019_s18 }
 0x2c4   : > { %v1537_v5 = vpop.permute.xlu2 %1536 }
 0x2c5   : > { %v6188_v49 = vmax.f32 %v5992_v40, %v1537_v5 }
 0x2d4   : > { %v1535_v63 = vpop.permute.xlu0 %1534 }
 0x2d5   : > { %v6183_v6 = vmax.f32 %v5971_v0, %v1535_v63  ;;  %v1471_v0 = vpop.permute.xlu2 %1470 }
 0x2d6   : > { %v6198_v52 = vmax.f32 %v6019_v44, %v1471_v0 }
 0x2d7   : > { %1614 = vrot.lane.b32.xlu2 %v6183_v6, %s5021_s20 }
 0x2dc   : > { %v1469_v22 = vpop.permute.xlu0 %1468 }
 0x2dd   : > { %v6191_v16 = vmax.f32 %v5994_v42, %v1469_v22  ;;  %v1543_v44 = vpop.permute.xlu2 %1542 }
 0x2de   : > { %v6218_v5 = vmax.f32 %v6047_v50, %v1543_v44  ;;  %v1900_v50 = vld [vmem:[%s8389_s5 + $0xf0] sm:$0xff]  ;;  %v1962_v44 = vld [vmem:[%s8389_s5 + $0x2e0] sm:$0xff] }
 0x2df   : > { %1616 = vrot.lane.b32.xlu2 %v6188_v49, %s5021_s20  ;;  %1548 = vrot.lane.b32.xlu1 %v6191_v16, %s5020_s19 }
 0x2e0   : > { %1998 = vmatpush.msrb.mxu2 %v1900_v50  ;;  %v1960_v50 = vld [vmem:[%s8389_s5 + $0x2d0] sm:$0xff] }
 0x2e4   : > { %v1539_v45 = vpop.permute.xlu1 %1538 }
 0x2e5   : > { %v6201_v48 = vmax.f32 %v6017_v17, %v1539_v45 }
 0x2e7   : > { %1618 = vrot.lane.b32.xlu2 %v6201_v48, %s5021_s20  ;;  %1550 = vrot.lane.b32.xlu1 %v6198_v52, %s5020_s19 }
 0x2ec   : > { %v1473_v42 = vpop.permute.xlu1 %1472  ;;  %v1541_v40 = vpop.permute.xlu0 %1540 }
 0x2ed   : > { %v6208_v8 = vmax.f32 %v6044_v20, %v1473_v42  ;;  %v6211_v63 = vmax.f32 %v6042_v39, %v1541_v40  ;;  %v1964_v42 = vld [vmem:[%s8389_s5 + $0x2f0] sm:$0xff]  ;;  %v1930_v40 = vld [vmem:[%s8389_s5 + $0x1e0] sm:$0xff] }
 0x2ee   : > { %2128 = vmatpush.msra.mxu0 %v1964_v42  ;;  %v1894_v42 = vld [vmem:[%s8389_s5 + $0xc0] sm:$0xff] }
 0x2ef   : > { %1552 = vrot.lane.b32.xlu1 %v6208_v8, %s5020_s19  ;;  %1620 = vrot.lane.b32.xlu2 %v6211_v63, %s5021_s20 }
 0x2f0   : > { %2129 = vmatpush.msra.mxu0 %v1962_v44 }
 0x2f2   : > { %2130 = vmatpush.msra.mxu0 %v1960_v50  ;;  %v1890_v50 = vld [vmem:[%s8389_s5 + $0xa0] sm:$0xff] }
 0x2f4   : > { %v1475_v17 = vpop.permute.xlu0 %1474  ;;  %v1545_v20 = vpop.permute.xlu1 %1544 }
 0x2f5   : > { %v6221_v22 = vmax.f32 %v6074_v13, %v1475_v17  ;;  %v6228_v0 = vmax.f32 %v6072_v62, %v1545_v20  ;;  %v1932_v13 = vld [vmem:[%s8389_s5 + $0x1f0] sm:$0xff]  ;;  %v1994_v17 = vld [vmem:[%s8389_s5 + $0x3e0] sm:$0xff] }
 0x2f6   : > { %2063 = vmatpush.msra.mxu3 %v1932_v13  ;;  %v1996_v62 = vld [vmem:[%s8389_s5 + $0x3f0] sm:$0xff] }
 0x2f7   : > { %1622 = vrot.lane.b32.xlu2 %v6218_v5, %s5021_s20  ;;  %1554 = vrot.lane.b32.xlu1 %v6221_v22, %s5020_s19  ;;  %v1896_v20 = vld [vmem:[%s8389_s5 + $0xd0] sm:$0xff] }
 0x2f8   : > { %2193 = vmatpush.msra.mxu1 %v1996_v62  ;;  %2064 = vmatpush.msra.mxu3 %v1930_v40  ;;  %v1992_v13 = vld [vmem:[%s8389_s5 + $0x3d0] sm:$0xff]  ;;  %v1926_v62 = vld [vmem:[%s8389_s5 + $0x1c0] sm:$0xff] }
 0x2f9   : > { %v1990_v40 = vld [vmem:[%s8389_s5 + $0x3c0] sm:$0xff] }
 0x2fa   : > { %2194 = vmatpush.msra.mxu1 %v1994_v17 }
 0x2fc   : > { %v1477_v39 = vpop.permute.xlu0 %1476  ;;  %2195 = vmatpush.msra.mxu1 %v1992_v13  ;;  %v1922_v13 = vld [vmem:[%s8389_s5 + $0x1a0] sm:$0xff] }
 0x2fd   : > { %v6231_v45 = vmax.f32 %v6096_v55, %v1477_v39  ;;  %v1898_v55 = vld [vmem:[%s8389_s5 + $0xe0] sm:$0xff]  ;;  %v1928_v39 = vld [vmem:[%s8389_s5 + $0x1d0] sm:$0xff] }
 0x2fe   : > { %1999 = vmatpush.msrb.mxu2 %v1898_v55  ;;  %2065 = vmatpush.msra.mxu3 %v1928_v39  ;;  %v1958_v55 = vld [vmem:[%s8389_s5 + $0x2c0] sm:$0xff]  ;;  %v1924_v39 = vld [vmem:[%s8389_s5 + $0x1b0] sm:$0xff] }
 0x2ff   : > { %1624 = vrot.lane.b32.xlu2 %v6228_v0, %s5021_s20  ;;  %1556 = vrot.lane.b32.xlu0 %v6231_v45, %s5020_s19 }
 0x300   : > { %2000 = vmatpush.msrb.mxu2 %v1896_v20  ;;  %2066 = vmatpush.msra.mxu3 %v1926_v62  ;;  %v1892_v20 = vld [vmem:[%s8389_s5 + $0xb0] sm:$0xff]  ;;  %v1986_v62 = vld [vmem:[%s8389_s5 + $0x3a0] sm:$0xff] }
 0x301   : > { %2131 = vmatpush.msra.mxu0 %v1958_v55  ;;  %2196 = vmatpush.msra.mxu1 %v1990_v40  ;;  %v1888_v55 = vld [vmem:[%s8389_s5 + $0x90] sm:$0xff] }
 0x302   : > { %2001 = vmatpush.msrb.mxu2 %v1894_v42  ;;  %2067 = vmatpush.msra.mxu3 %v1924_v39  ;;  %v1954_v42 = vld [vmem:[%s8389_s5 + $0x2a0] sm:$0xff]  ;;  %v1920_v40 = vld [vmem:[%s8389_s5 + $0x190] sm:$0xff] }
 0x303   : > { %v1918_v39 = vld [vmem:[%s8389_s5 + $0x180] sm:$0xff] }
 0x304   : > { %v1547_v44 = vpop.permute.xlu1 %1546  ;;  %v1479_v17 = vpop.permute.xlu0 %1478  ;;  %2002 = vmatpush.msrb.mxu2 %v1892_v20  ;;  %2068 = vmatpush.msra.mxu3 %v1922_v13  ;;  %v1886_v20 = vld [vmem:[%s8389_s5 + $0x80] sm:$0xff] }
 0x305   : > { %v6286_v35 = vmax.f32 %v6117_v31, %v1547_v44  ;;  %v6289_v30 = vmax.f32 %v6119_v15, %v1479_v17  ;;  %v1956_v31 = vld [vmem:[%s8389_s5 + $0x2b0] sm:$0xff]  ;;  %v1982_v13 = vld [vmem:[%s8389_s5 + $0x380] sm:$0xff] }
 0x306   : > { %v1988_v15 = vld [vmem:[%s8389_s5 + $0x3b0] sm:$0xff]  ;;  %2132 = vmatpush.msra.mxu0 %v1956_v31  ;;  %2003 = vmatpush.msrb.mxu2 %v1890_v50 }
 0x307   : > { %1626 = vrot.lane.b32.xlu1 %v6286_v35, %s5021_s20  ;;  %1558 = vrot.lane.b32.xlu2 %v6289_v30, %s5020_s19  ;;  %v1952_v44 = vld [vmem:[%s8389_s5 + $0x290] sm:$0xff] }
 0x308   : > { %2197 = vmatpush.msra.mxu1 %v1988_v15  ;;  %v1984_v17 = vld [vmem:[%s8389_s5 + $0x390] sm:$0xff]  ;;  %2133 = vmatpush.msra.mxu0 %v1954_v42  ;;  %v1950_v15 = vld [vmem:[%s8389_s5 + $0x280] sm:$0xff] }
 0x309   : > { %2004 = vmatpush.msrb.mxu2 %v1888_v55  ;;  %2069 = vmatpush.msra.mxu3 %v1920_v40  ;;  %v1884_v42 = vld [vmem:[%s8389_s5 + $0x70] sm:$0xff]  ;;  %v1882_v40 = vld [vmem:[%s8389_s5 + $0x60] sm:$0xff] }
 0x30a   : > { %2198 = vmatpush.msra.mxu1 %v1986_v62  ;;  %2134 = vmatpush.msra.mxu0 %v1952_v44  ;;  %v1916_v62 = vld [vmem:[%s8389_s5 + $0x170] sm:$0xff]  ;;  %v1914_v44 = vld [vmem:[%s8389_s5 + $0x160] sm:$0xff] }
 0x30b   : > { %2005 = vmatpush.msrb.mxu2 %v1886_v20  ;;  %2070 = vmatpush.msra.mxu3 %v1918_v39  ;;  %v1980_v55 = vld [vmem:[%s8389_s5 + $0x370] sm:$0xff]  ;;  %v1978_v20 = vld [vmem:[%s8389_s5 + $0x360] sm:$0xff] }
 0x30c   : > { %v1481_v31 = vpop.permute.xlu0 %1480  ;;  %2199 = vmatpush.msra.mxu1 %v1984_v17  ;;  %2135 = vmatpush.msra.mxu0 %v1950_v15  ;;  %v1946_v17 = vld [vmem:[%s8389_s5 + $0x260] sm:$0xff]  ;;  %v1880_v39 = vld [vmem:[%s8389_s5 + $0x50] sm:$0xff] }
 0x30d   : > { %v6341_v50 = vmax.f32 %v6141_v4, %v1481_v31  ;;  %v1948_v4 = vld [vmem:[%s8389_s5 + $0x270] sm:$0xff]  ;;  %2006 = vmatpush.msrb.mxu2 %v1884_v42  ;;  %2071 = vmatpush.msra.mxu3 %v1916_v62  ;;  %v1878_v42 = vld [vmem:[%s8389_s5 + $0x40] sm:$0xff] }
 0x30e   : > { %2200 = vmatpush.msra.mxu1 %v1982_v13  ;;  %2136 = vmatpush.msra.mxu0 %v1948_v4  ;;  %v1912_v31 = vld [vmem:[%s8389_s5 + $0x150] sm:$0xff]  ;;  %v1910_v62 = vld [vmem:[%s8389_s5 + $0x140] sm:$0xff] }
 0x30f   : > { %1560 = vrot.lane.b32.xlu1 %v6341_v50, %s5020_s19  ;;  %2007 = vmatpush.msrb.mxu2 %v1882_v40  ;;  %v1944_v15 = vld [vmem:[%s8389_s5 + $0x250] sm:$0xff]  ;;  %v1942_v4 = vld [vmem:[%s8389_s5 + $0x240] sm:$0xff] }
 0x310   : > { %2201 = vmatpush.msra.mxu1 %v1980_v55  ;;  %2072 = vmatpush.msra.mxu3 %v1914_v44  ;;  %v1976_v13 = vld [vmem:[%s8389_s5 + $0x350] sm:$0xff]  ;;  %v1974_v55 = vld [vmem:[%s8389_s5 + $0x340] sm:$0xff] }
 0x311   : > { %2137 = vmatpush.msra.mxu0 %v1946_v17  ;;  %2008 = vmatpush.msrb.mxu2 %v1880_v39  ;;  %v1876_v40 = vld [vmem:[%s8389_s5 + $0x30] sm:$0xff]  ;;  %v1874_v39 = vld [vmem:[%s8389_s5 + $0x20] sm:$0xff] }
 0x312   : > { %2202 = vmatpush.msra.mxu1 %v1978_v20  ;;  %2073 = vmatpush.msra.mxu3 %v1912_v31  ;;  %v1908_v44 = vld [vmem:[%s8389_s5 + $0x130] sm:$0xff]  ;;  %v1906_v31 = vld [vmem:[%s8389_s5 + $0x120] sm:$0xff] }
 0x313   : > { %2138 = vmatpush.msra.mxu0 %v1944_v15  ;;  %2009 = vmatpush.msrb.mxu2 %v1878_v42  ;;  %v1940_v17 = vld [vmem:[%s8389_s5 + $0x230] sm:$0xff]  ;;  %v1938_v15 = vld [vmem:[%s8389_s5 + $0x220] sm:$0xff] }
 0x314   : > { %2203 = vmatpush.msra.mxu1 %v1976_v13  ;;  %2074 = vmatpush.msra.mxu3 %v1910_v62  ;;  %v1972_v20 = vld [vmem:[%s8389_s5 + $0x330] sm:$0xff]  ;;  %v1970_v13 = vld [vmem:[%s8389_s5 + $0x320] sm:$0xff] }
 0x315   : > { %2139 = vmatpush.msra.mxu0 %v1942_v4  ;;  %2010 = vmatpush.msrb.mxu2 %v1876_v40  ;;  %v1872_v42 = vld [vmem:[%s8389_s5 + $0x10] sm:$0xff]  ;;  %v1870_v40 = vld [vmem:[%s8389_s5] sm:$0xff] }
 0x316   : > { %2204 = vmatpush.msra.mxu1 %v1974_v55  ;;  %2075 = vmatpush.msra.mxu3 %v1908_v44  ;;  %v1904_v62 = vld [vmem:[%s8389_s5 + $0x110] sm:$0xff]  ;;  %v1902_v44 = vld [vmem:[%s8389_s5 + $0x100] sm:$0xff] }
 0x317   : > { %2140 = vmatpush.msra.mxu0 %v1940_v17  ;;  %2011 = vmatpush.msrb.mxu2 %v1874_v39  ;;  %v1936_v4 = vld [vmem:[%s8389_s5 + $0x210] sm:$0xff]  ;;  %v1934_v17 = vld [vmem:[%s8389_s5 + $0x200] sm:$0xff] }
 0x318   : > { %2205 = vmatpush.msra.mxu1 %v1972_v20  ;;  %2076 = vmatpush.msra.mxu3 %v1906_v31  ;;  %v1968_v55 = vld [vmem:[%s8389_s5 + $0x310] sm:$0xff]  ;;  %v1966_v20 = vld [vmem:[%s8389_s5 + $0x300] sm:$0xff] }
 0x319   : > { %2141 = vmatpush.msra.mxu0 %v1938_v15  ;;  %2012 = vmatpush.msrb.mxu2 %v1872_v42 }
 0x31a   : > { %2206 = vmatpush.msra.mxu1 %v1970_v13  ;;  %2077 = vmatpush.msra.mxu3 %v1904_v62 }
 0x31b   : > { %2142 = vmatpush.msra.mxu0 %v1936_v4  ;;  %2013 = vmatpush.msrb.mxu2 %v1870_v40 }
 0x31c   : > { %2207 = vmatpush.msra.mxu1 %v1968_v55  ;;  %2078 = vmatpush.msra.mxu3 %v1902_v44 }
 0x31d   : > { %2143 = vmatpush.msra.mxu0 %v1934_v17 }
 0x31e   : > { %2208 = vmatpush.msra.mxu1 %v1966_v20 }
 0x331   : > { %v1615_v39 = vpop.permute.xlu2 %1614 }
 0x332   : > { %v1662_v31 = vmax.f32 %v6183_v6, %v1615_v39 }
 0x334   : > { %v1678_v15 = vsub.f32 %v5831_v59, %v1662_v31  ;;  %v1679_v13 = vsub.f32 %v5828_v3, %v1662_v31  ;;  %v1680_v42 = vsub.f32 %v5837_v11, %v1662_v31  ;;  %v1681_v62 = vsub.f32 %v5834_v10, %v1662_v31 }
 0x336   : > { %v1742_v4 = vmul.f32 1.442695, %v1678_v15  ;;  %v1744_v55 = vmul.f32 1.442695, %v1679_v13  ;;  %v1746_v40 = vmul.f32 1.442695, %v1680_v42 }
 0x337   : > { %v1748_v44 = vmul.f32 1.442695, %v1681_v62 }
 0x338   : > { %4714 = vpow2.f32 %v1742_v4 }
 0x339   : > { %4716 = vpow2.f32 %v1744_v55  ;;  %v1617_v46 = vpop.permute.xlu2 %1616 }
 0x33a   : > { %4718 = vpow2.f32 %v1746_v40  ;;  %v1663_v17 = vmax.f32 %v6188_v49, %v1617_v46 }
 0x33b   : > { %4720 = vpow2.f32 %v1748_v44 }
 0x33c   : > { %v1683_v6 = vsub.f32 %v5846_v18, %v1663_v17  ;;  %v1684_v59 = vsub.f32 %v5857_v27, %v1663_v17  ;;  %v1685_v3 = vsub.f32 %v5854_v26, %v1663_v17  ;;  %v1682_v11 = vsub.f32 %v5851_v24, %v1663_v17 }
 0x33e   : > { %v6454_v10 = vpop.eup %4714  ;;  %v1752_v20 = vmul.f32 1.442695, %v1683_v6  ;;  %v1754_v39 = vmul.f32 1.442695, %v1684_v59  ;;  %v1756_v31 = vmul.f32 1.442695, %v1685_v3 }
 0x33f   : > { %v6456_v15 = vpop.eup %4716  ;;  %2014 = vmatmul.f32.vlgmr.msrb.gmra.mxu2 %v6454_v10  ;;  %v1750_v13 = vmul.f32 1.442695, %v1682_v11 }
 0x340   : > { %v6459_v46 = vpop.eup %4718  ;;  %4722 = vpow2.f32 %v1752_v20  ;;  %2079 = vmatmul.f32.vlgmr.msra.gmra.mxu3 %v6456_v15 }
 0x341   : > { %v6462_v18 = vpop.eup %4720  ;;  %4724 = vpow2.f32 %v1754_v39  ;;  %2144 = vmatmul.f32.vlgmr.msra.gmra.mxu0 %v6459_v46  ;;  %v1619_v24 = vpop.permute.xlu2 %1618 }
 0x342   : > { %4726 = vpow2.f32 %v1756_v31  ;;  %2209 = vmatmul.f32.vlgmr.msra.gmra.mxu1 %v6462_v18  ;;  %v1664_v26 = vmax.f32 %v6201_v48, %v1619_v24 }
 0x343   : > { %4728 = vpow2.f32 %v1750_v13 }
 0x344   : > { %v1687_v27 = vsub.f32 %v5866_v23, %v1664_v26  ;;  %v1688_v49 = vsub.f32 %v5877_v37, %v1664_v26  ;;  %v1689_v42 = vsub.f32 %v5874_v36, %v1664_v26  ;;  %v1686_v62 = vsub.f32 %v5871_v28, %v1664_v26 }
 0x346   : > { %v6471_v4 = vpop.eup %4722  ;;  %v1760_v55 = vmul.f32 1.442695, %v1687_v27  ;;  %v1762_v40 = vmul.f32 1.442695, %v1688_v49  ;;  %v1764_v44 = vmul.f32 1.442695, %v1689_v42 }
 0x347   : > { %v6473_v17 = vpop.eup %4724  ;;  %v1758_v6 = vmul.f32 1.442695, %v1686_v62 }
 0x348   : > { %v6475_v59 = vpop.eup %4726  ;;  %4730 = vpow2.f32 %v1760_v55  ;;  %2082 = vmatmul.f32.gmra.mxu3 %v6471_v4 }
 0x349   : > { %v6478_v23 = vpop.eup %4728  ;;  %4732 = vpow2.f32 %v1762_v40  ;;  %2147 = vmatmul.f32.gmra.mxu0 %v6473_v17  ;;  %v1621_v36 = vpop.permute.xlu2 %1620 }
 0x34a   : > { %4734 = vpow2.f32 %v1764_v44  ;;  %2017 = vmatmul.f32.gmra.mxu2 %v6478_v23  ;;  %2212 = vmatmul.f32.gmra.mxu1 %v6475_v59  ;;  %v1665_v28 = vmax.f32 %v6211_v63, %v1621_v36  ;;  %v1483_v40 = vpop.permute.xlu0 %1482 }
 0x34b   : > { %4736 = vpow2.f32 %v1758_v6 }
 0x34c   : > { %v1691_v37 = vsub.f32 %v5886_v43, %v1665_v28  ;;  %v1692_v48 = vsub.f32 %v5897_v54, %v1665_v28  ;;  %v1693_v3 = vsub.f32 %v5894_v53, %v1665_v28  ;;  %v1690_v11 = vsub.f32 %v5891_v51, %v1665_v28 }
 0x34e   : > { %v6488_v20 = vpop.eup %4730  ;;  %v1768_v39 = vmul.f32 1.442695, %v1691_v37  ;;  %v1770_v31 = vmul.f32 1.442695, %v1692_v48  ;;  %v1772_v13 = vmul.f32 1.442695, %v1693_v3 }
 0x34f   : > { %v6490_v24 = vpop.eup %4732  ;;  %v1766_v26 = vmul.f32 1.442695, %v1690_v11 }
 0x350   : > { %v6492_v27 = vpop.eup %4734  ;;  %4738 = vpow2.f32 %v1768_v39  ;;  %2085 = vmatmul.f32.gmra.mxu3 %v6488_v20 }
 0x351   : > { %v6495_v43 = vpop.eup %4736  ;;  %4740 = vpow2.f32 %v1770_v31  ;;  %2150 = vmatmul.f32.gmra.mxu0 %v6490_v24  ;;  %v1549_v53 = vpop.permute.xlu1 %1548 }
 0x352   : > { %v1623_v51 = vpop.permute.xlu2 %1622  ;;  %4742 = vpow2.f32 %v1772_v13  ;;  %2020 = vmatmul.f32.gmra.mxu2 %v6495_v43  ;;  %2215 = vmatmul.f32.gmra.mxu1 %v6492_v27  ;;  %v6501_v54 = vmax.f32 %v6191_v16, %v1549_v53 }
 0x353   : > { %v1666_v63 = vmax.f32 %v6218_v5, %v1623_v51  ;;  %4744 = vpow2.f32 %v1766_v26 }
 0x354   : > { %1628 = vrot.lane.b32.xlu0 %v6501_v54, %s5021_s20 }
 0x355   : > { %v1695_v49 = vsub.f32 %v5906_v60, %v1666_v63  ;;  %v1696_v42 = vsub.f32 %v5917_v2, %v1666_v63  ;;  %v1697_v62 = vsub.f32 %v5909_v61, %v1666_v63  ;;  %v1694_v55 = vsub.f32 %v5914_v1, %v1666_v63 }
 0x356   : > { %v6510_v44 = vpop.eup %4738  ;;  %v6521_v2 = vmax.f32 %v6161_v38, %v1483_v40 }
 0x357   : > { %v1776_v6 = vmul.f32 1.442695, %v1695_v49  ;;  %v1778_v16 = vmul.f32 1.442695, %v1696_v42  ;;  %v1780_v36 = vmul.f32 1.442695, %v1697_v62  ;;  %v6512_v28 = vpop.eup %4740 }
 0x358   : > { %v1774_v5 = vmul.f32 1.442695, %v1694_v55  ;;  %v6514_v37 = vpop.eup %4742  ;;  %2088 = vmatmul.f32.gmra.mxu3 %v6510_v44 }
 0x359   : > { %4746 = vpow2.f32 %v1776_v6  ;;  %v6517_v60 = vpop.eup %4744  ;;  %2153 = vmatmul.f32.gmra.mxu0 %v6512_v28  ;;  %v1551_v61 = vpop.permute.xlu1 %1550 }
 0x35a   : > { %4748 = vpow2.f32 %v1778_v16  ;;  %v1625_v1 = vpop.permute.xlu2 %1624  ;;  %2023 = vmatmul.f32.gmra.mxu2 %v6517_v60  ;;  %2218 = vmatmul.f32.gmra.mxu1 %v6514_v37  ;;  %v6526_v48 = vmax.f32 %v6198_v52, %v1551_v61 }
 0x35b   : > { %4750 = vpow2.f32 %v1780_v36  ;;  %v1667_v3 = vmax.f32 %v6228_v0, %v1625_v1 }
 0x35c   : > { %4752 = vpow2.f32 %v1774_v5  ;;  %1630 = vrot.lane.b32.xlu2 %v6526_v48, %s5021_s20  ;;  %1562 = vrot.lane.b32.xlu0 %v6521_v2, %s5020_s19 }
 0x35d   : > { %v1699_v11 = vsub.f32 %v5926_v29, %v1667_v3  ;;  %v1700_v39 = vsub.f32 %v5937_v34, %v1667_v3  ;;  %v1701_v31 = vsub.f32 %v5929_v21, %v1667_v3  ;;  %v1698_v38 = vsub.f32 %v5934_v47, %v1667_v3  ;;  %v1485_v29 = vpop.permute.xlu0 %1484 }
 0x35e   : > { %v1517_v63 = vmax.f32 %v6178_v7, %v1485_v29 }
 0x35f   : > { %v6537_v13 = vpop.eup %4746  ;;  %v1784_v52 = vmul.f32 1.442695, %v1699_v11  ;;  %v1786_v26 = vmul.f32 1.442695, %v1700_v39  ;;  %v1788_v0 = vmul.f32 1.442695, %v1701_v31 }
 0x360   : > { %v6539_v53 = vpop.eup %4748  ;;  %v1782_v51 = vmul.f32 1.442695, %v1698_v38  ;;  %2091 = vmatmul.f32.gmra.mxu3 %v6537_v13 }
 0x361   : > { %v6541_v34 = vpop.eup %4750  ;;  %4754 = vpow2.f32 %v1784_v52  ;;  %2156 = vmatmul.f32.gmra.mxu0 %v6539_v53  ;;  %v1553_v47 = vpop.permute.xlu1 %1552 }
 0x362   : > { %v6544_v21 = vpop.eup %4752  ;;  %4756 = vpow2.f32 %v1786_v26  ;;  %2221 = vmatmul.f32.gmra.mxu1 %v6541_v34  ;;  %v6551_v49 = vmax.f32 %v6208_v8, %v1553_v47  ;;  %v1559_v55 = vpop.permute.xlu2 %1558  ;;  %v1933_v47 = vld [vmem:[%s8389_s5 + $0x1f8] sm:$0xff] }
 0x363   : > { %4758 = vpow2.f32 %v1788_v0  ;;  %2026 = vmatmul.f32.gmra.mxu2 %v6544_v21  ;;  %v6567_v6 = vmax.f32 %v6289_v30, %v1559_v55  ;;  %2323 = vmatpush.msrb.mxu3 %v1933_v47  ;;  %v1963_v47 = vld [vmem:[%s8389_s5 + $0x2e8] sm:$0xff] }
 0x364   : > { %4760 = vpow2.f32 %v1782_v51  ;;  %1632 = vrot.lane.b32.xlu1 %v6551_v49, %s5021_s20  ;;  %1564 = vrot.lane.b32.xlu2 %v1517_v63, %s5020_s19  ;;  %v1901_v51 = vld [vmem:[%s8389_s5 + $0xf8] sm:$0xff] }
 0x365   : > { %2258 = vmatpush.msra.mxu2 %v1901_v51  ;;  %v1929_v51 = vld [vmem:[%s8389_s5 + $0x1d8] sm:$0xff] }
 0x367   : > { %v6556_v42 = vpop.eup %4754 }
 0x368   : > { %v6558_v62 = vpop.eup %4756  ;;  %2094 = vmatmul.f32.gmra.mxu3 %v6556_v42 }
 0x369   : > { %v6560_v7 = vpop.eup %4758  ;;  %2159 = vmatmul.f32.gmra.mxu0 %v6558_v62  ;;  %v1555_v8 = vpop.permute.xlu1 %1554 }
 0x36a   : > { %v6563_v40 = vpop.eup %4760  ;;  %2224 = vmatmul.f32.gmra.mxu1 %v6560_v7  ;;  %v6572_v16 = vmax.f32 %v6221_v22, %v1555_v8 }
 0x36b   : > { %2029 = vmatmul.f32.gmra.mxu2 %v6563_v40 }
 0x36c   : > { %1634 = vrot.lane.b32.xlu0 %v6572_v16, %s5021_s20  ;;  %1638 = vrot.lane.b32.xlu2 %v6567_v6, %s5021_s20 }
 0x371   : > { %v1557_v36 = vpop.permute.xlu0 %1556 }
 0x372   : > { %v6579_v5 = vmax.f32 %v6231_v45, %v1557_v36 }
 0x374   : > { %1636 = vrot.lane.b32.xlu1 %v6579_v5, %s5021_s20 }
 0x379   : > { %v1627_v30 = vpop.permute.xlu1 %1626 }
 0x37a   : > { %v1668_v61 = vmax.f32 %v6286_v35, %v1627_v30  ;;  %v8538_v30 = vld [vmem:[#allocation18_spill] sm:$0xff] }
 0x37c   : > { %v1703_v1 = vsub.f32 %v5946_v56, %v1668_v61  ;;  %v1704_v22 = vsub.f32 %v5957_v12, %v1668_v61  ;;  %v1705_v3 = vsub.f32 %v5949_v57, %v1668_v61  ;;  %v1702_v11 = vsub.f32 %v5954_v9, %v1668_v61 }
 0x37e   : > { %v1792_v39 = vmul.f32 1.442695, %v1703_v1  ;;  %v1794_v31 = vmul.f32 1.442695, %v1704_v22  ;;  %v1796_v38 = vmul.f32 1.442695, %v1705_v3 }
 0x37f   : > { %v1790_v52 = vmul.f32 1.442695, %v1702_v11 }
 0x380   : > { %4762 = vpow2.f32 %v1792_v39 }
 0x381   : > { %4764 = vpow2.f32 %v1794_v31  ;;  %v1561_v45 = vpop.permute.xlu1 %1560  ;;  %v8539_v31 = vld [vmem:[#allocation20_spill] sm:$0xff] }
 0x382   : > { %4766 = vpow2.f32 %v1796_v38  ;;  %v6589_v26 = vmax.f32 %v6341_v50, %v1561_v45 }
 0x383   : > { %4768 = vpow2.f32 %v1790_v52  ;;  %v8540_v52 = vld [vmem:[#allocation19_spill] sm:$0xff] }
 0x384   : > { %1640 = vrot.lane.b32.xlu0 %v6589_v26, %s5021_s20 }
 0x386   : > { %v6593_v56 = vpop.eup %4762 }
 0x387   : > { %v6595_v57 = vpop.eup %4764  ;;  %2097 = vmatmul.f32.gmra.mxu3 %v6593_v56 }
 0x388   : > { %v6598_v9 = vpop.eup %4766  ;;  %2162 = vmatmul.f32.gmra.mxu0 %v6595_v57 }
 0x389   : > { %v6601_v12 = vpop.eup %4768  ;;  %2227 = vmatmul.f32.gmra.mxu1 %v6598_v9 }
 0x38a   : > { %2032 = vmatmul.f32.gmra.mxu2 %v6601_v12 }
 0x3b6   : > { %v1631_v35 = vpop.permute.xlu2 %1630 }
 0x3b7   : > { %v1670_v1 = vmax.f32 %v6526_v48, %v1631_v35  ;;  %v1997_v35 = vld [vmem:[%s8389_s5 + $0x3f8] sm:$0xff] }
 0x3b8   : > { %2453 = vmatpush.msrb.mxu1 %v1997_v35 }
 0x3b9   : > { %v1711_v38 = vsub.f32 %v8539_v31, %v1670_v1  ;;  %v1712_v45 = vsub.f32 %v8540_v52, %v1670_v1 }
 0x3be   : > { %v1565_v50 = vpop.permute.xlu2 %1564 }
 0x3bf   : > { %v6605_v0 = vmax.f32 %v1517_v63, %v1565_v50  ;;  %v8541_v50 = vld [vmem:[#allocation21_spill] sm:$0xff] }
 0x3c1   : > { %1644 = vrot.lane.b32.xlu2 %v6605_v0, %s5021_s20 }
 0x3c6   : > { %v1629_v29 = vpop.permute.xlu0 %1628 }
 0x3c7   : > { %v1669_v55 = vmax.f32 %v6501_v54, %v1629_v29  ;;  %v1899_v54 = vld [vmem:[%s8389_s5 + $0xe8] sm:$0xff]  ;;  %v1897_v29 = vld [vmem:[%s8389_s5 + $0xd8] sm:$0xff] }
 0x3c8   : > { %2259 = vmatpush.msra.mxu2 %v1899_v54 }
 0x3c9   : > { %v1707_v8 = vsub.f32 %v5974_v14, %v1669_v55  ;;  %v1708_v63 = vsub.f32 %v5968_v19, %v1669_v55  ;;  %v1709_v36 = vsub.f32 %v5977_v32, %v1669_v55  ;;  %v1706_v61 = vsub.f32 %v8538_v30, %v1669_v55  ;;  %v1931_v14 = vld [vmem:[%s8389_s5 + $0x1e8] sm:$0xff]  ;;  %v1965_v32 = vld [vmem:[%s8389_s5 + $0x2f8] sm:$0xff]  ;;  %v8542_v55 = vld [vmem:[#allocation22_spill] sm:$0xff] }
 0x3ca   : > { %2324 = vmatpush.msrb.mxu3 %v1931_v14  ;;  %2388 = vmatpush.msrb.mxu0 %v1965_v32  ;;  %v1810_v30 = vmul.f32 1.442695, %v1712_v45  ;;  %v8543_v14 = vld [vmem:[#allocation24_spill] sm:$0xff] }
 0x3cb   : > { %v1800_v22 = vmul.f32 1.442695, %v1707_v8  ;;  %v1802_v3 = vmul.f32 1.442695, %v1708_v63  ;;  %v1804_v11 = vmul.f32 1.442695, %v1709_v36  ;;  %v1710_v8 = vsub.f32 %v8542_v55, %v1670_v1  ;;  %2260 = vmatpush.msra.mxu2 %v1897_v29 }
 0x3cc   : > { %v1798_v48 = vmul.f32 1.442695, %v1706_v61  ;;  %2325 = vmatpush.msrb.mxu3 %v1929_v51  ;;  %v1995_v63 = vld [vmem:[%s8389_s5 + $0x3e8] sm:$0xff]  ;;  %v1808_v36 = vmul.f32 1.442695, %v1711_v38  ;;  %2389 = vmatpush.msrb.mxu0 %v1963_v47  ;;  %v8545_v38 = vld [vmem:[#allocation25_spill] sm:$0xff] }
 0x3cd   : > { %4770 = vpow2.f32 %v1800_v22  ;;  %2454 = vmatpush.msrb.mxu1 %v1995_v63 }
 0x3ce   : > { %v1563_v39 = vpop.permute.xlu0 %1562  ;;  %4772 = vpow2.f32 %v1802_v3 }
 0x3cf   : > { %v6631_v19 = vmax.f32 %v6521_v2, %v1563_v39  ;;  %v1713_v2 = vsub.f32 %v8541_v50, %v1670_v1  ;;  %4774 = vpow2.f32 %v1804_v11  ;;  %v1806_v1 = vmul.f32 1.442695, %v1710_v8 }
 0x3d0   : > { %4776 = vpow2.f32 %v1798_v48  ;;  %v8544_v48 = vld [vmem:[#allocation23_spill] sm:$0xff] }
 0x3d1   : > { %1642 = vrot.lane.b32.xlu1 %v6631_v19, %s5021_s20  ;;  %v1812_v3 = vmul.f32 1.442695, %v1713_v2  ;;  %4778 = vpow2.f32 %v1808_v36  ;;  %v1895_v36 = vld [vmem:[%s8389_s5 + $0xc8] sm:$0xff]  ;;  %s8261_s20 = scalar_lea.vmem %s8397_s13, %s5147_s27 }
 0x3d2   : > { %4780 = vpow2.f32 %v1810_v30  ;;  %v1927_v30 = vld [vmem:[%s8389_s5 + $0x1c8] sm:$0xff]  ;;  %2261 = vmatpush.msra.mxu2 %v1895_v36 }
 0x3d3   : > { %v6654_v22 = vpop.eup %4770  ;;  %4782 = vpow2.f32 %v1812_v3  ;;  %v8547_v3 = vld [vmem:[#allocation27_spill] sm:$0xff]  ;;  %2326 = vmatpush.msrb.mxu3 %v1927_v30 }
 0x3d4   : > { %v6657_v39 = vpop.eup %4772  ;;  %2100 = vmatmul.f32.gmra.mxu3 %v6654_v22  ;;  %4784 = vpow2.f32 %v1806_v1  ;;  %v8548_v1 = vld [vmem:[#allocation28_spill] sm:$0xff] }
 0x3d5   : > { %v6660_v54 = vpop.eup %4774  ;;  %2165 = vmatmul.f32.gmra.mxu0 %v6657_v39 }
 0x3d6   : > { %v1633_v61 = vpop.permute.xlu1 %1632  ;;  %v6666_v45 = vpop.eup %4776  ;;  %2230 = vmatmul.f32.gmra.mxu1 %v6660_v54 }
 0x3d7   : > { %v1671_v11 = vmax.f32 %v6551_v49, %v1633_v61  ;;  %v8546_v49 = vld [vmem:[#allocation26_spill] sm:$0xff]  ;;  %2035 = vmatmul.f32.gmra.mxu2 %v6666_v45  ;;  %v6671_v55 = vpop.eup %4778 }
 0x3d8   : > { %v6674_v63 = vpop.eup %4780 }
 0x3d9   : > { %v1715_v32 = vsub.f32 %v8543_v14, %v1671_v11  ;;  %v1716_v31 = vsub.f32 %v8544_v48, %v1671_v11  ;;  %v1717_v52 = vsub.f32 %v8545_v38, %v1671_v11  ;;  %v1714_v35 = vsub.f32 %v8546_v49, %v1671_v11  ;;  %v6683_v61 = vpop.eup %4782  ;;  %v1993_v48 = vld [vmem:[%s8389_s5 + $0x3d8] sm:$0xff] }
 0x3da   : > { %v8549_v38 = vld [vmem:[#allocation29_spill] sm:$0xff]  ;;  %2455 = vmatpush.msrb.mxu1 %v1993_v48 }
 0x3db   : > { %v1816_v50 = vmul.f32 1.442695, %v1715_v32  ;;  %v1818_v2 = vmul.f32 1.442695, %v1716_v31  ;;  %v1820_v29 = vmul.f32 1.442695, %v1717_v52  ;;  %v6695_v31 = vpop.eup %4784 }
 0x3dc   : > { %v1814_v47 = vmul.f32 1.442695, %v1714_v35  ;;  %2103 = vmatmul.f32.gmra.mxu3 %v6671_v55  ;;  %v1961_v32 = vld [vmem:[%s8389_s5 + $0x2d8] sm:$0xff] }
 0x3dd   : > { %4786 = vpow2.f32 %v1816_v50  ;;  %2168 = vmatmul.f32.gmra.mxu0 %v6674_v63  ;;  %v1893_v35 = vld [vmem:[%s8389_s5 + $0xb8] sm:$0xff] }
 0x3de   : > { %v1635_v51 = vpop.permute.xlu0 %1634  ;;  %4788 = vpow2.f32 %v1818_v2  ;;  %2233 = vmatmul.f32.gmra.mxu1 %v6683_v61  ;;  %2390 = vmatpush.msrb.mxu0 %v1961_v32  ;;  %v1925_v50 = vld [vmem:[%s8389_s5 + $0x1b8] sm:$0xff]  ;;  %v1959_v2 = vld [vmem:[%s8389_s5 + $0x2c8] sm:$0xff]  ;;  %v8553_v32 = vld [vmem:[#allocation30_spill] sm:$0xff] }
 0x3df   : > { %v1672_v8 = vmax.f32 %v6572_v16, %v1635_v51  ;;  %4790 = vpow2.f32 %v1820_v29  ;;  %2038 = vmatmul.f32.gmra.mxu2 %v6695_v31  ;;  %2327 = vmatpush.msrb.mxu3 %v1925_v50 }
 0x3e0   : > { %4792 = vpow2.f32 %v1814_v47  ;;  %2262 = vmatpush.msra.mxu2 %v1893_v35  ;;  %v1991_v47 = vld [vmem:[%s8389_s5 + $0x3c8] sm:$0xff]  ;;  %2391 = vmatpush.msrb.mxu0 %v1959_v2  ;;  %v1639_v35 = vpop.permute.xlu2 %1638 }
 0x3e1   : > { %v1719_v16 = vsub.f32 %v6050_v25, %v1672_v8  ;;  %v1720_v11 = vsub.f32 %v8547_v3, %v1672_v8  ;;  %v1721_v14 = vsub.f32 %v8548_v1, %v1672_v8  ;;  %v1718_v52 = vsub.f32 %v8549_v38, %v1672_v8  ;;  %2456 = vmatpush.msrb.mxu1 %v1991_v47  ;;  %v8552_v1 = vld [vmem:[#allocation31_spill] sm:$0xff]  ;;  %v8554_v38 = vld [vmem:[#allocation32_spill] sm:$0xff]  ;;  %v1957_v47 = vld [vmem:[%s8389_s5 + $0x2b8] sm:$0xff] }
 0x3e2   : > { %v1891_v2 = vld [vmem:[%s8389_s5 + $0xa8] sm:$0xff]  ;;  %2392 = vmatpush.msrb.mxu0 %v1957_v47 }
 0x3e3   : > { %v1824_v25 = vmul.f32 1.442695, %v1719_v16  ;;  %v1826_v49 = vmul.f32 1.442695, %v1720_v11  ;;  %v6709_v29 = vpop.eup %4786  ;;  %v1828_v51 = vmul.f32 1.442695, %v1721_v14  ;;  %2263 = vmatpush.msra.mxu2 %v1891_v2 }
 0x3e4   : > { %v6714_v8 = vpop.eup %4788  ;;  %v1822_v30 = vmul.f32 1.442695, %v1718_v52  ;;  %2106 = vmatmul.f32.gmra.mxu3 %v6709_v29  ;;  %v1987_v47 = vld [vmem:[%s8389_s5 + $0x3a8] sm:$0xff] }
 0x3e5   : > { %8550 = vst [vmem:[#allocation18_spill] sm:$0xff] %v6714_v8  ;;  %v6716_v16 = vpop.eup %4790  ;;  %4794 = vpow2.f32 %v1824_v25  ;;  %2171 = vmatmul.f32.gmra.mxu0 %v6714_v8  ;;  %v8555_v25 = vld [vmem:[#allocation33_spill] sm:$0xff] }
 0x3e6   : > { %v1637_v36 = vpop.permute.xlu1 %1636  ;;  %8551 = vst [vmem:[#allocation20_spill] sm:$0xff] %v6716_v16  ;;  %v6719_v11 = vpop.eup %4792  ;;  %4796 = vpow2.f32 %v1826_v49  ;;  %2236 = vmatmul.f32.gmra.mxu1 %v6716_v16 }
 0x3e7   : > { %v1673_v3 = vmax.f32 %v6579_v5, %v1637_v36  ;;  %4798 = vpow2.f32 %v1828_v51  ;;  %2041 = vmatmul.f32.gmra.mxu2 %v6719_v11  ;;  %v1923_v51 = vld [vmem:[%s8389_s5 + $0x1a8] sm:$0xff] }
 0x3e8   : > { %4800 = vpow2.f32 %v1822_v30  ;;  %v1674_v30 = vmax.f32 %v6567_v6, %v1639_v35  ;;  %2328 = vmatpush.msrb.mxu3 %v1923_v51  ;;  %v8561_v6 = vld [vmem:[#allocation34_spill] sm:$0xff]  ;;  %v1989_v35 = vld [vmem:[%s8389_s5 + $0x3b8] sm:$0xff]  ;;  %v1955_v51 = vld [vmem:[%s8389_s5 + $0x2a8] sm:$0xff] }
 0x3e9   : > { %v1723_v14 = vsub.f32 %v8552_v1, %v1673_v3  ;;  %v1724_v48 = vsub.f32 %v8553_v32, %v1673_v3  ;;  %v1725_v52 = vsub.f32 %v8554_v38, %v1673_v3  ;;  %v1722_v5 = vsub.f32 %v8555_v25, %v1673_v3  ;;  %v8560_v38 = vld [vmem:[#allocation35_spill] sm:$0xff]  ;;  %2457 = vmatpush.msrb.mxu1 %v1989_v35  ;;  %v1953_v35 = vld [vmem:[%s8389_s5 + $0x298] sm:$0xff] }
 0x3ea   : > { %v1727_v25 = vsub.f32 %v8560_v38, %v1674_v30  ;;  %2393 = vmatpush.msrb.mxu0 %v1955_v51  ;;  %v8565_v51 = vld [vmem:[#allocation38_spill] sm:$0xff] }
 0x3eb   : > { %v1832_v49 = vmul.f32 1.442695, %v1723_v14  ;;  %v1834_v50 = vmul.f32 1.442695, %v1724_v48  ;;  %v6738_v36 = vpop.eup %4794  ;;  %v1836_v3 = vmul.f32 1.442695, %v1725_v52  ;;  %v1728_v52 = vsub.f32 %v8561_v6, %v1674_v30  ;;  %2458 = vmatpush.msrb.mxu1 %v1987_v47 }
 0x3ec   : > { %8556 = vst [vmem:[#allocation19_spill] sm:$0xff] %v6738_v36  ;;  %v6741_v1 = vpop.eup %4796  ;;  %v1830_v14 = vmul.f32 1.442695, %v1722_v5  ;;  %2109 = vmatmul.f32.gmra.mxu3 %v6738_v36  ;;  %v1889_v5 = vld [vmem:[%s8389_s5 + $0x98] sm:$0xff]  ;;  %v1919_v6 = vld [vmem:[%s8389_s5 + $0x188] sm:$0xff]  ;;  %2394 = vmatpush.msrb.mxu0 %v1953_v35 }
 0x3ed   : > { %8557 = vst [vmem:[#allocation21_spill] sm:$0xff] %v6741_v1  ;;  %v6743_v32 = vpop.eup %4798  ;;  %4802 = vpow2.f32 %v1832_v49  ;;  %2174 = vmatmul.f32.gmra.mxu0 %v6741_v1  ;;  %v1921_v49 = vld [vmem:[%s8389_s5 + $0x198] sm:$0xff]  ;;  %2264 = vmatpush.msra.mxu2 %v1889_v5  ;;  %v1840_v1 = vmul.f32 1.442695, %v1727_v25  ;;  %v1842_v5 = vmul.f32 1.442695, %v1728_v52 }
 0x3ee   : > { %8558 = vst [vmem:[#allocation22_spill] sm:$0xff] %v6743_v32  ;;  %v6745_v48 = vpop.eup %4800  ;;  %4804 = vpow2.f32 %v1834_v50  ;;  %2239 = vmatmul.f32.gmra.mxu1 %v6743_v32  ;;  %v8562_v50 = vld [vmem:[#allocation36_spill] sm:$0xff]  ;;  %2329 = vmatpush.msrb.mxu3 %v1921_v49  ;;  %v8564_v25 = vld [vmem:[#allocation39_spill] sm:$0xff] }
 0x3ef   : > { %8559 = vst [vmem:[#allocation24_spill] sm:$0xff] %v6745_v48  ;;  %4806 = vpow2.f32 %v1836_v3  ;;  %v1729_v2 = vsub.f32 %v8562_v50, %v1674_v30  ;;  %2044 = vmatmul.f32.gmra.mxu2 %v6745_v48  ;;  %v1887_v3 = vld [vmem:[%s8389_s5 + $0x88] sm:$0xff]  ;;  %v1985_v50 = vld [vmem:[%s8389_s5 + $0x398] sm:$0xff] }
 0x3f0   : > { %4808 = vpow2.f32 %v1830_v14  ;;  %v8563_v14 = vld [vmem:[#allocation37_spill] sm:$0xff]  ;;  %2265 = vmatpush.msra.mxu2 %v1887_v3  ;;  %2330 = vmatpush.msrb.mxu3 %v1919_v6  ;;  %v8566_v3 = vld [vmem:[#allocation40_spill] sm:$0xff] }
 0x3f1   : > { %v1726_v38 = vsub.f32 %v8563_v14, %v1674_v30  ;;  %v1844_v36 = vmul.f32 1.442695, %v1729_v2  ;;  %2459 = vmatpush.msrb.mxu1 %v1985_v50  ;;  %4810 = vpow2.f32 %v1840_v1 }
 0x3f2   : > { %4812 = vpow2.f32 %v1842_v5 }
 0x3f3   : > { %v6782_v32 = vpop.eup %4802  ;;  %v1838_v8 = vmul.f32 1.442695, %v1726_v38  ;;  %4814 = vpow2.f32 %v1844_v36 }
 0x3f4   : > { %v6784_v30 = vpop.eup %4804  ;;  %2112 = vmatmul.f32.gmra.mxu3 %v6782_v32 }
 0x3f5   : > { %v6786_v14 = vpop.eup %4806  ;;  %2177 = vmatmul.f32.gmra.mxu0 %v6784_v30  ;;  %4816 = vpow2.f32 %v1838_v8 }
 0x3f6   : > { %v1641_v49 = vpop.permute.xlu0 %1640  ;;  %v6789_v16 = vpop.eup %4808  ;;  %2242 = vmatmul.f32.gmra.mxu1 %v6786_v14 }
 0x3f7   : > { %v1675_v48 = vmax.f32 %v6589_v26, %v1641_v49  ;;  %v8567_v26 = vld [vmem:[#allocation41_spill] sm:$0xff]  ;;  %2047 = vmatmul.f32.gmra.mxu2 %v6789_v16  ;;  %v6799_v49 = vpop.eup %4810 }
 0x3f8   : > { %8568 = vst [vmem:[#allocation23_spill] sm:$0xff] %v6799_v49 }
 0x3f9   : > { %v1731_v52 = vsub.f32 %v8564_v25, %v1675_v48  ;;  %v1732_v47 = vsub.f32 %v8565_v51, %v1675_v48  ;;  %v1733_v6 = vsub.f32 %v8566_v3, %v1675_v48  ;;  %v1730_v2 = vsub.f32 %v8567_v26, %v1675_v48  ;;  %v6801_v25 = vpop.eup %4812  ;;  %v1885_v48 = vld [vmem:[%s8389_s5 + $0x78] sm:$0xff]  ;;  %v1951_v51 = vld [vmem:[%s8389_s5 + $0x288] sm:$0xff] }
 0x3fa   : > { %8569 = vst [vmem:[#allocation25_spill] sm:$0xff] %v6801_v25  ;;  %v6804_v5 = vpop.eup %4814  ;;  %2266 = vmatpush.msra.mxu2 %v1885_v48  ;;  %v1983_v3 = vld [vmem:[%s8389_s5 + $0x388] sm:$0xff]  ;;  %2395 = vmatpush.msrb.mxu0 %v1951_v51  ;;  %v1913_v48 = vld [vmem:[%s8389_s5 + $0x158] sm:$0xff] }
 0x3fb   : > { %v1848_v38 = vmul.f32 1.442695, %v1731_v52  ;;  %v1850_v35 = vmul.f32 1.442695, %v1732_v47  ;;  %v1852_v1 = vmul.f32 1.442695, %v1733_v6  ;;  %v6807_v36 = vpop.eup %4816  ;;  %2460 = vmatpush.msrb.mxu1 %v1983_v3 }
 0x3fc   : > { %v1846_v50 = vmul.f32 1.442695, %v1730_v2  ;;  %2115 = vmatmul.f32.gmra.mxu3 %v6799_v49  ;;  %8570 = vst [vmem:[#allocation26_spill] sm:$0xff] %v6804_v5  ;;  %v1917_v52 = vld [vmem:[%s8389_s5 + $0x178] sm:$0xff]  ;;  %v1883_v6 = vld [vmem:[%s8389_s5 + $0x68] sm:$0xff] }
 0x3fd   : > { %4818 = vpow2.f32 %v1848_v38  ;;  %2180 = vmatmul.f32.gmra.mxu0 %v6801_v25  ;;  %2331 = vmatpush.msrb.mxu3 %v1917_v52  ;;  %v1915_v26 = vld [vmem:[%s8389_s5 + $0x168] sm:$0xff]  ;;  %v1949_v38 = vld [vmem:[%s8389_s5 + $0x278] sm:$0xff]  ;;  %v6934_v25 = vpop.f32.mrf.mxu1 }
 0x3fe   : > { %4820 = vpow2.f32 %v1850_v35  ;;  %2245 = vmatmul.f32.gmra.mxu1 %v6804_v5  ;;  %2267 = vmatpush.msra.mxu2 %v1883_v6  ;;  %v1947_v52 = vld [vmem:[%s8389_s5 + $0x268] sm:$0xff] }
 0x3ff   : > { %4822 = vpow2.f32 %v1852_v1  ;;  %2050 = vmatmul.f32.gmra.mxu2 %v6807_v36  ;;  %v1981_v1 = vld [vmem:[%s8389_s5 + $0x378] sm:$0xff]  ;;  %2332 = vmatpush.msrb.mxu3 %v1915_v26  ;;  %v1979_v51 = vld [vmem:[%s8389_s5 + $0x368] sm:$0xff] }
 0x400   : > { %4824 = vpow2.f32 %v1846_v50  ;;  %v1881_v50 = vld [vmem:[%s8389_s5 + $0x58] sm:$0xff]  ;;  %2396 = vmatpush.msrb.mxu0 %v1949_v38  ;;  %2461 = vmatpush.msrb.mxu1 %v1981_v1  ;;  %v1879_v3 = vld [vmem:[%s8389_s5 + $0x48] sm:$0xff] }
 0x401   : > { %v1911_v6 = vld [vmem:[%s8389_s5 + $0x148] sm:$0xff]  ;;  %2268 = vmatpush.msra.mxu2 %v1881_v50  ;;  %2333 = vmatpush.msrb.mxu3 %v1913_v48  ;;  %v1945_v26 = vld [vmem:[%s8389_s5 + $0x258] sm:$0xff] }
 0x402   : > { %v1977_v38 = vld [vmem:[%s8389_s5 + $0x358] sm:$0xff]  ;;  %2397 = vmatpush.msrb.mxu0 %v1947_v52  ;;  %2462 = vmatpush.msrb.mxu1 %v1979_v51  ;;  %v1943_v50 = vld [vmem:[%s8389_s5 + $0x248] sm:$0xff] }
 0x403   : > { %v6811_v8 = vpop.eup %4818  ;;  %v1877_v1 = vld [vmem:[%s8389_s5 + $0x38] sm:$0xff]  ;;  %2269 = vmatpush.msra.mxu2 %v1879_v3  ;;  %2334 = vmatpush.msrb.mxu3 %v1911_v6  ;;  %v1975_v48 = vld [vmem:[%s8389_s5 + $0x348] sm:$0xff] }
 0x404   : > { %8571 = vst [vmem:[#allocation27_spill] sm:$0xff] %v6811_v8  ;;  %v6822_v47 = vpop.eup %4820  ;;  %2118 = vmatmul.f32.gmra.mxu3 %v6811_v8  ;;  %2398 = vmatpush.msrb.mxu0 %v1945_v26  ;;  %v1875_v52 = vld [vmem:[%s8389_s5 + $0x28] sm:$0xff]  ;;  %v1941_v3 = vld [vmem:[%s8389_s5 + $0x238] sm:$0xff] }
 0x405   : > { %8572 = vst [vmem:[#allocation28_spill] sm:$0xff] %v6822_v47  ;;  %v6833_v2 = vpop.eup %4822  ;;  %2183 = vmatmul.f32.gmra.mxu0 %v6822_v47  ;;  %2463 = vmatpush.msrb.mxu1 %v1977_v38  ;;  %v1907_v51 = vld [vmem:[%s8389_s5 + $0x128] sm:$0xff]  ;;  %v1873_v6 = vld [vmem:[%s8389_s5 + $0x18] sm:$0xff]  ;;  %v8575_v47 = vld [vmem:[#allocation42_spill] sm:$0xff] }
 0x406   : > { %8573 = vst [vmem:[#allocation29_spill] sm:$0xff] %v6833_v2  ;;  %v6838_v35 = vpop.eup %4824  ;;  %2248 = vmatmul.f32.gmra.mxu1 %v6833_v2  ;;  %v1909_v2 = vld [vmem:[%s8389_s5 + $0x138] sm:$0xff]  ;;  %2270 = vmatpush.msra.mxu2 %v1877_v1  ;;  %v1939_v38 = vld [vmem:[%s8389_s5 + $0x228] sm:$0xff] }
 0x407   : > { %8574 = vst [vmem:[#allocation31_spill] sm:$0xff] %v6838_v35  ;;  %2053 = vmatmul.f32.gmra.mxu2 %v6838_v35  ;;  %2335 = vmatpush.msrb.mxu3 %v1909_v2  ;;  %v1973_v2 = vld [vmem:[%s8389_s5 + $0x338] sm:$0xff]  ;;  %v1971_v1 = vld [vmem:[%s8389_s5 + $0x328] sm:$0xff] }
 0x408   : > { %2399 = vmatpush.msrb.mxu0 %v1943_v50  ;;  %2464 = vmatpush.msrb.mxu1 %v1975_v48  ;;  %v1905_v26 = vld [vmem:[%s8389_s5 + $0x118] sm:$0xff]  ;;  %v1871_v48 = vld [vmem:[%s8389_s5 + $0x8] sm:$0xff] }
 0x409   : > { %2271 = vmatpush.msra.mxu2 %v1875_v52  ;;  %2336 = vmatpush.msrb.mxu3 %v1907_v51  ;;  %v1903_v52 = vld [vmem:[%s8389_s5 + $0x108] sm:$0xff]  ;;  %v1937_v51 = vld [vmem:[%s8389_s5 + $0x218] sm:$0xff] }
 0x40a   : > { %2400 = vmatpush.msrb.mxu0 %v1941_v3  ;;  %2465 = vmatpush.msrb.mxu1 %v1973_v2  ;;  %v1969_v2 = vld [vmem:[%s8389_s5 + $0x318] sm:$0xff]  ;;  %v8576_v35 = vld [vmem:[#allocation43_spill] sm:$0xff] }
 0x40b   : > { %2272 = vmatpush.msra.mxu2 %v1873_v6  ;;  %2337 = vmatpush.msrb.mxu3 %v1905_v26 }
 0x40c   : > { %2401 = vmatpush.msrb.mxu0 %v1939_v38  ;;  %2466 = vmatpush.msrb.mxu1 %v1971_v1  ;;  %v1935_v38 = vld [vmem:[%s8389_s5 + $0x208] sm:$0xff] }
 0x40d   : > { %2273 = vmatpush.msra.mxu2 %v1871_v48  ;;  %2338 = vmatpush.msrb.mxu3 %v1903_v52  ;;  %v1967_v1 = vld [vmem:[%s8389_s5 + $0x308] sm:$0xff] }
 0x40e   : > { %2402 = vmatpush.msrb.mxu0 %v1937_v51  ;;  %2467 = vmatpush.msrb.mxu1 %v1969_v2  ;;  %v6931_v2 = vpop.f32.mrf.mxu0 }
 0x410   : > { %2403 = vmatpush.msrb.mxu0 %v1935_v38  ;;  %2468 = vmatpush.msrb.mxu1 %v1967_v1  ;;  %v6939_v38 = vpop.f32.mrf.mxu2  ;;  %v6941_v1 = vpop.f32.mrf.mxu3 }
 0x41b   : > { %v1645_v50 = vpop.permute.xlu2 %1644 }
 0x41c   : > { %v1677_v26 = vmax.f32 %v6605_v0, %v1645_v50 }
 0x41e   : > { %v1738_v5 = vsub.f32 %v6170_v41, %v1677_v26 }
 0x443   : > { %v1643_v3 = vpop.permute.xlu1 %1642 }
 0x444   : > { %v1676_v6 = vmax.f32 %v6631_v19, %v1643_v3 }
 0x446   : > { %v1734_v48 = vsub.f32 %v6150_v33, %v1676_v6  ;;  %v1735_v52 = vsub.f32 %v6144_v58, %v1676_v6  ;;  %v1736_v8 = vsub.f32 %v8575_v47, %v1676_v6  ;;  %v1737_v19 = vsub.f32 %v8576_v35, %v1676_v6  ;;  %v8577_v33 = vld [vmem:[#allocation45_spill] sm:$0xff]  ;;  %v8578_v58 = vld [vmem:[#allocation44_spill] sm:$0xff]  ;;  %v8579_v35 = vld [vmem:[#allocation46_spill] sm:$0xff] }
 0x447   : > { %v1739_v49 = vsub.f32 %v8577_v33, %v1677_v26  ;;  %v1740_v47 = vsub.f32 %v8578_v58, %v1677_v26  ;;  %v1741_v6 = vsub.f32 %v8579_v35, %v1677_v26  ;;  %v6965_v58 = vpop.f32.mrf.mxu3 }
 0x448   : > { %v1854_v51 = vmul.f32 1.442695, %v1734_v48  ;;  %v1856_v0 = vmul.f32 1.442695, %v1735_v52  ;;  %v1858_v50 = vmul.f32 1.442695, %v1736_v8 }
 0x449   : > { %v1860_v3 = vmul.f32 1.442695, %v1737_v19  ;;  %v1862_v8 = vmul.f32 1.442695, %v1738_v5  ;;  %v1864_v48 = vmul.f32 1.442695, %v1739_v49  ;;  %v6954_v5 = vpop.f32.mrf.mxu0  ;;  %v6957_v49 = vpop.f32.mrf.mxu1 }
 0x44a   : > { %4826 = vpow2.f32 %v1854_v51  ;;  %v1866_v41 = vmul.f32 1.442695, %v1740_v47  ;;  %v1868_v51 = vmul.f32 1.442695, %v1741_v6 }
 0x44b   : > { %4828 = vpow2.f32 %v1856_v0 }
 0x44c   : > { %4830 = vpow2.f32 %v1858_v50 }
 0x44d   : > { %4832 = vpow2.f32 %v1860_v3  ;;  %v6961_v3 = vpop.f32.mrf.mxu2 }
 0x44e   : > { %4834 = vpow2.f32 %v1862_v8 }
 0x44f   : > { %4836 = vpow2.f32 %v1864_v48 }
 0x450   : > { %v6943_v52 = vpop.eup %4826  ;;  %4838 = vpow2.f32 %v1866_v41  ;;  %v2789_v41 = vld [vmem:[%s8390_s6 + $0x78] sm:$0xff] }
 0x451   : > { %v6945_v19 = vpop.eup %4828  ;;  %2056 = vmatmul.f32.gmra.mxu2 %v6943_v52  ;;  %4840 = vpow2.f32 %v1868_v51  ;;  %v6975_v6 = vpop.f32.mrf.mxu0 }
 0x452   : > { %v6948_v0 = vpop.eup %4830  ;;  %2121 = vmatmul.f32.gmra.mxu3 %v6945_v19  ;;  %8580 = vst [vmem:[#allocation30_spill] sm:$0xff] %v6975_v6  ;;  %v6977_v8 = vpop.f32.mrf.mxu1  ;;  %2791 = vmatpush.msrb.mxu2 %v2789_v41 }
 0x453   : > { %v6951_v26 = vpop.eup %4832  ;;  %2186 = vmatmul.f32.gmra.mxu0 %v6948_v0  ;;  %8581 = vst [vmem:[#allocation32_spill] sm:$0xff] %v6977_v8  ;;  %v6986_v51 = vpop.f32.mrf.mxu3 }
 0x454   : > { %2251 = vmatmul.f32.gmra.mxu1 %v6951_v26  ;;  %v6959_v50 = vpop.eup %4834 }
 0x455   : > { %v6963_v33 = vpop.eup %4836  ;;  %v6980_v48 = vpop.f32.mrf.mxu2 }
 0x456   : > { %v6968_v47 = vpop.eup %4838 }
 0x457   : > { %v6971_v35 = vpop.eup %4840 }
 0x459   : > { %2059 = vmatmul.f32.gmra.mxu2 %v6959_v50  ;;  %v6990_v6 = vpop.f32.mrf.mxu0 }
 0x45a   : > { %2124 = vmatmul.f32.gmra.mxu3 %v6963_v33  ;;  %v6992_v8 = vpop.f32.mrf.mxu1 }
 0x45b   : > { %2189 = vmatmul.f32.gmra.mxu0 %v6968_v47 }
 0x45c   : > { %2254 = vmatmul.f32.gmra.mxu1 %v6971_v35 }
 0x461   : > { %2274 = vmatmul.f32.vlgmr.msra.gmra.mxu2 %v6454_v10  ;;  %v2788_v10 = vld [vmem:[%s8390_s6 + $0x70] sm:$0xff] }
 0x462   : > { %2339 = vmatmul.f32.vlgmr.msrb.gmra.mxu3 %v6456_v15  ;;  %2792 = vmatpush.msrb.mxu2 %v2788_v10  ;;  %v7000_v15 = vpop.f32.mrf.mxu2 }
 0x463   : > { %2404 = vmatmul.f32.vlgmr.msrb.gmra.mxu0 %v6459_v46  ;;  %v7003_v46 = vpop.f32.mrf.mxu3 }
 0x464   : > { %2469 = vmatmul.f32.vlgmr.msrb.gmra.mxu1 %v6462_v18  ;;  %v7006_v18 = vpop.f32.mrf.mxu0 }
 0x469   : > { %2277 = vmatmul.f32.gmra.mxu2 %v6478_v23  ;;  %v7012_v23 = vpop.f32.mrf.mxu1 }
 0x46a   : > { %2342 = vmatmul.f32.gmra.mxu3 %v6471_v4  ;;  %v2787_v4 = vld [vmem:[%s8390_s6 + $0x68] sm:$0xff] }
 0x46b   : > { %2407 = vmatmul.f32.gmra.mxu0 %v6473_v17  ;;  %2793 = vmatpush.msrb.mxu2 %v2787_v4  ;;  %v2786_v17 = vld [vmem:[%s8390_s6 + $0x60] sm:$0xff] }
 0x46c   : > { %2472 = vmatmul.f32.gmra.mxu1 %v6475_v59  ;;  %v7019_v59 = vpop.f32.mrf.mxu2 }
 0x46d   : > { %2794 = vmatpush.msrb.mxu2 %v2786_v17 }
 0x471   : > { %2280 = vmatmul.f32.gmra.mxu2 %v6495_v43  ;;  %v7021_v43 = vpop.f32.mrf.mxu3 }
 0x472   : > { %2345 = vmatmul.f32.gmra.mxu3 %v6488_v20  ;;  %v7026_v20 = vpop.f32.mrf.mxu0 }
 0x473   : > { %2410 = vmatmul.f32.gmra.mxu0 %v6490_v24  ;;  %v2785_v24 = vld [vmem:[%s8390_s6 + $0x58] sm:$0xff] }
 0x474   : > { %2475 = vmatmul.f32.gmra.mxu1 %v6492_v27  ;;  %v7032_v27 = vpop.f32.mrf.mxu1  ;;  %2795 = vmatpush.msrb.mxu2 %v2785_v24  ;;  %v7034_v41 = vpop.f32.mrf.mxu2 }
 0x479   : > { %2283 = vmatmul.f32.gmra.mxu2 %v6517_v60  ;;  %v7036_v10 = vpop.f32.mrf.mxu3 }
 0x47a   : > { %2348 = vmatmul.f32.gmra.mxu3 %v6510_v44  ;;  %v7041_v44 = vpop.f32.mrf.mxu0 }
 0x47b   : > { %2413 = vmatmul.f32.gmra.mxu0 %v6512_v28  ;;  %v2784_v28 = vld [vmem:[%s8390_s6 + $0x50] sm:$0xff] }
 0x47c   : > { %2478 = vmatmul.f32.gmra.mxu1 %v6514_v37  ;;  %v7047_v37 = vpop.f32.mrf.mxu1  ;;  %2796 = vmatpush.msrb.mxu2 %v2784_v28  ;;  %v7049_v60 = vpop.f32.mrf.mxu2  ;;  %v8584_v28 = vld [vmem:[#allocation24_spill] sm:$0xff] }
 0x481   : > { %2286 = vmatmul.f32.gmra.mxu2 %v6544_v21  ;;  %v7051_v4 = vpop.f32.mrf.mxu3 }
 0x482   : > { %2351 = vmatmul.f32.gmra.mxu3 %v6537_v13  ;;  %v7056_v13 = vpop.f32.mrf.mxu0 }
 0x483   : > { %2416 = vmatmul.f32.gmra.mxu0 %v6539_v53  ;;  %v2783_v53 = vld [vmem:[%s8390_s6 + $0x48] sm:$0xff] }
 0x484   : > { %2481 = vmatmul.f32.gmra.mxu1 %v6541_v34  ;;  %v7062_v34 = vpop.f32.mrf.mxu1  ;;  %2797 = vmatpush.msrb.mxu2 %v2783_v53  ;;  %v7064_v21 = vpop.f32.mrf.mxu2  ;;  %v8585_v53 = vld [vmem:[#allocation19_spill] sm:$0xff] }
 0x489   : > { %2289 = vmatmul.f32.gmra.mxu2 %v6563_v40  ;;  %v7066_v17 = vpop.f32.mrf.mxu3 }
 0x48a   : > { %2354 = vmatmul.f32.gmra.mxu3 %v6556_v42  ;;  %v2782_v42 = vld [vmem:[%s8390_s6 + $0x40] sm:$0xff] }
 0x48b   : > { %2419 = vmatmul.f32.gmra.mxu0 %v6558_v62  ;;  %2798 = vmatpush.msrb.mxu2 %v2782_v42  ;;  %v7075_v62 = vpop.f32.mrf.mxu0 }
 0x48c   : > { %2484 = vmatmul.f32.gmra.mxu1 %v6560_v7  ;;  %v7077_v7 = vpop.f32.mrf.mxu1  ;;  %v7080_v40 = vpop.f32.mrf.mxu2 }
 0x491   : > { %2292 = vmatmul.f32.gmra.mxu2 %v6601_v12 }
 0x492   : > { %2357 = vmatmul.f32.gmra.mxu3 %v6593_v56  ;;  %v7083_v56 = vpop.f32.mrf.mxu3 }
 0x493   : > { %2422 = vmatmul.f32.gmra.mxu0 %v6595_v57  ;;  %v2781_v57 = vld [vmem:[%s8390_s6 + $0x38] sm:$0xff] }
 0x494   : > { %2487 = vmatmul.f32.gmra.mxu1 %v6598_v9  ;;  %2799 = vmatpush.msrb.mxu2 %v2781_v57  ;;  %v7090_v9 = vpop.f32.mrf.mxu0  ;;  %v7092_v12 = vpop.f32.mrf.mxu1  ;;  %v8588_v57 = vld [vmem:[#allocation22_spill] sm:$0xff] }
 0x499   : > { %2295 = vmatmul.f32.gmra.mxu2 %v6666_v45 }
 0x49a   : > { %2360 = vmatmul.f32.gmra.mxu3 %v6654_v22  ;;  %v7097_v22 = vpop.f32.mrf.mxu2 }
 0x49b   : > { %2425 = vmatmul.f32.gmra.mxu0 %v6657_v39  ;;  %v2780_v39 = vld [vmem:[%s8390_s6 + $0x30] sm:$0xff] }
 0x49c   : > { %2490 = vmatmul.f32.gmra.mxu1 %v6660_v54  ;;  %v7103_v54 = vpop.f32.mrf.mxu3  ;;  %2800 = vmatpush.msrb.mxu2 %v2780_v39  ;;  %v7106_v45 = vpop.f32.mrf.mxu0 }
 0x4a1   : > { %2298 = vmatmul.f32.gmra.mxu2 %v6695_v31  ;;  %v8583_v31 = vld [vmem:[#allocation20_spill] sm:$0xff] }
 0x4a2   : > { %2363 = vmatmul.f32.gmra.mxu3 %v6671_v55  ;;  %v7109_v55 = vpop.f32.mrf.mxu1 }
 0x4a3   : > { %2428 = vmatmul.f32.gmra.mxu0 %v6674_v63  ;;  %v8582_v63 = vld [vmem:[#allocation18_spill] sm:$0xff] }
 0x4a4   : > { %2493 = vmatmul.f32.gmra.mxu1 %v6683_v61  ;;  %v7113_v61 = vpop.f32.mrf.mxu2  ;;  %v7115_v24 = vpop.f32.mrf.mxu3 }
 0x4a5   : > { %v7123_v42 = vpop.f32.mrf.mxu0 }
 0x4a6   : > { %8587 = vst [vmem:[#allocation33_spill] sm:$0xff] %v7123_v42 }
 0x4a9   : > { %2301 = vmatmul.f32.gmra.mxu2 %v6719_v11  ;;  %v2779_v11 = vld [vmem:[%s8390_s6 + $0x28] sm:$0xff] }
 0x4aa   : > { %2366 = vmatmul.f32.gmra.mxu3 %v6709_v29  ;;  %2801 = vmatpush.msrb.mxu2 %v2779_v11  ;;  %v8586_v29 = vld [vmem:[#allocation21_spill] sm:$0xff]  ;;  %v7126_v39 = vpop.f32.mrf.mxu1 }
 0x4ab   : > { %2431 = vmatmul.f32.gmra.mxu0 %v8582_v63  ;;  %8589 = vst [vmem:[#allocation35_spill] sm:$0xff] %v7126_v39 }
 0x4ac   : > { %2496 = vmatmul.f32.gmra.mxu1 %v8583_v31  ;;  %v7128_v63 = vpop.f32.mrf.mxu2  ;;  %v7130_v31 = vpop.f32.mrf.mxu3 }
 0x4ad   : > { %8590 = vst [vmem:[#allocation34_spill] sm:$0xff] %v7130_v31  ;;  %v7139_v11 = vpop.f32.mrf.mxu0 }
 0x4ae   : > { %8591 = vst [vmem:[#allocation36_spill] sm:$0xff] %v7139_v11  ;;  %v8601_v11 = vld [vmem:[#allocation27_spill] sm:$0xff] }
 0x4b1   : > { %2304 = vmatmul.f32.gmra.mxu2 %v8584_v28  ;;  %v2778_v28 = vld [vmem:[%s8390_s6 + $0x20] sm:$0xff] }
 0x4b2   : > { %2369 = vmatmul.f32.gmra.mxu3 %v8585_v53  ;;  %2802 = vmatpush.msrb.mxu2 %v2778_v28  ;;  %v7141_v53 = vpop.f32.mrf.mxu1 }
 0x4b3   : > { %2434 = vmatmul.f32.gmra.mxu0 %v8586_v29  ;;  %8592 = vst [vmem:[#allocation37_spill] sm:$0xff] %v7141_v53 }
 0x4b4   : > { %2499 = vmatmul.f32.gmra.mxu1 %v8588_v57  ;;  %v7144_v29 = vpop.f32.mrf.mxu2  ;;  %v7150_v57 = vpop.f32.mrf.mxu3 }
 0x4b5   : > { %8593 = vst [vmem:[#allocation39_spill] sm:$0xff] %v7144_v29  ;;  %v7154_v28 = vpop.f32.mrf.mxu0  ;;  %v8604_v29 = vld [vmem:[#allocation29_spill] sm:$0xff] }
 0x4b6   : > { %8595 = vst [vmem:[#allocation38_spill] sm:$0xff] %v7150_v57 }
 0x4b7   : > { %8598 = vst [vmem:[#allocation40_spill] sm:$0xff] %v7154_v28 }
 0x4b9   : > { %2307 = vmatmul.f32.gmra.mxu2 %v6789_v16  ;;  %v8594_v16 = vld [vmem:[#allocation23_spill] sm:$0xff] }
 0x4ba   : > { %2372 = vmatmul.f32.gmra.mxu3 %v6782_v32  ;;  %v2777_v32 = vld [vmem:[%s8390_s6 + $0x18] sm:$0xff]  ;;  %v7156_v53 = vpop.f32.mrf.mxu1 }
 0x4bb   : > { %2437 = vmatmul.f32.gmra.mxu0 %v6784_v30  ;;  %v8596_v30 = vld [vmem:[#allocation25_spill] sm:$0xff]  ;;  %2803 = vmatpush.msrb.mxu2 %v2777_v32  ;;  %8599 = vst [vmem:[#allocation41_spill] sm:$0xff] %v7156_v53 }
 0x4bc   : > { %2502 = vmatmul.f32.gmra.mxu1 %v6786_v14  ;;  %v8597_v14 = vld [vmem:[#allocation26_spill] sm:$0xff]  ;;  %v7161_v39 = vpop.f32.mrf.mxu2  ;;  %v7164_v57 = vpop.f32.mrf.mxu3 }
 0x4bd   : > { %8603 = vst [vmem:[#allocation42_spill] sm:$0xff] %v7161_v39 }
 0x4be   : > { %8605 = vst [vmem:[#allocation43_spill] sm:$0xff] %v7164_v57 }
 0x4c1   : > { %2310 = vmatmul.f32.gmra.mxu2 %v6807_v36  ;;  %v8600_v36 = vld [vmem:[#allocation31_spill] sm:$0xff] }
 0x4c2   : > { %2375 = vmatmul.f32.gmra.mxu3 %v8594_v16  ;;  %v8602_v16 = vld [vmem:[#allocation28_spill] sm:$0xff] }
 0x4c3   : > { %2440 = vmatmul.f32.gmra.mxu0 %v8596_v30 }
 0x4c4   : > { %2505 = vmatmul.f32.gmra.mxu1 %v8597_v14 }
 0x4c9   : > { %2313 = vmatmul.f32.gmra.mxu2 %v8600_v36  ;;  %v2775_v36 = vld [vmem:[%s8390_s6 + $0x8] sm:$0xff] }
 0x4ca   : > { %2378 = vmatmul.f32.gmra.mxu3 %v8601_v11 }
 0x4cb   : > { %2443 = vmatmul.f32.gmra.mxu0 %v8602_v16 }
 0x4cc   : > { %2508 = vmatmul.f32.gmra.mxu1 %v8604_v29  ;;  %v2776_v29 = vld [vmem:[%s8390_s6 + $0x10] sm:$0xff] }
 0x4cd   : > { %2804 = vmatpush.msrb.mxu2 %v2776_v29 }
 0x4cf   : > { %2805 = vmatpush.msrb.mxu2 %v2775_v36 }
 0x4d0   : > { %v7166_v30 = vpop.f32.mrf.mxu0 }
 0x4d1   : > { %8606 = vst [vmem:[#allocation45_spill] sm:$0xff] %v7166_v30  ;;  %v7168_v32 = vpop.f32.mrf.mxu1  ;;  %2316 = vmatmul.f32.gmra.mxu2 %v6943_v52 }
 0x4d2   : > { %8607 = vst [vmem:[#allocation44_spill] sm:$0xff] %v7168_v32  ;;  %2381 = vmatmul.f32.gmra.mxu3 %v6945_v19 }
 0x4d3   : > { %2446 = vmatmul.f32.gmra.mxu0 %v6948_v0  ;;  %v2774_v0 = vld [vmem:[%s8390_s6] sm:$0xff] }
 0x4d4   : > { %2511 = vmatmul.f32.gmra.mxu1 %v6951_v26  ;;  %v7174_v11 = vpop.f32.mrf.mxu2  ;;  %2806 = vmatpush.msrb.mxu2 %v2774_v0 }
 0x4d5   : > { %8608 = vst [vmem:[#allocation46_spill] sm:$0xff] %v7174_v11  ;;  %v7176_v14 = vpop.f32.mrf.mxu3 }
 0x4d6   : > { %8609 = vst [vmem:[#allocation18_spill] sm:$0xff] %v7176_v14 }
 0x4d8   : > { %v7184_v16 = vpop.f32.mrf.mxu0 }
 0x4d9   : > { %8610 = vst [vmem:[#allocation20_spill] sm:$0xff] %v7184_v16  ;;  %v7186_v52 = vpop.f32.mrf.mxu1  ;;  %2319 = vmatmul.f32.gmra.mxu2 %v6959_v50 }
 0x4da   : > { %8611 = vst [vmem:[#allocation24_spill] sm:$0xff] %v7186_v52  ;;  %2384 = vmatmul.f32.gmra.mxu3 %v6963_v33 }
 0x4db   : > { %2449 = vmatmul.f32.gmra.mxu0 %v6968_v47 }
 0x4dc   : > { %2514 = vmatmul.f32.gmra.mxu1 %v6971_v35  ;;  %v7192_v19 = vpop.f32.mrf.mxu2 }
 0x4dd   : > { %8612 = vst [vmem:[#allocation19_spill] sm:$0xff] %v7192_v19  ;;  %v7197_v26 = vpop.f32.mrf.mxu3  ;;  %v2871_v19 = vld [vmem:[%s8394_s10 + $0x78] sm:$0xff] }
 0x4de   : > { %8613 = vst [vmem:[#allocation21_spill] sm:$0xff] %v7197_v26  ;;  %2888 = vmatpush.msra.mxu3 %v2871_v19  ;;  %2969 = vmatpush.msra.mxu0 %v2871_v19 }
 0x4e0   : > { %v2405_v29 = vpop.f32.mrf.mxu0 }
 0x4e1   : > { %v2470_v52 = vpop.f32.mrf.mxu1 }
 0x4e4   : > { %v2275_v16 = vpop.f32.mrf.mxu2 }
 0x4e5   : > { %v2340_v50 = vpop.f32.mrf.mxu3 }
 0x4e6   : > { %v2341_v32 = vadd.f32 %v2340_v50, %v2275_v16  ;;  %v2870_v50 = vld [vmem:[%s8394_s10 + $0x70] sm:$0xff] }
 0x4e7   : > { %2889 = vmatpush.msra.mxu3 %v2870_v50  ;;  %2970 = vmatpush.msra.mxu0 %v2870_v50 }
 0x4e8   : > { %v2406_v33 = vadd.f32 %v2405_v29, %v2341_v32  ;;  %v2408_v36 = vpop.f32.mrf.mxu0  ;;  %v2081_v32 = vadd.f32 %v6941_v1, %v6939_v38 }
 0x4e9   : > { %v2473_v30 = vpop.f32.mrf.mxu1 }
 0x4ea   : > { %v2471_v47 = vadd.f32 %v2470_v52, %v2406_v33 }
 0x4ec   : > { %4842 = vrcp.f32 %v2471_v47  ;;  %v2278_v35 = vpop.f32.mrf.mxu2  ;;  %vm2523_vm1 = vweird.f32 %v2471_v47 }
 0x4ed   : > { %v2343_v53 = vpop.f32.mrf.mxu3 }
 0x4ee   : > { %v2344_v26 = vadd.f32 %v2343_v53, %v2278_v35  ;;  %v2146_v53 = vadd.f32 %v6931_v2, %v2081_v32  ;;  %v2527_v35 = vand.u32 2147483647, %v2471_v47  ;;  %v2084_v2 = vadd.f32 %v6965_v58, %v6961_v3 }
 0x4f0   : > { %v2409_v0 = vadd.f32 %v2408_v36, %v2344_v26  ;;  %v2411_v14 = vpop.f32.mrf.mxu0  ;;  %v2529_v26 = vand.u32 2147483648, %v2471_v47  ;;  %v2211_v42 = vadd.f32 %v6934_v25, %v2146_v53  ;;  %vm2528_vm3 = vcmp.eq.f32.partialorder %v2527_v35, 8.507059e+37 }
 0x4f1   : > { %v2476_v11 = vpop.f32.mrf.mxu1  ;;  %v2149_v3 = vadd.f32 %v6954_v5, %v2084_v2 }
 0x4f2   : > { %v4843_v28 = vpop.eup %4842  ;;  %v2474_v16 = vadd.f32 %v2473_v30, %v2409_v0 }
 0x4f3   : > { %v2519_v29 = vmul.f32 %v4843_v28, %v2471_v47  ;;  %vm2524_vm0 = vweird.f32 %v4843_v28  ;;  %v2869_v47 = vld [vmem:[%s8394_s10 + $0x68] sm:$0xff] }
 0x4f4   : > { %4844 = vrcp.f32 %v2474_v16  ;;  %v2281_v52 = vpop.f32.mrf.mxu2  ;;  %vm2525_vm2 = vmor %vm2523_vm1, %vm2524_vm0  ;;  %2890 = vmatpush.msra.mxu3 %v2869_v47  ;;  %2971 = vmatpush.msra.mxu0 %v2869_v47  ;;  %v2544_v53 = vand.u32 2147483648, %v2474_v16  ;;  %vm2538_vm5 = vweird.f32 %v2474_v16 }
 0x4f5   : > { %v2520_v33 = vsub.f32 1.0, %v2519_v29  ;;  %v2346_v57 = vpop.f32.mrf.mxu3  ;;  %v2530_v29 = vor.u32 1.1754944e-38, %v2529_v26 }
 0x4f6   : > { %v2347_v19 = vadd.f32 %v2346_v57, %v2281_v52 }
 0x4f7   : > { %v2521_v36 = vmul.f32 %v4843_v28, %v2520_v33 }
 0x4f8   : > { %v2412_v38 = vadd.f32 %v2411_v14, %v2347_v19  ;;  %v2414_v1 = vpop.f32.mrf.mxu0 }
 0x4f9   : > { %v2479_v30 = vpop.f32.mrf.mxu1  ;;  %v2522_v0 = vadd.f32 %v4843_v28, %v2521_v36 }
 0x4fa   : > { %v4845_v39 = vpop.eup %4844  ;;  %v7209_v31 = vadd.f32 %v2476_v11, %v2412_v38 }
 0x4fb   : > { %v2526_v57 = vsel %vm2525_vm2, %v4843_v28, %v2522_v0  ;;  %v2534_v32 = vmul.f32 %v4845_v39, %v2474_v16  ;;  %vm2539_vm4 = vweird.f32 %v4845_v39  ;;  %v2542_v28 = vand.u32 2147483647, %v2474_v16  ;;  %v2868_v16 = vld [vmem:[%s8394_s10 + $0x60] sm:$0xff] }
 0x4fc   : > { %4846 = vrcp.f32 %v7209_v31  ;;  %v2284_v14 = vpop.f32.mrf.mxu2  ;;  %v2531_v52 = vsel %vm2528_vm3, %v2530_v29, %v2526_v57  ;;  %vm2540_vm6 = vmor %vm2538_vm5, %vm2539_vm4  ;;  %v2545_v29 = vor.u32 1.1754944e-38, %v2544_v53  ;;  %v2214_v57 = vadd.f32 %v6957_v49, %v2149_v3  ;;  %2891 = vmatpush.msra.mxu3 %v2868_v16  ;;  %2972 = vmatpush.msra.mxu0 %v2868_v16 }
 0x4fd   : > { %v2349_v50 = vpop.f32.mrf.mxu3  ;;  %v2758_v25 = vmul.f32 %v2531_v52, %v2211_v42  ;;  %v2535_v11 = vsub.f32 1.0, %v2534_v32  ;;  %v2087_v42 = vadd.f32 %v6986_v51, %v6980_v48  ;;  %vm2543_vm7 = vcmp.eq.f32.partialorder %v2542_v28, 8.507059e+37 }
 0x4fe   : > { %v2350_v33 = vadd.f32 %v2349_v50, %v2284_v14  ;;  %v2557_v50 = vand.u32 2147483647, %v7209_v31  ;;  %vm2553_vm9 = vweird.f32 %v7209_v31 }
 0x4ff   : > { %2807 = vmatmul.f32.vlgmr.msrb.gmra.mxu2 %v2758_v25  ;;  %v2536_v58 = vmul.f32 %v4845_v39, %v2535_v11 }
 0x500   : > { %v2415_v19 = vadd.f32 %v2414_v1, %v2350_v33  ;;  %v2417_v26 = vpop.f32.mrf.mxu0  ;;  %vm2558_vm11 = vcmp.eq.f32.partialorder %v2557_v50, 8.507059e+37 }
 0x501   : > { %v2482_v36 = vpop.f32.mrf.mxu1  ;;  %v2537_v35 = vadd.f32 %v4845_v39, %v2536_v58  ;;  %v8615_v58 = vld [vmem:[#allocation32_spill] sm:$0xff] }
 0x502   : > { %v4847_v38 = vpop.eup %4846  ;;  %v7220_v0 = vadd.f32 %v2479_v30, %v2415_v19  ;;  %v8614_v30 = vld [vmem:[#allocation30_spill] sm:$0xff] }
 0x503   : > { %v2541_v5 = vsel %vm2540_vm6, %v4845_v39, %v2537_v35  ;;  %v2549_v2 = vmul.f32 %v4847_v38, %v7209_v31  ;;  %v2152_v52 = vadd.f32 %v8614_v30, %v2087_v42  ;;  %v2559_v39 = vand.u32 2147483648, %v7209_v31  ;;  %v2867_v31 = vld [vmem:[%s8394_s10 + $0x58] sm:$0xff] }
 0x504   : > { %4848 = vrcp.f32 %v7220_v0  ;;  %v2287_v1 = vpop.f32.mrf.mxu2  ;;  %v2546_v32 = vsel %vm2543_vm7, %v2545_v29, %v2541_v5  ;;  %vm2554_vm8 = vweird.f32 %v4847_v38  ;;  %v2090_v42 = vadd.f32 %v7003_v46, %v7000_v15  ;;  %2892 = vmatpush.msra.mxu3 %v2867_v31  ;;  %2973 = vmatpush.msra.mxu0 %v2867_v31 }
 0x505   : > { %v2352_v14 = vpop.f32.mrf.mxu3  ;;  %v2759_v48 = vmul.f32 %v2546_v32, %v2214_v57  ;;  %v2550_v51 = vsub.f32 1.0, %v2549_v2  ;;  %v2217_v28 = vadd.f32 %v8615_v58, %v2152_v52  ;;  %vm2555_vm10 = vmor %vm2553_vm9, %vm2554_vm8  ;;  %v2560_v35 = vor.u32 1.1754944e-38, %v2559_v39 }
 0x506   : > { %v2353_v49 = vadd.f32 %v2352_v14, %v2287_v1  ;;  %v2574_v15 = vand.u32 2147483648, %v7220_v0  ;;  %v2155_v46 = vadd.f32 %v6990_v6, %v2090_v42  ;;  %v2572_v16 = vand.u32 2147483647, %v7220_v0 }
 0x507   : > { %2810 = vmatmul.f32.gmra.mxu2 %v2759_v48  ;;  %v2551_v47 = vmul.f32 %v4847_v38, %v2550_v51  ;;  %vm2568_vm13 = vweird.f32 %v7220_v0 }
 0x508   : > { %v2418_v25 = vadd.f32 %v2417_v26, %v2353_v49  ;;  %v2420_v11 = vpop.f32.mrf.mxu0  ;;  %v2093_v49 = vadd.f32 %v7021_v43, %v7019_v59  ;;  %v2220_v6 = vadd.f32 %v6992_v8, %v2155_v46  ;;  %vm2573_vm15 = vcmp.eq.f32.partialorder %v2572_v16, 8.507059e+37 }
 0x509   : > { %v2485_v33 = vpop.f32.mrf.mxu1  ;;  %v2552_v53 = vadd.f32 %v4847_v38, %v2551_v47  ;;  %v2575_v47 = vor.u32 1.1754944e-38, %v2574_v15 }
 0x50a   : > { %v4849_v3 = vpop.eup %4848  ;;  %v7233_v19 = vadd.f32 %v2482_v36, %v2418_v25 }
 0x50b   : > { %v2556_v29 = vsel %vm2555_vm10, %v4847_v38, %v2552_v53  ;;  %v2564_v57 = vmul.f32 %v4849_v3, %v7220_v0  ;;  %vm2569_vm12 = vweird.f32 %v4849_v3  ;;  %v2866_v0 = vld [vmem:[%s8394_s10 + $0x50] sm:$0xff] }
 0x50c   : > { %4850 = vrcp.f32 %v7233_v19  ;;  %v2290_v26 = vpop.f32.mrf.mxu2  ;;  %v2561_v5 = vsel %vm2558_vm11, %v2560_v35, %v2556_v29  ;;  %vm2570_vm14 = vmor %vm2568_vm13, %vm2569_vm12  ;;  %2893 = vmatpush.msra.mxu3 %v2866_v0  ;;  %2974 = vmatpush.msra.mxu0 %v2866_v0  ;;  %v2587_v35 = vand.u32 2147483647, %v7233_v19  ;;  %vm2583_vm1 = vweird.f32 %v7233_v19 }
 0x50d   : > { %v2355_v2 = vpop.f32.mrf.mxu3  ;;  %v2760_v36 = vmul.f32 %v2561_v5, %v2217_v28  ;;  %v2565_v1 = vsub.f32 1.0, %v2564_v57 }
 0x50e   : > { %v2356_v32 = vadd.f32 %v2355_v2, %v2290_v26  ;;  %vm2588_vm3 = vcmp.eq.f32.partialorder %v2587_v35, 8.507059e+37 }
 0x50f   : > { %2813 = vmatmul.f32.gmra.mxu2 %v2760_v36  ;;  %v2566_v38 = vmul.f32 %v4849_v3, %v2565_v1  ;;  %v2096_v36 = vadd.f32 %v7036_v10, %v7034_v41 }
 0x510   : > { %v2421_v14 = vadd.f32 %v2420_v11, %v2356_v32  ;;  %v2423_v48 = vpop.f32.mrf.mxu0 }
 0x511   : > { %v2488_v51 = vpop.f32.mrf.mxu1  ;;  %v2567_v30 = vadd.f32 %v4849_v3, %v2566_v38 }
 0x512   : > { %v4851_v52 = vpop.eup %4850  ;;  %v7248_v39 = vadd.f32 %v2485_v33, %v2421_v14  ;;  %v2158_v33 = vadd.f32 %v7006_v18, %v2093_v49  ;;  %v2161_v14 = vadd.f32 %v7026_v20, %v2096_v36 }
 0x513   : > { %v2571_v50 = vsel %vm2570_vm14, %v4849_v3, %v2567_v30  ;;  %v2579_v25 = vmul.f32 %v4851_v52, %v7233_v19  ;;  %v2589_v3 = vand.u32 2147483648, %v7233_v19  ;;  %vm2584_vm0 = vweird.f32 %v4851_v52  ;;  %v7270_v19 = vld [vmem:[%s8394_s10 + $0x48] sm:$0xff] }
 0x514   : > { %4852 = vrcp.f32 %v7248_v39  ;;  %v2293_v11 = vpop.f32.mrf.mxu2  ;;  %v2576_v53 = vsel %vm2573_vm15, %v2575_v47, %v2571_v50  ;;  %v2223_v31 = vadd.f32 %v7012_v23, %v2158_v33  ;;  %vm2585_vm2 = vmor %vm2583_vm1, %vm2584_vm0  ;;  %2894 = vmatpush.msra.mxu3 %v7270_v19  ;;  %2975 = vmatpush.msra.mxu0 %v7270_v19  ;;  %v2604_v10 = vand.u32 2147483648, %v7248_v39 }
 0x515   : > { %v2358_v58 = vpop.f32.mrf.mxu3  ;;  %v2761_v59 = vmul.f32 %v2576_v53, %v2220_v6  ;;  %v2580_v43 = vsub.f32 1.0, %v2579_v25  ;;  %v2590_v18 = vor.u32 1.1754944e-38, %v2589_v3  ;;  %vm2598_vm5 = vweird.f32 %v7248_v39 }
 0x516   : > { %v2359_v8 = vadd.f32 %v2358_v58, %v2293_v11  ;;  %v2099_v50 = vadd.f32 %v7051_v4, %v7049_v60  ;;  %v2605_v11 = vor.u32 1.1754944e-38, %v2604_v10  ;;  %v2226_v20 = vadd.f32 %v7032_v27, %v2161_v14 }
 0x517   : > { %2816 = vmatmul.f32.gmra.mxu2 %v2761_v59  ;;  %v2581_v28 = vmul.f32 %v4851_v52, %v2580_v43 }
 0x518   : > { %v2424_v42 = vadd.f32 %v2423_v48, %v2359_v8  ;;  %v2426_v29 = vpop.f32.mrf.mxu0  ;;  %v2164_v27 = vadd.f32 %v7041_v44, %v2099_v50 }
 0x519   : > { %v2491_v57 = vpop.f32.mrf.mxu1  ;;  %v2582_v26 = vadd.f32 %v4851_v52, %v2581_v28 }
 0x51a   : > { %v4853_v5 = vpop.eup %4852  ;;  %v7261_v2 = vadd.f32 %v2488_v51, %v2424_v42  ;;  %v2602_v51 = vand.u32 2147483647, %v7248_v39 }
 0x51b   : > { %v2586_v1 = vsel %vm2585_vm2, %v4851_v52, %v2582_v26  ;;  %v2594_v32 = vmul.f32 %v4853_v5, %v7248_v39  ;;  %vm2599_vm4 = vweird.f32 %v4853_v5  ;;  %v7288_v39 = vld [vmem:[%s8394_s10 + $0x40] sm:$0xff] }
 0x51c   : > { %4854 = vrcp.f32 %v7261_v2  ;;  %v2296_v15 = vpop.f32.mrf.mxu2  ;;  %v2591_v46 = vsel %vm2588_vm3, %v2590_v18, %v2586_v1  ;;  %vm2600_vm6 = vmor %vm2598_vm5, %vm2599_vm4  ;;  %vm2603_vm7 = vcmp.eq.f32.partialorder %v2602_v51, 8.507059e+37  ;;  %2895 = vmatpush.msra.mxu3 %v7288_v39  ;;  %2976 = vmatpush.msra.mxu0 %v7288_v39  ;;  %v2619_v8 = vand.u32 2147483648, %v7261_v2 }
 0x51d   : > { %v2361_v23 = vpop.f32.mrf.mxu3  ;;  %v2762_v38 = vmul.f32 %v2591_v46, %v2223_v31  ;;  %v2595_v16 = vsub.f32 1.0, %v2594_v32  ;;  %v2617_v28 = vand.u32 2147483647, %v7261_v2  ;;  %vm2613_vm9 = vweird.f32 %v7261_v2 }
 0x51e   : > { %v2362_v41 = vadd.f32 %v2361_v23, %v2296_v15  ;;  %v2620_v44 = vor.u32 1.1754944e-38, %v2619_v8  ;;  %v2102_v18 = vadd.f32 %v7066_v17, %v7064_v21 }
 0x51f   : > { %2819 = vmatmul.f32.gmra.mxu2 %v2762_v38  ;;  %v2596_v48 = vmul.f32 %v4853_v5, %v2595_v16  ;;  %vm2618_vm11 = vcmp.eq.f32.partialorder %v2617_v28, 8.507059e+37 }
 0x520   : > { %v2427_v30 = vadd.f32 %v2426_v29, %v2362_v41  ;;  %v2429_v52 = vpop.f32.mrf.mxu0  ;;  %v2167_v38 = vadd.f32 %v7056_v13, %v2102_v18 }
 0x521   : > { %v2494_v49 = vpop.f32.mrf.mxu1  ;;  %v2597_v47 = vadd.f32 %v4853_v5, %v2596_v48 }
 0x522   : > { %v4855_v6 = vpop.eup %4854  ;;  %v7280_v25 = vadd.f32 %v2491_v57, %v2427_v30  ;;  %v2232_v13 = vadd.f32 %v7062_v34, %v2167_v38 }
 0x523   : > { %v2601_v53 = vsel %vm2600_vm6, %v4853_v5, %v2597_v47  ;;  %v2609_v0 = vmul.f32 %v4855_v6, %v7261_v2  ;;  %vm2614_vm8 = vweird.f32 %v4855_v6  ;;  %v2229_v5 = vadd.f32 %v7047_v37, %v2164_v27  ;;  %v7306_v2 = vld [vmem:[%s8394_s10 + $0x38] sm:$0xff] }
 0x524   : > { %4856 = vrcp.f32 %v7280_v25  ;;  %v2299_v58 = vpop.f32.mrf.mxu2  ;;  %v2606_v59 = vsel %vm2603_vm7, %v2605_v11, %v2601_v53  ;;  %vm2615_vm10 = vmor %vm2613_vm9, %vm2614_vm8  ;;  %2896 = vmatpush.msra.mxu3 %v7306_v2  ;;  %2977 = vmatpush.msra.mxu0 %v7306_v2  ;;  %v2634_v17 = vand.u32 2147483648, %v7280_v25  ;;  %v2632_v41 = vand.u32 2147483647, %v7280_v25 }
 0x525   : > { %v2364_v60 = vpop.f32.mrf.mxu3  ;;  %v2763_v4 = vmul.f32 %v2606_v59, %v2226_v20  ;;  %v2610_v43 = vsub.f32 1.0, %v2609_v0  ;;  %vm2628_vm13 = vweird.f32 %v7280_v25 }
 0x526   : > { %v2365_v33 = vadd.f32 %v2364_v60, %v2299_v58  ;;  %v2635_v47 = vor.u32 1.1754944e-38, %v2634_v17  ;;  %vm2633_vm15 = vcmp.eq.f32.partialorder %v2632_v41, 8.507059e+37 }
 0x527   : > { %2822 = vmatmul.f32.gmra.mxu2 %v2763_v4  ;;  %v2611_v3 = vmul.f32 %v4855_v6, %v2610_v43 }
 0x528   : > { %v2430_v35 = vadd.f32 %v2429_v52, %v2365_v33  ;;  %v2432_v42 = vpop.f32.mrf.mxu0  ;;  %v2105_v52 = vadd.f32 %v7083_v56, %v7080_v40 }
 0x529   : > { %v2497_v29 = vpop.f32.mrf.mxu1  ;;  %v2612_v57 = vadd.f32 %v4855_v6, %v2611_v3 }
 0x52a   : > { %v4857_v26 = vpop.eup %4856  ;;  %v7297_v31 = vadd.f32 %v2494_v49, %v2430_v35  ;;  %v2170_v34 = vadd.f32 %v7075_v62, %v2105_v52  ;;  %v2108_v35 = vadd.f32 %v7103_v54, %v7097_v22 }
 0x52b   : > { %v2616_v36 = vsel %vm2615_vm10, %v4855_v6, %v2612_v57  ;;  %v2624_v1 = vmul.f32 %v4857_v26, %v7280_v25  ;;  %vm2629_vm12 = vweird.f32 %v4857_v26  ;;  %v7324_v25 = vld [vmem:[%s8394_s10 + $0x30] sm:$0xff] }
 0x52c   : > { %4858 = vrcp.f32 %v7297_v31  ;;  %v2302_v32 = vpop.f32.mrf.mxu2  ;;  %v2621_v15 = vsel %vm2618_vm11, %v2620_v44, %v2616_v36  ;;  %vm2630_vm14 = vmor %vm2628_vm13, %vm2629_vm12  ;;  %2897 = vmatpush.msra.mxu3 %v7324_v25  ;;  %2978 = vmatpush.msra.mxu0 %v7324_v25  ;;  %v2649_v58 = vand.u32 2147483648, %v7297_v31  ;;  %v2647_v60 = vand.u32 2147483647, %v7297_v31 }
 0x52d   : > { %v2367_v37 = vpop.f32.mrf.mxu3  ;;  %v2764_v46 = vmul.f32 %v2621_v15, %v2229_v5  ;;  %v2625_v23 = vsub.f32 1.0, %v2624_v1  ;;  %vm2643_vm1 = vweird.f32 %v7297_v31  ;;  %v2235_v3 = vadd.f32 %v7077_v7, %v2170_v34  ;;  %v7342_v5 = vld [vmem:[%s8394_s10 + $0x28] sm:$0xff] }
 0x52e   : > { %v2368_v21 = vadd.f32 %v2367_v37, %v2302_v32  ;;  %v2650_v62 = vor.u32 1.1754944e-38, %v2649_v58  ;;  %vm2648_vm3 = vcmp.eq.f32.partialorder %v2647_v60, 8.507059e+37  ;;  %2898 = vmatpush.msra.mxu3 %v7342_v5  ;;  %2979 = vmatpush.msra.mxu0 %v7342_v5  ;;  %v2173_v18 = vadd.f32 %v7090_v9, %v2108_v35  ;;  %v7388_v35 = vld [vmem:[%s8394_s10 + $0x10] sm:$0xff] }
 0x52f   : > { %2825 = vmatmul.f32.gmra.mxu2 %v2764_v46  ;;  %v2626_v16 = vmul.f32 %v4857_v26, %v2625_v23  ;;  %v2111_v23 = vadd.f32 %v7115_v24, %v7113_v61 }
 0x530   : > { %v2433_v10 = vadd.f32 %v2432_v42, %v2368_v21  ;;  %v2435_v14 = vpop.f32.mrf.mxu0  ;;  %v2238_v9 = vadd.f32 %v7092_v12, %v2173_v18 }
 0x531   : > { %v2500_v48 = vpop.f32.mrf.mxu1  ;;  %v2627_v51 = vadd.f32 %v4857_v26, %v2626_v16  ;;  %v2176_v12 = vadd.f32 %v7106_v45, %v2111_v23 }
 0x532   : > { %v4859_v30 = vpop.eup %4858  ;;  %v7316_v49 = vadd.f32 %v2497_v29, %v2433_v10 }
 0x533   : > { %v2631_v6 = vsel %vm2630_vm14, %v4857_v26, %v2627_v51  ;;  %v2639_v50 = vmul.f32 %v4859_v30, %v7297_v31  ;;  %vm2644_vm0 = vweird.f32 %v4859_v30 }
 0x534   : > { %4860 = vrcp.f32 %v7316_v49  ;;  %v2305_v11 = vpop.f32.mrf.mxu2  ;;  %v2636_v20 = vsel %vm2633_vm15, %v2635_v47, %v2631_v6  ;;  %vm2645_vm2 = vmor %vm2643_vm1, %vm2644_vm0  ;;  %v2664_v54 = vand.u32 2147483648, %v7316_v49  ;;  %v2662_v1 = vand.u32 2147483647, %v7316_v49 }
 0x535   : > { %v2370_v40 = vpop.f32.mrf.mxu3  ;;  %v2765_v56 = vmul.f32 %v2636_v20, %v2232_v13  ;;  %v2640_v53 = vsub.f32 1.0, %v2639_v50  ;;  %vm2658_vm5 = vweird.f32 %v7316_v49  ;;  %v7370_v13 = vld [vmem:[%s8394_s10 + $0x18] sm:$0xff] }
 0x536   : > { %v2371_v0 = vadd.f32 %v2370_v40, %v2305_v11  ;;  %v2665_v17 = vor.u32 1.1754944e-38, %v2664_v54  ;;  %vm2663_vm7 = vcmp.eq.f32.partialorder %v2662_v1, 8.507059e+37  ;;  %v2241_v11 = vadd.f32 %v7109_v55, %v2176_v12  ;;  %v8620_v54 = vld [vmem:[#allocation35_spill] sm:$0xff] }
 0x537   : > { %2828 = vmatmul.f32.gmra.mxu2 %v2765_v56  ;;  %v2641_v59 = vmul.f32 %v4859_v30, %v2640_v53  ;;  %v8616_v56 = vld [vmem:[#allocation34_spill] sm:$0xff] }
 0x538   : > { %v2436_v4 = vadd.f32 %v2435_v14, %v2371_v0  ;;  %v2438_v43 = vpop.f32.mrf.mxu0  ;;  %v2114_v53 = vadd.f32 %v8616_v56, %v7128_v63 }
 0x539   : > { %v2503_v27 = vpop.f32.mrf.mxu1  ;;  %v2642_v33 = vadd.f32 %v4859_v30, %v2641_v59 }
 0x53a   : > { %v4861_v8 = vpop.eup %4860  ;;  %v7333_v28 = vadd.f32 %v2500_v48, %v2436_v4  ;;  %v7360_v48 = vld [vmem:[%s8394_s10 + $0x20] sm:$0xff] }
 0x53b   : > { %v2646_v42 = vsel %vm2645_vm2, %v4859_v30, %v2642_v33  ;;  %v2654_v29 = vmul.f32 %v4861_v8, %v7316_v49  ;;  %vm2659_vm4 = vweird.f32 %v4861_v8  ;;  %2899 = vmatpush.msra.mxu3 %v7360_v48  ;;  %2980 = vmatpush.msra.mxu0 %v7360_v48 }
 0x53c   : > { %4862 = vrcp.f32 %v7333_v28  ;;  %v2308_v57 = vpop.f32.mrf.mxu2  ;;  %v2651_v26 = vsel %vm2648_vm3, %v2650_v62, %v2646_v42  ;;  %vm2660_vm6 = vmor %vm2658_vm5, %vm2659_vm4  ;;  %v2679_v52 = vand.u32 2147483648, %v7333_v28  ;;  %v2677_v47 = vand.u32 2147483647, %v7333_v28 }
 0x53d   : > { %v2373_v7 = vpop.f32.mrf.mxu3  ;;  %v2766_v31 = vmul.f32 %v2651_v26, %v2235_v3  ;;  %v2655_v44 = vsub.f32 1.0, %v2654_v29  ;;  %2900 = vmatpush.msra.mxu3 %v7370_v13  ;;  %2981 = vmatpush.msra.mxu0 %v7370_v13  ;;  %vm2673_vm9 = vweird.f32 %v7333_v28  ;;  %v8617_v3 = vld [vmem:[#allocation33_spill] sm:$0xff]  ;;  %v8618_v26 = vld [vmem:[#allocation39_spill] sm:$0xff] }
 0x53e   : > { %v2374_v22 = vadd.f32 %v2373_v7, %v2308_v57  ;;  %v2680_v40 = vor.u32 1.1754944e-38, %v2679_v52  ;;  %vm2678_vm11 = vcmp.eq.f32.partialorder %v2677_v47, 8.507059e+37  ;;  %v8619_v7 = vld [vmem:[#allocation38_spill] sm:$0xff]  ;;  %v8622_v52 = vld [vmem:[#allocation37_spill] sm:$0xff] }
 0x53f   : > { %2831 = vmatmul.f32.gmra.mxu2 %v2766_v31  ;;  %v2656_v36 = vmul.f32 %v4861_v8, %v2655_v44  ;;  %2901 = vmatpush.msra.mxu3 %v7388_v35  ;;  %v2117_v31 = vadd.f32 %v8619_v7, %v8618_v26  ;;  %v8628_v7 = vld [vmem:[#allocation41_spill] sm:$0xff] }
 0x540   : > { %v2439_v32 = vadd.f32 %v2438_v43, %v2374_v22  ;;  %v2441_v15 = vpop.f32.mrf.mxu0  ;;  %2982 = vmatpush.msra.mxu0 %v7388_v35 }
 0x541   : > { %v2657_v37 = vadd.f32 %v4861_v8, %v2656_v36  ;;  %v2506_v38 = vpop.f32.mrf.mxu1 }
 0x542   : > { %v4863_v46 = vpop.eup %4862  ;;  %v7352_v21 = vadd.f32 %v2503_v27, %v2439_v32 }
 0x543   : > { %v2661_v16 = vsel %vm2660_vm6, %v4861_v8, %v2657_v37  ;;  %v2669_v41 = vmul.f32 %v4863_v46, %v7333_v28  ;;  %vm2674_vm8 = vweird.f32 %v4863_v46  ;;  %v2179_v28 = vadd.f32 %v8617_v3, %v2114_v53 }
 0x544   : > { %4864 = vrcp.f32 %v7352_v21  ;;  %v2311_v10 = vpop.f32.mrf.mxu2  ;;  %v2666_v14 = vsel %vm2663_vm7, %v2665_v17, %v2661_v16  ;;  %vm2675_vm10 = vmor %vm2673_vm9, %vm2674_vm8  ;;  %v2694_v8 = vand.u32 2147483648, %v7352_v21  ;;  %v2692_v62 = vand.u32 2147483647, %v7352_v21  ;;  %v8621_v17 = vld [vmem:[#allocation36_spill] sm:$0xff] }
 0x545   : > { %v2376_v61 = vpop.f32.mrf.mxu3  ;;  %v2767_v24 = vmul.f32 %v2666_v14, %v2238_v9  ;;  %v2670_v51 = vsub.f32 1.0, %v2669_v41  ;;  %vm2688_vm13 = vweird.f32 %v7352_v21  ;;  %v2244_v18 = vadd.f32 %v8620_v54, %v2179_v28 }
 0x546   : > { %v2377_v30 = vadd.f32 %v2376_v61, %v2311_v10  ;;  %v2695_v22 = vor.u32 1.1754944e-38, %v2694_v8  ;;  %vm2693_vm15 = vcmp.eq.f32.partialorder %v2692_v62, 8.507059e+37  ;;  %v2182_v9 = vadd.f32 %v8621_v17, %v2117_v31  ;;  %v7406_v61 = vld [vmem:[%s8394_s10 + $0x8] sm:$0xff]  ;;  %v8626_v62 = vld [vmem:[#allocation46_spill] sm:$0xff]  ;;  %v8630_v17 = vld [vmem:[#allocation44_spill] sm:$0xff] }
 0x547   : > { %2834 = vmatmul.f32.gmra.mxu2 %v2767_v24  ;;  %v2671_v49 = vmul.f32 %v4863_v46, %v2670_v51  ;;  %v7411_v24 = vld [vmem:[%s8394_s10] sm:$0xff]  ;;  %2902 = vmatpush.msra.mxu3 %v7406_v61 }
 0x548   : > { %v2442_v6 = vadd.f32 %v2441_v15, %v2377_v30  ;;  %v2444_v34 = vpop.f32.mrf.mxu0  ;;  %2983 = vmatpush.msra.mxu0 %v7406_v61 }
 0x549   : > { %v2672_v50 = vadd.f32 %v4863_v46, %v2671_v49  ;;  %v2509_v4 = vpop.f32.mrf.mxu1  ;;  %v2247_v49 = vadd.f32 %v8622_v52, %v2182_v9  ;;  %2903 = vmatpush.msra.mxu3 %v7411_v24 }
 0x54a   : > { %v4865_v45 = vpop.eup %4864  ;;  %v7376_v20 = vadd.f32 %v2506_v38, %v2442_v6  ;;  %2984 = vmatpush.msra.mxu0 %v7411_v24 }
 0x54b   : > { %v2676_v0 = vsel %vm2675_vm10, %v4863_v46, %v2672_v50  ;;  %v2684_v58 = vmul.f32 %v4865_v45, %v7352_v21  ;;  %vm2689_vm12 = vweird.f32 %v4865_v45  ;;  %v8623_v50 = vld [vmem:[#allocation42_spill] sm:$0xff] }
 0x54c   : > { %4866 = vrcp.f32 %v7376_v20  ;;  %v2314_v59 = vpop.f32.mrf.mxu2  ;;  %v2681_v60 = vsel %vm2678_vm11, %v2680_v40, %v2676_v0  ;;  %vm2690_vm14 = vmor %vm2688_vm13, %vm2689_vm12  ;;  %v2709_v16 = vand.u32 2147483648, %v7376_v20  ;;  %v2707_v14 = vand.u32 2147483647, %v7376_v20 }
 0x54d   : > { %v2379_v43 = vpop.f32.mrf.mxu3  ;;  %v2768_v27 = vmul.f32 %v2681_v60, %v2241_v11  ;;  %v2685_v55 = vsub.f32 1.0, %v2684_v58  ;;  %vm2703_vm1 = vweird.f32 %v7376_v20 }
 0x54e   : > { %v2380_v33 = vadd.f32 %v2379_v43, %v2314_v59  ;;  %v2710_v6 = vor.u32 1.1754944e-38, %v2709_v16  ;;  %vm2708_vm3 = vcmp.eq.f32.partialorder %v2707_v14, 8.507059e+37  ;;  %v8631_v16 = vld [vmem:[#allocation19_spill] sm:$0xff] }
 0x54f   : > { %2837 = vmatmul.f32.gmra.mxu2 %v2768_v27  ;;  %v2686_v63 = vmul.f32 %v4865_v45, %v2685_v55 }
 0x550   : > { %v2445_v42 = vadd.f32 %v2444_v34, %v2380_v33  ;;  %v2447_v37 = vpop.f32.mrf.mxu0 }
 0x551   : > { %v2687_v29 = vadd.f32 %v4865_v45, %v2686_v63  ;;  %v2512_v41 = vpop.f32.mrf.mxu1 }
 0x552   : > { %v4867_v57 = vpop.eup %4866  ;;  %v7395_v44 = vadd.f32 %v2509_v4, %v2445_v42  ;;  %v8625_v4 = vld [vmem:[#allocation40_spill] sm:$0xff]  ;;  %v8627_v42 = vld [vmem:[#allocation18_spill] sm:$0xff] }
 0x553   : > { %v2691_v36 = vsel %vm2690_vm14, %v4865_v45, %v2687_v29  ;;  %v2699_v1 = vmul.f32 %v4867_v57, %v7376_v20  ;;  %vm2704_vm0 = vweird.f32 %v4867_v57  ;;  %v8624_v45 = vld [vmem:[#allocation43_spill] sm:$0xff]  ;;  %v2123_v29 = vadd.f32 %v8627_v42, %v8626_v62  ;;  %v3355_v62 = vld [vmem:[%s8391_s7 + $0xf8] sm:$0xff] }
 0x554   : > { %4868 = vrcp.f32 %v7395_v44  ;;  %v2317_v32 = vpop.f32.mrf.mxu2  ;;  %v2696_v15 = vsel %vm2693_vm15, %v2695_v22, %v2691_v36  ;;  %vm2705_vm2 = vmor %vm2703_vm1, %vm2704_vm0  ;;  %v2120_v11 = vadd.f32 %v8624_v45, %v8623_v50  ;;  %v2724_v60 = vand.u32 2147483648, %v7395_v44  ;;  %3427 = vmatpush.msra.mxu2 %v3355_v62 }
 0x555   : > { %v2382_v46 = vpop.f32.mrf.mxu3  ;;  %v2769_v23 = vmul.f32 %v2696_v15, %v2244_v18  ;;  %v2700_v21 = vsub.f32 1.0, %v2699_v1  ;;  %v2722_v33 = vand.u32 2147483647, %v7395_v44  ;;  %vm2718_vm5 = vweird.f32 %v7395_v44 }
 0x556   : > { %v2383_v38 = vadd.f32 %v2382_v46, %v2317_v32  ;;  %v2185_v43 = vadd.f32 %v8625_v4, %v2120_v11  ;;  %v2725_v26 = vor.u32 1.1754944e-38, %v2724_v60  ;;  %v8629_v32 = vld [vmem:[#allocation45_spill] sm:$0xff] }
 0x557   : > { %2840 = vmatmul.f32.gmra.mxu2 %v2769_v23  ;;  %v2701_v10 = vmul.f32 %v4867_v57, %v2700_v21  ;;  %vm2723_vm7 = vcmp.eq.f32.partialorder %v2722_v33, 8.507059e+37  ;;  %v2188_v15 = vadd.f32 %v8629_v32, %v2123_v29 }
 0x558   : > { %v2448_v51 = vadd.f32 %v2447_v37, %v2383_v38  ;;  %v2450_v27 = vpop.f32.mrf.mxu0  ;;  %v2250_v31 = vadd.f32 %v8628_v7, %v2185_v43  ;;  %v8635_v43 = vld [vmem:[#allocation2_spill] sm:$0xff] }
 0x559   : > { %v2702_v12 = vadd.f32 %v4867_v57, %v2701_v10  ;;  %v2515_v3 = vpop.f32.mrf.mxu1  ;;  %v2253_v9 = vadd.f32 %v8630_v17, %v2188_v15  ;;  %v3350_v15 = vld [vmem:[%s8391_s7 + $0xd0] sm:$0xff] }
 0x55a   : > { %v4869_v30 = vpop.eup %4868  ;;  %v2513_v47 = vadd.f32 %v2512_v41, %v2448_v51  ;;  %v8632_v41 = vld [vmem:[#allocation21_spill] sm:$0xff] }
 0x55b   : > { %v2706_v40 = vsel %vm2705_vm2, %v4867_v57, %v2702_v12  ;;  %v2714_v56 = vmul.f32 %v4869_v30, %v7395_v44  ;;  %vm2719_vm4 = vweird.f32 %v4869_v30  ;;  %v2126_v10 = vadd.f32 %v8632_v41, %v8631_v16 }
 0x55c   : > { %4870 = vrcp.f32 %v2513_v47  ;;  %v2320_v53 = vpop.f32.mrf.mxu2  ;;  %v2711_v20 = vsel %vm2708_vm3, %v2710_v6, %v2706_v40  ;;  %vm2720_vm6 = vmor %vm2718_vm5, %vm2719_vm4  ;;  %v2739_v37 = vand.u32 2147483648, %v2513_v47  ;;  %v2737_v46 = vand.u32 2147483647, %v2513_v47  ;;  %v8633_v6 = vld [vmem:[#allocation20_spill] sm:$0xff] }
 0x55d   : > { %v2385_v34 = vpop.f32.mrf.mxu3  ;;  %v2770_v0 = vmul.f32 %v2711_v20, %v2247_v49  ;;  %v2715_v58 = vsub.f32 1.0, %v2714_v56  ;;  %vm2733_vm9 = vweird.f32 %v2513_v47  ;;  %v2191_v50 = vadd.f32 %v8633_v6, %v2126_v10  ;;  %v8634_v56 = vld [vmem:[#allocation24_spill] sm:$0xff] }
 0x55e   : > { %v2386_v59 = vadd.f32 %v2385_v34, %v2320_v53  ;;  %v2740_v38 = vor.u32 1.1754944e-38, %v2739_v37  ;;  %vm2738_vm11 = vcmp.eq.f32.partialorder %v2737_v46, 8.507059e+37  ;;  %v3351_v37 = vld [vmem:[%s8391_s7 + $0xd8] sm:$0xff] }
 0x55f   : > { %2843 = vmatmul.f32.gmra.mxu2 %v2770_v0  ;;  %v2716_v55 = vmul.f32 %v4869_v30, %v2715_v58  ;;  %v2256_v53 = vadd.f32 %v8634_v56, %v2191_v50  ;;  %v7438_v58 = vld [vmem:[%s8395_s11] sm:$0xff]  ;;  %v8641_v50 = vld [vmem:[#allocation8_spill] sm:$0xff] }
 0x560   : > { %v2451_v8 = vadd.f32 %v2450_v27, %v2386_v59  ;;  %v7441_v59 = vperm.slane %v7438_v58, 2 }
 0x561   : > { %v2717_v28 = vadd.f32 %v4869_v30, %v2716_v55 }
 0x562   : > { %v4871_v63 = vpop.eup %4870  ;;  %v2516_v57 = vadd.f32 %v2515_v3, %v2451_v8  ;;  %v8636_v3 = vld [vmem:[#allocation3_spill] sm:$0xff] }
 0x563   : > { %v2721_v22 = vsel %vm2720_vm6, %v4869_v30, %v2717_v28  ;;  %v2729_v54 = vmul.f32 %v4871_v63, %v2513_v47  ;;  %vm2734_vm8 = vweird.f32 %v4871_v63 }
 0x564   : > { %4872 = vrcp.f32 %v2516_v57  ;;  %v2726_v18 = vsel %vm2723_vm7, %v2725_v26, %v2721_v22  ;;  %vm2735_vm10 = vmor %vm2733_vm9, %vm2734_vm8  ;;  %v2754_v49 = vand.u32 2147483648, %v2516_v57  ;;  %v2752_v47 = vand.u32 2147483647, %v2516_v57  ;;  %v8637_v26 = vld [vmem:[#allocation5_spill] sm:$0xff]  ;;  %v3353_v22 = vld [vmem:[%s8391_s7 + $0xe8] sm:$0xff] }
 0x565   : > { %v2771_v36 = vmul.f32 %v2726_v18, %v2250_v31  ;;  %v2730_v1 = vsub.f32 1.0, %v2729_v54  ;;  %vm2748_vm13 = vweird.f32 %v2516_v57  ;;  %v3352_v31 = vld [vmem:[%s8391_s7 + $0xe0] sm:$0xff]  ;;  %3428 = vmatpush.msra.mxu2 %v3353_v22  ;;  %v3339_v22 = vld [vmem:[%s8391_s7 + $0x78] sm:$0xff] }
 0x566   : > { %v2755_v40 = vor.u32 1.1754944e-38, %v2754_v49  ;;  %vm2753_vm15 = vcmp.eq.f32.partialorder %v2752_v47, 8.507059e+37  ;;  %v3344_v47 = vld [vmem:[%s8391_s7 + $0xa0] sm:$0xff] }
 0x567   : > { %2846 = vmatmul.f32.gmra.mxu2 %v2771_v36  ;;  %v2731_v44 = vmul.f32 %v4871_v63, %v2730_v1  ;;  %v8638_v1 = vld [vmem:[#allocation7_spill] sm:$0xff] }
 0x568   : > { %3429 = vmatpush.msra.mxu2 %v3351_v37  ;;  %v3336_v37 = vld [vmem:[%s8391_s7 + $0x60] sm:$0xff] }
 0x569   : > { %v2732_v23 = vadd.f32 %v4871_v63, %v2731_v44 }
 0x56a   : > { %v4873_v21 = vpop.eup %4872 }
 0x56b   : > { %v2736_v14 = vsel %vm2735_vm10, %v4871_v63, %v2732_v23  ;;  %v2744_v51 = vmul.f32 %v4873_v21, %v2516_v57  ;;  %vm2749_vm12 = vweird.f32 %v4873_v21  ;;  %v3354_v63 = vld [vmem:[%s8391_s7 + $0xf0] sm:$0xff] }
 0x56c   : > { %v2741_v12 = vsel %vm2738_vm11, %v2740_v38, %v2736_v14  ;;  %vm2750_vm14 = vmor %vm2748_vm13, %vm2749_vm12  ;;  %3362 = vmatpush.msra.mxu1 %v3354_v63  ;;  %v3349_v38 = vld [vmem:[%s8391_s7 + $0xc8] sm:$0xff]  ;;  %v8640_v14 = vld [vmem:[#allocation6_spill] sm:$0xff] }
 0x56d   : > { %v2772_v30 = vmul.f32 %v2741_v12, %v2253_v9  ;;  %v2745_v52 = vsub.f32 1.0, %v2744_v51  ;;  %v3348_v9 = vld [vmem:[%s8391_s7 + $0xc0] sm:$0xff]  ;;  %3430 = vmatpush.msra.mxu2 %v3349_v38  ;;  %v3346_v12 = vld [vmem:[%s8391_s7 + $0xb0] sm:$0xff]  ;;  %v3341_v63 = vld [vmem:[%s8391_s7 + $0x88] sm:$0xff] }
 0x56e   : > { %3363 = vmatpush.msra.mxu1 %v3352_v31  ;;  %v3338_v31 = vld [vmem:[%s8391_s7 + $0x70] sm:$0xff] }
 0x56f   : > { %2849 = vmatmul.f32.gmra.mxu2 %v2772_v30  ;;  %v2746_v45 = vmul.f32 %v4873_v21, %v2745_v52  ;;  %v3347_v30 = vld [vmem:[%s8391_s7 + $0xb8] sm:$0xff] }
 0x570   : > { %3364 = vmatpush.msra.mxu1 %v3350_v15  ;;  %3431 = vmatpush.msra.mxu2 %v3347_v30 }
 0x571   : > { %v2747_v11 = vadd.f32 %v4873_v21, %v2746_v45 }
 0x572   : > { %3365 = vmatpush.msra.mxu1 %v3348_v9  ;;  %v8646_v9 = vld [vmem:[#allocation13_spill] sm:$0xff] }
 0x573   : > { %v2751_v20 = vsel %vm2750_vm14, %v4873_v21, %v2747_v11  ;;  %v8639_v21 = vld [vmem:[#allocation4_spill] sm:$0xff]  ;;  %v3345_v11 = vld [vmem:[%s8391_s7 + $0xa8] sm:$0xff] }
 0x574   : > { %v2756_v34 = vsel %vm2753_vm15, %v2755_v40, %v2751_v20  ;;  %3366 = vmatpush.msra.mxu1 %v3346_v12  ;;  %3432 = vmatpush.msra.mxu2 %v3345_v11  ;;  %v8642_v20 = vld [vmem:[#allocation9_spill] sm:$0xff]  ;;  %v3333_v12 = vld [vmem:[%s8391_s7 + $0x48] sm:$0xff] }
 0x575   : > { %v2773_v0 = vmul.f32 %v2756_v34, %v2256_v53 }
 0x576   : > { %3367 = vmatpush.msra.mxu1 %v3344_v47 }
 0x577   : > { %2852 = vmatmul.f32.gmra.mxu2 %v2773_v0  ;;  %v3342_v0 = vld [vmem:[%s8391_s7 + $0x90] sm:$0xff] }
 0x578   : > { %3368 = vmatpush.msra.mxu1 %v3342_v0 }
 0x582   : > { %v2808_v60 = vpop.f32.mrf.mxu2 }
 0x583   : > { %v2809_v4 = vadd.f32 %v2808_v60, %v7441_v59  ;;  %v3343_v60 = vld [vmem:[%s8391_s7 + $0x98] sm:$0xff] }
 0x584   : > { %3433 = vmatpush.msra.mxu2 %v3343_v60  ;;  %v8649_v60 = vld [vmem:[#allocation16_spill] sm:$0xff] }
 0x585   : > { %v7445_v27 = vadd.f32 %v2809_v4, %v8635_v43 }
 0x586   : > { %3434 = vmatpush.msra.mxu2 %v3341_v63 }
 0x587   : > { %v2953_v55 = vmul.f32 %v7445_v27, %v7445_v27  ;;  %2904 = vmatmul.f32.vlgmr.msra.gmra.mxu3 %v7445_v27 }
 0x588   : > { %3435 = vmatpush.msra.mxu2 %v3339_v22  ;;  %v3329_v22 = vld [vmem:[%s8391_s7 + $0x28] sm:$0xff] }
 0x589   : > { %2985 = vmatmul.f32.vlgmr.msra.gmra.mxu0 %v2953_v55 }
 0x58a   : > { %v2811_v33 = vpop.f32.mrf.mxu2 }
 0x58b   : > { %v2812_v8 = vadd.f32 %v2811_v33, %v7441_v59  ;;  %v8643_v33 = vld [vmem:[#allocation10_spill] sm:$0xff] }
 0x58d   : > { %v7452_v28 = vadd.f32 %v2812_v8, %v8636_v3  ;;  %v3340_v3 = vld [vmem:[%s8391_s7 + $0x80] sm:$0xff] }
 0x58e   : > { %3369 = vmatpush.msra.mxu1 %v3340_v3  ;;  %v8650_v3 = vld [vmem:[#allocation17_spill] sm:$0xff] }
 0x58f   : > { %2907 = vmatmul.f32.gmra.mxu3 %v7452_v28  ;;  %v2954_v42 = vmul.f32 %v7452_v28, %v7452_v28 }
 0x590   : > { %3370 = vmatpush.msra.mxu1 %v3338_v31  ;;  %v3328_v31 = vld [vmem:[%s8391_s7 + $0x20] sm:$0xff] }
 0x591   : > { %2988 = vmatmul.f32.gmra.mxu0 %v2954_v42 }
 0x592   : > { %v2814_v29 = vpop.f32.mrf.mxu2  ;;  %3371 = vmatpush.msra.mxu1 %v3336_v37 }
 0x593   : > { %v2815_v57 = vadd.f32 %v2814_v29, %v7441_v59 }
 0x595   : > { %v7465_v7 = vadd.f32 %v2815_v57, %v8637_v26  ;;  %v8644_v57 = vld [vmem:[#allocation11_spill] sm:$0xff] }
 0x597   : > { %2910 = vmatmul.f32.gmra.mxu3 %v7465_v7  ;;  %v2955_v54 = vmul.f32 %v7465_v7, %v7465_v7 }
 0x599   : > { %2991 = vmatmul.f32.gmra.mxu0 %v2955_v54 }
 0x59a   : > { %v2817_v18 = vpop.f32.mrf.mxu2 }
 0x59b   : > { %v2818_v36 = vadd.f32 %v2817_v18, %v7441_v59 }
 0x59d   : > { %v7478_v32 = vadd.f32 %v2818_v36, %v8638_v1  ;;  %v8645_v1 = vld [vmem:[#allocation12_spill] sm:$0xff] }
 0x59f   : > { %2913 = vmatmul.f32.gmra.mxu3 %v7478_v32  ;;  %v2956_v44 = vmul.f32 %v7478_v32, %v7478_v32 }
 0x5a1   : > { %2994 = vmatmul.f32.gmra.mxu0 %v2956_v44  ;;  %v3337_v44 = vld [vmem:[%s8391_s7 + $0x68] sm:$0xff] }
 0x5a2   : > { %v2820_v46 = vpop.f32.mrf.mxu2  ;;  %3436 = vmatpush.msra.mxu2 %v3337_v44  ;;  %v3324_v44 = vld [vmem:[%s8391_s7] sm:$0xff] }
 0x5a3   : > { %v2821_v23 = vadd.f32 %v2820_v46, %v7441_v59 }
 0x5a5   : > { %v7491_v17 = vadd.f32 %v2821_v23, %v8639_v21 }
 0x5a7   : > { %2916 = vmatmul.f32.gmra.mxu3 %v7491_v17  ;;  %v2957_v16 = vmul.f32 %v7491_v17, %v7491_v17 }
 0x5a9   : > { %2997 = vmatmul.f32.gmra.mxu0 %v2957_v16  ;;  %v3334_v16 = vld [vmem:[%s8391_s7 + $0x50] sm:$0xff] }
 0x5aa   : > { %v2823_v41 = vpop.f32.mrf.mxu2  ;;  %3372 = vmatpush.msra.mxu1 %v3334_v16 }
 0x5ab   : > { %v2824_v10 = vadd.f32 %v2823_v41, %v7441_v59  ;;  %v3335_v41 = vld [vmem:[%s8391_s7 + $0x58] sm:$0xff] }
 0x5ac   : > { %3437 = vmatpush.msra.mxu2 %v3335_v41  ;;  %v5005_v41 = vld [vmem:[%s8394_s10 + $0x70] sm:$0xff] }
 0x5ad   : > { %v7504_v51 = vadd.f32 %v2824_v10, %v8640_v14  ;;  %v3332_v14 = vld [vmem:[%s8391_s7 + $0x40] sm:$0xff] }
 0x5ae   : > { %3373 = vmatpush.msra.mxu1 %v3332_v14  ;;  %3438 = vmatpush.msra.mxu2 %v3333_v12  ;;  %v5006_v14 = vld [vmem:[%s8394_s10 + $0x68] sm:$0xff] }
 0x5af   : > { %2919 = vmatmul.f32.gmra.mxu3 %v7504_v51  ;;  %v2958_v52 = vmul.f32 %v7504_v51, %v7504_v51 }
 0x5b1   : > { %3000 = vmatmul.f32.gmra.mxu0 %v2958_v52 }
 0x5b2   : > { %v2826_v49 = vpop.f32.mrf.mxu2 }
 0x5b3   : > { %v2827_v6 = vadd.f32 %v2826_v49, %v7441_v59  ;;  %v8647_v49 = vld [vmem:[#allocation14_spill] sm:$0xff] }
 0x5b5   : > { %v7517_v45 = vadd.f32 %v2827_v6, %v8641_v50 }
 0x5b7   : > { %2922 = vmatmul.f32.gmra.mxu3 %v7517_v45  ;;  %v2959_v40 = vmul.f32 %v7517_v45, %v7517_v45 }
 0x5b9   : > { %3003 = vmatmul.f32.gmra.mxu0 %v2959_v40  ;;  %v8648_v40 = vld [vmem:[#allocation15_spill] sm:$0xff] }
 0x5ba   : > { %v2829_v56 = vpop.f32.mrf.mxu2 }
 0x5bb   : > { %v2830_v53 = vadd.f32 %v2829_v56, %v7441_v59 }
 0x5bd   : > { %v7530_v34 = vadd.f32 %v2830_v53, %v8642_v20 }
 0x5bf   : > { %2925 = vmatmul.f32.gmra.mxu3 %v7530_v34  ;;  %v2960_v4 = vmul.f32 %v7530_v34, %v7530_v34 }
 0x5c1   : > { %3006 = vmatmul.f32.gmra.mxu0 %v2960_v4 }
 0x5c2   : > { %v2832_v43 = vpop.f32.mrf.mxu2 }
 0x5c3   : > { %v2833_v55 = vadd.f32 %v2832_v43, %v7441_v59 }
 0x5c5   : > { %v7543_v8 = vadd.f32 %v2833_v55, %v8643_v33 }
 0x5c7   : > { %2928 = vmatmul.f32.gmra.mxu3 %v7543_v8  ;;  %v2961_v62 = vmul.f32 %v7543_v8, %v7543_v8 }
 0x5c9   : > { %3009 = vmatmul.f32.gmra.mxu0 %v2961_v62 }
 0x5ca   : > { %v2835_v42 = vpop.f32.mrf.mxu2 }
 0x5cb   : > { %v2836_v29 = vadd.f32 %v2835_v42, %v7441_v59 }
 0x5cd   : > { %v7556_v26 = vadd.f32 %v2836_v29, %v8644_v57  ;;  %v3330_v29 = vld [vmem:[%s8391_s7 + $0x30] sm:$0xff]  ;;  %v3331_v57 = vld [vmem:[%s8391_s7 + $0x38] sm:$0xff] }
 0x5ce   : > { %3374 = vmatpush.msra.mxu1 %v3330_v29  ;;  %3439 = vmatpush.msra.mxu2 %v3331_v57 }
 0x5cf   : > { %2931 = vmatmul.f32.gmra.mxu3 %v7556_v26  ;;  %v2962_v54 = vmul.f32 %v7556_v26, %v7556_v26 }
 0x5d0   : > { %3375 = vmatpush.msra.mxu1 %v3328_v31  ;;  %3440 = vmatpush.msra.mxu2 %v3329_v22  ;;  %v7696_v22 = vperm.slane %v7438_v58, 4 }
 0x5d1   : > { %3012 = vmatmul.f32.gmra.mxu0 %v2962_v54 }
 0x5d2   : > { %v2838_v18 = vpop.f32.mrf.mxu2 }
 0x5d3   : > { %v2839_v36 = vadd.f32 %v2838_v18, %v7441_v59  ;;  %v3326_v18 = vld [vmem:[%s8391_s7 + $0x10] sm:$0xff] }
 0x5d4   : > { %3376 = vmatpush.msra.mxu1 %v3326_v18 }
 0x5d5   : > { %v7569_v15 = vadd.f32 %v2839_v36, %v8645_v1  ;;  %v3327_v36 = vld [vmem:[%s8391_s7 + $0x18] sm:$0xff] }
 0x5d6   : > { %3441 = vmatpush.msra.mxu2 %v3327_v36  ;;  %3377 = vmatpush.msra.mxu1 %v3324_v44 }
 0x5d7   : > { %2934 = vmatmul.f32.gmra.mxu3 %v7569_v15  ;;  %v2963_v46 = vmul.f32 %v7569_v15, %v7569_v15 }
 0x5d9   : > { %3015 = vmatmul.f32.gmra.mxu0 %v2963_v46  ;;  %v3325_v46 = vld [vmem:[%s8391_s7 + $0x8] sm:$0xff] }
 0x5da   : > { %v2841_v23 = vpop.f32.mrf.mxu2  ;;  %3442 = vmatpush.msra.mxu2 %v3325_v46 }
 0x5db   : > { %v2842_v21 = vadd.f32 %v2841_v23, %v7441_v59 }
 0x5dd   : > { %v7582_v38 = vadd.f32 %v2842_v21, %v8646_v9  ;;  %v5004_v21 = vld [vmem:[%s8394_s10 + $0x78] sm:$0xff] }
 0x5de   : > { %4040 = vmatpush.msrb.mxu2 %v5004_v21  ;;  %3959 = vmatpush.msrb.mxu1 %v5004_v21 }
 0x5df   : > { %2937 = vmatmul.f32.gmra.mxu3 %v7582_v38  ;;  %v2964_v10 = vmul.f32 %v7582_v38, %v7582_v38 }
 0x5e0   : > { %4041 = vmatpush.msrb.mxu2 %v5005_v41  ;;  %3960 = vmatpush.msrb.mxu1 %v5005_v41 }
 0x5e1   : > { %3018 = vmatmul.f32.gmra.mxu0 %v2964_v10 }
 0x5e2   : > { %v2844_v30 = vpop.f32.mrf.mxu2  ;;  %4042 = vmatpush.msrb.mxu2 %v5006_v14  ;;  %3961 = vmatpush.msrb.mxu1 %v5006_v14 }
 0x5e3   : > { %v2845_v52 = vadd.f32 %v2844_v30, %v7441_v59 }
 0x5e5   : > { %v7601_v6 = vadd.f32 %v2845_v52, %v8647_v49  ;;  %v5007_v52 = vld [vmem:[%s8394_s10 + $0x60] sm:$0xff] }
 0x5e6   : > { %4043 = vmatpush.msrb.mxu2 %v5007_v52  ;;  %3962 = vmatpush.msrb.mxu1 %v5007_v52 }
 0x5e7   : > { %2940 = vmatmul.f32.gmra.mxu3 %v7601_v6  ;;  %v2965_v50 = vmul.f32 %v7601_v6, %v7601_v6 }
 0x5e9   : > { %3021 = vmatmul.f32.gmra.mxu0 %v2965_v50  ;;  %v5008_v50 = vld [vmem:[%s8394_s10 + $0x58] sm:$0xff] }
 0x5ea   : > { %v2847_v47 = vpop.f32.mrf.mxu2  ;;  %4044 = vmatpush.msrb.mxu2 %v5008_v50  ;;  %3963 = vmatpush.msrb.mxu1 %v5008_v50 }
 0x5eb   : > { %v2848_v11 = vadd.f32 %v2847_v47, %v7441_v59 }
 0x5ed   : > { %v7608_v56 = vadd.f32 %v2848_v11, %v8648_v40 }
 0x5ef   : > { %2943 = vmatmul.f32.gmra.mxu3 %v7608_v56  ;;  %v2966_v53 = vmul.f32 %v7608_v56, %v7608_v56 }
 0x5f1   : > { %3024 = vmatmul.f32.gmra.mxu0 %v2966_v53 }
 0x5f2   : > { %v2850_v20 = vpop.f32.mrf.mxu2 }
 0x5f3   : > { %v2851_v0 = vadd.f32 %v2850_v20, %v7441_v59  ;;  %v5009_v20 = vld [vmem:[%s8394_s10 + $0x50] sm:$0xff] }
 0x5f4   : > { %4045 = vmatpush.msrb.mxu2 %v5009_v20  ;;  %3964 = vmatpush.msrb.mxu1 %v5009_v20 }
 0x5f5   : > { %v7615_v4 = vadd.f32 %v2851_v0, %v8649_v60 }
 0x5f6   : > { %4046 = vmatpush.msrb.mxu2 %v7270_v19  ;;  %3965 = vmatpush.msrb.mxu1 %v7270_v19 }
 0x5f7   : > { %2946 = vmatmul.f32.gmra.mxu3 %v7615_v4  ;;  %v2967_v43 = vmul.f32 %v7615_v4, %v7615_v4 }
 0x5f8   : > { %4047 = vmatpush.msrb.mxu2 %v7288_v39  ;;  %3966 = vmatpush.msrb.mxu1 %v7288_v39 }
 0x5f9   : > { %3027 = vmatmul.f32.gmra.mxu0 %v2967_v43 }
 0x5fa   : > { %v2853_v55 = vpop.f32.mrf.mxu2  ;;  %4048 = vmatpush.msrb.mxu2 %v7306_v2  ;;  %3967 = vmatpush.msrb.mxu1 %v7306_v2 }
 0x5fb   : > { %v2854_v33 = vadd.f32 %v2853_v55, %v7441_v59 }
 0x5fc   : > { %4049 = vmatpush.msrb.mxu2 %v7324_v25  ;;  %3968 = vmatpush.msrb.mxu1 %v7324_v25  ;;  %v7704_v25 = vperm.slane %v7438_v58, 5 }
 0x5fd   : > { %v7622_v63 = vadd.f32 %v2854_v33, %v8650_v3 }
 0x5fe   : > { %4050 = vmatpush.msrb.mxu2 %v7342_v5  ;;  %3969 = vmatpush.msrb.mxu1 %v7342_v5 }
 0x5ff   : > { %2949 = vmatmul.f32.gmra.mxu3 %v7622_v63  ;;  %v2968_v62 = vmul.f32 %v7622_v63, %v7622_v63 }
 0x600   : > { %4051 = vmatpush.msrb.mxu2 %v7360_v48  ;;  %3970 = vmatpush.msrb.mxu1 %v7360_v48 }
 0x601   : > { %3030 = vmatmul.f32.gmra.mxu0 %v2968_v62 }
 0x602   : > { %4052 = vmatpush.msrb.mxu2 %v7370_v13  ;;  %3971 = vmatpush.msrb.mxu1 %v7370_v13 }
 0x604   : > { %4053 = vmatpush.msrb.mxu2 %v7388_v35  ;;  %3972 = vmatpush.msrb.mxu1 %v7388_v35 }
 0x606   : > { %v2986_v42 = vpop.f32.mrf.mxu0  ;;  %4054 = vmatpush.msrb.mxu2 %v7406_v61  ;;  %3973 = vmatpush.msrb.mxu1 %v7406_v61 }
 0x608   : > { %4055 = vmatpush.msrb.mxu2 %v7411_v24  ;;  %3974 = vmatpush.msrb.mxu1 %v7411_v24 }
 0x60a   : > { %v7633_v59 = vpop.f32.mrf.mxu3 }
 0x60b   : > { %v3034_v54 = vmul.f32 %v7633_v59, %v7633_v59  ;;  %v3082_v39 = vsub.f32 %v7445_v27, %v7633_v59 }
 0x60d   : > { %v3050_v1 = vsub.f32 %v2986_v42, %v3034_v54 }
 0x60e   : > { %v2989_v37 = vpop.f32.mrf.mxu0 }
 0x60f   : > { %v3066_v23 = vmax.f32 %v3050_v1, 0.0 }
 0x611   : > { %v3098_v9 = vadd.f32 1e-05, %v3066_v23 }
 0x612   : > { %v7658_v16 = vpop.f32.mrf.mxu3 }
 0x613   : > { %4874 = vrsqrt.f32 %v3098_v9  ;;  %v3035_v10 = vmul.f32 %v7658_v16, %v7658_v16  ;;  %vm3120_vm1 = vweird.f32 %v3098_v9  ;;  %v3083_v48 = vsub.f32 %v7452_v28, %v7658_v16 }
 0x615   : > { %v3051_v12 = vsub.f32 %v2989_v37, %v3035_v10 }
 0x616   : > { %v2992_v30 = vpop.f32.mrf.mxu0 }
 0x617   : > { %v3067_v49 = vmax.f32 %v3051_v12, 0.0 }
 0x619   : > { %v4875_v47 = vpop.eup %4874  ;;  %v3099_v11 = vadd.f32 1e-05, %v3067_v49 }
 0x61a   : > { %v3115_v40 = vmul.f32 %v4875_v47, %v3098_v9  ;;  %v7674_v53 = vpop.f32.mrf.mxu3  ;;  %vm3121_vm0 = vweird.f32 %v4875_v47 }
 0x61b   : > { %4876 = vrsqrt.f32 %v3099_v11  ;;  %v3036_v0 = vmul.f32 %v7674_v53, %v7674_v53  ;;  %vm3122_vm2 = vmor %vm3120_vm1, %vm3121_vm0  ;;  %vm3130_vm4 = vweird.f32 %v3099_v11 }
 0x61c   : > { %v3116_v60 = vmul.f32 %v4875_v47, %v3115_v40 }
 0x61d   : > { %v3052_v43 = vsub.f32 %v2992_v30, %v3036_v0  ;;  %v3084_v0 = vsub.f32 %v7465_v7, %v7674_v53 }
 0x61e   : > { %v3117_v55 = vmul.f32 0.5, %v3116_v60  ;;  %v2995_v33 = vpop.f32.mrf.mxu0 }
 0x61f   : > { %v3068_v3 = vmax.f32 %v3052_v43, 0.0 }
 0x620   : > { %v3118_v62 = vsub.f32 1.5, %v3117_v55 }
 0x621   : > { %v4877_v42 = vpop.eup %4876  ;;  %v7687_v29 = vadd.f32 1e-05, %v3068_v3  ;;  %v3795_v3 = vld [vmem:[%s8393_s9 + $0x78] sm:$0xff] }
 0x622   : > { %v3119_v57 = vmul.f32 %v4875_v47, %v3118_v62  ;;  %v3125_v19 = vmul.f32 %v4877_v42, %v3099_v11  ;;  %v7689_v31 = vpop.f32.mrf.mxu3  ;;  %vm3131_vm3 = vweird.f32 %v4877_v42  ;;  %3813 = vmatpush.msrb.mxu3 %v3795_v3 }
 0x623   : > { %4878 = vrsqrt.f32 %v7687_v29  ;;  %v3037_v2 = vmul.f32 %v7689_v31, %v7689_v31  ;;  %vm3132_vm5 = vmor %vm3130_vm4, %vm3131_vm3  ;;  %vm3140_vm7 = vweird.f32 %v7687_v29 }
 0x624   : > { %v3123_v54 = vsel %vm3122_vm2, %v4875_v47, %v3119_v57  ;;  %v3126_v18 = vmul.f32 %v4877_v42, %v3125_v19 }
 0x625   : > { %v3274_v36 = vmul.f32 %v3123_v54, %v3082_v39  ;;  %v3053_v27 = vsub.f32 %v2995_v33, %v3037_v2 }
 0x626   : > { %v3127_v59 = vmul.f32 0.5, %v3126_v18  ;;  %v2998_v1 = vpop.f32.mrf.mxu0 }
 0x627   : > { %v3291_v37 = vmul.f32 %v7696_v22, %v3274_v36  ;;  %v3069_v44 = vmax.f32 %v3053_v27, 0.0  ;;  %v3085_v36 = vsub.f32 %v7478_v32, %v7689_v31  ;;  %v3811_v32 = vld [vmem:[%s8393_s9 + $0xf8] sm:$0xff] }
 0x628   : > { %v3128_v46 = vsub.f32 1.5, %v3127_v59  ;;  %3878 = vmatpush.msrb.mxu0 %v3811_v32 }
 0x629   : > { %v4879_v5 = vpop.eup %4878  ;;  %v7712_v58 = vadd.f32 %v7704_v25, %v3291_v37  ;;  %v3101_v23 = vadd.f32 1e-05, %v3069_v44 }
 0x62a   : > { %v3129_v21 = vmul.f32 %v4877_v42, %v3128_v46  ;;  %v3135_v9 = vmul.f32 %v4879_v5, %v7687_v29  ;;  %v7715_v41 = vpop.f32.mrf.mxu3  ;;  %vm3141_vm6 = vweird.f32 %v4879_v5  ;;  %v3794_v46 = vld [vmem:[%s8393_s9 + $0x70] sm:$0xff] }
 0x62b   : > { %4880 = vrsqrt.f32 %v3101_v23  ;;  %v3038_v13 = vmul.f32 %v7715_v41, %v7715_v41  ;;  %3378 = vmatmul.f32.vlgmr.msra.gmra.mxu1 %v7712_v58  ;;  %3443 = vmatmul.f32.vlgmr.msra.gmra.mxu2 %v7712_v58  ;;  %vm3142_vm8 = vmor %vm3140_vm7, %vm3141_vm6  ;;  %vm3150_vm10 = vweird.f32 %v3101_v23 }
 0x62c   : > { %v3133_v10 = vsel %vm3132_vm5, %v4877_v42, %v3129_v21  ;;  %v3136_v14 = vmul.f32 %v4879_v5, %v3135_v9  ;;  %3814 = vmatpush.msrb.mxu3 %v3794_v46 }
 0x62d   : > { %v3275_v12 = vmul.f32 %v3133_v10, %v3083_v48  ;;  %v3054_v35 = vsub.f32 %v2998_v1, %v3038_v13 }
 0x62e   : > { %v3137_v30 = vmul.f32 0.5, %v3136_v14  ;;  %v3001_v52 = vpop.f32.mrf.mxu0 }
 0x62f   : > { %v3070_v28 = vmax.f32 %v3054_v35, 0.0  ;;  %v3292_v16 = vmul.f32 %v7696_v22, %v3275_v12 }
 0x630   : > { %v3138_v49 = vsub.f32 1.5, %v3137_v30  ;;  %v3086_v30 = vsub.f32 %v7491_v17, %v7715_v41  ;;  %v3793_v17 = vld [vmem:[%s8393_s9 + $0x68] sm:$0xff]  ;;  %v3810_v41 = vld [vmem:[%s8393_s9 + $0xf0] sm:$0xff] }
 0x631   : > { %v4881_v50 = vpop.eup %4880  ;;  %v3102_v47 = vadd.f32 1e-05, %v3070_v28  ;;  %v7731_v11 = vadd.f32 %v7704_v25, %v3292_v16  ;;  %3815 = vmatpush.msrb.mxu3 %v3793_v17  ;;  %3879 = vmatpush.msrb.mxu0 %v3810_v41 }
 0x632   : > { %v3139_v40 = vmul.f32 %v4879_v5, %v3138_v49  ;;  %v3145_v61 = vmul.f32 %v4881_v50, %v3101_v23  ;;  %v7734_v20 = vpop.f32.mrf.mxu3  ;;  %vm3151_vm9 = vweird.f32 %v4881_v50 }
 0x633   : > { %4882 = vrsqrt.f32 %v3102_v47  ;;  %v3039_v24 = vmul.f32 %v7734_v20, %v7734_v20  ;;  %3381 = vmatmul.f32.gmra.mxu1 %v7731_v11  ;;  %3446 = vmatmul.f32.gmra.mxu2 %v7731_v11  ;;  %vm3152_vm11 = vmor %vm3150_vm10, %vm3151_vm9  ;;  %vm3160_vm13 = vweird.f32 %v3102_v47 }
 0x634   : > { %v3143_v60 = vsel %vm3142_vm8, %v4879_v5, %v3139_v40  ;;  %v3146_v43 = vmul.f32 %v4881_v50, %v3145_v61 }
 0x635   : > { %v3276_v55 = vmul.f32 %v3143_v60, %v3084_v0  ;;  %v3055_v33 = vsub.f32 %v3001_v52, %v3039_v24 }
 0x636   : > { %v3147_v62 = vmul.f32 0.5, %v3146_v43  ;;  %v3004_v42 = vpop.f32.mrf.mxu0 }
 0x637   : > { %v3071_v7 = vmax.f32 %v3055_v33, 0.0  ;;  %v3293_v53 = vmul.f32 %v7696_v22, %v3276_v55 }
 0x638   : > { %v3148_v29 = vsub.f32 1.5, %v3147_v62 }
 0x639   : > { %v4883_v57 = vpop.eup %4882  ;;  %v3103_v19 = vadd.f32 1e-05, %v3071_v7  ;;  %v7747_v39 = vadd.f32 %v7704_v25, %v3293_v53 }
 0x63a   : > { %v3149_v2 = vmul.f32 %v4881_v50, %v3148_v29  ;;  %v3155_v54 = vmul.f32 %v4883_v57, %v3102_v47  ;;  %v7749_v18 = vpop.f32.mrf.mxu3  ;;  %vm3161_vm12 = vweird.f32 %v4883_v57 }
 0x63b   : > { %4884 = vrsqrt.f32 %v3103_v19  ;;  %v3040_v27 = vmul.f32 %v7749_v18, %v7749_v18  ;;  %3384 = vmatmul.f32.gmra.mxu1 %v7747_v39  ;;  %3449 = vmatmul.f32.gmra.mxu2 %v7747_v39  ;;  %vm3162_vm14 = vmor %vm3160_vm13, %vm3161_vm12  ;;  %vm3170_vm0 = vweird.f32 %v3103_v19 }
 0x63c   : > { %v3153_v59 = vsel %vm3152_vm11, %v4881_v50, %v3149_v2  ;;  %v3156_v1 = vmul.f32 %v4883_v57, %v3155_v54 }
 0x63d   : > { %v3277_v37 = vmul.f32 %v3153_v59, %v3085_v36  ;;  %v3056_v44 = vsub.f32 %v3004_v42, %v3040_v27  ;;  %v3087_v42 = vsub.f32 %v7504_v51, %v7734_v20  ;;  %v3792_v51 = vld [vmem:[%s8393_s9 + $0x60] sm:$0xff]  ;;  %v3809_v20 = vld [vmem:[%s8393_s9 + $0xe8] sm:$0xff] }
 0x63e   : > { %v3157_v31 = vmul.f32 0.5, %v3156_v1  ;;  %v3007_v5 = vpop.f32.mrf.mxu0  ;;  %3816 = vmatpush.msrb.mxu3 %v3792_v51  ;;  %3880 = vmatpush.msrb.mxu0 %v3809_v20 }
 0x63f   : > { %v3072_v23 = vmax.f32 %v3056_v44, 0.0  ;;  %v3294_v21 = vmul.f32 %v7696_v22, %v3277_v37 }
 0x640   : > { %v3158_v9 = vsub.f32 1.5, %v3157_v31 }
 0x641   : > { %v4885_v48 = vpop.eup %4884  ;;  %v3104_v13 = vadd.f32 1e-05, %v3072_v23  ;;  %v7765_v10 = vadd.f32 %v7704_v25, %v3294_v21 }
 0x642   : > { %v3159_v14 = vmul.f32 %v4883_v57, %v3158_v9  ;;  %v3165_v12 = vmul.f32 %v4885_v48, %v3103_v19  ;;  %v7767_v35 = vpop.f32.mrf.mxu3  ;;  %vm3171_vm15 = vweird.f32 %v4885_v48 }
 0x643   : > { %4886 = vrsqrt.f32 %v3104_v13  ;;  %v3041_v52 = vmul.f32 %v7767_v35, %v7767_v35  ;;  %3387 = vmatmul.f32.gmra.mxu1 %v7765_v10  ;;  %3452 = vmatmul.f32.gmra.mxu2 %v7765_v10  ;;  %vm3172_vm1 = vmor %vm3170_vm0, %vm3171_vm15  ;;  %vm3180_vm3 = vweird.f32 %v3104_v13 }
 0x644   : > { %v3163_v28 = vsel %vm3162_vm14, %v4883_v57, %v3159_v14  ;;  %v3166_v16 = vmul.f32 %v4885_v48, %v3165_v12 }
 0x645   : > { %v3278_v49 = vmul.f32 %v3163_v28, %v3086_v30  ;;  %v3057_v50 = vsub.f32 %v3007_v5, %v3041_v52  ;;  %v3088_v5 = vsub.f32 %v7517_v45, %v7749_v18  ;;  %v3791_v45 = vld [vmem:[%s8393_s9 + $0x58] sm:$0xff]  ;;  %v3808_v18 = vld [vmem:[%s8393_s9 + $0xe0] sm:$0xff] }
 0x646   : > { %v3167_v47 = vmul.f32 0.5, %v3166_v16  ;;  %v3010_v40 = vpop.f32.mrf.mxu0  ;;  %3817 = vmatpush.msrb.mxu3 %v3791_v45  ;;  %3881 = vmatpush.msrb.mxu0 %v3808_v18 }
 0x647   : > { %v3073_v61 = vmax.f32 %v3057_v50, 0.0  ;;  %v3295_v0 = vmul.f32 %v7696_v22, %v3278_v49 }
 0x648   : > { %v3168_v24 = vsub.f32 1.5, %v3167_v47 }
 0x649   : > { %v4887_v60 = vpop.eup %4886  ;;  %v3105_v43 = vadd.f32 1e-05, %v3073_v61  ;;  %v7783_v55 = vadd.f32 %v7704_v25, %v3295_v0  ;;  %v3089_v0 = vsub.f32 %v7530_v34, %v7767_v35  ;;  %v3790_v34 = vld [vmem:[%s8393_s9 + $0x50] sm:$0xff]  ;;  %v3807_v35 = vld [vmem:[%s8393_s9 + $0xd8] sm:$0xff] }
 0x64a   : > { %v3169_v33 = vmul.f32 %v4885_v48, %v3168_v24  ;;  %v3175_v3 = vmul.f32 %v4887_v60, %v3104_v13  ;;  %v7785_v62 = vpop.f32.mrf.mxu3  ;;  %vm3181_vm2 = vweird.f32 %v4887_v60  ;;  %3818 = vmatpush.msrb.mxu3 %v3790_v34  ;;  %3882 = vmatpush.msrb.mxu0 %v3807_v35 }
 0x64b   : > { %4888 = vrsqrt.f32 %v3105_v43  ;;  %v3042_v7 = vmul.f32 %v7785_v62, %v7785_v62  ;;  %3390 = vmatmul.f32.gmra.mxu1 %v7783_v55  ;;  %3455 = vmatmul.f32.gmra.mxu2 %v7783_v55  ;;  %vm3182_vm4 = vmor %vm3180_vm3, %vm3181_vm2  ;;  %vm3190_vm6 = vweird.f32 %v3105_v43 }
 0x64c   : > { %v3173_v53 = vsel %vm3172_vm1, %v4885_v48, %v3169_v33  ;;  %v3176_v29 = vmul.f32 %v4887_v60, %v3175_v3 }
 0x64d   : > { %v3279_v57 = vmul.f32 %v3173_v53, %v3087_v42  ;;  %v3058_v2 = vsub.f32 %v3010_v40, %v3042_v7 }
 0x64e   : > { %v3177_v19 = vmul.f32 0.5, %v3176_v29  ;;  %v3013_v54 = vpop.f32.mrf.mxu0 }
 0x64f   : > { %v3074_v36 = vmax.f32 %v3058_v2, 0.0  ;;  %v3296_v27 = vmul.f32 %v7696_v22, %v3279_v57 }
 0x650   : > { %v3178_v59 = vsub.f32 1.5, %v3177_v19 }
 0x651   : > { %v4889_v1 = vpop.eup %4888  ;;  %v3106_v37 = vadd.f32 1e-05, %v3074_v36  ;;  %v7801_v44 = vadd.f32 %v7704_v25, %v3296_v27  ;;  %v3090_v27 = vsub.f32 %v7543_v8, %v7785_v62  ;;  %v3789_v8 = vld [vmem:[%s8393_s9 + $0x48] sm:$0xff]  ;;  %v3806_v62 = vld [vmem:[%s8393_s9 + $0xd0] sm:$0xff] }
 0x652   : > { %v3179_v46 = vmul.f32 %v4887_v60, %v3178_v59  ;;  %v3185_v32 = vmul.f32 %v4889_v1, %v3105_v43  ;;  %v7803_v31 = vpop.f32.mrf.mxu3  ;;  %vm3191_vm5 = vweird.f32 %v4889_v1  ;;  %3819 = vmatpush.msrb.mxu3 %v3789_v8  ;;  %3883 = vmatpush.msrb.mxu0 %v3806_v62 }
 0x653   : > { %4890 = vrsqrt.f32 %v3106_v37  ;;  %v3043_v23 = vmul.f32 %v7803_v31, %v7803_v31  ;;  %3393 = vmatmul.f32.gmra.mxu1 %v7801_v44  ;;  %3458 = vmatmul.f32.gmra.mxu2 %v7801_v44  ;;  %vm3192_vm7 = vmor %vm3190_vm6, %vm3191_vm5  ;;  %vm3200_vm9 = vweird.f32 %v3106_v37 }
 0x654   : > { %v3183_v21 = vsel %vm3182_vm4, %v4887_v60, %v3179_v46  ;;  %v3186_v9 = vmul.f32 %v4889_v1, %v3185_v32 }
 0x655   : > { %v3280_v48 = vmul.f32 %v3183_v21, %v3088_v5  ;;  %v3059_v14 = vsub.f32 %v3013_v54, %v3043_v23 }
 0x656   : > { %v3187_v13 = vmul.f32 0.5, %v3186_v9  ;;  %v3016_v12 = vpop.f32.mrf.mxu0 }
 0x657   : > { %v3075_v30 = vmax.f32 %v3059_v14, 0.0  ;;  %v3297_v52 = vmul.f32 %v7696_v22, %v3280_v48 }
 0x658   : > { %v3188_v28 = vsub.f32 1.5, %v3187_v13 }
 0x659   : > { %v4891_v16 = vpop.eup %4890  ;;  %v3107_v49 = vadd.f32 1e-05, %v3075_v30  ;;  %v7819_v50 = vadd.f32 %v7704_v25, %v3297_v52  ;;  %v3091_v52 = vsub.f32 %v7556_v26, %v7803_v31  ;;  %v3788_v26 = vld [vmem:[%s8393_s9 + $0x40] sm:$0xff]  ;;  %v3805_v31 = vld [vmem:[%s8393_s9 + $0xc8] sm:$0xff] }
 0x65a   : > { %v3189_v47 = vmul.f32 %v4889_v1, %v3188_v28  ;;  %v3195_v40 = vmul.f32 %v4891_v16, %v3106_v37  ;;  %v7821_v61 = vpop.f32.mrf.mxu3  ;;  %vm3201_vm8 = vweird.f32 %v4891_v16  ;;  %3820 = vmatpush.msrb.mxu3 %v3788_v26  ;;  %3884 = vmatpush.msrb.mxu0 %v3805_v31 }
 0x65b   : > { %4892 = vrsqrt.f32 %v3107_v49  ;;  %v3044_v17 = vmul.f32 %v7821_v61, %v7821_v61  ;;  %3396 = vmatmul.f32.gmra.mxu1 %v7819_v50  ;;  %3461 = vmatmul.f32.gmra.mxu2 %v7819_v50  ;;  %vm3202_vm10 = vmor %vm3200_vm9, %vm3201_vm8  ;;  %vm3210_vm12 = vweird.f32 %v3107_v49 }
 0x65c   : > { %v3193_v41 = vsel %vm3192_vm7, %v4889_v1, %v3189_v47  ;;  %v3196_v24 = vmul.f32 %v4891_v16, %v3195_v40 }
 0x65d   : > { %v3281_v60 = vmul.f32 %v3193_v41, %v3089_v0  ;;  %v3060_v33 = vsub.f32 %v3016_v12, %v3044_v17 }
 0x65e   : > { %v3197_v43 = vmul.f32 0.5, %v3196_v24  ;;  %v3019_v3 = vpop.f32.mrf.mxu0 }
 0x65f   : > { %v3076_v42 = vmax.f32 %v3060_v33, 0.0  ;;  %v3298_v7 = vmul.f32 %v7696_v22, %v3281_v60 }
 0x660   : > { %v3198_v53 = vsub.f32 1.5, %v3197_v43 }
 0x661   : > { %v4893_v29 = vpop.eup %4892  ;;  %v3108_v57 = vadd.f32 1e-05, %v3076_v42  ;;  %v7837_v2 = vadd.f32 %v7704_v25, %v3298_v7  ;;  %v3092_v7 = vsub.f32 %v7569_v15, %v7821_v61  ;;  %v3787_v15 = vld [vmem:[%s8393_s9 + $0x38] sm:$0xff]  ;;  %v3804_v61 = vld [vmem:[%s8393_s9 + $0xc0] sm:$0xff] }
 0x662   : > { %v3199_v19 = vmul.f32 %v4891_v16, %v3198_v53  ;;  %v3205_v54 = vmul.f32 %v4893_v29, %v3107_v49  ;;  %v7839_v36 = vpop.f32.mrf.mxu3  ;;  %vm3211_vm11 = vweird.f32 %v4893_v29  ;;  %3821 = vmatpush.msrb.mxu3 %v3787_v15  ;;  %3885 = vmatpush.msrb.mxu0 %v3804_v61 }
 0x663   : > { %4894 = vrsqrt.f32 %v3108_v57  ;;  %v3045_v51 = vmul.f32 %v7839_v36, %v7839_v36  ;;  %3399 = vmatmul.f32.gmra.mxu1 %v7837_v2  ;;  %3464 = vmatmul.f32.gmra.mxu2 %v7837_v2  ;;  %vm3212_vm13 = vmor %vm3210_vm12, %vm3211_vm11  ;;  %vm3220_vm15 = vweird.f32 %v3108_v57 }
 0x664   : > { %v3203_v20 = vsel %vm3202_vm10, %v4891_v16, %v3199_v19  ;;  %v3206_v59 = vmul.f32 %v4893_v29, %v3205_v54 }
 0x665   : > { %v3282_v1 = vmul.f32 %v3203_v20, %v3090_v27  ;;  %v3061_v46 = vsub.f32 %v3019_v3, %v3045_v51 }
 0x666   : > { %v3207_v37 = vmul.f32 0.5, %v3206_v59  ;;  %v3022_v32 = vpop.f32.mrf.mxu0 }
 0x667   : > { %v3299_v5 = vmul.f32 %v7696_v22, %v3282_v1  ;;  %v3077_v23 = vmax.f32 %v3061_v46, 0.0 }
 0x668   : > { %v3208_v21 = vsub.f32 1.5, %v3207_v37 }
 0x669   : > { %v4895_v9 = vpop.eup %4894  ;;  %v3109_v48 = vadd.f32 1e-05, %v3077_v23  ;;  %v7855_v14 = vadd.f32 %v7704_v25, %v3299_v5  ;;  %v3093_v23 = vsub.f32 %v7582_v38, %v7839_v36  ;;  %v3786_v38 = vld [vmem:[%s8393_s9 + $0x30] sm:$0xff]  ;;  %v3803_v36 = vld [vmem:[%s8393_s9 + $0xb8] sm:$0xff] }
 0x66a   : > { %v3209_v13 = vmul.f32 %v4893_v29, %v3208_v21  ;;  %v3215_v12 = vmul.f32 %v4895_v9, %v3108_v57  ;;  %v7857_v30 = vpop.f32.mrf.mxu3  ;;  %vm3221_vm14 = vweird.f32 %v4895_v9  ;;  %3822 = vmatpush.msrb.mxu3 %v3786_v38  ;;  %3886 = vmatpush.msrb.mxu0 %v3803_v36 }
 0x66b   : > { %4896 = vrsqrt.f32 %v3109_v48  ;;  %v3046_v45 = vmul.f32 %v7857_v30, %v7857_v30  ;;  %3402 = vmatmul.f32.gmra.mxu1 %v7855_v14  ;;  %3467 = vmatmul.f32.gmra.mxu2 %v7855_v14  ;;  %vm3222_vm0 = vmor %vm3220_vm15, %vm3221_vm14  ;;  %vm3230_vm2 = vweird.f32 %v3109_v48 }
 0x66c   : > { %v3213_v18 = vsel %vm3212_vm13, %v4893_v29, %v3209_v13  ;;  %v3216_v28 = vmul.f32 %v4895_v9, %v3215_v12 }
 0x66d   : > { %v3283_v16 = vmul.f32 %v3213_v18, %v3091_v52  ;;  %v3062_v47 = vsub.f32 %v3022_v32, %v3046_v45  ;;  %v3785_v45 = vld [vmem:[%s8393_s9 + $0x28] sm:$0xff] }
 0x66e   : > { %v3217_v49 = vmul.f32 0.5, %v3216_v28  ;;  %v3025_v41 = vpop.f32.mrf.mxu0  ;;  %v3802_v28 = vld [vmem:[%s8393_s9 + $0xb0] sm:$0xff]  ;;  %3823 = vmatpush.msrb.mxu3 %v3785_v45 }
 0x66f   : > { %v3300_v40 = vmul.f32 %v7696_v22, %v3283_v16  ;;  %v3078_v0 = vmax.f32 %v3062_v47, 0.0  ;;  %3887 = vmatpush.msrb.mxu0 %v3802_v28  ;;  %v3781_v28 = vld [vmem:[%s8393_s9 + $0x8] sm:$0xff] }
 0x670   : > { %v3218_v17 = vsub.f32 1.5, %v3217_v49 }
 0x671   : > { %v4897_v24 = vpop.eup %4896  ;;  %v7872_v60 = vadd.f32 1e-05, %v3078_v0  ;;  %v7875_v33 = vadd.f32 %v7704_v25, %v3300_v40  ;;  %v3784_v40 = vld [vmem:[%s8393_s9 + $0x20] sm:$0xff]  ;;  %v3801_v0 = vld [vmem:[%s8393_s9 + $0xa8] sm:$0xff] }
 0x672   : > { %v3219_v43 = vmul.f32 %v4895_v9, %v3218_v17  ;;  %v3225_v3 = vmul.f32 %v4897_v24, %v3109_v48  ;;  %v7877_v42 = vpop.f32.mrf.mxu3  ;;  %vm3231_vm1 = vweird.f32 %v4897_v24  ;;  %3824 = vmatpush.msrb.mxu3 %v3784_v40  ;;  %3888 = vmatpush.msrb.mxu0 %v3801_v0 }
 0x673   : > { %4898 = vrsqrt.f32 %v7872_v60  ;;  %v3047_v34 = vmul.f32 %v7877_v42, %v7877_v42  ;;  %3405 = vmatmul.f32.gmra.mxu1 %v7875_v33  ;;  %3470 = vmatmul.f32.gmra.mxu2 %v7875_v33  ;;  %vm3232_vm3 = vmor %vm3230_vm2, %vm3231_vm1  ;;  %vm3240_vm5 = vweird.f32 %v7872_v60 }
 0x674   : > { %v3223_v35 = vsel %vm3222_vm0, %v4895_v9, %v3219_v43  ;;  %v3226_v53 = vmul.f32 %v4897_v24, %v3225_v3  ;;  %v3800_v43 = vld [vmem:[%s8393_s9 + $0xa0] sm:$0xff] }
 0x675   : > { %v3284_v29 = vmul.f32 %v3223_v35, %v3092_v7  ;;  %v3063_v57 = vsub.f32 %v3025_v41, %v3047_v34  ;;  %v3094_v41 = vsub.f32 %v7601_v6, %v7857_v30  ;;  %3889 = vmatpush.msrb.mxu0 %v3800_v43 }
 0x676   : > { %v3227_v19 = vmul.f32 0.5, %v3226_v53  ;;  %v3028_v32 = vpop.f32.mrf.mxu0 }
 0x677   : > { %v3301_v54 = vmul.f32 %v7696_v22, %v3284_v29  ;;  %v3079_v27 = vmax.f32 %v3063_v57, 0.0 }
 0x678   : > { %v3228_v51 = vsub.f32 1.5, %v3227_v19 }
 0x679   : > { %v4899_v20 = vpop.eup %4898  ;;  %v7893_v59 = vadd.f32 1e-05, %v3079_v27  ;;  %v7896_v1 = vadd.f32 %v7704_v25, %v3301_v54 }
 0x67a   : > { %v3229_v46 = vmul.f32 %v4897_v24, %v3228_v51  ;;  %v3235_v37 = vmul.f32 %v4899_v20, %v7872_v60  ;;  %v7899_v5 = vpop.f32.mrf.mxu3  ;;  %vm3241_vm4 = vweird.f32 %v4899_v20  ;;  %v3783_v60 = vld [vmem:[%s8393_s9 + $0x18] sm:$0xff]  ;;  %v3095_v51 = vsub.f32 %v7608_v56, %v7877_v42 }
 0x67b   : > { %4900 = vrsqrt.f32 %v7893_v59  ;;  %v3048_v8 = vmul.f32 %v7899_v5, %v7899_v5  ;;  %3408 = vmatmul.f32.gmra.mxu1 %v7896_v1  ;;  %3473 = vmatmul.f32.gmra.mxu2 %v7896_v1  ;;  %vm3242_vm6 = vmor %vm3240_vm5, %vm3241_vm4  ;;  %vm3250_vm8 = vweird.f32 %v7893_v59  ;;  %v3096_v42 = vsub.f32 %v7615_v4, %v7899_v5 }
 0x67c   : > { %v3233_v62 = vsel %vm3232_vm3, %v4897_v24, %v3229_v46  ;;  %v3236_v21 = vmul.f32 %v4899_v20, %v3235_v37  ;;  %3825 = vmatpush.msrb.mxu3 %v3783_v60 }
 0x67d   : > { %v3285_v9 = vmul.f32 %v3233_v62, %v3093_v23  ;;  %v3064_v48 = vsub.f32 %v3028_v32, %v3048_v8 }
 0x67e   : > { %v3237_v13 = vmul.f32 0.5, %v3236_v21  ;;  %v3031_v30 = vpop.f32.mrf.mxu0 }
 0x67f   : > { %v3302_v12 = vmul.f32 %v7696_v22, %v3285_v9  ;;  %v3080_v52 = vmax.f32 %v3064_v48, 0.0 }
 0x680   : > { %v3238_v18 = vsub.f32 1.5, %v3237_v13 }
 0x681   : > { %v4901_v16 = vpop.eup %4900  ;;  %v3112_v47 = vadd.f32 1e-05, %v3080_v52  ;;  %v7922_v49 = vadd.f32 %v7704_v25, %v3302_v12  ;;  %v3782_v12 = vld [vmem:[%s8393_s9 + $0x10] sm:$0xff]  ;;  %v3799_v52 = vld [vmem:[%s8393_s9 + $0x98] sm:$0xff] }
 0x682   : > { %v3239_v26 = vmul.f32 %v4899_v20, %v3238_v18  ;;  %v3245_v31 = vmul.f32 %v4901_v16, %v7893_v59  ;;  %v7932_v17 = vpop.f32.mrf.mxu3  ;;  %vm3251_vm7 = vweird.f32 %v4901_v16  ;;  %3826 = vmatpush.msrb.mxu3 %v3782_v12  ;;  %3890 = vmatpush.msrb.mxu0 %v3799_v52 }
 0x683   : > { %4902 = vrsqrt.f32 %v3112_v47  ;;  %v3049_v24 = vmul.f32 %v7932_v17, %v7932_v17  ;;  %3411 = vmatmul.f32.gmra.mxu1 %v7922_v49  ;;  %3476 = vmatmul.f32.gmra.mxu2 %v7922_v49  ;;  %vm3252_vm9 = vmor %vm3250_vm8, %vm3251_vm7  ;;  %vm3260_vm11 = vweird.f32 %v3112_v47  ;;  %v3097_v18 = vsub.f32 %v7622_v63, %v7932_v17  ;;  %v3797_v63 = vld [vmem:[%s8393_s9 + $0x88] sm:$0xff]  ;;  %v3356_v17 = vld [vmem:[%s8392_s8] sm:$0x3] }
 0x684   : > { %v3243_v3 = vsel %vm3242_vm6, %v4899_v20, %v3239_v26  ;;  %v3246_v6 = vmul.f32 %v4901_v16, %v3245_v31  ;;  %3827 = vmatpush.msrb.mxu3 %v3781_v28  ;;  %v8005_v43 = vperm.slane %v3356_v17, 1 }
 0x685   : > { %v3286_v7 = vmul.f32 %v3243_v3, %v3094_v41  ;;  %v3065_v34 = vsub.f32 %v3031_v30, %v3049_v24  ;;  %v3796_v41 = vld [vmem:[%s8393_s9 + $0x80] sm:$0xff]  ;;  %v8002_v24 = vperm.slane %v3356_v17, 0 }
 0x686   : > { %v3247_v35 = vmul.f32 0.5, %v3246_v6 }
 0x687   : > { %v3303_v53 = vmul.f32 %v7696_v22, %v3286_v7  ;;  %v3081_v29 = vmax.f32 %v3065_v34, 0.0 }
 0x688   : > { %v3248_v57 = vsub.f32 1.5, %v3247_v35 }
 0x689   : > { %v4903_v19 = vpop.eup %4902  ;;  %v3113_v54 = vadd.f32 1e-05, %v3081_v29  ;;  %v7949_v27 = vadd.f32 %v7704_v25, %v3303_v53 }
 0x68a   : > { %v3249_v15 = vmul.f32 %v4901_v16, %v3248_v57  ;;  %v3255_v61 = vmul.f32 %v4903_v19, %v3112_v47  ;;  %vm3261_vm10 = vweird.f32 %v4903_v19  ;;  %v3780_v47 = vld [vmem:[%s8393_s9] sm:$0xff] }
 0x68b   : > { %4904 = vrsqrt.f32 %v3113_v54  ;;  %3414 = vmatmul.f32.gmra.mxu1 %v7949_v27  ;;  %3479 = vmatmul.f32.gmra.mxu2 %v7949_v27  ;;  %vm3262_vm12 = vmor %vm3260_vm11, %vm3261_vm10  ;;  %vm3270_vm14 = vweird.f32 %v3113_v54 }
 0x68c   : > { %v3253_v20 = vsel %vm3252_vm9, %v4901_v16, %v3249_v15  ;;  %v3256_v46 = vmul.f32 %v4903_v19, %v3255_v61  ;;  %v3798_v16 = vld [vmem:[%s8393_s9 + $0x90] sm:$0xff]  ;;  %3828 = vmatpush.msrb.mxu3 %v3780_v47 }
 0x68d   : > { %v3287_v37 = vmul.f32 %v3253_v20, %v3095_v51  ;;  %3891 = vmatpush.msrb.mxu0 %v3798_v16 }
 0x68e   : > { %v3257_v32 = vmul.f32 0.5, %v3256_v46 }
 0x68f   : > { %v3304_v23 = vmul.f32 %v7696_v22, %v3287_v37  ;;  %3892 = vmatpush.msrb.mxu0 %v3797_v63 }
 0x690   : > { %v3258_v8 = vsub.f32 1.5, %v3257_v32 }
 0x691   : > { %v4905_v62 = vpop.eup %4904  ;;  %v7958_v59 = vadd.f32 %v7704_v25, %v3304_v23  ;;  %3893 = vmatpush.msrb.mxu0 %v3796_v41 }
 0x692   : > { %v3259_v21 = vmul.f32 %v4903_v19, %v3258_v8  ;;  %v3265_v56 = vmul.f32 %v4905_v62, %v3113_v54  ;;  %vm3271_vm13 = vweird.f32 %v4905_v62 }
 0x693   : > { %3417 = vmatmul.f32.gmra.mxu1 %v7958_v59  ;;  %3482 = vmatmul.f32.gmra.mxu2 %v7958_v59  ;;  %vm3272_vm15 = vmor %vm3270_vm14, %vm3271_vm13 }
 0x694   : > { %v3263_v9 = vsel %vm3262_vm12, %v4903_v19, %v3259_v21  ;;  %v3266_v48 = vmul.f32 %v4905_v62, %v3265_v56 }
 0x695   : > { %v3288_v13 = vmul.f32 %v3263_v9, %v3096_v42 }
 0x696   : > { %v3267_v38 = vmul.f32 0.5, %v3266_v48 }
 0x697   : > { %v3305_v4 = vmul.f32 %v7696_v22, %v3288_v13 }
 0x698   : > { %v3268_v5 = vsub.f32 1.5, %v3267_v38 }
 0x699   : > { %v7972_v36 = vadd.f32 %v7704_v25, %v3305_v4 }
 0x69a   : > { %v3269_v45 = vmul.f32 %v4905_v62, %v3268_v5 }
 0x69b   : > { %3420 = vmatmul.f32.gmra.mxu1 %v7972_v36  ;;  %3485 = vmatmul.f32.gmra.mxu2 %v7972_v36 }
 0x69c   : > { %v3273_v40 = vsel %vm3272_vm15, %v4905_v62, %v3269_v45 }
 0x69d   : > { %v3289_v0 = vmul.f32 %v3273_v40, %v3097_v18 }
 0x69f   : > { %v3306_v26 = vmul.f32 %v7696_v22, %v3289_v0 }
 0x6a1   : > { %v7992_v31 = vadd.f32 %v7704_v25, %v3306_v26 }
 0x6a3   : > { %3423 = vmatmul.f32.gmra.mxu1 %v7992_v31  ;;  %3488 = vmatmul.f32.gmra.mxu2 %v7992_v31 }
 0x6a8   : > { %v3379_v60 = vpop.f32.mrf.mxu1 }
 0x6a9   : > { %v3380_v22 = vadd.f32 %v3379_v60, %v8002_v24 }
 0x6ab   : > { %v3524_v25 = vmul.f32 0.044715, %v3380_v22  ;;  %v3492_v13 = vmul.f32 0.5, %v3380_v22 }
 0x6ad   : > { %v3556_v3 = vmul.f32 %v3524_v25, %v3380_v22 }
 0x6ae   : > { %v3444_v6 = vpop.f32.mrf.mxu2 }
 0x6af   : > { %v3588_v30 = vmul.f32 %v3556_v3, %v3380_v22  ;;  %v3445_v7 = vadd.f32 %v3444_v6, %v8005_v43 }
 0x6b0   : > { %v3382_v34 = vpop.f32.mrf.mxu1 }
 0x6b1   : > { %v3620_v35 = vadd.f32 %v3588_v30, %v3380_v22  ;;  %v3525_v53 = vmul.f32 0.044715, %v3445_v7  ;;  %v3383_v29 = vadd.f32 %v3382_v34, %v8002_v24  ;;  %v3493_v17 = vmul.f32 0.5, %v3445_v7 }
 0x6b3   : > { %v3652_v57 = vmul.f32 0.7978846, %v3620_v35  ;;  %v3557_v19 = vmul.f32 %v3525_v53, %v3445_v7  ;;  %v3526_v54 = vmul.f32 0.044715, %v3383_v29  ;;  %v3494_v30 = vmul.f32 0.5, %v3383_v29 }
 0x6b5   : > { %4906 = vtanh.f32 %v3652_v57  ;;  %v3589_v15 = vmul.f32 %v3557_v19, %v3445_v7  ;;  %v3558_v61 = vmul.f32 %v3526_v54, %v3383_v29 }
 0x6b6   : > { %v3447_v51 = vpop.f32.mrf.mxu2 }
 0x6b7   : > { %v3621_v20 = vadd.f32 %v3589_v15, %v3445_v7  ;;  %v3448_v46 = vadd.f32 %v3447_v51, %v8005_v43  ;;  %v3590_v37 = vmul.f32 %v3558_v61, %v3383_v29 }
 0x6b8   : > { %v3385_v32 = vpop.f32.mrf.mxu1 }
 0x6b9   : > { %v3653_v23 = vmul.f32 0.7978846, %v3621_v20  ;;  %v3527_v8 = vmul.f32 0.044715, %v3448_v46  ;;  %v3386_v62 = vadd.f32 %v3385_v32, %v8002_v24  ;;  %v3622_v21 = vadd.f32 %v3590_v37, %v3383_v29 }
 0x6bb   : > { %v4907_v56 = vpop.eup %4906  ;;  %4908 = vtanh.f32 %v3653_v23  ;;  %v3528_v42 = vmul.f32 0.044715, %v3386_v62  ;;  %v3654_v9 = vmul.f32 0.7978846, %v3622_v21  ;;  %v3559_v48 = vmul.f32 %v3527_v8, %v3448_v46 }
 0x6bc   : > { %v3716_v12 = vadd.f32 1.0, %v4907_v56  ;;  %v3495_v23 = vmul.f32 0.5, %v3448_v46 }
 0x6bd   : > { %4910 = vtanh.f32 %v3654_v9  ;;  %v3591_v52 = vmul.f32 %v3559_v48, %v3448_v46  ;;  %v3560_v38 = vmul.f32 %v3528_v42, %v3386_v62 }
 0x6be   : > { %v3450_v4 = vpop.f32.mrf.mxu2  ;;  %v3748_v5 = vmul.f32 %v3716_v12, %v3492_v13  ;;  %v3496_v13 = vmul.f32 0.5, %v3386_v62 }
 0x6bf   : > { %v3451_v45 = vadd.f32 %v3450_v4, %v8005_v43  ;;  %v3623_v18 = vadd.f32 %v3591_v52, %v3448_v46  ;;  %v3592_v28 = vmul.f32 %v3560_v38, %v3386_v62 }
 0x6c0   : > { %v3388_v16 = vpop.f32.mrf.mxu1  ;;  %3829 = vmatmul.f32.vlgmr.msrb.gmra.mxu3 %v3748_v5 }
 0x6c1   : > { %v4909_v47 = vpop.eup %4908  ;;  %v3529_v40 = vmul.f32 0.044715, %v3451_v45  ;;  %v8013_v63 = vadd.f32 %v3388_v16, %v8002_v24  ;;  %v3655_v0 = vmul.f32 0.7978846, %v3623_v18  ;;  %v3624_v26 = vadd.f32 %v3592_v28, %v3386_v62 }
 0x6c2   : > { %v3717_v41 = vadd.f32 1.0, %v4909_v47 }
 0x6c3   : > { %v4911_v60 = vpop.eup %4910  ;;  %v3530_v22 = vmul.f32 0.044715, %v8013_v63  ;;  %4912 = vtanh.f32 %v3655_v0  ;;  %v3656_v25 = vmul.f32 0.7978846, %v3624_v26  ;;  %v3561_v3 = vmul.f32 %v3529_v40, %v3451_v45 }
 0x6c4   : > { %v3749_v6 = vmul.f32 %v3717_v41, %v3493_v17  ;;  %v3718_v34 = vadd.f32 1.0, %v4911_v60  ;;  %v3497_v17 = vmul.f32 0.5, %v3451_v45 }
 0x6c5   : > { %4914 = vtanh.f32 %v3656_v25  ;;  %v3593_v35 = vmul.f32 %v3561_v3, %v3451_v45  ;;  %v3562_v53 = vmul.f32 %v3530_v22, %v8013_v63 }
 0x6c6   : > { %v3453_v57 = vpop.f32.mrf.mxu2  ;;  %3894 = vmatmul.f32.vlgmr.msrb.gmra.mxu0 %v3749_v6  ;;  %v3750_v19 = vmul.f32 %v3718_v34, %v3494_v30  ;;  %v3498_v30 = vmul.f32 0.5, %v8013_v63 }
 0x6c7   : > { %v3454_v54 = vadd.f32 %v3453_v57, %v8005_v43  ;;  %v3625_v7 = vadd.f32 %v3593_v35, %v3451_v45  ;;  %v3594_v15 = vmul.f32 %v3562_v53, %v8013_v63 }
 0x6c8   : > { %v3391_v61 = vpop.f32.mrf.mxu1  ;;  %3832 = vmatmul.f32.gmra.mxu3 %v3750_v19 }
 0x6c9   : > { %v4913_v51 = vpop.eup %4912  ;;  %v3531_v20 = vmul.f32 0.044715, %v3454_v54  ;;  %v8020_v37 = vadd.f32 %v3391_v61, %v8002_v24  ;;  %v3657_v29 = vmul.f32 0.7978846, %v3625_v7  ;;  %v3626_v32 = vadd.f32 %v3594_v15, %v8013_v63 }
 0x6ca   : > { %v3719_v8 = vadd.f32 1.0, %v4913_v51 }
 0x6cb   : > { %v4915_v21 = vpop.eup %4914  ;;  %v3532_v56 = vmul.f32 0.044715, %v8020_v37  ;;  %4916 = vtanh.f32 %v3657_v29  ;;  %v3658_v42 = vmul.f32 0.7978846, %v3626_v32  ;;  %v3563_v9 = vmul.f32 %v3531_v20, %v3454_v54 }
 0x6cc   : > { %v3751_v48 = vmul.f32 %v3719_v8, %v3495_v23  ;;  %v3720_v12 = vadd.f32 1.0, %v4915_v21  ;;  %v3499_v23 = vmul.f32 0.5, %v3454_v54 }
 0x6cd   : > { %4918 = vtanh.f32 %v3658_v42  ;;  %v3595_v52 = vmul.f32 %v3563_v9, %v3454_v54  ;;  %v3564_v38 = vmul.f32 %v3532_v56, %v8020_v37 }
 0x6ce   : > { %v3456_v4 = vpop.f32.mrf.mxu2  ;;  %3897 = vmatmul.f32.gmra.mxu0 %v3751_v48  ;;  %v3752_v5 = vmul.f32 %v3720_v12, %v3496_v13  ;;  %v3500_v13 = vmul.f32 0.5, %v8020_v37 }
 0x6cf   : > { %v3457_v18 = vadd.f32 %v3456_v4, %v8005_v43  ;;  %v3627_v46 = vadd.f32 %v3595_v52, %v3454_v54  ;;  %v3596_v28 = vmul.f32 %v3564_v38, %v8020_v37 }
 0x6d0   : > { %v3394_v16 = vpop.f32.mrf.mxu1  ;;  %3835 = vmatmul.f32.gmra.mxu3 %v3752_v5 }
 0x6d1   : > { %v4917_v47 = vpop.eup %4916  ;;  %v3533_v40 = vmul.f32 0.044715, %v3457_v18  ;;  %v8028_v0 = vadd.f32 %v3394_v16, %v8002_v24  ;;  %v3659_v62 = vmul.f32 0.7978846, %v3627_v46  ;;  %v3628_v26 = vadd.f32 %v3596_v28, %v8020_v37 }
 0x6d2   : > { %v3721_v41 = vadd.f32 1.0, %v4917_v47 }
 0x6d3   : > { %v4919_v60 = vpop.eup %4918  ;;  %v3534_v22 = vmul.f32 0.044715, %v8028_v0  ;;  %4920 = vtanh.f32 %v3659_v62  ;;  %v3660_v25 = vmul.f32 0.7978846, %v3628_v26  ;;  %v3565_v3 = vmul.f32 %v3533_v40, %v3457_v18 }
 0x6d4   : > { %v3753_v6 = vmul.f32 %v3721_v41, %v3497_v17  ;;  %v3722_v34 = vadd.f32 1.0, %v4919_v60  ;;  %v3501_v17 = vmul.f32 0.5, %v3457_v18 }
 0x6d5   : > { %4922 = vtanh.f32 %v3660_v25  ;;  %v3597_v35 = vmul.f32 %v3565_v3, %v3457_v18  ;;  %v3566_v53 = vmul.f32 %v3534_v22, %v8028_v0 }
 0x6d6   : > { %v3459_v57 = vpop.f32.mrf.mxu2  ;;  %3900 = vmatmul.f32.gmra.mxu0 %v3753_v6  ;;  %v3754_v19 = vmul.f32 %v3722_v34, %v3498_v30  ;;  %v3502_v30 = vmul.f32 0.5, %v8028_v0 }
 0x6d7   : > { %v3460_v45 = vadd.f32 %v3459_v57, %v8005_v43  ;;  %v3629_v7 = vadd.f32 %v3597_v35, %v3457_v18  ;;  %v3598_v15 = vmul.f32 %v3566_v53, %v8028_v0 }
 0x6d8   : > { %v3397_v61 = vpop.f32.mrf.mxu1  ;;  %3838 = vmatmul.f32.gmra.mxu3 %v3754_v19 }
 0x6d9   : > { %v4921_v51 = vpop.eup %4920  ;;  %v3535_v20 = vmul.f32 0.044715, %v3460_v45  ;;  %v8037_v29 = vadd.f32 %v3397_v61, %v8002_v24  ;;  %v3661_v63 = vmul.f32 0.7978846, %v3629_v7  ;;  %v3630_v32 = vadd.f32 %v3598_v15, %v8028_v0 }
 0x6da   : > { %v3723_v8 = vadd.f32 1.0, %v4921_v51 }
 0x6db   : > { %v4923_v21 = vpop.eup %4922  ;;  %v3536_v56 = vmul.f32 0.044715, %v8037_v29  ;;  %4924 = vtanh.f32 %v3661_v63  ;;  %v3662_v42 = vmul.f32 0.7978846, %v3630_v32  ;;  %v3567_v9 = vmul.f32 %v3535_v20, %v3460_v45 }
 0x6dc   : > { %v3755_v48 = vmul.f32 %v3723_v8, %v3499_v23  ;;  %v3724_v12 = vadd.f32 1.0, %v4923_v21  ;;  %v3503_v23 = vmul.f32 0.5, %v3460_v45 }
 0x6dd   : > { %4926 = vtanh.f32 %v3662_v42  ;;  %v3599_v52 = vmul.f32 %v3567_v9, %v3460_v45  ;;  %v3568_v38 = vmul.f32 %v3536_v56, %v8037_v29 }
 0x6de   : > { %v3462_v4 = vpop.f32.mrf.mxu2  ;;  %3903 = vmatmul.f32.gmra.mxu0 %v3755_v48  ;;  %v3756_v5 = vmul.f32 %v3724_v12, %v3500_v13  ;;  %v3504_v13 = vmul.f32 0.5, %v8037_v29 }
 0x6df   : > { %v3463_v54 = vadd.f32 %v3462_v4, %v8005_v43  ;;  %v3631_v46 = vadd.f32 %v3599_v52, %v3460_v45  ;;  %v3600_v28 = vmul.f32 %v3568_v38, %v8037_v29 }
 0x6e0   : > { %v3400_v16 = vpop.f32.mrf.mxu1  ;;  %3841 = vmatmul.f32.gmra.mxu3 %v3756_v5 }
 0x6e1   : > { %v4925_v47 = vpop.eup %4924  ;;  %v3537_v40 = vmul.f32 0.044715, %v3463_v54  ;;  %v8046_v62 = vadd.f32 %v3400_v16, %v8002_v24  ;;  %v3663_v37 = vmul.f32 0.7978846, %v3631_v46  ;;  %v3632_v26 = vadd.f32 %v3600_v28, %v8037_v29 }
 0x6e2   : > { %v3725_v41 = vadd.f32 1.0, %v4925_v47 }
 0x6e3   : > { %v4927_v60 = vpop.eup %4926  ;;  %v3538_v22 = vmul.f32 0.044715, %v8046_v62  ;;  %4928 = vtanh.f32 %v3663_v37  ;;  %v3664_v25 = vmul.f32 0.7978846, %v3632_v26  ;;  %v3569_v3 = vmul.f32 %v3537_v40, %v3463_v54 }
 0x6e4   : > { %v3757_v6 = vmul.f32 %v3725_v41, %v3501_v17  ;;  %v3726_v34 = vadd.f32 1.0, %v4927_v60  ;;  %v3505_v17 = vmul.f32 0.5, %v3463_v54 }
 0x6e5   : > { %4930 = vtanh.f32 %v3664_v25  ;;  %v3601_v35 = vmul.f32 %v3569_v3, %v3463_v54  ;;  %v3570_v53 = vmul.f32 %v3538_v22, %v8046_v62 }
 0x6e6   : > { %v3465_v57 = vpop.f32.mrf.mxu2  ;;  %3906 = vmatmul.f32.gmra.mxu0 %v3757_v6  ;;  %v3758_v19 = vmul.f32 %v3726_v34, %v3502_v30  ;;  %v3506_v30 = vmul.f32 0.5, %v8046_v62 }
 0x6e7   : > { %v3466_v18 = vadd.f32 %v3465_v57, %v8005_v43  ;;  %v3633_v7 = vadd.f32 %v3601_v35, %v3463_v54  ;;  %v3602_v15 = vmul.f32 %v3570_v53, %v8046_v62 }
 0x6e8   : > { %v3403_v61 = vpop.f32.mrf.mxu1  ;;  %3844 = vmatmul.f32.gmra.mxu3 %v3758_v19 }
 0x6e9   : > { %v4929_v51 = vpop.eup %4928  ;;  %v3539_v20 = vmul.f32 0.044715, %v3466_v18  ;;  %v8055_v63 = vadd.f32 %v3403_v61, %v8002_v24  ;;  %v3665_v0 = vmul.f32 0.7978846, %v3633_v7  ;;  %v3634_v32 = vadd.f32 %v3602_v15, %v8046_v62 }
 0x6ea   : > { %v3727_v8 = vadd.f32 1.0, %v4929_v51 }
 0x6eb   : > { %v4931_v21 = vpop.eup %4930  ;;  %v3540_v56 = vmul.f32 0.044715, %v8055_v63  ;;  %4932 = vtanh.f32 %v3665_v0  ;;  %v3666_v42 = vmul.f32 0.7978846, %v3634_v32  ;;  %v3571_v9 = vmul.f32 %v3539_v20, %v3466_v18 }
 0x6ec   : > { %v3759_v48 = vmul.f32 %v3727_v8, %v3503_v23  ;;  %v3728_v12 = vadd.f32 1.0, %v4931_v21  ;;  %v3507_v23 = vmul.f32 0.5, %v3466_v18 }
 0x6ed   : > { %4934 = vtanh.f32 %v3666_v42  ;;  %v3603_v52 = vmul.f32 %v3571_v9, %v3466_v18  ;;  %v3572_v38 = vmul.f32 %v3540_v56, %v8055_v63 }
 0x6ee   : > { %v3468_v4 = vpop.f32.mrf.mxu2  ;;  %3909 = vmatmul.f32.gmra.mxu0 %v3759_v48  ;;  %v3760_v5 = vmul.f32 %v3728_v12, %v3504_v13  ;;  %v3508_v13 = vmul.f32 0.5, %v8055_v63 }
 0x6ef   : > { %v3469_v45 = vadd.f32 %v3468_v4, %v8005_v43  ;;  %v3635_v46 = vadd.f32 %v3603_v52, %v3466_v18  ;;  %v3604_v28 = vmul.f32 %v3572_v38, %v8055_v63 }
 0x6f0   : > { %v3406_v16 = vpop.f32.mrf.mxu1  ;;  %3847 = vmatmul.f32.gmra.mxu3 %v3760_v5 }
 0x6f1   : > { %v4933_v47 = vpop.eup %4932  ;;  %v3541_v40 = vmul.f32 0.044715, %v3469_v45  ;;  %v8064_v37 = vadd.f32 %v3406_v16, %v8002_v24  ;;  %v3667_v29 = vmul.f32 0.7978846, %v3635_v46  ;;  %v3636_v26 = vadd.f32 %v3604_v28, %v8055_v63 }
 0x6f2   : > { %v3729_v41 = vadd.f32 1.0, %v4933_v47 }
 0x6f3   : > { %v4935_v60 = vpop.eup %4934  ;;  %v3542_v22 = vmul.f32 0.044715, %v8064_v37  ;;  %4936 = vtanh.f32 %v3667_v29  ;;  %v3668_v25 = vmul.f32 0.7978846, %v3636_v26  ;;  %v3573_v3 = vmul.f32 %v3541_v40, %v3469_v45 }
 0x6f4   : > { %v3761_v6 = vmul.f32 %v3729_v41, %v3505_v17  ;;  %v3730_v34 = vadd.f32 1.0, %v4935_v60  ;;  %v3509_v17 = vmul.f32 0.5, %v3469_v45 }
 0x6f5   : > { %4938 = vtanh.f32 %v3668_v25  ;;  %v3605_v35 = vmul.f32 %v3573_v3, %v3469_v45  ;;  %v3574_v53 = vmul.f32 %v3542_v22, %v8064_v37 }
 0x6f6   : > { %v3471_v57 = vpop.f32.mrf.mxu2  ;;  %3912 = vmatmul.f32.gmra.mxu0 %v3761_v6  ;;  %v3762_v19 = vmul.f32 %v3730_v34, %v3506_v30  ;;  %v3510_v30 = vmul.f32 0.5, %v8064_v37 }
 0x6f7   : > { %v3472_v54 = vadd.f32 %v3471_v57, %v8005_v43  ;;  %v3637_v7 = vadd.f32 %v3605_v35, %v3469_v45  ;;  %v3606_v15 = vmul.f32 %v3574_v53, %v8064_v37 }
 0x6f8   : > { %v3409_v61 = vpop.f32.mrf.mxu1  ;;  %3850 = vmatmul.f32.gmra.mxu3 %v3762_v19 }
 0x6f9   : > { %v4937_v51 = vpop.eup %4936  ;;  %v3543_v20 = vmul.f32 0.044715, %v3472_v54  ;;  %v8073_v0 = vadd.f32 %v3409_v61, %v8002_v24  ;;  %v3669_v62 = vmul.f32 0.7978846, %v3637_v7  ;;  %v3638_v32 = vadd.f32 %v3606_v15, %v8064_v37 }
 0x6fa   : > { %v3731_v8 = vadd.f32 1.0, %v4937_v51 }
 0x6fb   : > { %v4939_v21 = vpop.eup %4938  ;;  %v3544_v56 = vmul.f32 0.044715, %v8073_v0  ;;  %4940 = vtanh.f32 %v3669_v62  ;;  %v3670_v42 = vmul.f32 0.7978846, %v3638_v32  ;;  %v3575_v9 = vmul.f32 %v3543_v20, %v3472_v54 }
 0x6fc   : > { %v3763_v48 = vmul.f32 %v3731_v8, %v3507_v23  ;;  %v3732_v12 = vadd.f32 1.0, %v4939_v21  ;;  %v3511_v23 = vmul.f32 0.5, %v3472_v54 }
 0x6fd   : > { %4942 = vtanh.f32 %v3670_v42  ;;  %v3607_v52 = vmul.f32 %v3575_v9, %v3472_v54  ;;  %v3576_v38 = vmul.f32 %v3544_v56, %v8073_v0 }
 0x6fe   : > { %v3474_v4 = vpop.f32.mrf.mxu2  ;;  %3915 = vmatmul.f32.gmra.mxu0 %v3763_v48  ;;  %v3764_v5 = vmul.f32 %v3732_v12, %v3508_v13  ;;  %v3512_v13 = vmul.f32 0.5, %v8073_v0 }
 0x6ff   : > { %v3475_v18 = vadd.f32 %v3474_v4, %v8005_v43  ;;  %v3639_v46 = vadd.f32 %v3607_v52, %v3472_v54  ;;  %v3608_v28 = vmul.f32 %v3576_v38, %v8073_v0 }
 0x700   : > { %v3412_v16 = vpop.f32.mrf.mxu1  ;;  %3853 = vmatmul.f32.gmra.mxu3 %v3764_v5 }
 0x701   : > { %v4941_v47 = vpop.eup %4940  ;;  %v3545_v40 = vmul.f32 0.044715, %v3475_v18  ;;  %v8082_v29 = vadd.f32 %v3412_v16, %v8002_v24  ;;  %v3671_v63 = vmul.f32 0.7978846, %v3639_v46  ;;  %v3640_v26 = vadd.f32 %v3608_v28, %v8073_v0 }
 0x702   : > { %v3733_v41 = vadd.f32 1.0, %v4941_v47 }
 0x703   : > { %v4943_v60 = vpop.eup %4942  ;;  %v3546_v22 = vmul.f32 0.044715, %v8082_v29  ;;  %4944 = vtanh.f32 %v3671_v63  ;;  %v3672_v25 = vmul.f32 0.7978846, %v3640_v26  ;;  %v3577_v3 = vmul.f32 %v3545_v40, %v3475_v18 }
 0x704   : > { %v3765_v6 = vmul.f32 %v3733_v41, %v3509_v17  ;;  %v3734_v34 = vadd.f32 1.0, %v4943_v60  ;;  %v3513_v17 = vmul.f32 0.5, %v3475_v18 }
 0x705   : > { %4946 = vtanh.f32 %v3672_v25  ;;  %v3609_v35 = vmul.f32 %v3577_v3, %v3475_v18  ;;  %v3578_v53 = vmul.f32 %v3546_v22, %v8082_v29 }
 0x706   : > { %v3477_v57 = vpop.f32.mrf.mxu2  ;;  %3918 = vmatmul.f32.gmra.mxu0 %v3765_v6  ;;  %v3766_v19 = vmul.f32 %v3734_v34, %v3510_v30  ;;  %v3514_v30 = vmul.f32 0.5, %v8082_v29 }
 0x707   : > { %v3478_v45 = vadd.f32 %v3477_v57, %v8005_v43  ;;  %v3641_v7 = vadd.f32 %v3609_v35, %v3475_v18  ;;  %v3610_v15 = vmul.f32 %v3578_v53, %v8082_v29 }
 0x708   : > { %v3415_v61 = vpop.f32.mrf.mxu1  ;;  %3856 = vmatmul.f32.gmra.mxu3 %v3766_v19 }
 0x709   : > { %v4945_v51 = vpop.eup %4944  ;;  %v3547_v20 = vmul.f32 0.044715, %v3478_v45  ;;  %v8091_v62 = vadd.f32 %v3415_v61, %v8002_v24  ;;  %v3673_v37 = vmul.f32 0.7978846, %v3641_v7  ;;  %v3642_v32 = vadd.f32 %v3610_v15, %v8082_v29 }
 0x70a   : > { %v3735_v8 = vadd.f32 1.0, %v4945_v51 }
 0x70b   : > { %v4947_v21 = vpop.eup %4946  ;;  %v3548_v56 = vmul.f32 0.044715, %v8091_v62  ;;  %4948 = vtanh.f32 %v3673_v37  ;;  %v3674_v42 = vmul.f32 0.7978846, %v3642_v32  ;;  %v3579_v9 = vmul.f32 %v3547_v20, %v3478_v45 }
 0x70c   : > { %v3767_v48 = vmul.f32 %v3735_v8, %v3511_v23  ;;  %v3736_v12 = vadd.f32 1.0, %v4947_v21  ;;  %v3515_v23 = vmul.f32 0.5, %v3478_v45 }
 0x70d   : > { %4950 = vtanh.f32 %v3674_v42  ;;  %v3611_v52 = vmul.f32 %v3579_v9, %v3478_v45  ;;  %v3580_v38 = vmul.f32 %v3548_v56, %v8091_v62 }
 0x70e   : > { %v3480_v4 = vpop.f32.mrf.mxu2  ;;  %3921 = vmatmul.f32.gmra.mxu0 %v3767_v48  ;;  %v3768_v5 = vmul.f32 %v3736_v12, %v3512_v13  ;;  %v3516_v13 = vmul.f32 0.5, %v8091_v62 }
 0x70f   : > { %v3481_v54 = vadd.f32 %v3480_v4, %v8005_v43  ;;  %v3643_v46 = vadd.f32 %v3611_v52, %v3478_v45  ;;  %v3612_v28 = vmul.f32 %v3580_v38, %v8091_v62 }
 0x710   : > { %v3418_v16 = vpop.f32.mrf.mxu1  ;;  %3859 = vmatmul.f32.gmra.mxu3 %v3768_v5 }
 0x711   : > { %v4949_v47 = vpop.eup %4948  ;;  %v3549_v40 = vmul.f32 0.044715, %v3481_v54  ;;  %v8100_v63 = vadd.f32 %v3418_v16, %v8002_v24  ;;  %v3675_v0 = vmul.f32 0.7978846, %v3643_v46  ;;  %v3644_v26 = vadd.f32 %v3612_v28, %v8091_v62 }
 0x712   : > { %v3737_v41 = vadd.f32 1.0, %v4949_v47  ;;  %v3517_v62 = vmul.f32 0.5, %v3481_v54 }
 0x713   : > { %v4951_v60 = vpop.eup %4950  ;;  %v3550_v22 = vmul.f32 0.044715, %v8100_v63  ;;  %4952 = vtanh.f32 %v3675_v0  ;;  %v3676_v25 = vmul.f32 0.7978846, %v3644_v26  ;;  %v3581_v3 = vmul.f32 %v3549_v40, %v3481_v54 }
 0x714   : > { %v3769_v6 = vmul.f32 %v3737_v41, %v3513_v17  ;;  %v3738_v34 = vadd.f32 1.0, %v4951_v60 }
 0x715   : > { %4954 = vtanh.f32 %v3676_v25  ;;  %v3613_v35 = vmul.f32 %v3581_v3, %v3481_v54  ;;  %v3582_v53 = vmul.f32 %v3550_v22, %v8100_v63 }
 0x716   : > { %v3483_v57 = vpop.f32.mrf.mxu2  ;;  %3924 = vmatmul.f32.gmra.mxu0 %v3769_v6  ;;  %v3770_v19 = vmul.f32 %v3738_v34, %v3514_v30  ;;  %v3518_v30 = vmul.f32 0.5, %v8100_v63 }
 0x717   : > { %v3484_v18 = vadd.f32 %v3483_v57, %v8005_v43  ;;  %v3645_v7 = vadd.f32 %v3613_v35, %v3481_v54  ;;  %v3614_v15 = vmul.f32 %v3582_v53, %v8100_v63 }
 0x718   : > { %v3421_v61 = vpop.f32.mrf.mxu1  ;;  %3862 = vmatmul.f32.gmra.mxu3 %v3770_v19 }
 0x719   : > { %v4953_v51 = vpop.eup %4952  ;;  %v3551_v20 = vmul.f32 0.044715, %v3484_v18  ;;  %v3422_v37 = vadd.f32 %v3421_v61, %v8002_v24  ;;  %v3677_v29 = vmul.f32 0.7978846, %v3645_v7  ;;  %v3646_v32 = vadd.f32 %v3614_v15, %v8100_v63 }
 0x71a   : > { %v3739_v8 = vadd.f32 1.0, %v4953_v51 }
 0x71b   : > { %v4955_v21 = vpop.eup %4954  ;;  %v3552_v56 = vmul.f32 0.044715, %v3422_v37  ;;  %4956 = vtanh.f32 %v3677_v29  ;;  %v3678_v42 = vmul.f32 0.7978846, %v3646_v32  ;;  %v3583_v9 = vmul.f32 %v3551_v20, %v3484_v18 }
 0x71c   : > { %v3771_v48 = vmul.f32 %v3739_v8, %v3515_v23  ;;  %v3740_v12 = vadd.f32 1.0, %v4955_v21  ;;  %v3519_v29 = vmul.f32 0.5, %v3484_v18 }
 0x71d   : > { %4958 = vtanh.f32 %v3678_v42  ;;  %v3615_v52 = vmul.f32 %v3583_v9, %v3484_v18  ;;  %v3584_v38 = vmul.f32 %v3552_v56, %v3422_v37  ;;  %v3520_v56 = vmul.f32 0.5, %v3422_v37 }
 0x71e   : > { %v3486_v4 = vpop.f32.mrf.mxu2  ;;  %3927 = vmatmul.f32.gmra.mxu0 %v3771_v48  ;;  %v3772_v5 = vmul.f32 %v3740_v12, %v3516_v13 }
 0x71f   : > { %v3487_v46 = vadd.f32 %v3486_v4, %v8005_v43  ;;  %v3647_v28 = vadd.f32 %v3615_v52, %v3484_v18  ;;  %v3616_v45 = vmul.f32 %v3584_v38, %v3422_v37 }
 0x720   : > { %v3424_v16 = vpop.f32.mrf.mxu1  ;;  %3865 = vmatmul.f32.gmra.mxu3 %v3772_v5 }
 0x721   : > { %v4957_v47 = vpop.eup %4956  ;;  %v3553_v40 = vmul.f32 0.044715, %v3487_v46  ;;  %v3425_v0 = vadd.f32 %v3424_v16, %v8002_v24  ;;  %v3679_v26 = vmul.f32 0.7978846, %v3647_v28  ;;  %v3648_v17 = vadd.f32 %v3616_v45, %v3422_v37 }
 0x722   : > { %v3741_v41 = vadd.f32 1.0, %v4957_v47  ;;  %v3521_v52 = vmul.f32 0.5, %v3487_v46 }
 0x723   : > { %v4959_v60 = vpop.eup %4958  ;;  %v3554_v22 = vmul.f32 0.044715, %v3425_v0  ;;  %4960 = vtanh.f32 %v3679_v26  ;;  %v3680_v25 = vmul.f32 0.7978846, %v3648_v17  ;;  %v3585_v3 = vmul.f32 %v3553_v40, %v3487_v46  ;;  %v8118_v26 = vld [vmem:[%s8395_s11] sm:$0xff] }
 0x724   : > { %v3773_v6 = vmul.f32 %v3741_v41, %v3517_v62  ;;  %v3742_v34 = vadd.f32 1.0, %v4959_v60  ;;  %v3522_v5 = vmul.f32 0.5, %v3425_v0 }
 0x725   : > { %4962 = vtanh.f32 %v3680_v25  ;;  %v3617_v35 = vmul.f32 %v3585_v3, %v3487_v46  ;;  %v3586_v53 = vmul.f32 %v3554_v22, %v3425_v0 }
 0x726   : > { %v3489_v57 = vpop.f32.mrf.mxu2  ;;  %3930 = vmatmul.f32.gmra.mxu0 %v3773_v6  ;;  %v3774_v19 = vmul.f32 %v3742_v34, %v3518_v30 }
 0x727   : > { %v3490_v24 = vadd.f32 %v3489_v57, %v8005_v43  ;;  %v3649_v7 = vadd.f32 %v3617_v35, %v3487_v46  ;;  %v3618_v54 = vmul.f32 %v3586_v53, %v3425_v0  ;;  %v8121_v46 = vperm.slane %v8118_v26, 3 }
 0x728   : > { %3868 = vmatmul.f32.gmra.mxu3 %v3774_v19 }
 0x729   : > { %v4961_v15 = vpop.eup %4960  ;;  %v3555_v61 = vmul.f32 0.044715, %v3490_v24  ;;  %v3681_v51 = vmul.f32 0.7978846, %v3649_v7  ;;  %v3650_v20 = vadd.f32 %v3618_v54, %v3425_v0  ;;  %v3523_v16 = vmul.f32 0.5, %v3490_v24 }
 0x72a   : > { %v3743_v32 = vadd.f32 1.0, %v4961_v15 }
 0x72b   : > { %v4963_v23 = vpop.eup %4962  ;;  %4964 = vtanh.f32 %v3681_v51  ;;  %v3682_v63 = vmul.f32 0.7978846, %v3650_v20  ;;  %v3587_v8 = vmul.f32 %v3555_v61, %v3490_v24 }
 0x72c   : > { %v3775_v21 = vmul.f32 %v3743_v32, %v3519_v29  ;;  %v3744_v42 = vadd.f32 1.0, %v4963_v23 }
 0x72d   : > { %4966 = vtanh.f32 %v3682_v63  ;;  %v3619_v9 = vmul.f32 %v3587_v8, %v3490_v24 }
 0x72e   : > { %3933 = vmatmul.f32.gmra.mxu0 %v3775_v21  ;;  %v3776_v43 = vmul.f32 %v3744_v42, %v3520_v56 }
 0x72f   : > { %v3651_v48 = vadd.f32 %v3619_v9, %v3490_v24 }
 0x730   : > { %3871 = vmatmul.f32.gmra.mxu3 %v3776_v43 }
 0x731   : > { %v4965_v13 = vpop.eup %4964  ;;  %v3683_v12 = vmul.f32 0.7978846, %v3651_v48 }
 0x732   : > { %v3745_v38 = vadd.f32 1.0, %v4965_v13 }
 0x733   : > { %v4967_v4 = vpop.eup %4966  ;;  %4968 = vtanh.f32 %v3683_v12 }
 0x734   : > { %v3777_v18 = vmul.f32 %v3745_v38, %v3521_v52  ;;  %v3746_v28 = vadd.f32 1.0, %v4967_v4 }
 0x736   : > { %3936 = vmatmul.f32.gmra.mxu0 %v3777_v18  ;;  %v3778_v45 = vmul.f32 %v3746_v28, %v3522_v5 }
 0x738   : > { %3874 = vmatmul.f32.gmra.mxu3 %v3778_v45 }
 0x739   : > { %v4969_v37 = vpop.eup %4968 }
 0x73a   : > { %v3747_v47 = vadd.f32 1.0, %v4969_v37 }
 0x73c   : > { %v3779_v40 = vmul.f32 %v3747_v47, %v3523_v16 }
 0x73e   : > { %3939 = vmatmul.f32.gmra.mxu0 %v3779_v40 }
 0x743   : > { %v3830_v17 = vpop.f32.mrf.mxu3  ;;  %v3895_v62 = vpop.f32.mrf.mxu0 }
 0x744   : > { %v3831_v0 = vadd.f32 %v3830_v17, %v8121_v46 }
 0x746   : > { %v3896_v41 = vadd.f32 %v3895_v62, %v3831_v0 }
 0x748   : > { %v8125_v60 = vadd.f32 %v3896_v41, %v7712_v58 }
 0x74a   : > { %v4024_v22 = vmul.f32 %v8125_v60, %v8125_v60  ;;  %3975 = vmatmul.f32.vlgmr.msrb.gmra.mxu1 %v8125_v60 }
 0x74b   : > { %v3833_v25 = vpop.f32.mrf.mxu3  ;;  %v3898_v3 = vpop.f32.mrf.mxu0 }
 0x74c   : > { %v3834_v6 = vadd.f32 %v3833_v25, %v8121_v46  ;;  %4056 = vmatmul.f32.vlgmr.msrb.gmra.mxu2 %v4024_v22 }
 0x74e   : > { %v3899_v30 = vadd.f32 %v3898_v3, %v3834_v6 }
 0x750   : > { %v8132_v34 = vadd.f32 %v3899_v30, %v7731_v11 }
 0x752   : > { %3978 = vmatmul.f32.gmra.mxu1 %v8132_v34  ;;  %v4025_v58 = vmul.f32 %v8132_v34, %v8132_v34 }
 0x753   : > { %v3836_v35 = vpop.f32.mrf.mxu3  ;;  %v3901_v53 = vpop.f32.mrf.mxu0 }
 0x754   : > { %v3837_v57 = vadd.f32 %v3836_v35, %v8121_v46  ;;  %4059 = vmatmul.f32.gmra.mxu2 %v4025_v58 }
 0x756   : > { %v3902_v19 = vadd.f32 %v3901_v53, %v3837_v57 }
 0x758   : > { %v8139_v24 = vadd.f32 %v3902_v19, %v7747_v39 }
 0x75a   : > { %3981 = vmatmul.f32.gmra.mxu1 %v8139_v24  ;;  %v4026_v11 = vmul.f32 %v8139_v24, %v8139_v24 }
 0x75b   : > { %v3839_v7 = vpop.f32.mrf.mxu3  ;;  %v3904_v54 = vpop.f32.mrf.mxu0 }
 0x75c   : > { %v3840_v15 = vadd.f32 %v3839_v7, %v8121_v46  ;;  %4062 = vmatmul.f32.gmra.mxu2 %v4026_v11 }
 0x75e   : > { %v3905_v61 = vadd.f32 %v3904_v54, %v3840_v15 }
 0x760   : > { %v8146_v51 = vadd.f32 %v3905_v61, %v7765_v10 }
 0x762   : > { %3984 = vmatmul.f32.gmra.mxu1 %v8146_v51  ;;  %v4027_v39 = vmul.f32 %v8146_v51, %v8146_v51 }
 0x763   : > { %v3842_v20 = vpop.f32.mrf.mxu3  ;;  %v3907_v29 = vpop.f32.mrf.mxu0 }
 0x764   : > { %v3843_v32 = vadd.f32 %v3842_v20, %v8121_v46  ;;  %4065 = vmatmul.f32.gmra.mxu2 %v4027_v39 }
 0x766   : > { %v3908_v23 = vadd.f32 %v3907_v29, %v3843_v32 }
 0x768   : > { %v8153_v63 = vadd.f32 %v3908_v23, %v7783_v55 }
 0x76a   : > { %3987 = vmatmul.f32.gmra.mxu1 %v8153_v63  ;;  %v4028_v10 = vmul.f32 %v8153_v63, %v8153_v63 }
 0x76b   : > { %v3845_v8 = vpop.f32.mrf.mxu3  ;;  %v3910_v21 = vpop.f32.mrf.mxu0 }
 0x76c   : > { %v3846_v56 = vadd.f32 %v3845_v8, %v8121_v46  ;;  %4068 = vmatmul.f32.gmra.mxu2 %v4028_v10 }
 0x76e   : > { %v3911_v42 = vadd.f32 %v3910_v21, %v3846_v56 }
 0x770   : > { %v8160_v9 = vadd.f32 %v3911_v42, %v7801_v44 }
 0x772   : > { %3990 = vmatmul.f32.gmra.mxu1 %v8160_v9  ;;  %v4029_v55 = vmul.f32 %v8160_v9, %v8160_v9 }
 0x773   : > { %v3848_v43 = vpop.f32.mrf.mxu3  ;;  %v3913_v48 = vpop.f32.mrf.mxu0 }
 0x774   : > { %v3849_v13 = vadd.f32 %v3848_v43, %v8121_v46  ;;  %4071 = vmatmul.f32.gmra.mxu2 %v4029_v55 }
 0x776   : > { %v3914_v12 = vadd.f32 %v3913_v48, %v3849_v13 }
 0x778   : > { %v8167_v52 = vadd.f32 %v3914_v12, %v7819_v50 }
 0x77a   : > { %3993 = vmatmul.f32.gmra.mxu1 %v8167_v52  ;;  %v4030_v44 = vmul.f32 %v8167_v52, %v8167_v52 }
 0x77b   : > { %v3851_v38 = vpop.f32.mrf.mxu3  ;;  %v3916_v4 = vpop.f32.mrf.mxu0 }
 0x77c   : > { %v3852_v18 = vadd.f32 %v3851_v38, %v8121_v46  ;;  %4074 = vmatmul.f32.gmra.mxu2 %v4030_v44 }
 0x77e   : > { %v3917_v5 = vadd.f32 %v3916_v4, %v3852_v18 }
 0x780   : > { %v8174_v28 = vadd.f32 %v3917_v5, %v7837_v2 }
 0x782   : > { %3996 = vmatmul.f32.gmra.mxu1 %v8174_v28  ;;  %v4031_v50 = vmul.f32 %v8174_v28, %v8174_v28 }
 0x783   : > { %v3854_v45 = vpop.f32.mrf.mxu3  ;;  %v3919_v37 = vpop.f32.mrf.mxu0 }
 0x784   : > { %v3855_v16 = vadd.f32 %v3854_v45, %v8121_v46  ;;  %4077 = vmatmul.f32.gmra.mxu2 %v4031_v50 }
 0x786   : > { %v3920_v47 = vadd.f32 %v3919_v37, %v3855_v16 }
 0x788   : > { %v8181_v40 = vadd.f32 %v3920_v47, %v7855_v14 }
 0x78a   : > { %3999 = vmatmul.f32.gmra.mxu1 %v8181_v40  ;;  %v4032_v2 = vmul.f32 %v8181_v40, %v8181_v40 }
 0x78b   : > { %v3857_v17 = vpop.f32.mrf.mxu3  ;;  %v3922_v62 = vpop.f32.mrf.mxu0 }
 0x78c   : > { %v3858_v0 = vadd.f32 %v3857_v17, %v8121_v46  ;;  %4080 = vmatmul.f32.gmra.mxu2 %v4032_v2 }
 0x78e   : > { %v3923_v41 = vadd.f32 %v3922_v62, %v3858_v0 }
 0x790   : > { %v8188_v22 = vadd.f32 %v3923_v41, %v7875_v33 }
 0x792   : > { %4002 = vmatmul.f32.gmra.mxu1 %v8188_v22  ;;  %v4033_v14 = vmul.f32 %v8188_v22, %v8188_v22 }
 0x793   : > { %v3860_v25 = vpop.f32.mrf.mxu3  ;;  %v3925_v3 = vpop.f32.mrf.mxu0 }
 0x794   : > { %v3861_v6 = vadd.f32 %v3860_v25, %v8121_v46  ;;  %4083 = vmatmul.f32.gmra.mxu2 %v4033_v14 }
 0x796   : > { %v3926_v30 = vadd.f32 %v3925_v3, %v3861_v6 }
 0x798   : > { %v8195_v58 = vadd.f32 %v3926_v30, %v7896_v1 }
 0x79a   : > { %4005 = vmatmul.f32.gmra.mxu1 %v8195_v58  ;;  %v4034_v33 = vmul.f32 %v8195_v58, %v8195_v58 }
 0x79b   : > { %v3863_v35 = vpop.f32.mrf.mxu3  ;;  %v3928_v53 = vpop.f32.mrf.mxu0 }
 0x79c   : > { %v3864_v57 = vadd.f32 %v3863_v35, %v8121_v46  ;;  %4086 = vmatmul.f32.gmra.mxu2 %v4034_v33 }
 0x79e   : > { %v3929_v19 = vadd.f32 %v3928_v53, %v3864_v57 }
 0x7a0   : > { %v8202_v11 = vadd.f32 %v3929_v19, %v7922_v49 }
 0x7a2   : > { %4008 = vmatmul.f32.gmra.mxu1 %v8202_v11  ;;  %v4035_v1 = vmul.f32 %v8202_v11, %v8202_v11 }
 0x7a3   : > { %v3866_v7 = vpop.f32.mrf.mxu3  ;;  %v3931_v54 = vpop.f32.mrf.mxu0 }
 0x7a4   : > { %v3867_v15 = vadd.f32 %v3866_v7, %v8121_v46  ;;  %4089 = vmatmul.f32.gmra.mxu2 %v4035_v1 }
 0x7a6   : > { %v3932_v61 = vadd.f32 %v3931_v54, %v3867_v15  ;;  %v8247_v54 = vperm.slane %v8118_v26, 6 }
 0x7a8   : > { %v8209_v39 = vadd.f32 %v3932_v61, %v7949_v27 }
 0x7aa   : > { %4011 = vmatmul.f32.gmra.mxu1 %v8209_v39  ;;  %v4036_v49 = vmul.f32 %v8209_v39, %v8209_v39 }
 0x7ab   : > { %v3869_v20 = vpop.f32.mrf.mxu3  ;;  %v3934_v29 = vpop.f32.mrf.mxu0 }
 0x7ac   : > { %v3870_v32 = vadd.f32 %v3869_v20, %v8121_v46  ;;  %4092 = vmatmul.f32.gmra.mxu2 %v4036_v49 }
 0x7ae   : > { %v3935_v23 = vadd.f32 %v3934_v29, %v3870_v32 }
 0x7b0   : > { %v8216_v10 = vadd.f32 %v3935_v23, %v7958_v59  ;;  %v8254_v23 = vperm.slane %v8118_v26, 7 }
 0x7b2   : > { %4014 = vmatmul.f32.gmra.mxu1 %v8216_v10  ;;  %v4037_v27 = vmul.f32 %v8216_v10, %v8216_v10 }
 0x7b3   : > { %v3872_v8 = vpop.f32.mrf.mxu3  ;;  %v3937_v21 = vpop.f32.mrf.mxu0 }
 0x7b4   : > { %v3873_v56 = vadd.f32 %v3872_v8, %v8121_v46  ;;  %4095 = vmatmul.f32.gmra.mxu2 %v4037_v27 }
 0x7b6   : > { %v3938_v42 = vadd.f32 %v3937_v21, %v3873_v56 }
 0x7b8   : > { %v8223_v55 = vadd.f32 %v3938_v42, %v7972_v36 }
 0x7ba   : > { %4017 = vmatmul.f32.gmra.mxu1 %v8223_v55  ;;  %v4038_v59 = vmul.f32 %v8223_v55, %v8223_v55 }
 0x7bb   : > { %v3875_v43 = vpop.f32.mrf.mxu3  ;;  %v3940_v13 = vpop.f32.mrf.mxu0 }
 0x7bc   : > { %v3876_v48 = vadd.f32 %v3875_v43, %v8121_v46  ;;  %4098 = vmatmul.f32.gmra.mxu2 %v4038_v59 }
 0x7be   : > { %v3941_v12 = vadd.f32 %v3940_v13, %v3876_v48 }
 0x7c0   : > { %v8230_v44 = vadd.f32 %v3941_v12, %v7992_v31 }
 0x7c2   : > { %4020 = vmatmul.f32.gmra.mxu1 %v8230_v44  ;;  %v4039_v36 = vmul.f32 %v8230_v44, %v8230_v44 }
 0x7c4   : > { %4101 = vmatmul.f32.gmra.mxu2 %v4039_v36 }
 0x7c7   : > { %v3976_v38 = vpop.f32.mrf.mxu1 }
 0x7c8   : > { %v4105_v4 = vmul.f32 %v3976_v38, %v3976_v38  ;;  %v4153_v7 = vsub.f32 %v8125_v60, %v3976_v38 }
 0x7cf   : > { %v8235_v18 = vpop.f32.mrf.mxu1  ;;  %v4057_v5 = vpop.f32.mrf.mxu2 }
 0x7d0   : > { %v4121_v50 = vsub.f32 %v4057_v5, %v4105_v4  ;;  %v4106_v37 = vmul.f32 %v8235_v18, %v8235_v18  ;;  %v4154_v13 = vsub.f32 %v8132_v34, %v8235_v18 }
 0x7d2   : > { %v4137_v45 = vmax.f32 %v4121_v50, 0.0 }
 0x7d4   : > { %v4169_v46 = vadd.f32 1e-05, %v4137_v45 }
 0x7d6   : > { %4970 = vrsqrt.f32 %v4169_v46  ;;  %vm4191_vm1 = vweird.f32 %v4169_v46 }
 0x7d7   : > { %v8239_v31 = vpop.f32.mrf.mxu1  ;;  %v4060_v16 = vpop.f32.mrf.mxu2 }
 0x7d8   : > { %v4122_v47 = vsub.f32 %v4060_v16, %v4106_v37  ;;  %v4107_v41 = vmul.f32 %v8239_v31, %v8239_v31 }
 0x7da   : > { %v4138_v2 = vmax.f32 %v4122_v47, 0.0 }
 0x7dc   : > { %v4971_v17 = vpop.eup %4970  ;;  %v4170_v62 = vadd.f32 1e-05, %v4138_v2 }
 0x7dd   : > { %v4186_v0 = vmul.f32 %v4971_v17, %v4169_v46  ;;  %vm4192_vm0 = vweird.f32 %v4971_v17 }
 0x7de   : > { %4972 = vrsqrt.f32 %v4170_v62  ;;  %vm4193_vm2 = vmor %vm4191_vm1, %vm4192_vm0  ;;  %vm4201_vm4 = vweird.f32 %v4170_v62 }
 0x7df   : > { %v4187_v14 = vmul.f32 %v4971_v17, %v4186_v0  ;;  %v8243_v25 = vpop.f32.mrf.mxu1  ;;  %v4063_v3 = vpop.f32.mrf.mxu2  ;;  %v4155_v0 = vsub.f32 %v8139_v24, %v8239_v31 }
 0x7e0   : > { %v4123_v6 = vsub.f32 %v4063_v3, %v4107_v41  ;;  %v4108_v15 = vmul.f32 %v8243_v25, %v8243_v25 }
 0x7e1   : > { %v4188_v30 = vmul.f32 0.5, %v4187_v14 }
 0x7e2   : > { %v4139_v33 = vmax.f32 %v4123_v6, 0.0 }
 0x7e3   : > { %v4189_v35 = vsub.f32 1.5, %v4188_v30 }
 0x7e4   : > { %v4973_v53 = vpop.eup %4972  ;;  %v4171_v57 = vadd.f32 1e-05, %v4139_v33 }
 0x7e5   : > { %v4190_v19 = vmul.f32 %v4971_v17, %v4189_v35  ;;  %v4196_v1 = vmul.f32 %v4973_v53, %v4170_v62  ;;  %vm4202_vm3 = vweird.f32 %v4973_v53 }
 0x7e6   : > { %4974 = vrsqrt.f32 %v4171_v57  ;;  %vm4203_vm5 = vmor %vm4201_vm4, %vm4202_vm3  ;;  %vm4211_vm7 = vweird.f32 %v4171_v57 }
 0x7e7   : > { %v4194_v61 = vsel %vm4193_vm2, %v4971_v17, %v4190_v19  ;;  %v4197_v49 = vmul.f32 %v4973_v53, %v4196_v1  ;;  %v8251_v20 = vpop.f32.mrf.mxu1  ;;  %v4066_v29 = vpop.f32.mrf.mxu2 }
 0x7e8   : > { %v4345_v32 = vmul.f32 %v4194_v61, %v4153_v7  ;;  %v4124_v27 = vsub.f32 %v4066_v29, %v4108_v15  ;;  %v4109_v12 = vmul.f32 %v8251_v20, %v8251_v20 }
 0x7e9   : > { %v4198_v8 = vmul.f32 0.5, %v4197_v49  ;;  %v4156_v49 = vsub.f32 %v8146_v51, %v8243_v25 }
 0x7ea   : > { %v4362_v60 = vmul.f32 %v8247_v54, %v4345_v32  ;;  %v4140_v21 = vmax.f32 %v4124_v27, 0.0 }
 0x7eb   : > { %v4199_v56 = vsub.f32 1.5, %v4198_v8 }
 0x7ec   : > { %v4975_v42 = vpop.eup %4974  ;;  %v4379_v59 = vadd.f32 %v8254_v23, %v4362_v60  ;;  %v4172_v43 = vadd.f32 1e-05, %v4140_v21 }
 0x7ed   : > { %v4200_v48 = vmul.f32 %v4973_v53, %v4199_v56  ;;  %v4206_v26 = vmul.f32 %v4975_v42, %v4171_v57  ;;  %vm4212_vm6 = vweird.f32 %v4975_v42 }
 0x7ee   : > { %4395 = vst [vmem:[%s8261_s20] sm:$0xff] %v4379_v59  ;;  %4976 = vrsqrt.f32 %v4172_v43  ;;  %vm4213_vm8 = vmor %vm4211_vm7, %vm4212_vm6  ;;  %vm4221_vm10 = vweird.f32 %v4172_v43 }
 0x7ef   : > { %v4204_v36 = vsel %vm4203_vm5, %v4973_v53, %v4200_v48  ;;  %v4207_v38 = vmul.f32 %v4975_v42, %v4206_v26  ;;  %v8269_v4 = vpop.f32.mrf.mxu1  ;;  %v4069_v5 = vpop.f32.mrf.mxu2 }
 0x7f0   : > { %v4346_v50 = vmul.f32 %v4204_v36, %v4154_v13  ;;  %v4125_v45 = vsub.f32 %v4069_v5, %v4109_v12  ;;  %v4110_v41 = vmul.f32 %v8269_v4, %v8269_v4  ;;  %v4157_v36 = vsub.f32 %v8153_v63, %v8251_v20 }
 0x7f1   : > { %v4208_v46 = vmul.f32 0.5, %v4207_v38 }
 0x7f2   : > { %v4363_v37 = vmul.f32 %v8247_v54, %v4346_v50  ;;  %v4141_v16 = vmax.f32 %v4125_v45, 0.0 }
 0x7f3   : > { %v4209_v47 = vsub.f32 1.5, %v4208_v46 }
 0x7f4   : > { %v4977_v34 = vpop.eup %4976  ;;  %v4380_v18 = vadd.f32 %v8254_v23, %v4363_v37  ;;  %v4173_v2 = vadd.f32 1e-05, %v4141_v16 }
 0x7f5   : > { %v4210_v17 = vmul.f32 %v4975_v42, %v4209_v47  ;;  %v4216_v62 = vmul.f32 %v4977_v34, %v4172_v43  ;;  %vm4222_vm9 = vweird.f32 %v4977_v34 }
 0x7f6   : > { %4396 = vst [vmem:[%s8261_s20 + $0x8] sm:$0xff] %v4380_v18  ;;  %4978 = vrsqrt.f32 %v4173_v2  ;;  %vm4223_vm11 = vmor %vm4221_vm10, %vm4222_vm9  ;;  %vm4231_vm13 = vweird.f32 %v4173_v2 }
 0x7f7   : > { %v4214_v14 = vsel %vm4213_vm8, %v4975_v42, %v4210_v17  ;;  %v4217_v3 = vmul.f32 %v4977_v34, %v4216_v62  ;;  %v8278_v6 = vpop.f32.mrf.mxu1  ;;  %v4072_v30 = vpop.f32.mrf.mxu2 }
 0x7f8   : > { %v4347_v33 = vmul.f32 %v4214_v14, %v4155_v0  ;;  %v4126_v35 = vsub.f32 %v4072_v30, %v4110_v41  ;;  %v4111_v29 = vmul.f32 %v8278_v6, %v8278_v6  ;;  %v4158_v41 = vsub.f32 %v8160_v9, %v8269_v4 }
 0x7f9   : > { %v4218_v53 = vmul.f32 0.5, %v4217_v3 }
 0x7fa   : > { %v4364_v57 = vmul.f32 %v8247_v54, %v4347_v33  ;;  %v4142_v19 = vmax.f32 %v4126_v35, 0.0 }
 0x7fb   : > { %v4219_v1 = vsub.f32 1.5, %v4218_v53 }
 0x7fc   : > { %v4979_v24 = vpop.eup %4978  ;;  %v4381_v31 = vadd.f32 %v8254_v23, %v4364_v57  ;;  %v4174_v7 = vadd.f32 1e-05, %v4142_v19 }
 0x7fd   : > { %v4220_v15 = vmul.f32 %v4977_v34, %v4219_v1  ;;  %v4226_v61 = vmul.f32 %v4979_v24, %v4173_v2  ;;  %vm4232_vm12 = vweird.f32 %v4979_v24 }
 0x7fe   : > { %4397 = vst [vmem:[%s8261_s20 + $0x10] sm:$0xff] %v4381_v31  ;;  %4980 = vrsqrt.f32 %v4174_v7  ;;  %vm4233_vm14 = vmor %vm4231_vm13, %vm4232_vm12  ;;  %vm4241_vm0 = vweird.f32 %v4174_v7 }
 0x7ff   : > { %v4224_v32 = vsel %vm4223_vm11, %v4977_v34, %v4220_v15  ;;  %v4227_v27 = vmul.f32 %v4979_v24, %v4226_v61  ;;  %v8287_v8 = vpop.f32.mrf.mxu1  ;;  %v4075_v60 = vpop.f32.mrf.mxu2 }
 0x800   : > { %v4348_v21 = vmul.f32 %v4224_v32, %v4156_v49  ;;  %v4127_v56 = vsub.f32 %v4075_v60, %v4111_v29  ;;  %v4112_v38 = vmul.f32 %v8287_v8, %v8287_v8  ;;  %v4159_v49 = vsub.f32 %v8167_v52, %v8278_v6 }
 0x801   : > { %v4228_v42 = vmul.f32 0.5, %v4227_v27 }
 0x802   : > { %v4365_v59 = vmul.f32 %v8247_v54, %v4348_v21  ;;  %v4143_v43 = vmax.f32 %v4127_v56, 0.0 }
 0x803   : > { %v4229_v48 = vsub.f32 1.5, %v4228_v42 }
 0x804   : > { %v4981_v51 = vpop.eup %4980  ;;  %v4382_v25 = vadd.f32 %v8254_v23, %v4365_v59  ;;  %v4175_v26 = vadd.f32 1e-05, %v4143_v43 }
 0x805   : > { %v4230_v13 = vmul.f32 %v4979_v24, %v4229_v48  ;;  %v4236_v12 = vmul.f32 %v4981_v51, %v4174_v7  ;;  %vm4242_vm15 = vweird.f32 %v4981_v51 }
 0x806   : > { %4398 = vst [vmem:[%s8261_s20 + $0x18] sm:$0xff] %v4382_v25  ;;  %4982 = vrsqrt.f32 %v4175_v26  ;;  %vm4243_vm1 = vmor %vm4241_vm0, %vm4242_vm15  ;;  %vm4251_vm3 = vweird.f32 %v4175_v26 }
 0x807   : > { %v4234_v5 = vsel %vm4233_vm14, %v4979_v24, %v4230_v13  ;;  %v4237_v50 = vmul.f32 %v4981_v51, %v4236_v12  ;;  %v8296_v45 = vpop.f32.mrf.mxu1  ;;  %v4078_v46 = vpop.f32.mrf.mxu2  ;;  %v4160_v12 = vsub.f32 %v8174_v28, %v8287_v8 }
 0x808   : > { %v4349_v37 = vmul.f32 %v4234_v5, %v4157_v36  ;;  %v4128_v16 = vsub.f32 %v4078_v46, %v4112_v38  ;;  %v4113_v14 = vmul.f32 %v8296_v45, %v8296_v45 }
 0x809   : > { %v4238_v47 = vmul.f32 0.5, %v4237_v50 }
 0x80a   : > { %v4366_v34 = vmul.f32 %v8247_v54, %v4349_v37  ;;  %v4144_v18 = vmax.f32 %v4128_v16, 0.0 }
 0x80b   : > { %v4239_v2 = vsub.f32 1.5, %v4238_v47 }
 0x80c   : > { %v4983_v63 = vpop.eup %4982  ;;  %v4383_v20 = vadd.f32 %v8254_v23, %v4366_v34  ;;  %v4176_v17 = vadd.f32 1e-05, %v4144_v18 }
 0x80d   : > { %v4240_v62 = vmul.f32 %v4981_v51, %v4239_v2  ;;  %v4246_v0 = vmul.f32 %v4983_v63, %v4175_v26  ;;  %vm4252_vm2 = vweird.f32 %v4983_v63 }
 0x80e   : > { %4399 = vst [vmem:[%s8261_s20 + $0x20] sm:$0xff] %v4383_v20  ;;  %4984 = vrsqrt.f32 %v4176_v17  ;;  %vm4253_vm4 = vmor %vm4251_vm3, %vm4252_vm2  ;;  %vm4261_vm6 = vweird.f32 %v4176_v17 }
 0x80f   : > { %v4244_v3 = vsel %vm4243_vm1, %v4981_v51, %v4240_v62  ;;  %v4247_v30 = vmul.f32 %v4983_v63, %v4246_v0  ;;  %v8305_v33 = vpop.f32.mrf.mxu1  ;;  %v4081_v35 = vpop.f32.mrf.mxu2  ;;  %v4161_v62 = vsub.f32 %v8181_v40, %v8296_v45 }
 0x810   : > { %v4350_v53 = vmul.f32 %v4244_v3, %v4158_v41  ;;  %v4129_v57 = vsub.f32 %v4081_v35, %v4113_v14  ;;  %v4114_v29 = vmul.f32 %v8305_v33, %v8305_v33 }
 0x811   : > { %v4248_v19 = vmul.f32 0.5, %v4247_v30 }
 0x812   : > { %v4367_v1 = vmul.f32 %v8247_v54, %v4350_v53  ;;  %v4145_v24 = vmax.f32 %v4129_v57, 0.0 }
 0x813   : > { %v4249_v31 = vsub.f32 1.5, %v4248_v19 }
 0x814   : > { %v4985_v9 = vpop.eup %4984  ;;  %v4384_v4 = vadd.f32 %v8254_v23, %v4367_v1  ;;  %v4177_v7 = vadd.f32 1e-05, %v4145_v24 }
 0x815   : > { %v4250_v15 = vmul.f32 %v4983_v63, %v4249_v31  ;;  %v4256_v61 = vmul.f32 %v4985_v9, %v4176_v17  ;;  %vm4262_vm5 = vweird.f32 %v4985_v9 }
 0x816   : > { %4400 = vst [vmem:[%s8261_s20 + $0x28] sm:$0xff] %v4384_v4  ;;  %4986 = vrsqrt.f32 %v4177_v7  ;;  %vm4263_vm7 = vmor %vm4261_vm6, %vm4262_vm5  ;;  %vm4271_vm9 = vweird.f32 %v4177_v7 }
 0x817   : > { %v4254_v32 = vsel %vm4253_vm4, %v4983_v63, %v4250_v15  ;;  %v4257_v27 = vmul.f32 %v4985_v9, %v4256_v61  ;;  %v8314_v60 = vpop.f32.mrf.mxu1  ;;  %v4084_v21 = vpop.f32.mrf.mxu2 }
 0x818   : > { %v4351_v56 = vmul.f32 %v4254_v32, %v4159_v49  ;;  %v4130_v42 = vsub.f32 %v4084_v21, %v4114_v29  ;;  %v4115_v36 = vmul.f32 %v8314_v60, %v8314_v60 }
 0x819   : > { %v4258_v59 = vmul.f32 0.5, %v4257_v27 }
 0x81a   : > { %v4368_v43 = vmul.f32 %v8247_v54, %v4351_v56  ;;  %v4146_v48 = vmax.f32 %v4130_v42, 0.0 }
 0x81b   : > { %v4259_v51 = vsub.f32 1.5, %v4258_v59 }
 0x81c   : > { %v4987_v52 = vpop.eup %4986  ;;  %v4385_v6 = vadd.f32 %v8254_v23, %v4368_v43  ;;  %v4178_v25 = vadd.f32 1e-05, %v4146_v48 }
 0x81d   : > { %v4260_v26 = vmul.f32 %v4985_v9, %v4259_v51  ;;  %v4266_v13 = vmul.f32 %v4987_v52, %v4177_v7  ;;  %vm4272_vm8 = vweird.f32 %v4987_v52  ;;  %v4162_v7 = vsub.f32 %v8188_v22, %v8305_v33 }
 0x81e   : > { %4401 = vst [vmem:[%s8261_s20 + $0x30] sm:$0xff] %v4385_v6  ;;  %4988 = vrsqrt.f32 %v4178_v25  ;;  %vm4273_vm10 = vmor %vm4271_vm9, %vm4272_vm8  ;;  %vm4281_vm12 = vweird.f32 %v4178_v25  ;;  %v4163_v6 = vsub.f32 %v8195_v58, %v8314_v60 }
 0x81f   : > { %v4264_v38 = vsel %vm4263_vm7, %v4985_v9, %v4260_v26  ;;  %v4267_v5 = vmul.f32 %v4987_v52, %v4266_v13  ;;  %v8323_v50 = vpop.f32.mrf.mxu1  ;;  %v4087_v46 = vpop.f32.mrf.mxu2 }
 0x820   : > { %v4352_v37 = vmul.f32 %v4264_v38, %v4160_v12  ;;  %v4131_v16 = vsub.f32 %v4087_v46, %v4115_v36  ;;  %v4116_v0 = vmul.f32 %v8323_v50, %v8323_v50 }
 0x821   : > { %v4268_v47 = vmul.f32 0.5, %v4267_v5 }
 0x822   : > { %v4369_v34 = vmul.f32 %v8247_v54, %v4352_v37  ;;  %v4147_v18 = vmax.f32 %v4131_v16, 0.0 }
 0x823   : > { %v4269_v2 = vsub.f32 1.5, %v4268_v47 }
 0x824   : > { %v4989_v28 = vpop.eup %4988  ;;  %v4386_v8 = vadd.f32 %v8254_v23, %v4369_v34  ;;  %v4179_v63 = vadd.f32 1e-05, %v4147_v18 }
 0x825   : > { %v4270_v20 = vmul.f32 %v4987_v52, %v4269_v2  ;;  %v4276_v17 = vmul.f32 %v4989_v28, %v4178_v25  ;;  %vm4282_vm11 = vweird.f32 %v4989_v28 }
 0x826   : > { %4402 = vst [vmem:[%s8261_s20 + $0x38] sm:$0xff] %v4386_v8  ;;  %4990 = vrsqrt.f32 %v4179_v63  ;;  %vm4283_vm13 = vmor %vm4281_vm12, %vm4282_vm11  ;;  %vm4291_vm15 = vweird.f32 %v4179_v63 }
 0x827   : > { %v4274_v41 = vsel %vm4273_vm10, %v4987_v52, %v4270_v20  ;;  %v4277_v14 = vmul.f32 %v4989_v28, %v4276_v17  ;;  %v8332_v3 = vpop.f32.mrf.mxu1  ;;  %v4090_v30 = vpop.f32.mrf.mxu2 }
 0x828   : > { %v4353_v35 = vmul.f32 %v4274_v41, %v4161_v62  ;;  %v4132_v53 = vsub.f32 %v4090_v30, %v4116_v0  ;;  %v4117_v15 = vmul.f32 %v8332_v3, %v8332_v3 }
 0x829   : > { %v4278_v57 = vmul.f32 0.5, %v4277_v14 }
 0x82a   : > { %v4370_v19 = vmul.f32 %v8247_v54, %v4353_v35  ;;  %v4148_v1 = vmax.f32 %v4132_v53, 0.0 }
 0x82b   : > { %v4279_v24 = vsub.f32 1.5, %v4278_v57 }
 0x82c   : > { %v4991_v40 = vpop.eup %4990  ;;  %v4387_v45 = vadd.f32 %v8254_v23, %v4370_v19  ;;  %v4180_v31 = vadd.f32 1e-05, %v4148_v1 }
 0x82d   : > { %v4280_v9 = vmul.f32 %v4989_v28, %v4279_v24  ;;  %v4286_v4 = vmul.f32 %v4991_v40, %v4179_v63  ;;  %vm4292_vm14 = vweird.f32 %v4991_v40  ;;  %v4165_v24 = vsub.f32 %v8209_v39, %v8332_v3 }
 0x82e   : > { %4403 = vst [vmem:[%s8261_s20 + $0x40] sm:$0xff] %v4387_v45  ;;  %4992 = vrsqrt.f32 %v4180_v31  ;;  %vm4293_vm0 = vmor %vm4291_vm15, %vm4292_vm14  ;;  %vm4301_vm2 = vweird.f32 %v4180_v31 }
 0x82f   : > { %v4284_v61 = vsel %vm4283_vm13, %v4989_v28, %v4280_v9  ;;  %v4287_v49 = vmul.f32 %v4991_v40, %v4286_v4  ;;  %v8341_v29 = vpop.f32.mrf.mxu1  ;;  %v4093_v32 = vpop.f32.mrf.mxu2  ;;  %v4164_v28 = vsub.f32 %v8202_v11, %v8323_v50 }
 0x830   : > { %v4354_v27 = vmul.f32 %v4284_v61, %v4162_v7  ;;  %v4133_v21 = vsub.f32 %v4093_v32, %v4117_v15  ;;  %v4118_v25 = vmul.f32 %v8341_v29, %v8341_v29 }
 0x831   : > { %v4288_v56 = vmul.f32 0.5, %v4287_v49 }
 0x832   : > { %v4371_v42 = vmul.f32 %v8247_v54, %v4354_v27  ;;  %v4149_v59 = vmax.f32 %v4133_v21, 0.0 }
 0x833   : > { %v4289_v43 = vsub.f32 1.5, %v4288_v56 }
 0x834   : > { %v4993_v22 = vpop.eup %4992  ;;  %v4388_v33 = vadd.f32 %v8254_v23, %v4371_v42  ;;  %v4181_v48 = vadd.f32 1e-05, %v4149_v59  ;;  %v4166_v42 = vsub.f32 %v8216_v10, %v8341_v29 }
 0x835   : > { %v4290_v51 = vmul.f32 %v4991_v40, %v4289_v43  ;;  %v4296_v52 = vmul.f32 %v4993_v22, %v4180_v31  ;;  %vm4302_vm1 = vweird.f32 %v4993_v22 }
 0x836   : > { %4404 = vst [vmem:[%s8261_s20 + $0x48] sm:$0xff] %v4388_v33  ;;  %4994 = vrsqrt.f32 %v4181_v48  ;;  %vm4303_vm3 = vmor %vm4301_vm2, %vm4302_vm1  ;;  %vm4311_vm5 = vweird.f32 %v4181_v48 }
 0x837   : > { %v4294_v26 = vsel %vm4293_vm0, %v4991_v40, %v4290_v51  ;;  %v4297_v13 = vmul.f32 %v4993_v22, %v4296_v52  ;;  %v4096_v12 = vpop.f32.mrf.mxu2  ;;  %v8350_v46 = vpop.f32.mrf.mxu1 }
 0x838   : > { %v4355_v36 = vmul.f32 %v4294_v26, %v4163_v6  ;;  %v4134_v38 = vsub.f32 %v4096_v12, %v4118_v25  ;;  %v4119_v8 = vmul.f32 %v8350_v46, %v8350_v46  ;;  %v4167_v10 = vsub.f32 %v8223_v55, %v8350_v46 }
 0x839   : > { %v4298_v5 = vmul.f32 0.5, %v4297_v13 }
 0x83a   : > { %v4372_v37 = vmul.f32 %v8247_v54, %v4355_v36  ;;  %v4150_v16 = vmax.f32 %v4134_v38, 0.0 }
 0x83b   : > { %v4299_v47 = vsub.f32 1.5, %v4298_v5 }
 0x83c   : > { %v4995_v58 = vpop.eup %4994  ;;  %v4389_v60 = vadd.f32 %v8254_v23, %v4372_v37  ;;  %v4182_v34 = vadd.f32 1e-05, %v4150_v16 }
 0x83d   : > { %v4300_v18 = vmul.f32 %v4993_v22, %v4299_v47  ;;  %v4306_v2 = vmul.f32 %v4995_v58, %v4181_v48  ;;  %vm4312_vm4 = vweird.f32 %v4995_v58 }
 0x83e   : > { %4405 = vst [vmem:[%s8261_s20 + $0x50] sm:$0xff] %v4389_v60  ;;  %4996 = vrsqrt.f32 %v4182_v34  ;;  %vm4313_vm6 = vmor %vm4311_vm5, %vm4312_vm4  ;;  %vm4321_vm8 = vweird.f32 %v4182_v34 }
 0x83f   : > { %v4304_v63 = vsel %vm4303_vm3, %v4993_v22, %v4300_v18  ;;  %v4307_v20 = vmul.f32 %v4995_v58, %v4306_v2  ;;  %v4099_v17 = vpop.f32.mrf.mxu2  ;;  %v4021_v53 = vpop.f32.mrf.mxu1 }
 0x840   : > { %v4356_v62 = vmul.f32 %v4304_v63, %v4164_v28  ;;  %v4135_v0 = vsub.f32 %v4099_v17, %v4119_v8  ;;  %v4120_v40 = vmul.f32 %v4021_v53, %v4021_v53  ;;  %v4168_v47 = vsub.f32 %v8230_v44, %v4021_v53 }
 0x841   : > { %v4308_v41 = vmul.f32 0.5, %v4307_v20 }
 0x842   : > { %v4373_v14 = vmul.f32 %v8247_v54, %v4356_v62  ;;  %v4151_v30 = vmax.f32 %v4135_v0, 0.0 }
 0x843   : > { %v4309_v35 = vsub.f32 1.5, %v4308_v41 }
 0x844   : > { %v4997_v11 = vpop.eup %4996  ;;  %v4390_v50 = vadd.f32 %v8254_v23, %v4373_v14  ;;  %v4183_v57 = vadd.f32 1e-05, %v4151_v30 }
 0x845   : > { %v4310_v19 = vmul.f32 %v4995_v58, %v4309_v35  ;;  %v4316_v1 = vmul.f32 %v4997_v11, %v4182_v34  ;;  %vm4322_vm7 = vweird.f32 %v4997_v11 }
 0x846   : > { %4406 = vst [vmem:[%s8261_s20 + $0x58] sm:$0xff] %v4390_v50  ;;  %4998 = vrsqrt.f32 %v4183_v57  ;;  %vm4323_vm9 = vmor %vm4321_vm8, %vm4322_vm7  ;;  %vm4331_vm11 = vweird.f32 %v4183_v57 }
 0x847   : > { %v4314_v45 = vsel %vm4313_vm6, %v4995_v58, %v4310_v19  ;;  %v4317_v31 = vmul.f32 %v4997_v11, %v4316_v1  ;;  %v4102_v9 = vpop.f32.mrf.mxu2 }
 0x848   : > { %v4357_v4 = vmul.f32 %v4314_v45, %v4165_v24  ;;  %v4136_v7 = vsub.f32 %v4102_v9, %v4120_v40 }
 0x849   : > { %v4318_v15 = vmul.f32 0.5, %v4317_v31 }
 0x84a   : > { %v4374_v61 = vmul.f32 %v8247_v54, %v4357_v4  ;;  %v4152_v49 = vmax.f32 %v4136_v7, 0.0 }
 0x84b   : > { %v4319_v32 = vsub.f32 1.5, %v4318_v15 }
 0x84c   : > { %v4999_v27 = vpop.eup %4998  ;;  %v4391_v21 = vadd.f32 %v8254_v23, %v4374_v61  ;;  %v4184_v39 = vadd.f32 1e-05, %v4152_v49 }
 0x84d   : > { %v4320_v3 = vmul.f32 %v4997_v11, %v4319_v32  ;;  %v4326_v56 = vmul.f32 %v4999_v27, %v4183_v57  ;;  %vm4332_vm10 = vweird.f32 %v4999_v27 }
 0x84e   : > { %4407 = vst [vmem:[%s8261_s20 + $0x60] sm:$0xff] %v4391_v21  ;;  %5000 = vrsqrt.f32 %v4184_v39  ;;  %vm4333_vm12 = vmor %vm4331_vm11, %vm4332_vm10  ;;  %vm4341_vm14 = vweird.f32 %v4184_v39 }
 0x84f   : > { %v4324_v59 = vsel %vm4323_vm9, %v4997_v11, %v4320_v3  ;;  %v4327_v43 = vmul.f32 %v4999_v27, %v4326_v56 }
 0x850   : > { %v4358_v22 = vmul.f32 %v4324_v59, %v4166_v42 }
 0x851   : > { %v4328_v33 = vmul.f32 0.5, %v4327_v43 }
 0x852   : > { %v4375_v48 = vmul.f32 %v8247_v54, %v4358_v22 }
 0x853   : > { %v4329_v51 = vsub.f32 1.5, %v4328_v33 }
 0x854   : > { %v5001_v52 = vpop.eup %5000  ;;  %v4392_v6 = vadd.f32 %v8254_v23, %v4375_v48 }
 0x855   : > { %v4330_v25 = vmul.f32 %v4999_v27, %v4329_v51  ;;  %v4336_v26 = vmul.f32 %v5001_v52, %v4184_v39  ;;  %vm4342_vm13 = vweird.f32 %v5001_v52 }
 0x856   : > { %4408 = vst [vmem:[%s8261_s20 + $0x68] sm:$0xff] %v4392_v6  ;;  %vm4343_vm15 = vmor %vm4341_vm14, %vm4342_vm13 }
 0x857   : > { %v4334_v29 = vsel %vm4333_vm12, %v4999_v27, %v4330_v25  ;;  %v4337_v13 = vmul.f32 %v5001_v52, %v4336_v26 }
 0x858   : > { %v4359_v12 = vmul.f32 %v4334_v29, %v4167_v10 }
 0x859   : > { %v4338_v36 = vmul.f32 0.5, %v4337_v13 }
 0x85a   : > { %v4376_v38 = vmul.f32 %v8247_v54, %v4359_v12 }
 0x85b   : > { %v4339_v5 = vsub.f32 1.5, %v4338_v36 }
 0x85c   : > { %v4393_v37 = vadd.f32 %v8254_v23, %v4376_v38 }
 0x85d   : > { %v4340_v16 = vmul.f32 %v5001_v52, %v4339_v5 }
 0x85e   : > { %4409 = vst [vmem:[%s8261_s20 + $0x70] sm:$0xff] %v4393_v37 }
 0x85f   : > { %v4344_v55 = vsel %vm4343_vm15, %v5001_v52, %v4340_v16 }
 0x860   : > { %v4360_v46 = vmul.f32 %v4344_v55, %v4168_v47 }
 0x862   : > { %v4377_v58 = vmul.f32 %v8247_v54, %v4360_v46 }
 0x864   : > { %v4394_v60 = vadd.f32 %v8254_v23, %v4377_v58 }
 0x866   : > { %4410 = vst [vmem:[%s8261_s20 + $0x78] sm:$0xff] %v4394_v60 }
 0x867 PF: > { %s25_s29 = sadd.s32 1, %s5017_s29  }
 0x868   : > { %p22_p4 = scmp.ge.s32.totalorder %s25_s29, 4  }
 0x86a   :  { %24 = sbr.rel (!%p22_p4) target bundleno = 1 (0x1), region = 117 }

</bundles_post_ra>
